<compile_context>
chip_gen: v5e
topology: v5e:2x2
jax: 0.10.0
libtpu: 0.0.40
codegen_flags: <defaults>
</compile_context>

<pallas_src>
import jax
import jax.numpy as jnp
from jax.experimental import pallas as pl
from jax.experimental.pallas import tpu as pltpu

# ---- "argparse" constants (the original script reads these from CLI) --------
ACT_BIT_WIDTH = 4       # args.qrelu
Q_BIT_WIDTH = 4         # args.qweight
Q_DATA_WIDTH = 8        # args.qdata

# ---- small, forward-consistent sizes (original: 32/64/128, 224-ish images) --
CNN1, CNN2, CNN3 = 8, 16, 32
H_IN = W_IN = 16
# spatial flow: 16 -> pool -> 8 -> pool -> 4 -> pool(pad=1) -> 3
FULLY1 = CNN3 * 3 * 3   # 288
FULLY2 = 32
FULLY3 = 16

RESULT_HIGH = 0.9
RESULT_LOW = 1.0 - RESULT_HIGH

ACT_QMAX4 = float(2 ** ACT_BIT_WIDTH - 1)   # QuantReLU(bit_width=4)
ACT_QMAX8 = float(2 ** 8 - 1)               # layer3 QuantReLU() default 8 bit

# Per-layer geometry: zero-padded "same"-conv frames, flattened row-major,
# plus a (Wp+1)-row margin so every 3x3 tap is a contiguous in-bounds slice.
H1, H2, H3 = 16, 8, 4
WP1, WP2, WP3 = H1 + 2, H2 + 2, H3 + 2                   # 18, 10, 6
NPAD1, NPAD2, NPAD3 = WP1 * WP1, WP2 * WP2, WP3 * WP3    # 324, 100, 36
M01, M02, M03 = WP1 + 1, WP2 + 1, WP3 + 1                # margins
S1_ROWS = NPAD1 + 2 * M01                                # 362
S2_ROWS = NPAD2 + 2 * M02                                # 122
S3_ROWS = NPAD3 + 2 * M03                                # 50

VMEM_SPEC = pl.BlockSpec(memory_space=pltpu.MemorySpace.VMEM)


# ---------------------------------------------------------------------------
# glue: deterministic fake quantization (parameter / input preprocessing)
# ---------------------------------------------------------------------------
def fake_quant_symmetric(w, bits, axis=None):
    qmax = 2.0 ** (bits - 1) - 1.0
    scale = jnp.max(jnp.abs(w), axis=axis, keepdims=axis is not None) / qmax
    scale = jnp.where(scale <= 0.0, 1.0, scale)
    return jnp.round(w / scale) * scale


def _interior_mask(h):
    """1.0 at real conv-output positions of the padded frame, 0.0 elsewhere."""
    m = jnp.pad(jnp.ones((h, h), jnp.float32), ((1, 1), (1, 1)))
    return m.reshape((h + 2) * (h + 2), 1)


# ---------------------------------------------------------------------------
# in-kernel building blocks (traced inside the fused kernel)
# ---------------------------------------------------------------------------
def _relu_quant(acc, bias_row, mask, act_qmax):
    """QuantReLU: bias + ReLU + border mask + unsigned max-abs fake quant."""
    act = jnp.maximum(acc + bias_row, 0.0) * mask
    amax = jnp.max(act, axis=(0, 1), keepdims=True)
    scale = jnp.maximum(amax, 1e-12) * (1.0 / act_qmax)
    inv_scale = 1.0 / scale          # exact (tiny (1,1) divide), not approx
    return jnp.round(act * inv_scale) * scale


def _conv_layer(src_ref, patch_ref, out_ref, w_ref, b_ref, mask_ref,
                wp, npad, cin, act_qmax):
    """3x3 'same' conv as ONE bf16 MXU matmul (bf16 im2col patch scratch)."""
    m0 = wp + 1
    for t in range(9):                        # static unroll over the 3x3 taps
        kh, kw = divmod(t, 3)
        d = (kh - 1) * wp + (kw - 1)
        patch_ref[:, t * cin:(t + 1) * cin] = (
            src_ref[pl.ds(m0 + d, npad), :].astype(jnp.bfloat16))
    acc = jnp.dot(patch_ref[...], w_ref[...],
                  preferred_element_type=jnp.float32)
    out_ref[...] = _relu_quant(acc, b_ref[...], mask_ref[...], act_qmax)


def _pool_frame(o_ref, vm_ref, wp, npad):
    """Whole-frame 2x2 max: horizontal (+1 row) then vertical (+wp rows).

    vm[i] = max(o[i], o[i+1], o[i+wp], o[i+wp+1]).  Zero padding-ring rows act
    as -inf because post-ReLU/quant activations are >= 0.
    """
    L = npad - wp - 1
    hmax_a = jnp.maximum(o_ref[pl.ds(0, L), :], o_ref[pl.ds(1, L), :])
    hmax_b = jnp.maximum(o_ref[pl.ds(wp, L), :], o_ref[pl.ds(wp + 1, L), :])
    vm_ref[pl.ds(0, L), :] = jnp.maximum(hmax_a, hmax_b)


# ---------------------------------------------------------------------------
# the fused kernel (one image per grid step)
# ---------------------------------------------------------------------------
def fused_forward_kernel(s1_ref, w1c_ref, b1c_ref, m1_ref,
                         w2c_ref, b2c_ref, m2_ref,
                         w3c_ref, b3c_ref, m3_ref,
                         w1f_ref, b1f_ref, w23_ref, b23_ref,
                         out_ref,
                         o1_ref, vm1_ref, s2_ref, p2_ref, o2_ref, vm2_ref,
                         s3_ref, p3_ref, o3_ref, vm3_ref, x3_ref):
    # Conv-input frames: only interior rows are overwritten by the pool writes
    # below, so padding ring + margins must be (re)zeroed each grid step.
    # TODO(synk): zero only ring+margin rows (review: minor win, skipped).
    s2_ref[...] = jnp.zeros_like(s2_ref)
    s3_ref[...] = jnp.zeros_like(s3_ref)

    # ---- layer1: QuantConv2d(1->8) as 9 shifted VPU multiply-accumulates ----
    # (cin=1: im2col would be 9 single-lane masked stores + a K=9 matmul)
    acc1 = None
    for t in range(9):
        kh, kw = divmod(t, 3)
        d = (kh - 1) * WP1 + (kw - 1)
        term = s1_ref[pl.ds(M01 + d, NPAD1), :] * w1c_ref[pl.ds(t, 1), :]
        acc1 = term if acc1 is None else acc1 + term
    o1_ref[...] = _relu_quant(acc1, b1c_ref[...], m1_ref[...], ACT_QMAX4)

    # maxpool1 2x2/2 -> layer2 padded frame (one strided gather per pooled row)
    _pool_frame(o1_ref, vm1_ref, WP1, NPAD1)
    for ho in range(H2):
        base = (2 * ho + 1) * WP1 + 1
        s2_ref[pl.ds(M02 + (ho + 1) * WP2 + 1, H2), :] = (
            vm1_ref[pl.ds(base, H2, 2), :])

    # ---- layer2: QuantConv2d(8->16) + QuantReLU(4b) + MaxPool 2x2 -----------
    _conv_layer(s2_ref, p2_ref, o2_ref, w2c_ref, b2c_ref, m2_ref,
                WP2, NPAD2, CNN1, ACT_QMAX4)
    _pool_frame(o2_ref, vm2_ref, WP2, NPAD2)
    for ho in range(H3):
        base = (2 * ho + 1) * WP2 + 1
        s3_ref[pl.ds(M03 + (ho + 1) * WP3 + 1, H3), :] = (
            vm2_ref[pl.ds(base, H3, 2), :])

    # ---- layer3: QuantConv2d(16->32) + QuantReLU(8b) + MaxPool(2,2,pad=1) ---
    _conv_layer(s3_ref, p3_ref, o3_ref, w3c_ref, b3c_ref, m3_ref,
                WP3, NPAD3, CNN2, ACT_QMAX8)
    _pool_frame(o3_ref, vm3_ref, WP3, NPAD3)
    # pooled 3x3x32 written lane-contiguously (lane = p*32 + c) so fc1 is ONE dot
    for ho in range(3):
        for wo in range(3):
            p = ho * 3 + wo
            x3_ref[:, p * CNN3:(p + 1) * CNN3] = (
                vm3_ref[pl.ds(2 * ho * WP3 + 2 * wo, 1), :])

    # ---- FC head: fc1 single matmul; fc2/fc3 pre-folded host-side -----------
    h1 = jnp.dot(x3_ref[...].astype(jnp.bfloat16), w1f_ref[...],
                 preferred_element_type=jnp.float32) + b1f_ref[...]
    h3 = jnp.dot(h1.astype(jnp.bfloat16), w23_ref[...],
                 preferred_element_type=jnp.float32) + b23_ref[...]
    out_ref[...] = jax.nn.sigmoid(h3) * (RESULT_HIGH - RESULT_LOW) + RESULT_LOW


# ---------------------------------------------------------------------------
# wrapper
# ---------------------------------------------------------------------------
@jax.jit
def quant_weight_net_forward(x_nchw, params):
    B = x_nchw.shape[0]
    # quant_inp: QuantIdentity on the input (per-image max-abs fake quant, glue)
    x = fake_quant_symmetric(x_nchw.astype(jnp.float32), Q_DATA_WIDTH,
                             axis=(1, 2, 3))
    imgs = x[:, 0]                                            # (B, 16, 16)
    # zero-padded, margin-extended flat layout the kernel consumes directly
    s1 = jnp.pad(jnp.pad(imgs, ((0, 0), (1, 1), (1, 1))).reshape(B, NPAD1, 1),
                 ((0, 0), (M01, M01), (0, 0)))                # (B, 362, 1)

    m1, m2, m3 = _interior_mask(H1), _interior_mask(H2), _interior_mask(H3)

    (w1c, b1c) = params["conv1"]
    (w2c, b2c) = params["conv2"]
    (w3c, b3c) = params["conv3"]
    (w1f, b1f) = params["fc1"]
    (w23, b23) = params["fc23"]

    out = pl.pallas_call(
        fused_forward_kernel,
        out_shape=jax.ShapeDtypeStruct((B, 1, 1), jnp.float32),
        grid=(B,),
        in_specs=[pl.BlockSpec((None, S1_ROWS, 1), lambda b: (b, 0, 0))]
                 + [VMEM_SPEC] * 13,
        out_specs=pl.BlockSpec((None, 1, 1), lambda b: (b, 0, 0)),
        scratch_shapes=[
            pltpu.VMEM((NPAD1, CNN1), jnp.float32),        # o1   conv1 output
            pltpu.VMEM((NPAD1, CNN1), jnp.float32),        # vm1  pooled maxes
            pltpu.VMEM((S2_ROWS, CNN1), jnp.float32),      # s2   layer2 input
            pltpu.VMEM((NPAD2, 9 * CNN1), jnp.bfloat16),   # p2   bf16 im2col
            pltpu.VMEM((NPAD2, CNN2), jnp.float32),        # o2
            pltpu.VMEM((NPAD2, CNN2), jnp.float32),        # vm2
            pltpu.VMEM((S3_ROWS, CNN2), jnp.float32),      # s3   layer3 input
            pltpu.VMEM((NPAD3, 9 * CNN2), jnp.bfloat16),   # p3   bf16 im2col
            pltpu.VMEM((NPAD3, CNN3), jnp.float32),        # o3
            pltpu.VMEM((NPAD3, CNN3), jnp.float32),        # vm3
            pltpu.VMEM((1, FULLY1), jnp.float32),          # x3   (1,288) fc1 in
        ],
        compiler_params=pltpu.CompilerParams(
            dimension_semantics=("parallel",)),            # v7x: split batch
        # NOTE: at the original 224x224 / 128-channel sizes this per-image
        # full-frame scratch plan must be re-derived: tile spatial rows with a
        # grid + BlockSpec, keep patches bf16, and set vmem_limit_bytes
        # (v7x has only 64 MiB VMEM vs 128 MiB on v5e/v6e).
    )(s1, w1c, b1c, m1, w2c, b2c, m2, w3c, b3c, m3, w1f, b1f, w23, b23)

    return out.reshape(B, 1)          # per-image scalar in (0.1, 0.9)


# ---------------------------------------------------------------------------
# parameter construction (deterministic, synthetic)
# ---------------------------------------------------------------------------
def init_params(key):
    ks = jax.random.split(key, 12)

    def conv_w(k, cin, cout, dtype):
        # PyTorch (Cout, Cin, 3, 3) -> (kh, kw, Cin, Cout) -> (9*Cin, Cout)
        w = jax.random.normal(k, (cout, cin, 3, 3), jnp.float32) * 0.2
        w = fake_quant_symmetric(w, Q_BIT_WIDTH)
        w = jnp.transpose(w, (2, 3, 1, 0)).reshape(9 * cin, cout)
        return w.astype(dtype)

    def lin_w(k, fin, fout):
        # PyTorch (out, in) -> (in, out), fake-quantized, f32
        w = jax.random.normal(k, (fout, fin), jnp.float32) * 0.1
        w = fake_quant_symmetric(w, Q_BIT_WIDTH)
        return jnp.transpose(w, (1, 0))

    def bias(k, n):
        return (jax.random.normal(k, (n,), jnp.float32) * 0.05).reshape(1, n)

    # fc1: fold the NCHW (c,h,w) flatten into a row permutation so the kernel
    # consumes the lane-contiguous pooled activation (lane = p*32 + c).
    w1f = lin_w(ks[6], FULLY1, FULLY2)                                 # (288,32)
    w1f = jnp.transpose(w1f.reshape(CNN3, 9, FULLY2),
                        (1, 0, 2)).reshape(FULLY1, FULLY2)
    b1f = bias(ks[7], FULLY2)

    # fc2/fc3: no activation between them in the reference forward -> fold.
    w2f, b2f = lin_w(ks[8], FULLY2, FULLY3), bias(ks[9], FULLY3)
    w3f, b3f = lin_w(ks[10], FULLY3, 1), bias(ks[11], 1)
    w23 = (w2f @ w3f).astype(jnp.bfloat16)                             # (32, 1)
    b23 = b2f @ w3f + b3f                                              # (1, 1)

    return {
        # conv1 weight stays f32: it is applied on the VPU (MAC), not the MXU
        "conv1": (conv_w(ks[0], 1, CNN1, jnp.float32), bias(ks[1], CNN1)),
        "conv2": (conv_w(ks[2], CNN1, CNN2, jnp.bfloat16), bias(ks[3], CNN2)),
        "conv3": (conv_w(ks[4], CNN2, CNN3, jnp.bfloat16), bias(ks[5], CNN3)),
        "fc1": (w1f.astype(jnp.bfloat16), b1f),
        "fc23": (w23, b23),
    }


if __name__ == "__main__":
    key = jax.random.PRNGKey(0)
    k_x, k_p = jax.random.split(key)
    B = 2
    x = jax.random.normal(k_x, (B, 1, H_IN, W_IN), jnp.float32)  # NCHW
    params = init_params(k_p)

    y = quant_weight_net_forward(x, params)
    y = jax.block_until_ready(y)

    assert y.shape == (B, 1), y.shape
    assert bool(jnp.isfinite(y).all())
    assert bool(jnp.all((y >= RESULT_LOW) & (y <= RESULT_HIGH)))
    print("KERNEL_OK")
</pallas_src>

<mosaic_0001>
module attributes {stable_mosaic.version = 11 : i64} {
  func.func @fused_forward_kernel(%arg0: i32, %arg1: memref<1x362x1xf32, #tpu.memory_space<vmem>>, %arg2: memref<9x8xf32, #tpu.memory_space<vmem>>, %arg3: memref<1x8xf32, #tpu.memory_space<vmem>>, %arg4: memref<324x1xf32, #tpu.memory_space<vmem>>, %arg5: memref<72x16xbf16, #tpu.memory_space<vmem>>, %arg6: memref<1x16xf32, #tpu.memory_space<vmem>>, %arg7: memref<100x1xf32, #tpu.memory_space<vmem>>, %arg8: memref<144x32xbf16, #tpu.memory_space<vmem>>, %arg9: memref<1x32xf32, #tpu.memory_space<vmem>>, %arg10: memref<36x1xf32, #tpu.memory_space<vmem>>, %arg11: memref<288x32xbf16, #tpu.memory_space<vmem>>, %arg12: memref<1x32xf32, #tpu.memory_space<vmem>>, %arg13: memref<32x1xbf16, #tpu.memory_space<vmem>>, %arg14: memref<1x1xf32, #tpu.memory_space<vmem>>, %arg15: memref<1x1x1xf32, #tpu.memory_space<vmem>>, %arg16: memref<324x8xf32, #tpu.memory_space<vmem>>, %arg17: memref<324x8xf32, #tpu.memory_space<vmem>>, %arg18: memref<122x8xf32, #tpu.memory_space<vmem>>, %arg19: memref<100x72xbf16, #tpu.memory_space<vmem>>, %arg20: memref<100x16xf32, #tpu.memory_space<vmem>>, %arg21: memref<100x16xf32, #tpu.memory_space<vmem>>, %arg22: memref<50x16xf32, #tpu.memory_space<vmem>>, %arg23: memref<36x144xbf16, #tpu.memory_space<vmem>>, %arg24: memref<36x32xf32, #tpu.memory_space<vmem>>, %arg25: memref<36x32xf32, #tpu.memory_space<vmem>>, %arg26: memref<1x288xf32, #tpu.memory_space<vmem>>) attributes {dimension_semantics = [#tpu.dimension_semantics<parallel>], iteration_bounds = array<i64: 2>, scalar_prefetch = 0 : i64, scratch_operands = 11 : i64, tpu.core_type = #tpu.core_type<tc>, window_params = [{transform_indices = @transform_0, window_bounds = array<i64: 1, 362, 1>}, {pipeline_mode = #tpu.pipeline_mode<synchronous>, transform_indices = @transform_1, window_bounds = array<i64: 9, 8>}, {pipeline_mode = #tpu.pipeline_mode<synchronous>, transform_indices = @transform_2, window_bounds = array<i64: 1, 8>}, {pipeline_mode = #tpu.pipeline_mode<synchronous>, transform_indices = @transform_3, window_bounds = array<i64: 324, 1>}, {pipeline_mode = #tpu.pipeline_mode<synchronous>, transform_indices = @transform_4, window_bounds = array<i64: 72, 16>}, {pipeline_mode = #tpu.pipeline_mode<synchronous>, transform_indices = @transform_5, window_bounds = array<i64: 1, 16>}, {pipeline_mode = #tpu.pipeline_mode<synchronous>, transform_indices = @transform_6, window_bounds = array<i64: 100, 1>}, {pipeline_mode = #tpu.pipeline_mode<synchronous>, transform_indices = @transform_7, window_bounds = array<i64: 144, 32>}, {pipeline_mode = #tpu.pipeline_mode<synchronous>, transform_indices = @transform_8, window_bounds = array<i64: 1, 32>}, {pipeline_mode = #tpu.pipeline_mode<synchronous>, transform_indices = @transform_9, window_bounds = array<i64: 36, 1>}, {pipeline_mode = #tpu.pipeline_mode<synchronous>, transform_indices = @transform_10, window_bounds = array<i64: 288, 32>}, {pipeline_mode = #tpu.pipeline_mode<synchronous>, transform_indices = @transform_11, window_bounds = array<i64: 1, 32>}, {pipeline_mode = #tpu.pipeline_mode<synchronous>, transform_indices = @transform_12, window_bounds = array<i64: 32, 1>}, {pipeline_mode = #tpu.pipeline_mode<synchronous>, transform_indices = @transform_13, window_bounds = array<i64: 1, 1>}, {transform_indices = @transform_14, window_bounds = array<i64: 1, 1, 1>}]} {
    %cst = arith.constant 0.000000e+00 : f32
    %0 = vector.broadcast %cst : f32 to vector<122x8xf32>
    %c0 = arith.constant 0 : index
    %c0_0 = arith.constant 0 : index
    %1 = vector.load %arg18[%c0, %c0_0] : memref<122x8xf32, #tpu.memory_space<vmem>>, vector<122x8xf32>
    tpu.vector_store %arg18[%c0, %c0_0], %0 {strides = array<i32>} : memref<122x8xf32, #tpu.memory_space<vmem>>, vector<122x8xf32>,
    %cst_1 = arith.constant 0.000000e+00 : f32
    %2 = vector.broadcast %cst_1 : f32 to vector<50x16xf32>
    %c0_2 = arith.constant 0 : index
    %c0_3 = arith.constant 0 : index
    %3 = vector.load %arg22[%c0_2, %c0_3] : memref<50x16xf32, #tpu.memory_space<vmem>>, vector<50x16xf32>
    tpu.vector_store %arg22[%c0_2, %c0_3], %2 {strides = array<i32>} : memref<50x16xf32, #tpu.memory_space<vmem>>, vector<50x16xf32>,
    %c0_4 = arith.constant 0 : index
    %c0_5 = arith.constant 0 : index
    %c0_6 = arith.constant 0 : index
    %4 = vector.load %arg1[%c0_4, %c0_5, %c0_6] : memref<1x362x1xf32, #tpu.memory_space<vmem>>, vector<1x324x1xf32>
    %5 = vector.shape_cast %4 : vector<1x324x1xf32> to vector<324x1xf32>
    %c0_7 = arith.constant 0 : index
    %c0_8 = arith.constant 0 : index
    %6 = vector.load %arg2[%c0_7, %c0_8] : memref<9x8xf32, #tpu.memory_space<vmem>>, vector<1x8xf32>
    %7 = vector.broadcast %5 : vector<324x1xf32> to vector<324x8xf32>
    %8 = vector.broadcast %6 : vector<1x8xf32> to vector<324x8xf32>
    %9 = arith.mulf %7, %8 : vector<324x8xf32>
    %c0_9 = arith.constant 0 : index
    %c1 = arith.constant 1 : index
    %c0_10 = arith.constant 0 : index
    %10 = vector.load %arg1[%c0_9, %c1, %c0_10] : memref<1x362x1xf32, #tpu.memory_space<vmem>>, vector<1x324x1xf32>
    %11 = vector.shape_cast %10 : vector<1x324x1xf32> to vector<324x1xf32>
    %c1_11 = arith.constant 1 : index
    %c0_12 = arith.constant 0 : index
    %12 = vector.load %arg2[%c1_11, %c0_12] : memref<9x8xf32, #tpu.memory_space<vmem>>, vector<1x8xf32>
    %13 = vector.broadcast %11 : vector<324x1xf32> to vector<324x8xf32>
    %14 = vector.broadcast %12 : vector<1x8xf32> to vector<324x8xf32>
    %15 = arith.mulf %13, %14 : vector<324x8xf32>
    %16 = arith.addf %9, %15 : vector<324x8xf32>
    %c0_13 = arith.constant 0 : index
    %c2 = arith.constant 2 : index
    %c0_14 = arith.constant 0 : index
    %17 = vector.load %arg1[%c0_13, %c2, %c0_14] : memref<1x362x1xf32, #tpu.memory_space<vmem>>, vector<1x324x1xf32>
    %18 = vector.shape_cast %17 : vector<1x324x1xf32> to vector<324x1xf32>
    %c2_15 = arith.constant 2 : index
    %c0_16 = arith.constant 0 : index
    %19 = vector.load %arg2[%c2_15, %c0_16] : memref<9x8xf32, #tpu.memory_space<vmem>>, vector<1x8xf32>
    %20 = vector.broadcast %18 : vector<324x1xf32> to vector<324x8xf32>
    %21 = vector.broadcast %19 : vector<1x8xf32> to vector<324x8xf32>
    %22 = arith.mulf %20, %21 : vector<324x8xf32>
    %23 = arith.addf %16, %22 : vector<324x8xf32>
    %c0_17 = arith.constant 0 : index
    %c18 = arith.constant 18 : index
    %c0_18 = arith.constant 0 : index
    %24 = vector.load %arg1[%c0_17, %c18, %c0_18] : memref<1x362x1xf32, #tpu.memory_space<vmem>>, vector<1x324x1xf32>
    %25 = vector.shape_cast %24 : vector<1x324x1xf32> to vector<324x1xf32>
    %c3 = arith.constant 3 : index
    %c0_19 = arith.constant 0 : index
    %26 = vector.load %arg2[%c3, %c0_19] : memref<9x8xf32, #tpu.memory_space<vmem>>, vector<1x8xf32>
    %27 = vector.broadcast %25 : vector<324x1xf32> to vector<324x8xf32>
    %28 = vector.broadcast %26 : vector<1x8xf32> to vector<324x8xf32>
    %29 = arith.mulf %27, %28 : vector<324x8xf32>
    %30 = arith.addf %23, %29 : vector<324x8xf32>
    %c0_20 = arith.constant 0 : index
    %c19 = arith.constant 19 : index
    %c0_21 = arith.constant 0 : index
    %31 = vector.load %arg1[%c0_20, %c19, %c0_21] : memref<1x362x1xf32, #tpu.memory_space<vmem>>, vector<1x324x1xf32>
    %32 = vector.shape_cast %31 : vector<1x324x1xf32> to vector<324x1xf32>
    %c4 = arith.constant 4 : index
    %c0_22 = arith.constant 0 : index
    %33 = vector.load %arg2[%c4, %c0_22] : memref<9x8xf32, #tpu.memory_space<vmem>>, vector<1x8xf32>
    %34 = vector.broadcast %32 : vector<324x1xf32> to vector<324x8xf32>
    %35 = vector.broadcast %33 : vector<1x8xf32> to vector<324x8xf32>
    %36 = arith.mulf %34, %35 : vector<324x8xf32>
    %37 = arith.addf %30, %36 : vector<324x8xf32>
    %c0_23 = arith.constant 0 : index
    %c20 = arith.constant 20 : index
    %c0_24 = arith.constant 0 : index
    %38 = vector.load %arg1[%c0_23, %c20, %c0_24] : memref<1x362x1xf32, #tpu.memory_space<vmem>>, vector<1x324x1xf32>
    %39 = vector.shape_cast %38 : vector<1x324x1xf32> to vector<324x1xf32>
    %c5 = arith.constant 5 : index
    %c0_25 = arith.constant 0 : index
    %40 = vector.load %arg2[%c5, %c0_25] : memref<9x8xf32, #tpu.memory_space<vmem>>, vector<1x8xf32>
    %41 = vector.broadcast %39 : vector<324x1xf32> to vector<324x8xf32>
    %42 = vector.broadcast %40 : vector<1x8xf32> to vector<324x8xf32>
    %43 = arith.mulf %41, %42 : vector<324x8xf32>
    %44 = arith.addf %37, %43 : vector<324x8xf32>
    %c0_26 = arith.constant 0 : index
    %c36 = arith.constant 36 : index
    %c0_27 = arith.constant 0 : index
    %45 = vector.load %arg1[%c0_26, %c36, %c0_27] : memref<1x362x1xf32, #tpu.memory_space<vmem>>, vector<1x324x1xf32>
    %46 = vector.shape_cast %45 : vector<1x324x1xf32> to vector<324x1xf32>
    %c6 = arith.constant 6 : index
    %c0_28 = arith.constant 0 : index
    %47 = vector.load %arg2[%c6, %c0_28] : memref<9x8xf32, #tpu.memory_space<vmem>>, vector<1x8xf32>
    %48 = vector.broadcast %46 : vector<324x1xf32> to vector<324x8xf32>
    %49 = vector.broadcast %47 : vector<1x8xf32> to vector<324x8xf32>
    %50 = arith.mulf %48, %49 : vector<324x8xf32>
    %51 = arith.addf %44, %50 : vector<324x8xf32>
    %c0_29 = arith.constant 0 : index
    %c37 = arith.constant 37 : index
    %c0_30 = arith.constant 0 : index
    %52 = vector.load %arg1[%c0_29, %c37, %c0_30] : memref<1x362x1xf32, #tpu.memory_space<vmem>>, vector<1x324x1xf32>
    %53 = vector.shape_cast %52 : vector<1x324x1xf32> to vector<324x1xf32>
    %c7 = arith.constant 7 : index
    %c0_31 = arith.constant 0 : index
    %54 = vector.load %arg2[%c7, %c0_31] : memref<9x8xf32, #tpu.memory_space<vmem>>, vector<1x8xf32>
    %55 = vector.broadcast %53 : vector<324x1xf32> to vector<324x8xf32>
    %56 = vector.broadcast %54 : vector<1x8xf32> to vector<324x8xf32>
    %57 = arith.mulf %55, %56 : vector<324x8xf32>
    %58 = arith.addf %51, %57 : vector<324x8xf32>
    %c0_32 = arith.constant 0 : index
    %c38 = arith.constant 38 : index
    %c0_33 = arith.constant 0 : index
    %59 = vector.load %arg1[%c0_32, %c38, %c0_33] : memref<1x362x1xf32, #tpu.memory_space<vmem>>, vector<1x324x1xf32>
    %60 = vector.shape_cast %59 : vector<1x324x1xf32> to vector<324x1xf32>
    %c8 = arith.constant 8 : index
    %c0_34 = arith.constant 0 : index
    %61 = vector.load %arg2[%c8, %c0_34] : memref<9x8xf32, #tpu.memory_space<vmem>>, vector<1x8xf32>
    %62 = vector.broadcast %60 : vector<324x1xf32> to vector<324x8xf32>
    %63 = vector.broadcast %61 : vector<1x8xf32> to vector<324x8xf32>
    %64 = arith.mulf %62, %63 : vector<324x8xf32>
    %65 = arith.addf %58, %64 : vector<324x8xf32>
    %c0_35 = arith.constant 0 : index
    %c0_36 = arith.constant 0 : index
    %66 = vector.load %arg3[%c0_35, %c0_36] : memref<1x8xf32, #tpu.memory_space<vmem>>, vector<1x8xf32>
    %c0_37 = arith.constant 0 : index
    %c0_38 = arith.constant 0 : index
    %67 = vector.load %arg4[%c0_37, %c0_38] : memref<324x1xf32, #tpu.memory_space<vmem>>, vector<324x1xf32>
    %68 = vector.broadcast %66 : vector<1x8xf32> to vector<324x8xf32>
    %69 = arith.addf %65, %68 : vector<324x8xf32>
    %cst_39 = arith.constant 0.000000e+00 : f32
    %70 = vector.broadcast %cst_39 : f32 to vector<324x8xf32>
    %71 = arith.maximumf %69, %70 : vector<324x8xf32>
    %72 = vector.broadcast %67 : vector<324x1xf32> to vector<324x8xf32>
    %73 = arith.mulf %71, %72 : vector<324x8xf32>
    %74 = vector.shape_cast %73 : vector<324x8xf32> to vector<1x324x8xf32>
    %cst_40 = arith.constant dense<0xFF800000> : vector<1xf32>
    %75 = vector.multi_reduction <maximumf>, %74, %cst_40 [1, 2] : vector<1x324x8xf32> to vector<1xf32>
    %76 = vector.shape_cast %75 : vector<1xf32> to vector<1x1x1xf32>
    %77 = vector.extract %76[0, 0, 0] : f32 from vector<1x1x1xf32>
    %78 = vector.broadcast %77 : f32 to vector<1x1xf32>
    %cst_41 = arith.constant 9.99999996E-13 : f32
    %79 = vector.broadcast %cst_41 : f32 to vector<1x1xf32>
    %80 = arith.maximumf %78, %79 : vector<1x1xf32>
    %cst_42 = arith.constant 0.0666666701 : f32
    %81 = vector.broadcast %cst_42 : f32 to vector<1x1xf32>
    %82 = arith.mulf %80, %81 : vector<1x1xf32>
    %cst_43 = arith.constant 1.000000e+00 : f32
    %83 = vector.broadcast %cst_43 : f32 to vector<1x1xf32>
    %84 = arith.divf %83, %82 : vector<1x1xf32>
    %85 = vector.broadcast %84 : vector<1x1xf32> to vector<324x8xf32>
    %86 = arith.mulf %73, %85 : vector<324x8xf32>
    %87 = math.roundeven %86 : vector<324x8xf32>
    %88 = vector.broadcast %82 : vector<1x1xf32> to vector<324x8xf32>
    %89 = arith.mulf %87, %88 : vector<324x8xf32>
    %c0_44 = arith.constant 0 : index
    %c0_45 = arith.constant 0 : index
    %90 = vector.load %arg16[%c0_44, %c0_45] : memref<324x8xf32, #tpu.memory_space<vmem>>, vector<324x8xf32>
    tpu.vector_store %arg16[%c0_44, %c0_45], %89 {strides = array<i32>} : memref<324x8xf32, #tpu.memory_space<vmem>>, vector<324x8xf32>,
    %c0_46 = arith.constant 0 : index
    %c0_47 = arith.constant 0 : index
    %91 = vector.load %arg16[%c0_46, %c0_47] : memref<324x8xf32, #tpu.memory_space<vmem>>, vector<305x8xf32>
    %c1_48 = arith.constant 1 : index
    %c0_49 = arith.constant 0 : index
    %92 = vector.load %arg16[%c1_48, %c0_49] : memref<324x8xf32, #tpu.memory_space<vmem>>, vector<305x8xf32>
    %93 = arith.maximumf %91, %92 : vector<305x8xf32>
    %c18_50 = arith.constant 18 : index
    %c0_51 = arith.constant 0 : index
    %94 = vector.load %arg16[%c18_50, %c0_51] : memref<324x8xf32, #tpu.memory_space<vmem>>, vector<305x8xf32>
    %c19_52 = arith.constant 19 : index
    %c0_53 = arith.constant 0 : index
    %95 = vector.load %arg16[%c19_52, %c0_53] : memref<324x8xf32, #tpu.memory_space<vmem>>, vector<305x8xf32>
    %96 = arith.maximumf %94, %95 : vector<305x8xf32>
    %97 = arith.maximumf %93, %96 : vector<305x8xf32>
    %c0_54 = arith.constant 0 : index
    %c0_55 = arith.constant 0 : index
    %98 = vector.load %arg17[%c0_54, %c0_55] : memref<324x8xf32, #tpu.memory_space<vmem>>, vector<305x8xf32>
    tpu.vector_store %arg17[%c0_54, %c0_55], %97 {strides = array<i32>} : memref<324x8xf32, #tpu.memory_space<vmem>>, vector<305x8xf32>,
    %c19_56 = arith.constant 19 : index
    %c0_57 = arith.constant 0 : index
    %99 = tpu.strided_load %arg17[%c19_56, %c0_57] {strides = array<i32: 2, 1>} : memref<324x8xf32, #tpu.memory_space<vmem>>, vector<8x8xf32>
    %c22 = arith.constant 22 : index
    %c0_58 = arith.constant 0 : index
    %100 = vector.load %arg18[%c22, %c0_58] : memref<122x8xf32, #tpu.memory_space<vmem>>, vector<8x8xf32>
    tpu.vector_store %arg18[%c22, %c0_58], %99 {strides = array<i32>} : memref<122x8xf32, #tpu.memory_space<vmem>>, vector<8x8xf32>,
    %c55 = arith.constant 55 : index
    %c0_59 = arith.constant 0 : index
    %101 = tpu.strided_load %arg17[%c55, %c0_59] {strides = array<i32: 2, 1>} : memref<324x8xf32, #tpu.memory_space<vmem>>, vector<8x8xf32>
    %c32 = arith.constant 32 : index
    %c0_60 = arith.constant 0 : index
    %102 = vector.load %arg18[%c32, %c0_60] : memref<122x8xf32, #tpu.memory_space<vmem>>, vector<8x8xf32>
    tpu.vector_store %arg18[%c32, %c0_60], %101 {strides = array<i32>} : memref<122x8xf32, #tpu.memory_space<vmem>>, vector<8x8xf32>,
    %c91 = arith.constant 91 : index
    %c0_61 = arith.constant 0 : index
    %103 = tpu.strided_load %arg17[%c91, %c0_61] {strides = array<i32: 2, 1>} : memref<324x8xf32, #tpu.memory_space<vmem>>, vector<8x8xf32>
    %c42 = arith.constant 42 : index
    %c0_62 = arith.constant 0 : index
    %104 = vector.load %arg18[%c42, %c0_62] : memref<122x8xf32, #tpu.memory_space<vmem>>, vector<8x8xf32>
    tpu.vector_store %arg18[%c42, %c0_62], %103 {strides = array<i32>} : memref<122x8xf32, #tpu.memory_space<vmem>>, vector<8x8xf32>,
    %c127 = arith.constant 127 : index
    %c0_63 = arith.constant 0 : index
    %105 = tpu.strided_load %arg17[%c127, %c0_63] {strides = array<i32: 2, 1>} : memref<324x8xf32, #tpu.memory_space<vmem>>, vector<8x8xf32>
    %c52 = arith.constant 52 : index
    %c0_64 = arith.constant 0 : index
    %106 = vector.load %arg18[%c52, %c0_64] : memref<122x8xf32, #tpu.memory_space<vmem>>, vector<8x8xf32>
    tpu.vector_store %arg18[%c52, %c0_64], %105 {strides = array<i32>} : memref<122x8xf32, #tpu.memory_space<vmem>>, vector<8x8xf32>,
    %c163 = arith.constant 163 : index
    %c0_65 = arith.constant 0 : index
    %107 = tpu.strided_load %arg17[%c163, %c0_65] {strides = array<i32: 2, 1>} : memref<324x8xf32, #tpu.memory_space<vmem>>, vector<8x8xf32>
    %c62 = arith.constant 62 : index
    %c0_66 = arith.constant 0 : index
    %108 = vector.load %arg18[%c62, %c0_66] : memref<122x8xf32, #tpu.memory_space<vmem>>, vector<8x8xf32>
    tpu.vector_store %arg18[%c62, %c0_66], %107 {strides = array<i32>} : memref<122x8xf32, #tpu.memory_space<vmem>>, vector<8x8xf32>,
    %c199 = arith.constant 199 : index
    %c0_67 = arith.constant 0 : index
    %109 = tpu.strided_load %arg17[%c199, %c0_67] {strides = array<i32: 2, 1>} : memref<324x8xf32, #tpu.memory_space<vmem>>, vector<8x8xf32>
    %c72 = arith.constant 72 : index
    %c0_68 = arith.constant 0 : index
    %110 = vector.load %arg18[%c72, %c0_68] : memref<122x8xf32, #tpu.memory_space<vmem>>, vector<8x8xf32>
    tpu.vector_store %arg18[%c72, %c0_68], %109 {strides = array<i32>} : memref<122x8xf32, #tpu.memory_space<vmem>>, vector<8x8xf32>,
    %c235 = arith.constant 235 : index
    %c0_69 = arith.constant 0 : index
    %111 = tpu.strided_load %arg17[%c235, %c0_69] {strides = array<i32: 2, 1>} : memref<324x8xf32, #tpu.memory_space<vmem>>, vector<8x8xf32>
    %c82 = arith.constant 82 : index
    %c0_70 = arith.constant 0 : index
    %112 = vector.load %arg18[%c82, %c0_70] : memref<122x8xf32, #tpu.memory_space<vmem>>, vector<8x8xf32>
    tpu.vector_store %arg18[%c82, %c0_70], %111 {strides = array<i32>} : memref<122x8xf32, #tpu.memory_space<vmem>>, vector<8x8xf32>,
    %c271 = arith.constant 271 : index
    %c0_71 = arith.constant 0 : index
    %113 = tpu.strided_load %arg17[%c271, %c0_71] {strides = array<i32: 2, 1>} : memref<324x8xf32, #tpu.memory_space<vmem>>, vector<8x8xf32>
    %c92 = arith.constant 92 : index
    %c0_72 = arith.constant 0 : index
    %114 = vector.load %arg18[%c92, %c0_72] : memref<122x8xf32, #tpu.memory_space<vmem>>, vector<8x8xf32>
    tpu.vector_store %arg18[%c92, %c0_72], %113 {strides = array<i32>} : memref<122x8xf32, #tpu.memory_space<vmem>>, vector<8x8xf32>,
    %c0_73 = arith.constant 0 : index
    %c0_74 = arith.constant 0 : index
    %115 = vector.load %arg18[%c0_73, %c0_74] : memref<122x8xf32, #tpu.memory_space<vmem>>, vector<100x8xf32>
    %116 = arith.truncf %115 : vector<100x8xf32> to vector<100x8xbf16>
    %c0_75 = arith.constant 0 : index
    %c0_76 = arith.constant 0 : index
    %117 = vector.load %arg19[%c0_75, %c0_76] : memref<100x72xbf16, #tpu.memory_space<vmem>>, vector<100x8xbf16>
    tpu.vector_store %arg19[%c0_75, %c0_76], %116 {strides = array<i32>} : memref<100x72xbf16, #tpu.memory_space<vmem>>, vector<100x8xbf16>,
    %c1_77 = arith.constant 1 : index
    %c0_78 = arith.constant 0 : index
    %118 = vector.load %arg18[%c1_77, %c0_78] : memref<122x8xf32, #tpu.memory_space<vmem>>, vector<100x8xf32>
    %119 = arith.truncf %118 : vector<100x8xf32> to vector<100x8xbf16>
    %c0_79 = arith.constant 0 : index
    %c8_80 = arith.constant 8 : index
    %120 = vector.load %arg19[%c0_79, %c8_80] : memref<100x72xbf16, #tpu.memory_space<vmem>>, vector<100x8xbf16>
    tpu.vector_store %arg19[%c0_79, %c8_80], %119 {strides = array<i32>} : memref<100x72xbf16, #tpu.memory_space<vmem>>, vector<100x8xbf16>,
    %c2_81 = arith.constant 2 : index
    %c0_82 = arith.constant 0 : index
    %121 = vector.load %arg18[%c2_81, %c0_82] : memref<122x8xf32, #tpu.memory_space<vmem>>, vector<100x8xf32>
    %122 = arith.truncf %121 : vector<100x8xf32> to vector<100x8xbf16>
    %c0_83 = arith.constant 0 : index
    %c16 = arith.constant 16 : index
    %123 = vector.load %arg19[%c0_83, %c16] : memref<100x72xbf16, #tpu.memory_space<vmem>>, vector<100x8xbf16>
    tpu.vector_store %arg19[%c0_83, %c16], %122 {strides = array<i32>} : memref<100x72xbf16, #tpu.memory_space<vmem>>, vector<100x8xbf16>,
    %c10 = arith.constant 10 : index
    %c0_84 = arith.constant 0 : index
    %124 = vector.load %arg18[%c10, %c0_84] : memref<122x8xf32, #tpu.memory_space<vmem>>, vector<100x8xf32>
    %125 = arith.truncf %124 : vector<100x8xf32> to vector<100x8xbf16>
    %c0_85 = arith.constant 0 : index
    %c24 = arith.constant 24 : index
    %126 = vector.load %arg19[%c0_85, %c24] : memref<100x72xbf16, #tpu.memory_space<vmem>>, vector<100x8xbf16>
    tpu.vector_store %arg19[%c0_85, %c24], %125 {strides = array<i32>} : memref<100x72xbf16, #tpu.memory_space<vmem>>, vector<100x8xbf16>,
    %c11 = arith.constant 11 : index
    %c0_86 = arith.constant 0 : index
    %127 = vector.load %arg18[%c11, %c0_86] : memref<122x8xf32, #tpu.memory_space<vmem>>, vector<100x8xf32>
    %128 = arith.truncf %127 : vector<100x8xf32> to vector<100x8xbf16>
    %c0_87 = arith.constant 0 : index
    %c32_88 = arith.constant 32 : index
    %129 = vector.load %arg19[%c0_87, %c32_88] : memref<100x72xbf16, #tpu.memory_space<vmem>>, vector<100x8xbf16>
    tpu.vector_store %arg19[%c0_87, %c32_88], %128 {strides = array<i32>} : memref<100x72xbf16, #tpu.memory_space<vmem>>, vector<100x8xbf16>,
    %c12 = arith.constant 12 : index
    %c0_89 = arith.constant 0 : index
    %130 = vector.load %arg18[%c12, %c0_89] : memref<122x8xf32, #tpu.memory_space<vmem>>, vector<100x8xf32>
    %131 = arith.truncf %130 : vector<100x8xf32> to vector<100x8xbf16>
    %c0_90 = arith.constant 0 : index
    %c40 = arith.constant 40 : index
    %132 = vector.load %arg19[%c0_90, %c40] : memref<100x72xbf16, #tpu.memory_space<vmem>>, vector<100x8xbf16>
    tpu.vector_store %arg19[%c0_90, %c40], %131 {strides = array<i32>} : memref<100x72xbf16, #tpu.memory_space<vmem>>, vector<100x8xbf16>,
    %c20_91 = arith.constant 20 : index
    %c0_92 = arith.constant 0 : index
    %133 = vector.load %arg18[%c20_91, %c0_92] : memref<122x8xf32, #tpu.memory_space<vmem>>, vector<100x8xf32>
    %134 = arith.truncf %133 : vector<100x8xf32> to vector<100x8xbf16>
    %c0_93 = arith.constant 0 : index
    %c48 = arith.constant 48 : index
    %135 = vector.load %arg19[%c0_93, %c48] : memref<100x72xbf16, #tpu.memory_space<vmem>>, vector<100x8xbf16>
    tpu.vector_store %arg19[%c0_93, %c48], %134 {strides = array<i32>} : memref<100x72xbf16, #tpu.memory_space<vmem>>, vector<100x8xbf16>,
    %c21 = arith.constant 21 : index
    %c0_94 = arith.constant 0 : index
    %136 = vector.load %arg18[%c21, %c0_94] : memref<122x8xf32, #tpu.memory_space<vmem>>, vector<100x8xf32>
    %137 = arith.truncf %136 : vector<100x8xf32> to vector<100x8xbf16>
    %c0_95 = arith.constant 0 : index
    %c56 = arith.constant 56 : index
    %138 = vector.load %arg19[%c0_95, %c56] : memref<100x72xbf16, #tpu.memory_space<vmem>>, vector<100x8xbf16>
    tpu.vector_store %arg19[%c0_95, %c56], %137 {strides = array<i32>} : memref<100x72xbf16, #tpu.memory_space<vmem>>, vector<100x8xbf16>,
    %c22_96 = arith.constant 22 : index
    %c0_97 = arith.constant 0 : index
    %139 = vector.load %arg18[%c22_96, %c0_97] : memref<122x8xf32, #tpu.memory_space<vmem>>, vector<100x8xf32>
    %140 = arith.truncf %139 : vector<100x8xf32> to vector<100x8xbf16>
    %c0_98 = arith.constant 0 : index
    %c64 = arith.constant 64 : index
    %141 = vector.load %arg19[%c0_98, %c64] : memref<100x72xbf16, #tpu.memory_space<vmem>>, vector<100x8xbf16>
    tpu.vector_store %arg19[%c0_98, %c64], %140 {strides = array<i32>} : memref<100x72xbf16, #tpu.memory_space<vmem>>, vector<100x8xbf16>,
    %c0_99 = arith.constant 0 : index
    %c0_100 = arith.constant 0 : index
    %142 = vector.load %arg19[%c0_99, %c0_100] : memref<100x72xbf16, #tpu.memory_space<vmem>>, vector<100x72xbf16>
    %c0_101 = arith.constant 0 : index
    %c0_102 = arith.constant 0 : index
    %143 = vector.load %arg5[%c0_101, %c0_102] : memref<72x16xbf16, #tpu.memory_space<vmem>>, vector<72x16xbf16>
    %cst_103 = arith.constant dense<0.000000e+00> : vector<100x16xf32>
    %144 = tpu.matmul %142, %143, %cst_103 {dimension_numbers = #tpu.dot_dimension_numbers<[1], [0], [0], [1], [0, 0, 1, 1], [], []>} : vector<100x72xbf16>, vector<72x16xbf16>, vector<100x16xf32> -> vector<100x16xf32>
    %c0_104 = arith.constant 0 : index
    %c0_105 = arith.constant 0 : index
    %145 = vector.load %arg6[%c0_104, %c0_105] : memref<1x16xf32, #tpu.memory_space<vmem>>, vector<1x16xf32>
    %c0_106 = arith.constant 0 : index
    %c0_107 = arith.constant 0 : index
    %146 = vector.load %arg7[%c0_106, %c0_107] : memref<100x1xf32, #tpu.memory_space<vmem>>, vector<100x1xf32>
    %147 = vector.broadcast %145 : vector<1x16xf32> to vector<100x16xf32>
    %148 = arith.addf %144, %147 : vector<100x16xf32>
    %cst_108 = arith.constant 0.000000e+00 : f32
    %149 = vector.broadcast %cst_108 : f32 to vector<100x16xf32>
    %150 = arith.maximumf %148, %149 : vector<100x16xf32>
    %151 = vector.broadcast %146 : vector<100x1xf32> to vector<100x16xf32>
    %152 = arith.mulf %150, %151 : vector<100x16xf32>
    %153 = vector.shape_cast %152 : vector<100x16xf32> to vector<1x100x16xf32>
    %cst_109 = arith.constant dense<0xFF800000> : vector<1xf32>
    %154 = vector.multi_reduction <maximumf>, %153, %cst_109 [1, 2] : vector<1x100x16xf32> to vector<1xf32>
    %155 = vector.shape_cast %154 : vector<1xf32> to vector<1x1x1xf32>
    %156 = vector.extract %155[0, 0, 0] : f32 from vector<1x1x1xf32>
    %157 = vector.broadcast %156 : f32 to vector<1x1xf32>
    %cst_110 = arith.constant 9.99999996E-13 : f32
    %158 = vector.broadcast %cst_110 : f32 to vector<1x1xf32>
    %159 = arith.maximumf %157, %158 : vector<1x1xf32>
    %cst_111 = arith.constant 0.0666666701 : f32
    %160 = vector.broadcast %cst_111 : f32 to vector<1x1xf32>
    %161 = arith.mulf %159, %160 : vector<1x1xf32>
    %cst_112 = arith.constant 1.000000e+00 : f32
    %162 = vector.broadcast %cst_112 : f32 to vector<1x1xf32>
    %163 = arith.divf %162, %161 : vector<1x1xf32>
    %164 = vector.broadcast %163 : vector<1x1xf32> to vector<100x16xf32>
    %165 = arith.mulf %152, %164 : vector<100x16xf32>
    %166 = math.roundeven %165 : vector<100x16xf32>
    %167 = vector.broadcast %161 : vector<1x1xf32> to vector<100x16xf32>
    %168 = arith.mulf %166, %167 : vector<100x16xf32>
    %c0_113 = arith.constant 0 : index
    %c0_114 = arith.constant 0 : index
    %169 = vector.load %arg20[%c0_113, %c0_114] : memref<100x16xf32, #tpu.memory_space<vmem>>, vector<100x16xf32>
    tpu.vector_store %arg20[%c0_113, %c0_114], %168 {strides = array<i32>} : memref<100x16xf32, #tpu.memory_space<vmem>>, vector<100x16xf32>,
    %c0_115 = arith.constant 0 : index
    %c0_116 = arith.constant 0 : index
    %170 = vector.load %arg20[%c0_115, %c0_116] : memref<100x16xf32, #tpu.memory_space<vmem>>, vector<89x16xf32>
    %c1_117 = arith.constant 1 : index
    %c0_118 = arith.constant 0 : index
    %171 = vector.load %arg20[%c1_117, %c0_118] : memref<100x16xf32, #tpu.memory_space<vmem>>, vector<89x16xf32>
    %172 = arith.maximumf %170, %171 : vector<89x16xf32>
    %c10_119 = arith.constant 10 : index
    %c0_120 = arith.constant 0 : index
    %173 = vector.load %arg20[%c10_119, %c0_120] : memref<100x16xf32, #tpu.memory_space<vmem>>, vector<89x16xf32>
    %c11_121 = arith.constant 11 : index
    %c0_122 = arith.constant 0 : index
    %174 = vector.load %arg20[%c11_121, %c0_122] : memref<100x16xf32, #tpu.memory_space<vmem>>, vector<89x16xf32>
    %175 = arith.maximumf %173, %174 : vector<89x16xf32>
    %176 = arith.maximumf %172, %175 : vector<89x16xf32>
    %c0_123 = arith.constant 0 : index
    %c0_124 = arith.constant 0 : index
    %177 = vector.load %arg21[%c0_123, %c0_124] : memref<100x16xf32, #tpu.memory_space<vmem>>, vector<89x16xf32>
    tpu.vector_store %arg21[%c0_123, %c0_124], %176 {strides = array<i32>} : memref<100x16xf32, #tpu.memory_space<vmem>>, vector<89x16xf32>,
    %c11_125 = arith.constant 11 : index
    %c0_126 = arith.constant 0 : index
    %178 = tpu.strided_load %arg21[%c11_125, %c0_126] {strides = array<i32: 2, 1>} : memref<100x16xf32, #tpu.memory_space<vmem>>, vector<4x16xf32>
    %c14 = arith.constant 14 : index
    %c0_127 = arith.constant 0 : index
    %179 = vector.load %arg22[%c14, %c0_127] : memref<50x16xf32, #tpu.memory_space<vmem>>, vector<4x16xf32>
    tpu.vector_store %arg22[%c14, %c0_127], %178 {strides = array<i32>} : memref<50x16xf32, #tpu.memory_space<vmem>>, vector<4x16xf32>,
    %c31 = arith.constant 31 : index
    %c0_128 = arith.constant 0 : index
    %180 = tpu.strided_load %arg21[%c31, %c0_128] {strides = array<i32: 2, 1>} : memref<100x16xf32, #tpu.memory_space<vmem>>, vector<4x16xf32>
    %c20_129 = arith.constant 20 : index
    %c0_130 = arith.constant 0 : index
    %181 = vector.load %arg22[%c20_129, %c0_130] : memref<50x16xf32, #tpu.memory_space<vmem>>, vector<4x16xf32>
    tpu.vector_store %arg22[%c20_129, %c0_130], %180 {strides = array<i32>} : memref<50x16xf32, #tpu.memory_space<vmem>>, vector<4x16xf32>,
    %c51 = arith.constant 51 : index
    %c0_131 = arith.constant 0 : index
    %182 = tpu.strided_load %arg21[%c51, %c0_131] {strides = array<i32: 2, 1>} : memref<100x16xf32, #tpu.memory_space<vmem>>, vector<4x16xf32>
    %c26 = arith.constant 26 : index
    %c0_132 = arith.constant 0 : index
    %183 = vector.load %arg22[%c26, %c0_132] : memref<50x16xf32, #tpu.memory_space<vmem>>, vector<4x16xf32>
    tpu.vector_store %arg22[%c26, %c0_132], %182 {strides = array<i32>} : memref<50x16xf32, #tpu.memory_space<vmem>>, vector<4x16xf32>,
    %c71 = arith.constant 71 : index
    %c0_133 = arith.constant 0 : index
    %184 = tpu.strided_load %arg21[%c71, %c0_133] {strides = array<i32: 2, 1>} : memref<100x16xf32, #tpu.memory_space<vmem>>, vector<4x16xf32>
    %c32_134 = arith.constant 32 : index
    %c0_135 = arith.constant 0 : index
    %185 = vector.load %arg22[%c32_134, %c0_135] : memref<50x16xf32, #tpu.memory_space<vmem>>, vector<4x16xf32>
    tpu.vector_store %arg22[%c32_134, %c0_135], %184 {strides = array<i32>} : memref<50x16xf32, #tpu.memory_space<vmem>>, vector<4x16xf32>,
    %c0_136 = arith.constant 0 : index
    %c0_137 = arith.constant 0 : index
    %186 = vector.load %arg22[%c0_136, %c0_137] : memref<50x16xf32, #tpu.memory_space<vmem>>, vector<36x16xf32>
    %187 = arith.truncf %186 : vector<36x16xf32> to vector<36x16xbf16>
    %c0_138 = arith.constant 0 : index
    %c0_139 = arith.constant 0 : index
    %188 = vector.load %arg23[%c0_138, %c0_139] : memref<36x144xbf16, #tpu.memory_space<vmem>>, vector<36x16xbf16>
    tpu.vector_store %arg23[%c0_138, %c0_139], %187 {strides = array<i32>} : memref<36x144xbf16, #tpu.memory_space<vmem>>, vector<36x16xbf16>,
    %c1_140 = arith.constant 1 : index
    %c0_141 = arith.constant 0 : index
    %189 = vector.load %arg22[%c1_140, %c0_141] : memref<50x16xf32, #tpu.memory_space<vmem>>, vector<36x16xf32>
    %190 = arith.truncf %189 : vector<36x16xf32> to vector<36x16xbf16>
    %c0_142 = arith.constant 0 : index
    %c16_143 = arith.constant 16 : index
    %191 = vector.load %arg23[%c0_142, %c16_143] : memref<36x144xbf16, #tpu.memory_space<vmem>>, vector<36x16xbf16>
    tpu.vector_store %arg23[%c0_142, %c16_143], %190 {strides = array<i32>} : memref<36x144xbf16, #tpu.memory_space<vmem>>, vector<36x16xbf16>,
    %c2_144 = arith.constant 2 : index
    %c0_145 = arith.constant 0 : index
    %192 = vector.load %arg22[%c2_144, %c0_145] : memref<50x16xf32, #tpu.memory_space<vmem>>, vector<36x16xf32>
    %193 = arith.truncf %192 : vector<36x16xf32> to vector<36x16xbf16>
    %c0_146 = arith.constant 0 : index
    %c32_147 = arith.constant 32 : index
    %194 = vector.load %arg23[%c0_146, %c32_147] : memref<36x144xbf16, #tpu.memory_space<vmem>>, vector<36x16xbf16>
    tpu.vector_store %arg23[%c0_146, %c32_147], %193 {strides = array<i32>} : memref<36x144xbf16, #tpu.memory_space<vmem>>, vector<36x16xbf16>,
    %c6_148 = arith.constant 6 : index
    %c0_149 = arith.constant 0 : index
    %195 = vector.load %arg22[%c6_148, %c0_149] : memref<50x16xf32, #tpu.memory_space<vmem>>, vector<36x16xf32>
    %196 = arith.truncf %195 : vector<36x16xf32> to vector<36x16xbf16>
    %c0_150 = arith.constant 0 : index
    %c48_151 = arith.constant 48 : index
    %197 = vector.load %arg23[%c0_150, %c48_151] : memref<36x144xbf16, #tpu.memory_space<vmem>>, vector<36x16xbf16>
    tpu.vector_store %arg23[%c0_150, %c48_151], %196 {strides = array<i32>} : memref<36x144xbf16, #tpu.memory_space<vmem>>, vector<36x16xbf16>,
    %c7_152 = arith.constant 7 : index
    %c0_153 = arith.constant 0 : index
    %198 = vector.load %arg22[%c7_152, %c0_153] : memref<50x16xf32, #tpu.memory_space<vmem>>, vector<36x16xf32>
    %199 = arith.truncf %198 : vector<36x16xf32> to vector<36x16xbf16>
    %c0_154 = arith.constant 0 : index
    %c64_155 = arith.constant 64 : index
    %200 = vector.load %arg23[%c0_154, %c64_155] : memref<36x144xbf16, #tpu.memory_space<vmem>>, vector<36x16xbf16>
    tpu.vector_store %arg23[%c0_154, %c64_155], %199 {strides = array<i32>} : memref<36x144xbf16, #tpu.memory_space<vmem>>, vector<36x16xbf16>,
    %c8_156 = arith.constant 8 : index
    %c0_157 = arith.constant 0 : index
    %201 = vector.load %arg22[%c8_156, %c0_157] : memref<50x16xf32, #tpu.memory_space<vmem>>, vector<36x16xf32>
    %202 = arith.truncf %201 : vector<36x16xf32> to vector<36x16xbf16>
    %c0_158 = arith.constant 0 : index
    %c80 = arith.constant 80 : index
    %203 = vector.load %arg23[%c0_158, %c80] : memref<36x144xbf16, #tpu.memory_space<vmem>>, vector<36x16xbf16>
    tpu.vector_store %arg23[%c0_158, %c80], %202 {strides = array<i32>} : memref<36x144xbf16, #tpu.memory_space<vmem>>, vector<36x16xbf16>,
    %c12_159 = arith.constant 12 : index
    %c0_160 = arith.constant 0 : index
    %204 = vector.load %arg22[%c12_159, %c0_160] : memref<50x16xf32, #tpu.memory_space<vmem>>, vector<36x16xf32>
    %205 = arith.truncf %204 : vector<36x16xf32> to vector<36x16xbf16>
    %c0_161 = arith.constant 0 : index
    %c96 = arith.constant 96 : index
    %206 = vector.load %arg23[%c0_161, %c96] : memref<36x144xbf16, #tpu.memory_space<vmem>>, vector<36x16xbf16>
    tpu.vector_store %arg23[%c0_161, %c96], %205 {strides = array<i32>} : memref<36x144xbf16, #tpu.memory_space<vmem>>, vector<36x16xbf16>,
    %c13 = arith.constant 13 : index
    %c0_162 = arith.constant 0 : index
    %207 = vector.load %arg22[%c13, %c0_162] : memref<50x16xf32, #tpu.memory_space<vmem>>, vector<36x16xf32>
    %208 = arith.truncf %207 : vector<36x16xf32> to vector<36x16xbf16>
    %c0_163 = arith.constant 0 : index
    %c112 = arith.constant 112 : index
    %209 = vector.load %arg23[%c0_163, %c112] : memref<36x144xbf16, #tpu.memory_space<vmem>>, vector<36x16xbf16>
    tpu.vector_store %arg23[%c0_163, %c112], %208 {strides = array<i32>} : memref<36x144xbf16, #tpu.memory_space<vmem>>, vector<36x16xbf16>,
    %c14_164 = arith.constant 14 : index
    %c0_165 = arith.constant 0 : index
    %210 = vector.load %arg22[%c14_164, %c0_165] : memref<50x16xf32, #tpu.memory_space<vmem>>, vector<36x16xf32>
    %211 = arith.truncf %210 : vector<36x16xf32> to vector<36x16xbf16>
    %c0_166 = arith.constant 0 : index
    %c128 = arith.constant 128 : index
    %212 = vector.load %arg23[%c0_166, %c128] : memref<36x144xbf16, #tpu.memory_space<vmem>>, vector<36x16xbf16>
    tpu.vector_store %arg23[%c0_166, %c128], %211 {strides = array<i32>} : memref<36x144xbf16, #tpu.memory_space<vmem>>, vector<36x16xbf16>,
    %c0_167 = arith.constant 0 : index
    %c0_168 = arith.constant 0 : index
    %213 = vector.load %arg23[%c0_167, %c0_168] : memref<36x144xbf16, #tpu.memory_space<vmem>>, vector<36x144xbf16>
    %c0_169 = arith.constant 0 : index
    %c0_170 = arith.constant 0 : index
    %214 = vector.load %arg8[%c0_169, %c0_170] : memref<144x32xbf16, #tpu.memory_space<vmem>>, vector<144x32xbf16>
    %cst_171 = arith.constant dense<0.000000e+00> : vector<36x32xf32>
    %215 = tpu.matmul %213, %214, %cst_171 {dimension_numbers = #tpu.dot_dimension_numbers<[1], [0], [0], [1], [0, 0, 1, 1], [], []>} : vector<36x144xbf16>, vector<144x32xbf16>, vector<36x32xf32> -> vector<36x32xf32>
    %c0_172 = arith.constant 0 : index
    %c0_173 = arith.constant 0 : index
    %216 = vector.load %arg9[%c0_172, %c0_173] : memref<1x32xf32, #tpu.memory_space<vmem>>, vector<1x32xf32>
    %c0_174 = arith.constant 0 : index
    %c0_175 = arith.constant 0 : index
    %217 = vector.load %arg10[%c0_174, %c0_175] : memref<36x1xf32, #tpu.memory_space<vmem>>, vector<36x1xf32>
    %218 = vector.broadcast %216 : vector<1x32xf32> to vector<36x32xf32>
    %219 = arith.addf %215, %218 : vector<36x32xf32>
    %cst_176 = arith.constant 0.000000e+00 : f32
    %220 = vector.broadcast %cst_176 : f32 to vector<36x32xf32>
    %221 = arith.maximumf %219, %220 : vector<36x32xf32>
    %222 = vector.broadcast %217 : vector<36x1xf32> to vector<36x32xf32>
    %223 = arith.mulf %221, %222 : vector<36x32xf32>
    %224 = vector.shape_cast %223 : vector<36x32xf32> to vector<1x36x32xf32>
    %cst_177 = arith.constant dense<0xFF800000> : vector<1xf32>
    %225 = vector.multi_reduction <maximumf>, %224, %cst_177 [1, 2] : vector<1x36x32xf32> to vector<1xf32>
    %226 = vector.shape_cast %225 : vector<1xf32> to vector<1x1x1xf32>
    %227 = vector.extract %226[0, 0, 0] : f32 from vector<1x1x1xf32>
    %228 = vector.broadcast %227 : f32 to vector<1x1xf32>
    %cst_178 = arith.constant 9.99999996E-13 : f32
    %229 = vector.broadcast %cst_178 : f32 to vector<1x1xf32>
    %230 = arith.maximumf %228, %229 : vector<1x1xf32>
    %cst_179 = arith.constant 0.00392156886 : f32
    %231 = vector.broadcast %cst_179 : f32 to vector<1x1xf32>
    %232 = arith.mulf %230, %231 : vector<1x1xf32>
    %cst_180 = arith.constant 1.000000e+00 : f32
    %233 = vector.broadcast %cst_180 : f32 to vector<1x1xf32>
    %234 = arith.divf %233, %232 : vector<1x1xf32>
    %235 = vector.broadcast %234 : vector<1x1xf32> to vector<36x32xf32>
    %236 = arith.mulf %223, %235 : vector<36x32xf32>
    %237 = math.roundeven %236 : vector<36x32xf32>
    %238 = vector.broadcast %232 : vector<1x1xf32> to vector<36x32xf32>
    %239 = arith.mulf %237, %238 : vector<36x32xf32>
    %c0_181 = arith.constant 0 : index
    %c0_182 = arith.constant 0 : index
    %240 = vector.load %arg24[%c0_181, %c0_182] : memref<36x32xf32, #tpu.memory_space<vmem>>, vector<36x32xf32>
    tpu.vector_store %arg24[%c0_181, %c0_182], %239 {strides = array<i32>} : memref<36x32xf32, #tpu.memory_space<vmem>>, vector<36x32xf32>,
    %c0_183 = arith.constant 0 : index
    %c0_184 = arith.constant 0 : index
    %241 = vector.load %arg24[%c0_183, %c0_184] : memref<36x32xf32, #tpu.memory_space<vmem>>, vector<29x32xf32>
    %c1_185 = arith.constant 1 : index
    %c0_186 = arith.constant 0 : index
    %242 = vector.load %arg24[%c1_185, %c0_186] : memref<36x32xf32, #tpu.memory_space<vmem>>, vector<29x32xf32>
    %243 = arith.maximumf %241, %242 : vector<29x32xf32>
    %c6_187 = arith.constant 6 : index
    %c0_188 = arith.constant 0 : index
    %244 = vector.load %arg24[%c6_187, %c0_188] : memref<36x32xf32, #tpu.memory_space<vmem>>, vector<29x32xf32>
    %c7_189 = arith.constant 7 : index
    %c0_190 = arith.constant 0 : index
    %245 = vector.load %arg24[%c7_189, %c0_190] : memref<36x32xf32, #tpu.memory_space<vmem>>, vector<29x32xf32>
    %246 = arith.maximumf %244, %245 : vector<29x32xf32>
    %247 = arith.maximumf %243, %246 : vector<29x32xf32>
    %c0_191 = arith.constant 0 : index
    %c0_192 = arith.constant 0 : index
    %248 = vector.load %arg25[%c0_191, %c0_192] : memref<36x32xf32, #tpu.memory_space<vmem>>, vector<29x32xf32>
    tpu.vector_store %arg25[%c0_191, %c0_192], %247 {strides = array<i32>} : memref<36x32xf32, #tpu.memory_space<vmem>>, vector<29x32xf32>,
    %c0_193 = arith.constant 0 : index
    %c0_194 = arith.constant 0 : index
    %249 = vector.load %arg25[%c0_193, %c0_194] : memref<36x32xf32, #tpu.memory_space<vmem>>, vector<1x32xf32>
    %c0_195 = arith.constant 0 : index
    %c0_196 = arith.constant 0 : index
    %250 = vector.load %arg26[%c0_195, %c0_196] : memref<1x288xf32, #tpu.memory_space<vmem>>, vector<1x32xf32>
    tpu.vector_store %arg26[%c0_195, %c0_196], %249 {strides = array<i32>} : memref<1x288xf32, #tpu.memory_space<vmem>>, vector<1x32xf32>,
    %c2_197 = arith.constant 2 : index
    %c0_198 = arith.constant 0 : index
    %251 = vector.load %arg25[%c2_197, %c0_198] : memref<36x32xf32, #tpu.memory_space<vmem>>, vector<1x32xf32>
    %c0_199 = arith.constant 0 : index
    %c32_200 = arith.constant 32 : index
    %252 = vector.load %arg26[%c0_199, %c32_200] : memref<1x288xf32, #tpu.memory_space<vmem>>, vector<1x32xf32>
    tpu.vector_store %arg26[%c0_199, %c32_200], %251 {strides = array<i32>} : memref<1x288xf32, #tpu.memory_space<vmem>>, vector<1x32xf32>,
    %c4_201 = arith.constant 4 : index
    %c0_202 = arith.constant 0 : index
    %253 = vector.load %arg25[%c4_201, %c0_202] : memref<36x32xf32, #tpu.memory_space<vmem>>, vector<1x32xf32>
    %c0_203 = arith.constant 0 : index
    %c64_204 = arith.constant 64 : index
    %254 = vector.load %arg26[%c0_203, %c64_204] : memref<1x288xf32, #tpu.memory_space<vmem>>, vector<1x32xf32>
    tpu.vector_store %arg26[%c0_203, %c64_204], %253 {strides = array<i32>} : memref<1x288xf32, #tpu.memory_space<vmem>>, vector<1x32xf32>,
    %c12_205 = arith.constant 12 : index
    %c0_206 = arith.constant 0 : index
    %255 = vector.load %arg25[%c12_205, %c0_206] : memref<36x32xf32, #tpu.memory_space<vmem>>, vector<1x32xf32>
    %c0_207 = arith.constant 0 : index
    %c96_208 = arith.constant 96 : index
    %256 = vector.load %arg26[%c0_207, %c96_208] : memref<1x288xf32, #tpu.memory_space<vmem>>, vector<1x32xf32>
    tpu.vector_store %arg26[%c0_207, %c96_208], %255 {strides = array<i32>} : memref<1x288xf32, #tpu.memory_space<vmem>>, vector<1x32xf32>,
    %c14_209 = arith.constant 14 : index
    %c0_210 = arith.constant 0 : index
    %257 = vector.load %arg25[%c14_209, %c0_210] : memref<36x32xf32, #tpu.memory_space<vmem>>, vector<1x32xf32>
    %c0_211 = arith.constant 0 : index
    %c128_212 = arith.constant 128 : index
    %258 = vector.load %arg26[%c0_211, %c128_212] : memref<1x288xf32, #tpu.memory_space<vmem>>, vector<1x32xf32>
    tpu.vector_store %arg26[%c0_211, %c128_212], %257 {strides = array<i32>} : memref<1x288xf32, #tpu.memory_space<vmem>>, vector<1x32xf32>,
    %c16_213 = arith.constant 16 : index
    %c0_214 = arith.constant 0 : index
    %259 = vector.load %arg25[%c16_213, %c0_214] : memref<36x32xf32, #tpu.memory_space<vmem>>, vector<1x32xf32>
    %c0_215 = arith.constant 0 : index
    %c160 = arith.constant 160 : index
    %260 = vector.load %arg26[%c0_215, %c160] : memref<1x288xf32, #tpu.memory_space<vmem>>, vector<1x32xf32>
    tpu.vector_store %arg26[%c0_215, %c160], %259 {strides = array<i32>} : memref<1x288xf32, #tpu.memory_space<vmem>>, vector<1x32xf32>,
    %c24_216 = arith.constant 24 : index
    %c0_217 = arith.constant 0 : index
    %261 = vector.load %arg25[%c24_216, %c0_217] : memref<36x32xf32, #tpu.memory_space<vmem>>, vector<1x32xf32>
    %c0_218 = arith.constant 0 : index
    %c192 = arith.constant 192 : index
    %262 = vector.load %arg26[%c0_218, %c192] : memref<1x288xf32, #tpu.memory_space<vmem>>, vector<1x32xf32>
    tpu.vector_store %arg26[%c0_218, %c192], %261 {strides = array<i32>} : memref<1x288xf32, #tpu.memory_space<vmem>>, vector<1x32xf32>,
    %c26_219 = arith.constant 26 : index
    %c0_220 = arith.constant 0 : index
    %263 = vector.load %arg25[%c26_219, %c0_220] : memref<36x32xf32, #tpu.memory_space<vmem>>, vector<1x32xf32>
    %c0_221 = arith.constant 0 : index
    %c224 = arith.constant 224 : index
    %264 = vector.load %arg26[%c0_221, %c224] : memref<1x288xf32, #tpu.memory_space<vmem>>, vector<1x32xf32>
    tpu.vector_store %arg26[%c0_221, %c224], %263 {strides = array<i32>} : memref<1x288xf32, #tpu.memory_space<vmem>>, vector<1x32xf32>,
    %c28 = arith.constant 28 : index
    %c0_222 = arith.constant 0 : index
    %265 = vector.load %arg25[%c28, %c0_222] : memref<36x32xf32, #tpu.memory_space<vmem>>, vector<1x32xf32>
    %c0_223 = arith.constant 0 : index
    %c256 = arith.constant 256 : index
    %266 = vector.load %arg26[%c0_223, %c256] : memref<1x288xf32, #tpu.memory_space<vmem>>, vector<1x32xf32>
    tpu.vector_store %arg26[%c0_223, %c256], %265 {strides = array<i32>} : memref<1x288xf32, #tpu.memory_space<vmem>>, vector<1x32xf32>,
    %c0_224 = arith.constant 0 : index
    %c0_225 = arith.constant 0 : index
    %267 = vector.load %arg26[%c0_224, %c0_225] : memref<1x288xf32, #tpu.memory_space<vmem>>, vector<1x288xf32>
    %268 = arith.truncf %267 : vector<1x288xf32> to vector<1x288xbf16>
    %c0_226 = arith.constant 0 : index
    %c0_227 = arith.constant 0 : index
    %269 = vector.load %arg11[%c0_226, %c0_227] : memref<288x32xbf16, #tpu.memory_space<vmem>>, vector<288x32xbf16>
    %cst_228 = arith.constant dense<0.000000e+00> : vector<1x32xf32>
    %270 = tpu.matmul %268, %269, %cst_228 {dimension_numbers = #tpu.dot_dimension_numbers<[1], [0], [0], [1], [0, 0, 1, 1], [], []>} : vector<1x288xbf16>, vector<288x32xbf16>, vector<1x32xf32> -> vector<1x32xf32>
    %c0_229 = arith.constant 0 : index
    %c0_230 = arith.constant 0 : index
    %271 = vector.load %arg12[%c0_229, %c0_230] : memref<1x32xf32, #tpu.memory_space<vmem>>, vector<1x32xf32>
    %272 = arith.addf %270, %271 : vector<1x32xf32>
    %273 = arith.truncf %272 : vector<1x32xf32> to vector<1x32xbf16>
    %c0_231 = arith.constant 0 : index
    %c0_232 = arith.constant 0 : index
    %274 = vector.load %arg13[%c0_231, %c0_232] : memref<32x1xbf16, #tpu.memory_space<vmem>>, vector<32x1xbf16>
    %cst_233 = arith.constant dense<0.000000e+00> : vector<1x1xf32>
    %275 = tpu.matmul %273, %274, %cst_233 {dimension_numbers = #tpu.dot_dimension_numbers<[1], [0], [0], [1], [0, 0, 1, 1], [], []>} : vector<1x32xbf16>, vector<32x1xbf16>, vector<1x1xf32> -> vector<1x1xf32>
    %c0_234 = arith.constant 0 : index
    %c0_235 = arith.constant 0 : index
    %276 = vector.load %arg14[%c0_234, %c0_235] : memref<1x1xf32, #tpu.memory_space<vmem>>, vector<1x1xf32>
    %277 = arith.addf %275, %276 : vector<1x1xf32>
    %278 = arith.negf %277 : vector<1x1xf32>
    %279 = math.exp %278 : vector<1x1xf32>
    %cst_236 = arith.constant 1.000000e+00 : f32
    %280 = vector.broadcast %cst_236 : f32 to vector<1x1xf32>
    %281 = arith.addf %280, %279 : vector<1x1xf32>
    %282 = arith.divf %280, %281 : vector<1x1xf32>
    %cst_237 = arith.constant 8.000000e-01 : f32
    %283 = vector.broadcast %cst_237 : f32 to vector<1x1xf32>
    %284 = arith.mulf %282, %283 : vector<1x1xf32>
    %cst_238 = arith.constant 1.000000e-01 : f32
    %285 = vector.broadcast %cst_238 : f32 to vector<1x1xf32>
    %286 = arith.addf %284, %285 : vector<1x1xf32>
    %c0_239 = arith.constant 0 : index
    %c0_240 = arith.constant 0 : index
    %c0_241 = arith.constant 0 : index
    %287 = vector.load %arg15[%c0_239, %c0_240, %c0_241] : memref<1x1x1xf32, #tpu.memory_space<vmem>>, vector<1x1x1xf32>
    %288 = vector.shape_cast %287 : vector<1x1x1xf32> to vector<1x1xf32>
    %289 = vector.shape_cast %286 : vector<1x1xf32> to vector<1x1x1xf32>
    tpu.vector_store %arg15[%c0_239, %c0_240, %c0_241], %289 {strides = array<i32>} : memref<1x1x1xf32, #tpu.memory_space<vmem>>, vector<1x1x1xf32>,
    return
  }
  func.func @transform_0(%arg0: i32) -> (i32, i32, i32) {
    %c0_i32 = arith.constant 0 : i32
    %c0_i32_0 = arith.constant 0 : i32
    %c0_i32_1 = arith.constant 0 : i32
    return %arg0, %c0_i32, %c0_i32_0 : i32, i32, i32
  }
  func.func @transform_1(%arg0: i32) -> (i32, i32) {
    %c0_i32 = arith.constant 0 : i32
    %c0_i32_0 = arith.constant 0 : i32
    %c0_i32_1 = arith.constant 0 : i32
    return %c0_i32, %c0_i32_0 : i32, i32
  }
  func.func @transform_2(%arg0: i32) -> (i32, i32) {
    %c0_i32 = arith.constant 0 : i32
    %c0_i32_0 = arith.constant 0 : i32
    %c0_i32_1 = arith.constant 0 : i32
    return %c0_i32, %c0_i32_0 : i32, i32
  }
  func.func @transform_3(%arg0: i32) -> (i32, i32) {
    %c0_i32 = arith.constant 0 : i32
    %c0_i32_0 = arith.constant 0 : i32
    %c0_i32_1 = arith.constant 0 : i32
    return %c0_i32, %c0_i32_0 : i32, i32
  }
  func.func @transform_4(%arg0: i32) -> (i32, i32) {
    %c0_i32 = arith.constant 0 : i32
    %c0_i32_0 = arith.constant 0 : i32
    %c0_i32_1 = arith.constant 0 : i32
    return %c0_i32, %c0_i32_0 : i32, i32
  }
  func.func @transform_5(%arg0: i32) -> (i32, i32) {
    %c0_i32 = arith.constant 0 : i32
    %c0_i32_0 = arith.constant 0 : i32
    %c0_i32_1 = arith.constant 0 : i32
    return %c0_i32, %c0_i32_0 : i32, i32
  }
  func.func @transform_6(%arg0: i32) -> (i32, i32) {
    %c0_i32 = arith.constant 0 : i32
    %c0_i32_0 = arith.constant 0 : i32
    %c0_i32_1 = arith.constant 0 : i32
    return %c0_i32, %c0_i32_0 : i32, i32
  }
  func.func @transform_7(%arg0: i32) -> (i32, i32) {
    %c0_i32 = arith.constant 0 : i32
    %c0_i32_0 = arith.constant 0 : i32
    %c0_i32_1 = arith.constant 0 : i32
    return %c0_i32, %c0_i32_0 : i32, i32
  }
  func.func @transform_8(%arg0: i32) -> (i32, i32) {
    %c0_i32 = arith.constant 0 : i32
    %c0_i32_0 = arith.constant 0 : i32
    %c0_i32_1 = arith.constant 0 : i32
    return %c0_i32, %c0_i32_0 : i32, i32
  }
  func.func @transform_9(%arg0: i32) -> (i32, i32) {
    %c0_i32 = arith.constant 0 : i32
    %c0_i32_0 = arith.constant 0 : i32
    %c0_i32_1 = arith.constant 0 : i32
    return %c0_i32, %c0_i32_0 : i32, i32
  }
  func.func @transform_10(%arg0: i32) -> (i32, i32) {
    %c0_i32 = arith.constant 0 : i32
    %c0_i32_0 = arith.constant 0 : i32
    %c0_i32_1 = arith.constant 0 : i32
    return %c0_i32, %c0_i32_0 : i32, i32
  }
  func.func @transform_11(%arg0: i32) -> (i32, i32) {
    %c0_i32 = arith.constant 0 : i32
    %c0_i32_0 = arith.constant 0 : i32
    %c0_i32_1 = arith.constant 0 : i32
    return %c0_i32, %c0_i32_0 : i32, i32
  }
  func.func @transform_12(%arg0: i32) -> (i32, i32) {
    %c0_i32 = arith.constant 0 : i32
    %c0_i32_0 = arith.constant 0 : i32
    %c0_i32_1 = arith.constant 0 : i32
    return %c0_i32, %c0_i32_0 : i32, i32
  }
  func.func @transform_13(%arg0: i32) -> (i32, i32) {
    %c0_i32 = arith.constant 0 : i32
    %c0_i32_0 = arith.constant 0 : i32
    %c0_i32_1 = arith.constant 0 : i32
    return %c0_i32, %c0_i32_0 : i32, i32
  }
  func.func @transform_14(%arg0: i32) -> (i32, i32, i32) {
    %c0_i32 = arith.constant 0 : i32
    %c0_i32_0 = arith.constant 0 : i32
    %c0_i32_1 = arith.constant 0 : i32
    return %arg0, %c0_i32, %c0_i32_0 : i32, i32, i32
  }
}

</mosaic_0001>

<bundles_post_ra>
// kernel: quant_weight_net_forward.1
= control target key start
LH: loop header
LB: loop body
LE: loop exit
PB: predicated region body
PF: predicated region fallthrough
CT: control target
= control target key end

     0   :  { %s7464_s15 = smov 0   ;;  %s12759_s0 = inlined_call_operand.vmem [shape: f32[2,362,1], index: 0, kind: input, shape index: {}]   ;;  %s12760_s1 = inlined_call_operand.vmem [shape: f32[9,8], index: 1, kind: input, shape index: {}]   ;;  %s12761_s2 = inlined_call_operand.vmem [shape: f32[1,8], index: 2, kind: input, shape index: {}]   ;;  %s12762_s3 = inlined_call_operand.vmem [shape: f32[324,1], index: 3, kind: input, shape index: {}]   ;;  %s12763_s4 = inlined_call_operand.vmem [shape: bf16[72,16], index: 4, kind: input, shape index: {}]   ;;  %s12764_s5 = inlined_call_operand.vmem [shape: f32[1,16], index: 5, kind: input, shape index: {}]   ;;  %s12765_s6 = inlined_call_operand.vmem [shape: f32[100,1], index: 6, kind: input, shape index: {}]   ;;  %s12766_s7 = inlined_call_operand.vmem [shape: bf16[144,32], index: 7, kind: input, shape index: {}]   ;;  %s12767_s8 = inlined_call_operand.vmem [shape: f32[1,32], index: 8, kind: input, shape index: {}]   ;;  %s12768_s9 = inlined_call_operand.vmem [shape: f32[36,1], index: 9, kind: input, shape index: {}]   ;;  %s12769_s10 = inlined_call_operand.vmem [shape: bf16[288,32], index: 10, kind: input, shape index: {}]   ;;  %s12770_s11 = inlined_call_operand.vmem [shape: f32[1,32], index: 11, kind: input, shape index: {}]   ;;  %s12771_s12 = inlined_call_operand.vmem [shape: bf16[32,1], index: 12, kind: input, shape index: {}]   ;;  %s12772_s13 = inlined_call_operand.<no memory space> [shape: f32[1,1], index: 13, kind: input, shape index: {}]   ;;  %s12773_s14 = inlined_call_operand.vmem [shape: f32[2,1,1], index: 14, kind: output, shape index: {}]  }
   0x1   :  { %v19_v0 = vstv %s12772_s13 }
   0x2   :  { %20 = vst [vmem:[#allocation13] sm:$0x1] %v19_v0 }
   0x3 LB: > { %s6599_s16 = sadd.s32 4294967295, %s7371_s15   ;;  %p6603_p0 = scmp.ge.s32.totalorder %s7371_s15, 1  ;;  %s7371_s15 = sphi %s7464_s15, %s26_s15  }
   0x4   : > { %p414_p1 = scmp.lt.s32.totalorder %s7371_s15, 3 }
   0x6   : > { %p415_p2 = pnand %p6603_p0, %p414_p1 }
   0x8   : > { %418 = sbr.rel (%p415_p2) target bundleno = 3386 (0xd3a), region = 76 }
   0xd   : > { %p458_p3 = scmp.lt.s32.totalorder %s6599_s16, 1  ;;  %v7373_v1 = vmov 0   ;;  %vm467_vm0 = vcmask 64512   ;;  %vm3872_vm1 = vcmask 60416   ;;  %s7375_s20 = smov 8  }
   0xe   : > { %7342 = vset.pattern.permute.xlu2 %v7373_v1  ;;  %7341 = vset.pattern.permute.xlu1 %v7373_v1  ;;  %s7376_s21 = smov 16   ;;  %s7377_s22 = smov 24  }
   0xf   : > { %7340 = vset.pattern.permute.xlu0 %v7373_v1  ;;  %s13856_s16 = smov (!%p458_p3, %s6599_s16), 1  ;;  %s7378_s24 = smov 32  }
  0x10   : > { %s6840_s13 = smul.u32 368, %s13856_s16  ;;  %s7379_s25 = smov 40  }
  0x11   : > { %s7380_s26 = smov 48   ;;  %s7381_s27 = smov 56  }
  0x12   : > { %s7478_s19 = scalar_lea.vmem %s12759_s0, %s6840_s13  ;;  %s7383_s30 = smov 112  }
  0x13   : > { %v498_v2 = vld [vmem:[%s7478_s19 + $0x20] sm:$0xff]  ;;  %v496_v3 = vld [vmem:[%s7478_s19 + $0x10] sm:$0xff]  ;;  %v499_v5 = vld [vmem:[%s7478_s19 + $0x28] sm:$0xff] }
  0x14   : > { %v494_v4 = vld [vmem:[%s7478_s19] sm:$0xff]  ;;  %558 = vperm.xlu2 %7342, %v498_v2   ;;  %548 = vperm.xlu1 %7341, %v496_v3   ;;  %v497_v6 = vld [vmem:[%s7478_s19 + $0x18] sm:$0xff]  ;;  %v495_v7 = vld [vmem:[%s7478_s19 + $0x8] sm:$0xff] }
  0x15   : > { %538 = vperm.xlu0 %7340, %v494_v4   ;;  %v502_v8 = vld [vmem:[%s7478_s19 + $0x40] sm:$0xff]  ;;  %v501_v9 = vld [vmem:[%s7478_s19 + $0x38] sm:$0xff]  ;;  %v500_v10 = vld [vmem:[%s7478_s19 + $0x30] sm:$0xff] }
  0x16   : > { %v505_v11 = vld [vmem:[%s7478_s19 + $0x58] sm:$0xff]  ;;  %v504_v12 = vld [vmem:[%s7478_s19 + $0x50] sm:$0xff]  ;;  %v503_v13 = vld [vmem:[%s7478_s19 + $0x48] sm:$0xff] }
  0x17   : > { %v508_v14 = vld [vmem:[%s7478_s19 + $0x70] sm:$0xff]  ;;  %v507_v15 = vld [vmem:[%s7478_s19 + $0x68] sm:$0xff]  ;;  %v506_v16 = vld [vmem:[%s7478_s19 + $0x60] sm:$0xff] }
  0x18   : > { %v511_v17 = vld [vmem:[%s7478_s19 + $0x88] sm:$0xff]  ;;  %v510_v18 = vld [vmem:[%s7478_s19 + $0x80] sm:$0xff]  ;;  %v509_v19 = vld [vmem:[%s7478_s19 + $0x78] sm:$0xff] }
  0x19   : > { %v514_v20 = vld [vmem:[%s7478_s19 + $0xa0] sm:$0xff]  ;;  %v513_v21 = vld [vmem:[%s7478_s19 + $0x98] sm:$0xff]  ;;  %v512_v22 = vld [vmem:[%s7478_s19 + $0x90] sm:$0xff] }
  0x1a   : > { %v517_v23 = vld [vmem:[%s7478_s19 + $0xb8] sm:$0xff]  ;;  %v516_v24 = vld [vmem:[%s7478_s19 + $0xb0] sm:$0xff]  ;;  %v515_v25 = vld [vmem:[%s7478_s19 + $0xa8] sm:$0xff] }
  0x1b   : > { %v520_v26 = vld [vmem:[%s7478_s19 + $0xd0] sm:$0xff]  ;;  %v519_v27 = vld [vmem:[%s7478_s19 + $0xc8] sm:$0xff]  ;;  %v518_v28 = vld [vmem:[%s7478_s19 + $0xc0] sm:$0xff] }
  0x1c   : > { %563 = vperm.xlu2 %7342, %v499_v5   ;;  %553 = vperm.xlu1 %7341, %v497_v6   ;;  %v523_v29 = vld [vmem:[%s7478_s19 + $0xe8] sm:$0xff]  ;;  %v522_v30 = vld [vmem:[%s7478_s19 + $0xe0] sm:$0xff]  ;;  %v521_v31 = vld [vmem:[%s7478_s19 + $0xd8] sm:$0xff] }
  0x1d   : > { %543 = vperm.xlu0 %7340, %v495_v7   ;;  %v526_v32 = vld [vmem:[%s7478_s19 + $0x100] sm:$0xff]  ;;  %v525_v33 = vld [vmem:[%s7478_s19 + $0xf8] sm:$0xff]  ;;  %v524_v34 = vld [vmem:[%s7478_s19 + $0xf0] sm:$0xff] }
  0x1e   : > { %v529_v35 = vld [vmem:[%s7478_s19 + $0x118] sm:$0xff]  ;;  %v528_v36 = vld [vmem:[%s7478_s19 + $0x110] sm:$0xff]  ;;  %v527_v37 = vld [vmem:[%s7478_s19 + $0x108] sm:$0xff] }
  0x1f   : > { %v532_v39 = vld [vmem:[%s7478_s19 + $0x130] sm:$0xff]  ;;  %v531_v40 = vld [vmem:[%s7478_s19 + $0x128] sm:$0xff]  ;;  %v530_v41 = vld [vmem:[%s7478_s19 + $0x120] sm:$0xff] }
  0x20   : > { %v783_v43 = vld [vmem:[%s7478_s19 + $0x1] sm:$0xff]  ;;  %v533_v45 = vld [vmem:[%s7478_s19 + $0x138] sm:$0xff]  ;;  %v784_v49 = vld [vmem:[%s7478_s19 + $0x9] sm:$0xff] }
  0x21   : > { %v534_v44 = vld [vmem:[%s7478_s19 + $0x140] sm:$0xf]  ;;  %v785_v48 = vld [vmem:[%s7478_s19 + $0x11] sm:$0xff]  ;;  %v788_v54 = vld [vmem:[%s7478_s19 + $0x29] sm:$0xff] }
  0x22   : > { %v786_v47 = vld [vmem:[%s7478_s19 + $0x19] sm:$0xff]  ;;  %v789_v53 = vld [vmem:[%s7478_s19 + $0x31] sm:$0xff]  ;;  %v787_v55 = vld [vmem:[%s7478_s19 + $0x21] sm:$0xff] }
  0x23   : > { %v792_v59 = vld [vmem:[%s7478_s19 + $0x49] sm:$0xff]  ;;  %v791_v60 = vld [vmem:[%s7478_s19 + $0x41] sm:$0xff]  ;;  %v790_v61 = vld [vmem:[%s7478_s19 + $0x39] sm:$0xff] }
  0x24   : > { %578 = vperm.xlu2 %7342, %v502_v8   ;;  %573 = vperm.xlu1 %7341, %v501_v9   ;;  %v795_v1 = vld [vmem:[%s7478_s19 + $0x61] sm:$0xff]  ;;  %v794_v2 = vld [vmem:[%s7478_s19 + $0x59] sm:$0xff]  ;;  %v793_v3 = vld [vmem:[%s7478_s19 + $0x51] sm:$0xff] }
  0x25   : > { %568 = vperm.xlu0 %7340, %v500_v10   ;;  %v798_v7 = vld [vmem:[%s7478_s19 + $0x79] sm:$0xff]  ;;  %v797_v8 = vld [vmem:[%s7478_s19 + $0x71] sm:$0xff]  ;;  %v796_v9 = vld [vmem:[%s7478_s19 + $0x69] sm:$0xff] }
  0x2c   : > { %593 = vperm.xlu2 %7342, %v505_v11   ;;  %588 = vperm.xlu1 %7341, %v504_v12  }
  0x2d   : > { %583 = vperm.xlu0 %7340, %v503_v13   ;;  %v801_v13 = vld [vmem:[%s7478_s19 + $0x91] sm:$0xff] }
  0x34   : > { %608 = vperm.xlu2 %7342, %v508_v14   ;;  %603 = vperm.xlu1 %7341, %v507_v15   ;;  %v800_v14 = vld [vmem:[%s7478_s19 + $0x89] sm:$0xff]  ;;  %v799_v15 = vld [vmem:[%s7478_s19 + $0x81] sm:$0xff] }
  0x35   : > { %598 = vperm.xlu0 %7340, %v506_v16  }
  0x3c   : > { %623 = vperm.xlu2 %7342, %v511_v17   ;;  %618 = vperm.xlu1 %7341, %v510_v18  }
  0x3d   : > { %613 = vperm.xlu0 %7340, %v509_v19   ;;  %v804_v19 = vld [vmem:[%s7478_s19 + $0xa9] sm:$0xff] }
  0x44   : > { %638 = vperm.xlu2 %7342, %v514_v20   ;;  %633 = vperm.xlu1 %7341, %v513_v21   ;;  %v803_v20 = vld [vmem:[%s7478_s19 + $0xa1] sm:$0xff]  ;;  %v802_v21 = vld [vmem:[%s7478_s19 + $0x99] sm:$0xff] }
  0x45   : > { %628 = vperm.xlu0 %7340, %v512_v22  }
  0x4c   : > { %653 = vperm.xlu2 %7342, %v517_v23   ;;  %648 = vperm.xlu1 %7341, %v516_v24  }
  0x4d   : > { %643 = vperm.xlu0 %7340, %v515_v25   ;;  %v807_v25 = vld [vmem:[%s7478_s19 + $0xc1] sm:$0xff] }
  0x54   : > { %668 = vperm.xlu2 %7342, %v520_v26   ;;  %663 = vperm.xlu1 %7341, %v519_v27   ;;  %v806_v26 = vld [vmem:[%s7478_s19 + $0xb9] sm:$0xff]  ;;  %v805_v27 = vld [vmem:[%s7478_s19 + $0xb1] sm:$0xff] }
  0x55   : > { %658 = vperm.xlu0 %7340, %v518_v28  }
  0x5c   : > { %683 = vperm.xlu2 %7342, %v523_v29   ;;  %678 = vperm.xlu1 %7341, %v522_v30  }
  0x5d   : > { %673 = vperm.xlu0 %7340, %v521_v31   ;;  %v810_v31 = vld [vmem:[%s7478_s19 + $0xd9] sm:$0xff] }
  0x64   : > { %698 = vperm.xlu2 %7342, %v526_v32   ;;  %693 = vperm.xlu1 %7341, %v525_v33   ;;  %v809_v32 = vld [vmem:[%s7478_s19 + $0xd1] sm:$0xff]  ;;  %v808_v33 = vld [vmem:[%s7478_s19 + $0xc9] sm:$0xff] }
  0x65   : > { %688 = vperm.xlu0 %7340, %v524_v34  }
  0x6c   : > { %713 = vperm.xlu2 %7342, %v529_v35   ;;  %708 = vperm.xlu1 %7341, %v528_v36  }
  0x6d   : > { %703 = vperm.xlu0 %7340, %v527_v37   ;;  %v813_v37 = vld [vmem:[%s7478_s19 + $0xf1] sm:$0xff] }
  0x6e   : > { %v7516_v38 = vpop.permute.xlu2 %558 }
  0x74   : > { %728 = vperm.xlu2 %7342, %v532_v39   ;;  %723 = vperm.xlu1 %7341, %v531_v40   ;;  %v812_v39 = vld [vmem:[%s7478_s19 + $0xe9] sm:$0xff]  ;;  %v811_v40 = vld [vmem:[%s7478_s19 + $0xe1] sm:$0xff] }
  0x75   : > { %718 = vperm.xlu0 %7340, %v530_v41  }
  0x76   : > { %v7521_v42 = vpop.permute.xlu2 %563 }
  0x7c   : > { %827 = vperm.xlu2 %7342, %v783_v43   ;;  %738 = vperm.xlu1 %7341, %v534_v44  }
  0x7d   : > { %733 = vperm.xlu0 %7340, %v533_v45   ;;  %v816_v45 = vld [vmem:[%s7478_s19 + $0x109] sm:$0xff] }
  0x7e   : > { %v7526_v46 = vpop.permute.xlu2 %578 }
  0x84   : > { %842 = vperm.xlu2 %7342, %v786_v47   ;;  %837 = vperm.xlu1 %7341, %v785_v48   ;;  %v815_v47 = vld [vmem:[%s7478_s19 + $0x101] sm:$0xff]  ;;  %v814_v48 = vld [vmem:[%s7478_s19 + $0xf9] sm:$0xff] }
  0x85   : > { %832 = vperm.xlu0 %7340, %v784_v49  }
  0x86   : > { %v7531_v50 = vpop.permute.xlu2 %593  ;;  %v7533_v51 = vpop.permute.xlu1 %548 }
  0x87   : > { %v7535_v52 = vpop.permute.xlu0 %538 }
  0x8c   : > { %857 = vperm.xlu2 %7342, %v789_v53   ;;  %852 = vperm.xlu1 %7341, %v788_v54  }
  0x8d   : > { %847 = vperm.xlu0 %7340, %v787_v55   ;;  %v819_v55 = vld [vmem:[%s7478_s19 + $0x121] sm:$0xff] }
  0x8e   : > { %v7540_v56 = vpop.permute.xlu2 %608  ;;  %v7542_v57 = vpop.permute.xlu1 %553 }
  0x8f   : > { %v7544_v58 = vpop.permute.xlu0 %543 }
  0x94   : > { %872 = vperm.xlu2 %7342, %v792_v59   ;;  %867 = vperm.xlu1 %7341, %v791_v60   ;;  %v818_v59 = vld [vmem:[%s7478_s19 + $0x119] sm:$0xff]  ;;  %v817_v60 = vld [vmem:[%s7478_s19 + $0x111] sm:$0xff] }
  0x95   : > { %862 = vperm.xlu0 %7340, %v790_v61  }
  0x96   : > { %v7549_v62 = vpop.permute.xlu2 %623  ;;  %v7551_v63 = vpop.permute.xlu1 %573 }
  0x97   : > { %v7553_v0 = vpop.permute.xlu0 %568 }
  0x9c   : > { %887 = vperm.xlu2 %7342, %v795_v1   ;;  %882 = vperm.xlu1 %7341, %v794_v2  }
  0x9d   : > { %877 = vperm.xlu0 %7340, %v793_v3   ;;  %v822_v3 = vld [vmem:[%s7478_s19 + $0x139] sm:$0xff] }
  0x9e   : > { %v7558_v4 = vpop.permute.xlu2 %638  ;;  %v7560_v5 = vpop.permute.xlu1 %588 }
  0x9f   : > { %v7562_v6 = vpop.permute.xlu0 %583 }
  0xa4   : > { %902 = vperm.xlu2 %7342, %v798_v7   ;;  %897 = vperm.xlu1 %7341, %v797_v8   ;;  %v821_v7 = vld [vmem:[%s7478_s19 + $0x131] sm:$0xff]  ;;  %v820_v8 = vld [vmem:[%s7478_s19 + $0x129] sm:$0xff] }
  0xa5   : > { %892 = vperm.xlu0 %7340, %v796_v9  }
  0xa6   : > { %v7567_v10 = vpop.permute.xlu2 %653  ;;  %v7569_v11 = vpop.permute.xlu1 %603 }
  0xa7   : > { %v7571_v12 = vpop.permute.xlu0 %598 }
  0xac   : > { %917 = vperm.xlu2 %7342, %v801_v13   ;;  %912 = vperm.xlu1 %7341, %v800_v14  }
  0xad   : > { %907 = vperm.xlu0 %7340, %v799_v15   ;;  %v1114_v15 = vld [vmem:[%s7478_s19 + $0xa] sm:$0xff] }
  0xae   : > { %v7576_v16 = vpop.permute.xlu2 %668  ;;  %v7578_v17 = vpop.permute.xlu1 %618 }
  0xaf   : > { %12820 = vst [vmem:[#allocation14_spill] sm:$0xff] %v7578_v17  ;;  %v7580_v18 = vpop.permute.xlu0 %613 }
  0xb0   : > { %12821 = vst [vmem:[#allocation15_spill] sm:$0xff] %v7580_v18 }
  0xb4   : > { %932 = vperm.xlu2 %7342, %v804_v19   ;;  %927 = vperm.xlu1 %7341, %v803_v20   ;;  %v1113_v19 = vld [vmem:[%s7478_s19 + $0x2] sm:$0xff] }
  0xb5   : > { %922 = vperm.xlu0 %7340, %v802_v21   ;;  %v823_v20 = vld [vmem:[%s7478_s19 + $0x141] sm:$0xf] }
  0xb6   : > { %v7585_v22 = vpop.permute.xlu2 %683  ;;  %v7587_v23 = vpop.permute.xlu1 %633 }
  0xb7   : > { %12822 = vst [vmem:[#allocation16_spill] sm:$0xff] %v7585_v22  ;;  %v7589_v24 = vpop.permute.xlu0 %628 }
  0xb8   : > { %12823 = vst [vmem:[#allocation17_spill] sm:$0xff] %v7587_v23  ;;  %v7875_v23 = vld [vmem:[%s7478_s19 + $0x132] sm:$0xff] }
  0xb9   : > { %12824 = vst [vmem:[#allocation18_spill] sm:$0xff] %v7589_v24  ;;  %v7859_v24 = vld [vmem:[%s7478_s19 + $0x11a] sm:$0xff] }
  0xbc   : > { %947 = vperm.xlu2 %7342, %v807_v25   ;;  %942 = vperm.xlu1 %7341, %v806_v26  }
  0xbd   : > { %937 = vperm.xlu0 %7340, %v805_v27   ;;  %v7655_v27 = vld [vmem:[%s7478_s19 + $0x22] sm:$0xff] }
  0xbe   : > { %v7594_v28 = vpop.permute.xlu2 %698  ;;  %v7596_v29 = vpop.permute.xlu1 %648 }
  0xbf   : > { %12825 = vst [vmem:[#allocation19_spill] sm:$0xff] %v7594_v28  ;;  %v7598_v30 = vpop.permute.xlu0 %643  ;;  %v7856_v28 = vld [vmem:[%s7478_s19 + $0x122] sm:$0xff] }
  0xc0   : > { %12826 = vst [vmem:[#allocation20_spill] sm:$0xff] %v7596_v29  ;;  %v7853_v29 = vld [vmem:[%s7478_s19 + $0x12a] sm:$0xff] }
  0xc1   : > { %12827 = vst [vmem:[#allocation21_spill] sm:$0xff] %v7598_v30  ;;  %v7841_v30 = vld [vmem:[%s7478_s19 + $0x102] sm:$0xff] }
  0xc4   : > { %962 = vperm.xlu2 %7342, %v810_v31   ;;  %957 = vperm.xlu1 %7341, %v809_v32   ;;  %v7658_v31 = vld [vmem:[%s7478_s19 + $0x1a] sm:$0xff]  ;;  %v7661_v32 = vld [vmem:[%s7478_s19 + $0x12] sm:$0xff] }
  0xc5   : > { %952 = vperm.xlu0 %7340, %v808_v33  }
  0xc6   : > { %v7603_v34 = vpop.permute.xlu2 %713  ;;  %v7605_v35 = vpop.permute.xlu1 %663 }
  0xc7   : > { %12828 = vst [vmem:[#allocation22_spill] sm:$0xff] %v7603_v34  ;;  %v7607_v36 = vpop.permute.xlu0 %658  ;;  %v7838_v34 = vld [vmem:[%s7478_s19 + $0x10a] sm:$0xff] }
  0xc8   : > { %12829 = vst [vmem:[#allocation23_spill] sm:$0xff] %v7605_v35  ;;  %v7835_v35 = vld [vmem:[%s7478_s19 + $0x112] sm:$0xff] }
  0xc9   : > { %12830 = vst [vmem:[#allocation24_spill] sm:$0xff] %v7607_v36  ;;  %v7823_v36 = vld [vmem:[%s7478_s19 + $0xea] sm:$0xff] }
  0xcc   : > { %977 = vperm.xlu2 %7342, %v813_v37   ;;  %972 = vperm.xlu1 %7341, %v812_v39  }
  0xcd   : > { %967 = vperm.xlu0 %7340, %v811_v40   ;;  %v7673_v40 = vld [vmem:[%s7478_s19 + $0x3a] sm:$0xff] }
  0xce   : > { %v7612_v41 = vpop.permute.xlu2 %728  ;;  %v7614_v43 = vpop.permute.xlu1 %678 }
  0xcf   : > { %12831 = vst [vmem:[#allocation25_spill] sm:$0xff] %v7612_v41  ;;  %v7616_v44 = vpop.permute.xlu0 %673  ;;  %v7820_v41 = vld [vmem:[%s7478_s19 + $0xf2] sm:$0xff] }
  0xd0   : > { %12832 = vst [vmem:[#allocation26_spill] sm:$0xff] %v7614_v43  ;;  %v7817_v43 = vld [vmem:[%s7478_s19 + $0xfa] sm:$0xff] }
  0xd1   : > { %12833 = vst [vmem:[#allocation27_spill] sm:$0xff] %v7616_v44  ;;  %v7805_v44 = vld [vmem:[%s7478_s19 + $0xd2] sm:$0xff] }
  0xd4   : > { %992 = vperm.xlu2 %7342, %v816_v45   ;;  %987 = vperm.xlu1 %7341, %v815_v47   ;;  %v7676_v45 = vld [vmem:[%s7478_s19 + $0x32] sm:$0xff]  ;;  %v7679_v47 = vld [vmem:[%s7478_s19 + $0x2a] sm:$0xff] }
  0xd5   : > { %982 = vperm.xlu0 %7340, %v814_v48  }
  0xd6   : > { %v7621_v49 = vpop.permute.xlu2 %827  ;;  %v7623_v53 = vpop.permute.xlu1 %693 }
  0xd7   : > { %12834 = vst [vmem:[#allocation28_spill] sm:$0xff] %v7621_v49  ;;  %v7625_v54 = vpop.permute.xlu0 %688 }
  0xd8   : > { %12835 = vst [vmem:[#allocation29_spill] sm:$0xff] %v7623_v53  ;;  %v7802_v53 = vld [vmem:[%s7478_s19 + $0xda] sm:$0xff] }
  0xd9   : > { %12836 = vst [vmem:[#allocation30_spill] sm:$0xff] %v7625_v54  ;;  %v7799_v54 = vld [vmem:[%s7478_s19 + $0xe2] sm:$0xff] }
  0xdc   : > { %1007 = vperm.xlu2 %7342, %v819_v55   ;;  %1002 = vperm.xlu1 %7341, %v818_v59  }
  0xdd   : > { %997 = vperm.xlu0 %7340, %v817_v60   ;;  %v7691_v60 = vld [vmem:[%s7478_s19 + $0x52] sm:$0xff] }
  0xde   : > { %v7630_v61 = vpop.permute.xlu2 %842  ;;  %v7632_v1 = vpop.permute.xlu1 %708 }
  0xdf   : > { %12837 = vst [vmem:[#allocation31_spill] sm:$0xff] %v7630_v61  ;;  %v7634_v2 = vpop.permute.xlu0 %703 }
  0xe0   : > { %12838 = vst [vmem:[#allocation32_spill] sm:$0xff] %v7632_v1  ;;  %v7787_v1 = vld [vmem:[%s7478_s19 + $0xba] sm:$0xff] }
  0xe1   : > { %12839 = vst [vmem:[#allocation33_spill] sm:$0xff] %v7634_v2  ;;  %v7784_v2 = vld [vmem:[%s7478_s19 + $0xc2] sm:$0xff] }
  0xe4   : > { %1022 = vperm.xlu2 %7342, %v822_v3   ;;  %1017 = vperm.xlu1 %7341, %v821_v7   ;;  %v7694_v3 = vld [vmem:[%s7478_s19 + $0x4a] sm:$0xff]  ;;  %v7697_v7 = vld [vmem:[%s7478_s19 + $0x42] sm:$0xff] }
  0xe5   : > { %1012 = vperm.xlu0 %7340, %v820_v8  }
  0xe6   : > { %v7639_v9 = vpop.permute.xlu2 %857  ;;  %v7641_v13 = vpop.permute.xlu1 %723 }
  0xe7   : > { %12840 = vst [vmem:[#allocation34_spill] sm:$0xff] %v7639_v9  ;;  %v7643_v14 = vpop.permute.xlu0 %718  ;;  %v7781_v9 = vld [vmem:[%s7478_s19 + $0xca] sm:$0xff] }
  0xe8   : > { %12841 = vst [vmem:[#allocation35_spill] sm:$0xff] %v7641_v13  ;;  %v7769_v13 = vld [vmem:[%s7478_s19 + $0xa2] sm:$0xff] }
  0xe9   : > { %12842 = vst [vmem:[#allocation36_spill] sm:$0xff] %v7643_v14  ;;  %v7766_v14 = vld [vmem:[%s7478_s19 + $0xaa] sm:$0xff] }
  0xec   : > { %1162 = vperm.xlu2 %7342, %v1114_v15   ;;  %1157 = vperm.xlu1 %7341, %v1113_v19  }
  0xed   : > { %1027 = vperm.xlu0 %7340, %v823_v20   ;;  %v7709_v20 = vld [vmem:[%s7478_s19 + $0x6a] sm:$0xff] }
  0xee   : > { %v7648_v21 = vpop.permute.xlu2 %872  ;;  %v7650_v25 = vpop.permute.xlu1 %738 }
  0xef   : > { %12843 = vst [vmem:[#allocation37_spill] sm:$0xff] %v7648_v21  ;;  %v7652_v26 = vpop.permute.xlu0 %733  ;;  %v7763_v21 = vld [vmem:[%s7478_s19 + $0xb2] sm:$0xff] }
  0xf0   : > { %12844 = vst [vmem:[#allocation38_spill] sm:$0xff] %v7650_v25  ;;  %v7715_v25 = vld [vmem:[%s7478_s19 + $0x5a] sm:$0xff] }
  0xf1   : > { %12845 = vst [vmem:[#allocation39_spill] sm:$0xff] %v7652_v26  ;;  %v7712_v26 = vld [vmem:[%s7478_s19 + $0x62] sm:$0xff] }
  0xf4   : > { %1177 = vperm.xlu2 %7342, %v7655_v27   ;;  %1172 = vperm.xlu1 %7341, %v7658_v31  }
  0xf5   : > { %1167 = vperm.xlu0 %7340, %v7661_v32  }
  0xf6   : > { %v7666_v33 = vpop.permute.xlu2 %887  ;;  %v7668_v37 = vpop.permute.xlu1 %837 }
  0xf7   : > { %12846 = vst [vmem:[#allocation40_spill] sm:$0xff] %v7666_v33  ;;  %v7670_v39 = vpop.permute.xlu0 %832  ;;  %v7751_v33 = vld [vmem:[%s7478_s19 + $0x8a] sm:$0xff] }
  0xf8   : > { %12847 = vst [vmem:[#allocation41_spill] sm:$0xff] %v7668_v37  ;;  %v7748_v37 = vld [vmem:[%s7478_s19 + $0x92] sm:$0xff] }
  0xf9   : > { %12848 = vst [vmem:[#allocation42_spill] sm:$0xff] %v7670_v39  ;;  %v7745_v39 = vld [vmem:[%s7478_s19 + $0x9a] sm:$0xff] }
  0xfc   : > { %1192 = vperm.xlu2 %7342, %v7673_v40   ;;  %1187 = vperm.xlu1 %7341, %v7676_v45  }
  0xfd   : > { %1182 = vperm.xlu0 %7340, %v7679_v47  }
  0xfe   : > { %v7684_v48 = vpop.permute.xlu2 %902  ;;  %v7686_v55 = vpop.permute.xlu1 %852 }
  0xff   : > { %12849 = vst [vmem:[#allocation43_spill] sm:$0xff] %v7684_v48  ;;  %v7688_v59 = vpop.permute.xlu0 %847  ;;  %v7733_v48 = vld [vmem:[%s7478_s19 + $0x72] sm:$0xff] }
 0x100   : > { %12850 = vst [vmem:[#allocation44_spill] sm:$0xff] %v7686_v55  ;;  %v7730_v55 = vld [vmem:[%s7478_s19 + $0x7a] sm:$0xff] }
 0x101   : > { %12851 = vst [vmem:[#allocation45_spill] sm:$0xff] %v7688_v59  ;;  %v7727_v59 = vld [vmem:[%s7478_s19 + $0x82] sm:$0xff] }
 0x104   : > { %1207 = vperm.xlu2 %7342, %v7691_v60   ;;  %1202 = vperm.xlu1 %7341, %v7694_v3  }
 0x105   : > { %1197 = vperm.xlu0 %7340, %v7697_v7  }
 0x106   : > { %v7702_v8 = vpop.permute.xlu2 %917  ;;  %v7704_v15 = vpop.permute.xlu1 %867 }
 0x107   : > { %12852 = vst [vmem:[#allocation46_spill] sm:$0xff] %v7702_v8  ;;  %v7706_v19 = vpop.permute.xlu0 %862 }
 0x108   : > { %12853 = vst [vmem:[#allocation47_spill] sm:$0xff] %v7704_v15 }
 0x109   : > { %12854 = vst [vmem:[#allocation48_spill] sm:$0xff] %v7706_v19 }
 0x10c   : > { %1222 = vperm.xlu2 %7342, %v7709_v20   ;;  %1217 = vperm.xlu1 %7341, %v7712_v26  }
 0x10d   : > { %1212 = vperm.xlu0 %7340, %v7715_v25  }
 0x10e   : > { %v7720_v8 = vpop.permute.xlu2 %932  ;;  %v7722_v15 = vpop.permute.xlu1 %882 }
 0x10f   : > { %12855 = vst [vmem:[#allocation49_spill] sm:$0xff] %v7720_v8  ;;  %v7724_v19 = vpop.permute.xlu0 %877 }
 0x110   : > { %12856 = vst [vmem:[#allocation50_spill] sm:$0xff] %v7722_v15 }
 0x111   : > { %12857 = vst [vmem:[#allocation51_spill] sm:$0xff] %v7724_v19 }
 0x114   : > { %1237 = vperm.xlu2 %7342, %v7727_v59   ;;  %1232 = vperm.xlu1 %7341, %v7730_v55  }
 0x115   : > { %1227 = vperm.xlu0 %7340, %v7733_v48  }
 0x116   : > { %v7738_v8 = vpop.permute.xlu2 %947  ;;  %v7740_v15 = vpop.permute.xlu1 %897 }
 0x117   : > { %12858 = vst [vmem:[#allocation52_spill] sm:$0xff] %v7738_v8  ;;  %v7742_v19 = vpop.permute.xlu0 %892 }
 0x118   : > { %12859 = vst [vmem:[#allocation53_spill] sm:$0xff] %v7740_v15 }
 0x119   : > { %12860 = vst [vmem:[#allocation54_spill] sm:$0xff] %v7742_v19 }
 0x11c   : > { %1252 = vperm.xlu2 %7342, %v7745_v39   ;;  %1247 = vperm.xlu1 %7341, %v7748_v37  }
 0x11d   : > { %1242 = vperm.xlu0 %7340, %v7751_v33  }
 0x11e   : > { %v7756_v8 = vpop.permute.xlu2 %962  ;;  %v7758_v15 = vpop.permute.xlu1 %912 }
 0x11f   : > { %12861 = vst [vmem:[#allocation55_spill] sm:$0xff] %v7756_v8  ;;  %v7760_v19 = vpop.permute.xlu0 %907 }
 0x120   : > { %12862 = vst [vmem:[#allocation56_spill] sm:$0xff] %v7758_v15 }
 0x121   : > { %12863 = vst [vmem:[#allocation57_spill] sm:$0xff] %v7760_v19 }
 0x124   : > { %1267 = vperm.xlu2 %7342, %v7763_v21   ;;  %1262 = vperm.xlu1 %7341, %v7766_v14  }
 0x125   : > { %1257 = vperm.xlu0 %7340, %v7769_v13  }
 0x126   : > { %v7774_v8 = vpop.permute.xlu2 %977  ;;  %v7776_v15 = vpop.permute.xlu1 %927 }
 0x127   : > { %12864 = vst [vmem:[#allocation58_spill] sm:$0xff] %v7774_v8  ;;  %v7778_v19 = vpop.permute.xlu0 %922 }
 0x128   : > { %12865 = vst [vmem:[#allocation59_spill] sm:$0xff] %v7776_v15 }
 0x129   : > { %12866 = vst [vmem:[#allocation60_spill] sm:$0xff] %v7778_v19 }
 0x12c   : > { %1282 = vperm.xlu2 %7342, %v7781_v9   ;;  %1277 = vperm.xlu1 %7341, %v7784_v2  }
 0x12d   : > { %1272 = vperm.xlu0 %7340, %v7787_v1  }
 0x12e   : > { %v7792_v8 = vpop.permute.xlu2 %992  ;;  %v7794_v15 = vpop.permute.xlu1 %942 }
 0x12f   : > { %12867 = vst [vmem:[#allocation61_spill] sm:$0xff] %v7792_v8  ;;  %v7796_v19 = vpop.permute.xlu0 %937 }
 0x130   : > { %12868 = vst [vmem:[#allocation62_spill] sm:$0xff] %v7794_v15 }
 0x131   : > { %12869 = vst [vmem:[#allocation63_spill] sm:$0xff] %v7796_v19 }
 0x134   : > { %1297 = vperm.xlu2 %7342, %v7799_v54   ;;  %1292 = vperm.xlu1 %7341, %v7802_v53  }
 0x135   : > { %1287 = vperm.xlu0 %7340, %v7805_v44  }
 0x136   : > { %v7810_v8 = vpop.permute.xlu2 %1007  ;;  %v7812_v15 = vpop.permute.xlu1 %957 }
 0x137   : > { %12870 = vst [vmem:[#allocation64_spill] sm:$0xff] %v7810_v8  ;;  %v7814_v19 = vpop.permute.xlu0 %952 }
 0x138   : > { %12871 = vst [vmem:[#allocation65_spill] sm:$0xff] %v7812_v15 }
 0x139   : > { %12872 = vst [vmem:[#allocation66_spill] sm:$0xff] %v7814_v19 }
 0x13c   : > { %1312 = vperm.xlu2 %7342, %v7817_v43   ;;  %1307 = vperm.xlu1 %7341, %v7820_v41  }
 0x13d   : > { %1302 = vperm.xlu0 %7340, %v7823_v36  }
 0x13e   : > { %v7828_v8 = vpop.permute.xlu2 %1022  ;;  %v7830_v15 = vpop.permute.xlu1 %972 }
 0x13f   : > { %12873 = vst [vmem:[#allocation67_spill] sm:$0xff] %v7828_v8  ;;  %v7832_v19 = vpop.permute.xlu0 %967 }
 0x140   : > { %12874 = vst [vmem:[#allocation68_spill] sm:$0xff] %v7830_v15 }
 0x141   : > { %12875 = vst [vmem:[#allocation69_spill] sm:$0xff] %v7832_v19 }
 0x144   : > { %1327 = vperm.xlu2 %7342, %v7835_v35   ;;  %1322 = vperm.xlu1 %7341, %v7838_v34  }
 0x145   : > { %1317 = vperm.xlu0 %7340, %v7841_v30  }
 0x146   : > { %v7846_v8 = vpop.permute.xlu2 %1162  ;;  %v7848_v15 = vpop.permute.xlu1 %987 }
 0x147   : > { %12876 = vst [vmem:[#allocation70_spill] sm:$0xff] %v7846_v8  ;;  %v7850_v19 = vpop.permute.xlu0 %982 }
 0x148   : > { %12877 = vst [vmem:[#allocation71_spill] sm:$0xff] %v7848_v15  ;;  %v1153_v15 = vld [vmem:[%s7478_s19 + $0x142] sm:$0xf] }
 0x149   : > { %12878 = vst [vmem:[#allocation72_spill] sm:$0xff] %v7850_v19  ;;  %v7872_v19 = vld [vmem:[%s7478_s19 + $0x13a] sm:$0xff] }
 0x14c   : > { %1342 = vperm.xlu2 %7342, %v7853_v29   ;;  %1337 = vperm.xlu1 %7341, %v7856_v28  }
 0x14d   : > { %1332 = vperm.xlu0 %7340, %v7859_v24  }
 0x14e   : > { %v7864_v61 = vpop.permute.xlu2 %1177  ;;  %v7866_v49 = vpop.permute.xlu1 %1002 }
 0x14f   : > { %12879 = vst [vmem:[#allocation73_spill] sm:$0xff] %v7864_v61  ;;  %v7868_v8 = vpop.permute.xlu0 %997  ;;  %v2141_v61 = vld [vmem:[%s7478_s19 + $0x144] sm:$0xff] }
 0x150   : > { %12880 = vst [vmem:[#allocation74_spill] sm:$0xff] %v7866_v49 }
 0x151   : > { %12881 = vst [vmem:[#allocation75_spill] sm:$0xff] %v7868_v8 }
 0x154   : > { %1357 = vperm.xlu2 %7342, %v1153_v15   ;;  %1352 = vperm.xlu1 %7341, %v7872_v19  }
 0x155   : > { %1347 = vperm.xlu0 %7340, %v7875_v23  }
 0x156   : > { %v7879_v22 = vpop.permute.xlu2 %1192  ;;  %v7881_v18 = vpop.permute.xlu1 %1017 }
 0x157   : > { %12882 = vst [vmem:[#allocation76_spill] sm:$0xff] %v7879_v22  ;;  %v7883_v17 = vpop.permute.xlu0 %1012  ;;  %v2142_v22 = vld [vmem:[%s7478_s19 + $0x14c] sm:$0xff] }
 0x158   : > { %12883 = vst [vmem:[#allocation77_spill] sm:$0xff] %v7881_v18 }
 0x159   : > { %12884 = vst [vmem:[#allocation78_spill] sm:$0xff] %v7883_v17 }
 0x15c   : > { %1497 = vperm.xlu2 %7342, %v7655_v27   ;;  %1492 = vperm.xlu1 %7341, %v7658_v31  }
 0x15d   : > { %1487 = vperm.xlu0 %7340, %v7661_v32  }
 0x15e   : > { %v7888_v8 = vpop.permute.xlu2 %1207  ;;  %v7890_v49 = vpop.permute.xlu1 %1157 }
 0x15f   : > { %12885 = vst [vmem:[#allocation79_spill] sm:$0xff] %v7888_v8  ;;  %v7892_v15 = vpop.permute.xlu0 %1027  ;;  %v2143_v8 = vld [vmem:[%s7478_s19 + $0x154] sm:$0xf] }
 0x160   : > { %12886 = vst [vmem:[#allocation80_spill] sm:$0xff] %v7890_v49 }
 0x161   : > { %12887 = vst [vmem:[#allocation81_spill] sm:$0xff] %v7892_v15 }
 0x164   : > { %1512 = vperm.xlu2 %7342, %v7673_v40   ;;  %1507 = vperm.xlu1 %7341, %v7676_v45  }
 0x165   : > { %1502 = vperm.xlu0 %7340, %v7679_v47  }
 0x166   : > { %v7897_v18 = vpop.permute.xlu2 %1222  ;;  %v7899_v17 = vpop.permute.xlu1 %1172 }
 0x167   : > { %12888 = vst [vmem:[#allocation82_spill] sm:$0xff] %v7897_v18  ;;  %v7901_v27 = vpop.permute.xlu0 %1167 }
 0x168   : > { %12889 = vst [vmem:[#allocation83_spill] sm:$0xff] %v7899_v17  ;;  %v2138_v17 = vld [vmem:[%s7478_s19 + $0x12c] sm:$0xff] }
 0x169   : > { %12890 = vst [vmem:[#allocation84_spill] sm:$0xff] %v7901_v27  ;;  %v2139_v27 = vld [vmem:[%s7478_s19 + $0x134] sm:$0xff] }
 0x16c   : > { %1527 = vperm.xlu2 %7342, %v7691_v60   ;;  %1522 = vperm.xlu1 %7341, %v7694_v3  }
 0x16d   : > { %1517 = vperm.xlu0 %7340, %v7697_v7  }
 0x16e   : > { %v7906_v31 = vpop.permute.xlu2 %1237  ;;  %v7908_v32 = vpop.permute.xlu1 %1187 }
 0x16f   : > { %12891 = vst [vmem:[#allocation85_spill] sm:$0xff] %v7906_v31  ;;  %v7910_v40 = vpop.permute.xlu0 %1182  ;;  %v2140_v31 = vld [vmem:[%s7478_s19 + $0x13c] sm:$0xff] }
 0x170   : > { %12892 = vst [vmem:[#allocation86_spill] sm:$0xff] %v7908_v32  ;;  %v8324_v32 = vld [vmem:[%s7478_s19 + $0x114] sm:$0xff] }
 0x171   : > { %12893 = vst [vmem:[#allocation87_spill] sm:$0xff] %v7910_v40  ;;  %v8321_v40 = vld [vmem:[%s7478_s19 + $0x11c] sm:$0xff] }
 0x174   : > { %1542 = vperm.xlu2 %7342, %v7709_v20   ;;  %1537 = vperm.xlu1 %7341, %v7712_v26  }
 0x175   : > { %1532 = vperm.xlu0 %7340, %v7715_v25  }
 0x176   : > { %v7915_v45 = vpop.permute.xlu2 %1252  ;;  %v7917_v47 = vpop.permute.xlu1 %1202 }
 0x177   : > { %12894 = vst [vmem:[#allocation88_spill] sm:$0xff] %v7915_v45  ;;  %v7919_v60 = vpop.permute.xlu0 %1197  ;;  %v8318_v45 = vld [vmem:[%s7478_s19 + $0x124] sm:$0xff] }
 0x178   : > { %12895 = vst [vmem:[#allocation89_spill] sm:$0xff] %v7917_v47  ;;  %v8306_v47 = vld [vmem:[%s7478_s19 + $0xfc] sm:$0xff] }
 0x179   : > { %12896 = vst [vmem:[#allocation90_spill] sm:$0xff] %v7919_v60  ;;  %v8303_v60 = vld [vmem:[%s7478_s19 + $0x104] sm:$0xff] }
 0x17c   : > { %1557 = vperm.xlu2 %7342, %v7727_v59   ;;  %1552 = vperm.xlu1 %7341, %v7730_v55  }
 0x17d   : > { %1547 = vperm.xlu0 %7340, %v7733_v48  }
 0x17e   : > { %v7924_v3 = vpop.permute.xlu2 %1267  ;;  %v7926_v7 = vpop.permute.xlu1 %1217 }
 0x17f   : > { %12897 = vst [vmem:[#allocation91_spill] sm:$0xff] %v7924_v3  ;;  %v7928_v20 = vpop.permute.xlu0 %1212  ;;  %v8300_v3 = vld [vmem:[%s7478_s19 + $0x10c] sm:$0xff] }
 0x180   : > { %12898 = vst [vmem:[#allocation92_spill] sm:$0xff] %v7926_v7  ;;  %v8288_v7 = vld [vmem:[%s7478_s19 + $0xe4] sm:$0xff] }
 0x181   : > { %12899 = vst [vmem:[#allocation93_spill] sm:$0xff] %v7928_v20  ;;  %v8285_v20 = vld [vmem:[%s7478_s19 + $0xec] sm:$0xff] }
 0x184   : > { %1572 = vperm.xlu2 %7342, %v7745_v39   ;;  %1567 = vperm.xlu1 %7341, %v7748_v37  }
 0x185   : > { %1562 = vperm.xlu0 %7340, %v7751_v33  }
 0x186   : > { %v7933_v25 = vpop.permute.xlu2 %1282  ;;  %v7935_v26 = vpop.permute.xlu1 %1232 }
 0x187   : > { %12900 = vst [vmem:[#allocation94_spill] sm:$0xff] %v7933_v25  ;;  %v7937_v59 = vpop.permute.xlu0 %1227  ;;  %v8282_v25 = vld [vmem:[%s7478_s19 + $0xf4] sm:$0xff] }
 0x188   : > { %12901 = vst [vmem:[#allocation95_spill] sm:$0xff] %v7935_v26  ;;  %v8270_v26 = vld [vmem:[%s7478_s19 + $0xcc] sm:$0xff] }
 0x189   : > { %12902 = vst [vmem:[#allocation96_spill] sm:$0xff] %v7937_v59  ;;  %v8267_v59 = vld [vmem:[%s7478_s19 + $0xd4] sm:$0xff] }
 0x18c   : > { %1587 = vperm.xlu2 %7342, %v7763_v21   ;;  %1582 = vperm.xlu1 %7341, %v7766_v14  }
 0x18d   : > { %1577 = vperm.xlu0 %7340, %v7769_v13  }
 0x18e   : > { %v7942_v48 = vpop.permute.xlu2 %1297  ;;  %v7944_v55 = vpop.permute.xlu1 %1247 }
 0x18f   : > { %12903 = vst [vmem:[#allocation97_spill] sm:$0xff] %v7942_v48  ;;  %v7946_v39 = vpop.permute.xlu0 %1242  ;;  %v8264_v48 = vld [vmem:[%s7478_s19 + $0xdc] sm:$0xff] }
 0x190   : > { %12904 = vst [vmem:[#allocation98_spill] sm:$0xff] %v7944_v55  ;;  %v8252_v55 = vld [vmem:[%s7478_s19 + $0xb4] sm:$0xff] }
 0x191   : > { %12905 = vst [vmem:[#allocation99_spill] sm:$0xff] %v7946_v39  ;;  %v8249_v39 = vld [vmem:[%s7478_s19 + $0xbc] sm:$0xff] }
 0x194   : > { %1602 = vperm.xlu2 %7342, %v7781_v9   ;;  %1597 = vperm.xlu1 %7341, %v7784_v2   ;;  %v1773_v2 = vld [vmem:[%s7478_s19 + $0x13] sm:$0xff] }
 0x195   : > { %1592 = vperm.xlu0 %7340, %v7787_v1  }
 0x196   : > { %v7951_v33 = vpop.permute.xlu2 %1312  ;;  %v7953_v37 = vpop.permute.xlu1 %1262 }
 0x197   : > { %12906 = vst [vmem:[#allocation100_spill] sm:$0xff] %v7951_v33  ;;  %v7955_v21 = vpop.permute.xlu0 %1257  ;;  %v8246_v33 = vld [vmem:[%s7478_s19 + $0xc4] sm:$0xff] }
 0x198   : > { %12907 = vst [vmem:[#allocation101_spill] sm:$0xff] %v7953_v37  ;;  %v8234_v37 = vld [vmem:[%s7478_s19 + $0x9c] sm:$0xff] }
 0x199   : > { %12908 = vst [vmem:[#allocation102_spill] sm:$0xff] %v7955_v21  ;;  %v8231_v21 = vld [vmem:[%s7478_s19 + $0xa4] sm:$0xff] }
 0x19c   : > { %1617 = vperm.xlu2 %7342, %v7799_v54   ;;  %1612 = vperm.xlu1 %7341, %v7802_v53  }
 0x19d   : > { %1607 = vperm.xlu0 %7340, %v7805_v44  }
 0x19e   : > { %v7960_v13 = vpop.permute.xlu2 %1327  ;;  %v7962_v14 = vpop.permute.xlu1 %1277 }
 0x19f   : > { %12909 = vst [vmem:[#allocation103_spill] sm:$0xff] %v7960_v13  ;;  %v7964_v9 = vpop.permute.xlu0 %1272  ;;  %v8228_v13 = vld [vmem:[%s7478_s19 + $0xac] sm:$0xff] }
 0x1a0   : > { %12910 = vst [vmem:[#allocation104_spill] sm:$0xff] %v7962_v14  ;;  %v8216_v14 = vld [vmem:[%s7478_s19 + $0x84] sm:$0xff] }
 0x1a1   : > { %12911 = vst [vmem:[#allocation105_spill] sm:$0xff] %v7964_v9  ;;  %v8213_v9 = vld [vmem:[%s7478_s19 + $0x8c] sm:$0xff] }
 0x1a4   : > { %1632 = vperm.xlu2 %7342, %v7817_v43   ;;  %1627 = vperm.xlu1 %7341, %v7820_v41   ;;  %v1481_v41 = vld [vmem:[%s7478_s19 + $0x142] sm:$0xff] }
 0x1a5   : > { %1622 = vperm.xlu0 %7340, %v7823_v36  }
 0x1a6   : > { %v7969_v1 = vpop.permute.xlu2 %1342  ;;  %v7971_v54 = vpop.permute.xlu1 %1292 }
 0x1a7   : > { %12912 = vst [vmem:[#allocation106_spill] sm:$0xff] %v7969_v1  ;;  %v7973_v53 = vpop.permute.xlu0 %1287  ;;  %v8210_v1 = vld [vmem:[%s7478_s19 + $0x94] sm:$0xff] }
 0x1a8   : > { %12913 = vst [vmem:[#allocation107_spill] sm:$0xff] %v7971_v54  ;;  %v8198_v54 = vld [vmem:[%s7478_s19 + $0x6c] sm:$0xff] }
 0x1a9   : > { %12914 = vst [vmem:[#allocation108_spill] sm:$0xff] %v7973_v53  ;;  %v8195_v53 = vld [vmem:[%s7478_s19 + $0x74] sm:$0xff] }
 0x1ac   : > { %1647 = vperm.xlu2 %7342, %v7835_v35   ;;  %1642 = vperm.xlu1 %7341, %v7838_v34  }
 0x1ad   : > { %1637 = vperm.xlu0 %7340, %v7841_v30  }
 0x1ae   : > { %v7978_v44 = vpop.permute.xlu2 %1357  ;;  %v7980_v43 = vpop.permute.xlu1 %1307 }
 0x1af   : > { %12915 = vst [vmem:[#allocation109_spill] sm:$0xff] %v7978_v44  ;;  %v7982_v36 = vpop.permute.xlu0 %1302  ;;  %v8192_v44 = vld [vmem:[%s7478_s19 + $0x7c] sm:$0xff] }
 0x1b0   : > { %12916 = vst [vmem:[#allocation110_spill] sm:$0xff] %v7980_v43  ;;  %v8180_v43 = vld [vmem:[%s7478_s19 + $0x54] sm:$0xff] }
 0x1b1   : > { %12917 = vst [vmem:[#allocation111_spill] sm:$0xff] %v7982_v36  ;;  %v8177_v36 = vld [vmem:[%s7478_s19 + $0x5c] sm:$0xff] }
 0x1b4   : > { %1662 = vperm.xlu2 %7342, %v7853_v29   ;;  %1657 = vperm.xlu1 %7341, %v7856_v28  }
 0x1b5   : > { %1652 = vperm.xlu0 %7340, %v7859_v24  }
 0x1b6   : > { %v7987_v35 = vpop.permute.xlu2 %1497  ;;  %v7989_v34 = vpop.permute.xlu1 %1322 }
 0x1b7   : > { %12918 = vst [vmem:[#allocation112_spill] sm:$0xff] %v7987_v35  ;;  %v7991_v30 = vpop.permute.xlu0 %1317  ;;  %v1483_v35 = vld [vmem:[%s7478_s19 + $0x152] sm:$0xf] }
 0x1b8   : > { %12919 = vst [vmem:[#allocation113_spill] sm:$0xff] %v7989_v34  ;;  %v1482_v34 = vld [vmem:[%s7478_s19 + $0x14a] sm:$0xff] }
 0x1b9   : > { %12920 = vst [vmem:[#allocation114_spill] sm:$0xff] %v7991_v30  ;;  %v1775_v30 = vld [vmem:[%s7478_s19 + $0x23] sm:$0xff] }
 0x1bc   : > { %1677 = vperm.xlu2 %7342, %v1481_v41   ;;  %1672 = vperm.xlu1 %7341, %v7872_v19  }
 0x1bd   : > { %1667 = vperm.xlu0 %7340, %v7875_v23  }
 0x1be   : > { %v7996_v29 = vpop.permute.xlu2 %1512  ;;  %v7998_v28 = vpop.permute.xlu1 %1337 }
 0x1bf   : > { %12921 = vst [vmem:[#allocation115_spill] sm:$0xff] %v7996_v29  ;;  %v8000_v24 = vpop.permute.xlu0 %1332  ;;  %v1776_v29 = vld [vmem:[%s7478_s19 + $0x2b] sm:$0xff] }
 0x1c0   : > { %12922 = vst [vmem:[#allocation116_spill] sm:$0xff] %v7998_v28  ;;  %v1774_v28 = vld [vmem:[%s7478_s19 + $0x1b] sm:$0xff] }
 0x1c1   : > { %12923 = vst [vmem:[#allocation117_spill] sm:$0xff] %v8000_v24  ;;  %v1778_v24 = vld [vmem:[%s7478_s19 + $0x3b] sm:$0xff] }
 0x1c4   : > { %1817 = vperm.xlu2 %7342, %v1773_v2   ;;  %1687 = vperm.xlu1 %7341, %v1483_v35  }
 0x1c5   : > { %1682 = vperm.xlu0 %7340, %v1482_v34  }
 0x1c6   : > { %v8005_v41 = vpop.permute.xlu2 %1527  ;;  %v8007_v19 = vpop.permute.xlu1 %1352 }
 0x1c7   : > { %12924 = vst [vmem:[#allocation118_spill] sm:$0xff] %v8005_v41  ;;  %v8009_v23 = vpop.permute.xlu0 %1347  ;;  %v1779_v41 = vld [vmem:[%s7478_s19 + $0x43] sm:$0xff] }
 0x1c8   : > { %12925 = vst [vmem:[#allocation119_spill] sm:$0xff] %v8007_v19  ;;  %v1777_v19 = vld [vmem:[%s7478_s19 + $0x33] sm:$0xff] }
 0x1c9   : > { %12926 = vst [vmem:[#allocation120_spill] sm:$0xff] %v8009_v23  ;;  %v1781_v23 = vld [vmem:[%s7478_s19 + $0x53] sm:$0xff] }
 0x1cc   : > { %1832 = vperm.xlu2 %7342, %v1776_v29   ;;  %1827 = vperm.xlu1 %7341, %v1775_v30  }
 0x1cd   : > { %1822 = vperm.xlu0 %7340, %v1774_v28  }
 0x1ce   : > { %v8014_v2 = vpop.permute.xlu2 %1542  ;;  %v8016_v35 = vpop.permute.xlu1 %1492 }
 0x1cf   : > { %12927 = vst [vmem:[#allocation121_spill] sm:$0xff] %v8014_v2  ;;  %v8018_v34 = vpop.permute.xlu0 %1487  ;;  %v1782_v2 = vld [vmem:[%s7478_s19 + $0x5b] sm:$0xff] }
 0x1d0   : > { %12928 = vst [vmem:[#allocation122_spill] sm:$0xff] %v8016_v35  ;;  %v1780_v35 = vld [vmem:[%s7478_s19 + $0x4b] sm:$0xff] }
 0x1d1   : > { %12929 = vst [vmem:[#allocation123_spill] sm:$0xff] %v8018_v34  ;;  %v1784_v34 = vld [vmem:[%s7478_s19 + $0x6b] sm:$0xff] }
 0x1d4   : > { %1847 = vperm.xlu2 %7342, %v1779_v41   ;;  %1842 = vperm.xlu1 %7341, %v1778_v24  }
 0x1d5   : > { %1837 = vperm.xlu0 %7340, %v1777_v19  }
 0x1d6   : > { %v8023_v29 = vpop.permute.xlu2 %1557  ;;  %v8025_v30 = vpop.permute.xlu1 %1507 }
 0x1d7   : > { %12930 = vst [vmem:[#allocation124_spill] sm:$0xff] %v8023_v29  ;;  %v8027_v28 = vpop.permute.xlu0 %1502  ;;  %v1785_v29 = vld [vmem:[%s7478_s19 + $0x73] sm:$0xff] }
 0x1d8   : > { %12931 = vst [vmem:[#allocation125_spill] sm:$0xff] %v8025_v30  ;;  %v1783_v30 = vld [vmem:[%s7478_s19 + $0x63] sm:$0xff] }
 0x1d9   : > { %12932 = vst [vmem:[#allocation126_spill] sm:$0xff] %v8027_v28  ;;  %v1787_v28 = vld [vmem:[%s7478_s19 + $0x83] sm:$0xff] }
 0x1dc   : > { %1862 = vperm.xlu2 %7342, %v1782_v2   ;;  %1857 = vperm.xlu1 %7341, %v1781_v23  }
 0x1dd   : > { %1852 = vperm.xlu0 %7340, %v1780_v35  }
 0x1de   : > { %v8032_v41 = vpop.permute.xlu2 %1572  ;;  %v8034_v24 = vpop.permute.xlu1 %1522 }
 0x1df   : > { %12933 = vst [vmem:[#allocation127_spill] sm:$0xff] %v8032_v41  ;;  %v8036_v19 = vpop.permute.xlu0 %1517  ;;  %v1788_v41 = vld [vmem:[%s7478_s19 + $0x8b] sm:$0xff] }
 0x1e0   : > { %12934 = vst [vmem:[#allocation128_spill] sm:$0xff] %v8034_v24  ;;  %v1786_v24 = vld [vmem:[%s7478_s19 + $0x7b] sm:$0xff] }
 0x1e1   : > { %12935 = vst [vmem:[#allocation129_spill] sm:$0xff] %v8036_v19  ;;  %v1790_v19 = vld [vmem:[%s7478_s19 + $0x9b] sm:$0xff] }
 0x1e4   : > { %1877 = vperm.xlu2 %7342, %v1785_v29   ;;  %1872 = vperm.xlu1 %7341, %v1784_v34  }
 0x1e5   : > { %1867 = vperm.xlu0 %7340, %v1783_v30  }
 0x1e6   : > { %v8041_v2 = vpop.permute.xlu2 %1587  ;;  %v8043_v23 = vpop.permute.xlu1 %1537 }
 0x1e7   : > { %12936 = vst [vmem:[#allocation130_spill] sm:$0xff] %v8041_v2  ;;  %v8045_v35 = vpop.permute.xlu0 %1532  ;;  %v1791_v2 = vld [vmem:[%s7478_s19 + $0xa3] sm:$0xff] }
 0x1e8   : > { %12937 = vst [vmem:[#allocation131_spill] sm:$0xff] %v8043_v23  ;;  %v1789_v23 = vld [vmem:[%s7478_s19 + $0x93] sm:$0xff] }
 0x1e9   : > { %12938 = vst [vmem:[#allocation132_spill] sm:$0xff] %v8045_v35  ;;  %v1793_v35 = vld [vmem:[%s7478_s19 + $0xb3] sm:$0xff] }
 0x1ec   : > { %1892 = vperm.xlu2 %7342, %v1788_v41   ;;  %1887 = vperm.xlu1 %7341, %v1787_v28  }
 0x1ed   : > { %1882 = vperm.xlu0 %7340, %v1786_v24  }
 0x1ee   : > { %v8050_v29 = vpop.permute.xlu2 %1602  ;;  %v8052_v34 = vpop.permute.xlu1 %1552 }
 0x1ef   : > { %12939 = vst [vmem:[#allocation133_spill] sm:$0xff] %v8050_v29  ;;  %v8054_v30 = vpop.permute.xlu0 %1547  ;;  %v1794_v29 = vld [vmem:[%s7478_s19 + $0xbb] sm:$0xff] }
 0x1f0   : > { %12940 = vst [vmem:[#allocation134_spill] sm:$0xff] %v8052_v34  ;;  %v1792_v34 = vld [vmem:[%s7478_s19 + $0xab] sm:$0xff] }
 0x1f1   : > { %12941 = vst [vmem:[#allocation135_spill] sm:$0xff] %v8054_v30  ;;  %v1796_v30 = vld [vmem:[%s7478_s19 + $0xcb] sm:$0xff] }
 0x1f4   : > { %1907 = vperm.xlu2 %7342, %v1791_v2   ;;  %1902 = vperm.xlu1 %7341, %v1790_v19  }
 0x1f5   : > { %1897 = vperm.xlu0 %7340, %v1789_v23  }
 0x1f6   : > { %v8059_v41 = vpop.permute.xlu2 %1617  ;;  %v8061_v28 = vpop.permute.xlu1 %1567 }
 0x1f7   : > { %12942 = vst [vmem:[#allocation136_spill] sm:$0xff] %v8059_v41  ;;  %v8063_v24 = vpop.permute.xlu0 %1562  ;;  %v1797_v41 = vld [vmem:[%s7478_s19 + $0xd3] sm:$0xff] }
 0x1f8   : > { %12943 = vst [vmem:[#allocation137_spill] sm:$0xff] %v8061_v28  ;;  %v1795_v28 = vld [vmem:[%s7478_s19 + $0xc3] sm:$0xff] }
 0x1f9   : > { %12944 = vst [vmem:[#allocation138_spill] sm:$0xff] %v8063_v24  ;;  %v1799_v24 = vld [vmem:[%s7478_s19 + $0xe3] sm:$0xff] }
 0x1fc   : > { %1922 = vperm.xlu2 %7342, %v1794_v29   ;;  %1917 = vperm.xlu1 %7341, %v1793_v35  }
 0x1fd   : > { %1912 = vperm.xlu0 %7340, %v1792_v34  }
 0x1fe   : > { %v8068_v2 = vpop.permute.xlu2 %1632  ;;  %v8070_v19 = vpop.permute.xlu1 %1582 }
 0x1ff   : > { %12945 = vst [vmem:[#allocation139_spill] sm:$0xff] %v8068_v2  ;;  %v8072_v23 = vpop.permute.xlu0 %1577  ;;  %v1800_v2 = vld [vmem:[%s7478_s19 + $0xeb] sm:$0xff] }
 0x200   : > { %12946 = vst [vmem:[#allocation140_spill] sm:$0xff] %v8070_v19  ;;  %v1798_v19 = vld [vmem:[%s7478_s19 + $0xdb] sm:$0xff] }
 0x201   : > { %12947 = vst [vmem:[#allocation141_spill] sm:$0xff] %v8072_v23  ;;  %v1802_v23 = vld [vmem:[%s7478_s19 + $0xfb] sm:$0xff] }
 0x204   : > { %1937 = vperm.xlu2 %7342, %v1797_v41   ;;  %1932 = vperm.xlu1 %7341, %v1796_v30  }
 0x205   : > { %1927 = vperm.xlu0 %7340, %v1795_v28  }
 0x206   : > { %v8077_v29 = vpop.permute.xlu2 %1647  ;;  %v8079_v35 = vpop.permute.xlu1 %1597 }
 0x207   : > { %12948 = vst [vmem:[#allocation142_spill] sm:$0xff] %v8077_v29  ;;  %v8081_v34 = vpop.permute.xlu0 %1592  ;;  %v1803_v29 = vld [vmem:[%s7478_s19 + $0x103] sm:$0xff] }
 0x208   : > { %12949 = vst [vmem:[#allocation143_spill] sm:$0xff] %v8079_v35  ;;  %v1801_v35 = vld [vmem:[%s7478_s19 + $0xf3] sm:$0xff] }
 0x209   : > { %12950 = vst [vmem:[#allocation144_spill] sm:$0xff] %v8081_v34  ;;  %v1805_v34 = vld [vmem:[%s7478_s19 + $0x113] sm:$0xff] }
 0x20c   : > { %1952 = vperm.xlu2 %7342, %v1800_v2   ;;  %1947 = vperm.xlu1 %7341, %v1799_v24  }
 0x20d   : > { %1942 = vperm.xlu0 %7340, %v1798_v19  }
 0x20e   : > { %v8086_v41 = vpop.permute.xlu2 %1662  ;;  %v8088_v30 = vpop.permute.xlu1 %1612 }
 0x20f   : > { %12951 = vst [vmem:[#allocation145_spill] sm:$0xff] %v8086_v41  ;;  %v8090_v28 = vpop.permute.xlu0 %1607  ;;  %v1806_v41 = vld [vmem:[%s7478_s19 + $0x11b] sm:$0xff] }
 0x210   : > { %12952 = vst [vmem:[#allocation146_spill] sm:$0xff] %v8088_v30  ;;  %v1804_v30 = vld [vmem:[%s7478_s19 + $0x10b] sm:$0xff] }
 0x211   : > { %12953 = vst [vmem:[#allocation147_spill] sm:$0xff] %v8090_v28  ;;  %v1808_v28 = vld [vmem:[%s7478_s19 + $0x12b] sm:$0xff] }
 0x214   : > { %1967 = vperm.xlu2 %7342, %v1803_v29   ;;  %1962 = vperm.xlu1 %7341, %v1802_v23  }
 0x215   : > { %1957 = vperm.xlu0 %7340, %v1801_v35  }
 0x216   : > { %v8095_v2 = vpop.permute.xlu2 %1677  ;;  %v8097_v24 = vpop.permute.xlu1 %1627 }
 0x217   : > { %12954 = vst [vmem:[#allocation148_spill] sm:$0xff] %v8095_v2  ;;  %v8099_v19 = vpop.permute.xlu0 %1622  ;;  %v1809_v2 = vld [vmem:[%s7478_s19 + $0x133] sm:$0xff] }
 0x218   : > { %12955 = vst [vmem:[#allocation149_spill] sm:$0xff] %v8097_v24  ;;  %v1807_v24 = vld [vmem:[%s7478_s19 + $0x123] sm:$0xff] }
 0x219   : > { %12956 = vst [vmem:[#allocation150_spill] sm:$0xff] %v8099_v19  ;;  %v1811_v19 = vld [vmem:[%s7478_s19 + $0x143] sm:$0xff] }
 0x21c   : > { %1982 = vperm.xlu2 %7342, %v1806_v41   ;;  %1977 = vperm.xlu1 %7341, %v1805_v34  }
 0x21d   : > { %1972 = vperm.xlu0 %7340, %v1804_v30  }
 0x21e   : > { %v8104_v29 = vpop.permute.xlu2 %1817  ;;  %v8106_v23 = vpop.permute.xlu1 %1642 }
 0x21f   : > { %12957 = vst [vmem:[#allocation151_spill] sm:$0xff] %v8104_v29  ;;  %v8108_v35 = vpop.permute.xlu0 %1637  ;;  %v1812_v29 = vld [vmem:[%s7478_s19 + $0x14b] sm:$0xff] }
 0x220   : > { %12958 = vst [vmem:[#allocation152_spill] sm:$0xff] %v8106_v23  ;;  %v1810_v23 = vld [vmem:[%s7478_s19 + $0x13b] sm:$0xff] }
 0x221   : > { %12959 = vst [vmem:[#allocation153_spill] sm:$0xff] %v8108_v35  ;;  %v2103_v35 = vld [vmem:[%s7478_s19 + $0x14] sm:$0xff] }
 0x224   : > { %1997 = vperm.xlu2 %7342, %v1809_v2   ;;  %1992 = vperm.xlu1 %7341, %v1808_v28  }
 0x225   : > { %1987 = vperm.xlu0 %7340, %v1807_v24  }
 0x226   : > { %v8113_v41 = vpop.permute.xlu2 %1832  ;;  %v8115_v34 = vpop.permute.xlu1 %1657 }
 0x227   : > { %12960 = vst [vmem:[#allocation154_spill] sm:$0xff] %v8113_v41  ;;  %v8117_v30 = vpop.permute.xlu0 %1652  ;;  %v2104_v41 = vld [vmem:[%s7478_s19 + $0x1c] sm:$0xff] }
 0x228   : > { %12961 = vst [vmem:[#allocation155_spill] sm:$0xff] %v8115_v34  ;;  %v1813_v34 = vld [vmem:[%s7478_s19 + $0x153] sm:$0xf] }
 0x229   : > { %12962 = vst [vmem:[#allocation156_spill] sm:$0xff] %v8117_v30  ;;  %v8174_v30 = vld [vmem:[%s7478_s19 + $0x64] sm:$0xff] }
 0x22c   : > { %2012 = vperm.xlu2 %7342, %v1812_v29   ;;  %2007 = vperm.xlu1 %7341, %v1811_v19  }
 0x22d   : > { %2002 = vperm.xlu0 %7340, %v1810_v23  }
 0x22e   : > { %v8122_v2 = vpop.permute.xlu2 %1847  ;;  %v8124_v28 = vpop.permute.xlu1 %1672 }
 0x22f   : > { %12963 = vst [vmem:[#allocation157_spill] sm:$0xff] %v8122_v2  ;;  %v8126_v24 = vpop.permute.xlu0 %1667  ;;  %v8138_v2 = vld [vmem:[%s7478_s19 + $0x34] sm:$0xff] }
 0x230   : > { %12964 = vst [vmem:[#allocation158_spill] sm:$0xff] %v8124_v28  ;;  %v8141_v28 = vld [vmem:[%s7478_s19 + $0x2c] sm:$0xff] }
 0x231   : > { %12965 = vst [vmem:[#allocation159_spill] sm:$0xff] %v8126_v24  ;;  %v8144_v24 = vld [vmem:[%s7478_s19 + $0x24] sm:$0xff] }
 0x234   : > { %2152 = vperm.xlu2 %7342, %v2104_v41   ;;  %2147 = vperm.xlu1 %7341, %v2103_v35  }
 0x235   : > { %2017 = vperm.xlu0 %7340, %v1813_v34  }
 0x236   : > { %v8131_v29 = vpop.permute.xlu2 %1862  ;;  %v8133_v19 = vpop.permute.xlu1 %1687 }
 0x237   : > { %12966 = vst [vmem:[#allocation160_spill] sm:$0xff] %v8131_v29  ;;  %v8135_v23 = vpop.permute.xlu0 %1682  ;;  %v8162_v29 = vld [vmem:[%s7478_s19 + $0x3c] sm:$0xff] }
 0x238   : > { %12967 = vst [vmem:[#allocation161_spill] sm:$0xff] %v8133_v19  ;;  %v8159_v19 = vld [vmem:[%s7478_s19 + $0x44] sm:$0xff] }
 0x239   : > { %12968 = vst [vmem:[#allocation162_spill] sm:$0xff] %v8135_v23  ;;  %v8156_v23 = vld [vmem:[%s7478_s19 + $0x4c] sm:$0xff] }
 0x23c   : > { %2167 = vperm.xlu2 %7342, %v8138_v2   ;;  %2162 = vperm.xlu1 %7341, %v8141_v28  }
 0x23d   : > { %2157 = vperm.xlu0 %7340, %v8144_v24  }
 0x23e   : > { %v8149_v35 = vpop.permute.xlu2 %1877  ;;  %v8151_v41 = vpop.permute.xlu1 %1827 }
 0x23f   : > { %12969 = vst [vmem:[#allocation163_spill] sm:$0xff] %v8149_v35  ;;  %v8153_v34 = vpop.permute.xlu0 %1822 }
 0x240   : > { %12970 = vst [vmem:[#allocation164_spill] sm:$0xff] %v8151_v41 }
 0x241   : > { %12971 = vst [vmem:[#allocation165_spill] sm:$0xff] %v8153_v34 }
 0x244   : > { %2182 = vperm.xlu2 %7342, %v8156_v23   ;;  %2177 = vperm.xlu1 %7341, %v8159_v19  }
 0x245   : > { %2172 = vperm.xlu0 %7340, %v8162_v29  }
 0x246   : > { %v8167_v35 = vpop.permute.xlu2 %1892  ;;  %v8169_v41 = vpop.permute.xlu1 %1842 }
 0x247   : > { %12972 = vst [vmem:[#allocation166_spill] sm:$0xff] %v8167_v35  ;;  %v8171_v34 = vpop.permute.xlu0 %1837 }
 0x248   : > { %12973 = vst [vmem:[#allocation167_spill] sm:$0xff] %v8169_v41 }
 0x249   : > { %12974 = vst [vmem:[#allocation168_spill] sm:$0xff] %v8171_v34 }
 0x24c   : > { %2197 = vperm.xlu2 %7342, %v8174_v30   ;;  %2192 = vperm.xlu1 %7341, %v8177_v36  }
 0x24d   : > { %2187 = vperm.xlu0 %7340, %v8180_v43  }
 0x24e   : > { %v8185_v35 = vpop.permute.xlu2 %1907  ;;  %v8187_v41 = vpop.permute.xlu1 %1857 }
 0x24f   : > { %12975 = vst [vmem:[#allocation169_spill] sm:$0xff] %v8185_v35  ;;  %v8189_v34 = vpop.permute.xlu0 %1852 }
 0x250   : > { %12976 = vst [vmem:[#allocation170_spill] sm:$0xff] %v8187_v41 }
 0x251   : > { %12977 = vst [vmem:[#allocation171_spill] sm:$0xff] %v8189_v34 }
 0x254   : > { %2212 = vperm.xlu2 %7342, %v8192_v44   ;;  %2207 = vperm.xlu1 %7341, %v8195_v53  }
 0x255   : > { %2202 = vperm.xlu0 %7340, %v8198_v54  }
 0x256   : > { %v8203_v35 = vpop.permute.xlu2 %1922  ;;  %v8205_v41 = vpop.permute.xlu1 %1872 }
 0x257   : > { %12978 = vst [vmem:[#allocation172_spill] sm:$0xff] %v8203_v35  ;;  %v8207_v34 = vpop.permute.xlu0 %1867 }
 0x258   : > { %12979 = vst [vmem:[#allocation173_spill] sm:$0xff] %v8205_v41 }
 0x259   : > { %12980 = vst [vmem:[#allocation174_spill] sm:$0xff] %v8207_v34 }
 0x25c   : > { %2227 = vperm.xlu2 %7342, %v8210_v1   ;;  %2222 = vperm.xlu1 %7341, %v8213_v9  }
 0x25d   : > { %2217 = vperm.xlu0 %7340, %v8216_v14  }
 0x25e   : > { %v8221_v35 = vpop.permute.xlu2 %1937  ;;  %v8223_v41 = vpop.permute.xlu1 %1887 }
 0x25f   : > { %12981 = vst [vmem:[#allocation175_spill] sm:$0xff] %v8221_v35  ;;  %v8225_v34 = vpop.permute.xlu0 %1882 }
 0x260   : > { %12982 = vst [vmem:[#allocation176_spill] sm:$0xff] %v8223_v41 }
 0x261   : > { %12983 = vst [vmem:[#allocation177_spill] sm:$0xff] %v8225_v34 }
 0x264   : > { %2242 = vperm.xlu2 %7342, %v8228_v13   ;;  %2237 = vperm.xlu1 %7341, %v8231_v21  }
 0x265   : > { %2232 = vperm.xlu0 %7340, %v8234_v37  }
 0x266   : > { %v8239_v35 = vpop.permute.xlu2 %1952  ;;  %v8241_v41 = vpop.permute.xlu1 %1902 }
 0x267   : > { %12984 = vst [vmem:[#allocation178_spill] sm:$0xff] %v8239_v35  ;;  %v8243_v34 = vpop.permute.xlu0 %1897 }
 0x268   : > { %12985 = vst [vmem:[#allocation179_spill] sm:$0xff] %v8241_v41 }
 0x269   : > { %12986 = vst [vmem:[#allocation180_spill] sm:$0xff] %v8243_v34 }
 0x26c   : > { %2257 = vperm.xlu2 %7342, %v8246_v33   ;;  %2252 = vperm.xlu1 %7341, %v8249_v39  }
 0x26d   : > { %2247 = vperm.xlu0 %7340, %v8252_v55  }
 0x26e   : > { %v8257_v35 = vpop.permute.xlu2 %1967  ;;  %v8259_v41 = vpop.permute.xlu1 %1917 }
 0x26f   : > { %12987 = vst [vmem:[#allocation181_spill] sm:$0xff] %v8257_v35  ;;  %v8261_v34 = vpop.permute.xlu0 %1912 }
 0x270   : > { %12988 = vst [vmem:[#allocation182_spill] sm:$0xff] %v8259_v41 }
 0x271   : > { %12989 = vst [vmem:[#allocation183_spill] sm:$0xff] %v8261_v34 }
 0x274   : > { %2272 = vperm.xlu2 %7342, %v8264_v48   ;;  %2267 = vperm.xlu1 %7341, %v8267_v59  }
 0x275   : > { %2262 = vperm.xlu0 %7340, %v8270_v26  }
 0x276   : > { %v8275_v35 = vpop.permute.xlu2 %1982  ;;  %v8277_v41 = vpop.permute.xlu1 %1932 }
 0x277   : > { %12990 = vst [vmem:[#allocation184_spill] sm:$0xff] %v8275_v35  ;;  %v8279_v34 = vpop.permute.xlu0 %1927 }
 0x278   : > { %12991 = vst [vmem:[#allocation185_spill] sm:$0xff] %v8277_v41 }
 0x279   : > { %12992 = vst [vmem:[#allocation186_spill] sm:$0xff] %v8279_v34 }
 0x27c   : > { %2287 = vperm.xlu2 %7342, %v8282_v25   ;;  %2282 = vperm.xlu1 %7341, %v8285_v20  }
 0x27d   : > { %2277 = vperm.xlu0 %7340, %v8288_v7  }
 0x27e   : > { %v8293_v35 = vpop.permute.xlu2 %1997  ;;  %v8295_v41 = vpop.permute.xlu1 %1947 }
 0x27f   : > { %12993 = vst [vmem:[#allocation187_spill] sm:$0xff] %v8293_v35  ;;  %v8297_v34 = vpop.permute.xlu0 %1942 }
 0x280   : > { %12994 = vst [vmem:[#allocation188_spill] sm:$0xff] %v8295_v41 }
 0x281   : > { %12995 = vst [vmem:[#allocation189_spill] sm:$0xff] %v8297_v34 }
 0x284   : > { %2302 = vperm.xlu2 %7342, %v8300_v3   ;;  %2297 = vperm.xlu1 %7341, %v8303_v60  }
 0x285   : > { %2292 = vperm.xlu0 %7340, %v8306_v47  }
 0x286   : > { %v8311_v35 = vpop.permute.xlu2 %2012  ;;  %v8313_v41 = vpop.permute.xlu1 %1962 }
 0x287   : > { %12996 = vst [vmem:[#allocation190_spill] sm:$0xff] %v8311_v35  ;;  %v8315_v34 = vpop.permute.xlu0 %1957 }
 0x288   : > { %12997 = vst [vmem:[#allocation191_spill] sm:$0xff] %v8313_v41 }
 0x289   : > { %12998 = vst [vmem:[#allocation192_spill] sm:$0xff] %v8315_v34 }
 0x28c   : > { %2317 = vperm.xlu2 %7342, %v8318_v45   ;;  %2312 = vperm.xlu1 %7341, %v8321_v40  }
 0x28d   : > { %2307 = vperm.xlu0 %7340, %v8324_v32  }
 0x28e   : > { %v8329_v35 = vpop.permute.xlu2 %2152  ;;  %v8331_v41 = vpop.permute.xlu1 %1977 }
 0x28f   : > { %12999 = vst [vmem:[#allocation193_spill] sm:$0xff] %v8329_v35  ;;  %v8333_v34 = vpop.permute.xlu0 %1972 }
 0x290   : > { %13000 = vst [vmem:[#allocation194_spill] sm:$0xff] %v8331_v41 }
 0x291   : > { %13001 = vst [vmem:[#allocation195_spill] sm:$0xff] %v8333_v34 }
 0x294   : > { %2332 = vperm.xlu2 %7342, %v2140_v31   ;;  %2327 = vperm.xlu1 %7341, %v2139_v27  }
 0x295   : > { %2322 = vperm.xlu0 %7340, %v2138_v17  }
 0x296   : > { %v8338_v18 = vpop.permute.xlu2 %2167  ;;  %v8340_v15 = vpop.permute.xlu1 %1992 }
 0x297   : > { %13002 = vst [vmem:[#allocation196_spill] sm:$0xff] %v8338_v18  ;;  %v8342_v49 = vpop.permute.xlu0 %1987 }
 0x298   : > { %13003 = vst [vmem:[#allocation197_spill] sm:$0xff] %v8340_v15  ;;  %v13170_v15 = vld [vmem:[#allocation50_spill] sm:$0xff] }
 0x299   : > { %13004 = vst [vmem:[#allocation198_spill] sm:$0xff] %v8342_v49 }
 0x29c   : > { %2347 = vperm.xlu2 %7342, %v2143_v8   ;;  %2342 = vperm.xlu1 %7341, %v2142_v22  }
 0x29d   : > { %2337 = vperm.xlu0 %7340, %v2141_v61  }
 0x29e   : > { %v8347_v41 = vpop.permute.xlu2 %2182  ;;  %v8349_v34 = vpop.permute.xlu1 %2007 }
 0x29f   : > { %13005 = vst [vmem:[#allocation199_spill] sm:$0xff] %v8347_v41  ;;  %v8351_v35 = vpop.permute.xlu0 %2002 }
 0x2a0   : > { %13006 = vst [vmem:[#allocation200_spill] sm:$0xff] %v8349_v34 }
 0x2a1   : > { %13007 = vst [vmem:[#allocation201_spill] sm:$0xff] %v8351_v35 }
 0x2a4   : > { %2487 = vperm.xlu2 %7342, %v8138_v2   ;;  %2482 = vperm.xlu1 %7341, %v8141_v28  }
 0x2a5   : > { %2477 = vperm.xlu0 %7340, %v8144_v24  }
 0x2a6   : > { %v8356_v17 = vpop.permute.xlu2 %2197  ;;  %v8358_v27 = vpop.permute.xlu1 %2147 }
 0x2a7   : > { %13008 = vst [vmem:[#allocation202_spill] sm:$0xff] %v8356_v17  ;;  %v8360_v31 = vpop.permute.xlu0 %2017 }
 0x2a8   : > { %13009 = vst [vmem:[#allocation203_spill] sm:$0xff] %v8358_v27  ;;  %v13165_v27 = vld [vmem:[#allocation45_spill] sm:$0xff] }
 0x2a9   : > { %13010 = vst [vmem:[#allocation204_spill] sm:$0xff] %v8360_v31 }
 0x2ac   : > { %2502 = vperm.xlu2 %7342, %v8156_v23   ;;  %2497 = vperm.xlu1 %7341, %v8159_v19   ;;  %v2766_v23 = vld [vmem:[%s7478_s19 + $0x3d] sm:$0xff] }
 0x2ad   : > { %2492 = vperm.xlu0 %7340, %v8162_v29  }
 0x2ae   : > { %v8365_v22 = vpop.permute.xlu2 %2212  ;;  %v8367_v61 = vpop.permute.xlu1 %2162 }
 0x2af   : > { %13011 = vst [vmem:[#allocation205_spill] sm:$0xff] %v8365_v22  ;;  %v8369_v8 = vpop.permute.xlu0 %2157  ;;  %v13164_v22 = vld [vmem:[#allocation44_spill] sm:$0xff] }
 0x2b0   : > { %13012 = vst [vmem:[#allocation206_spill] sm:$0xff] %v8367_v61  ;;  %v13163_v61 = vld [vmem:[#allocation43_spill] sm:$0xff] }
 0x2b1   : > { %13013 = vst [vmem:[#allocation207_spill] sm:$0xff] %v8369_v8 }
 0x2b4   : > { %2517 = vperm.xlu2 %7342, %v8174_v30   ;;  %2512 = vperm.xlu1 %7341, %v8177_v36  }
 0x2b5   : > { %2507 = vperm.xlu0 %7340, %v8180_v43  }
 0x2b6   : > { %v8374_v2 = vpop.permute.xlu2 %2227  ;;  %v8376_v28 = vpop.permute.xlu1 %2177 }
 0x2b7   : > { %13014 = vst [vmem:[#allocation208_spill] sm:$0xff] %v8374_v2  ;;  %v8378_v24 = vpop.permute.xlu0 %2172 }
 0x2b8   : > { %13015 = vst [vmem:[#allocation209_spill] sm:$0xff] %v8376_v28 }
 0x2b9   : > { %13016 = vst [vmem:[#allocation210_spill] sm:$0xff] %v8378_v24  ;;  %v13157_v24 = vld [vmem:[#allocation35_spill] sm:$0xff] }
 0x2bc   : > { %2532 = vperm.xlu2 %7342, %v8192_v44   ;;  %2527 = vperm.xlu1 %7341, %v8195_v53   ;;  %v2763_v53 = vld [vmem:[%s7478_s19 + $0x25] sm:$0xff] }
 0x2bd   : > { %2522 = vperm.xlu0 %7340, %v8198_v54  }
 0x2be   : > { %v8383_v29 = vpop.permute.xlu2 %2242  ;;  %v8385_v19 = vpop.permute.xlu1 %2192 }
 0x2bf   : > { %13017 = vst [vmem:[#allocation211_spill] sm:$0xff] %v8383_v29  ;;  %v8387_v30 = vpop.permute.xlu0 %2187 }
 0x2c0   : > { %13018 = vst [vmem:[#allocation212_spill] sm:$0xff] %v8385_v19 }
 0x2c1   : > { %13019 = vst [vmem:[#allocation213_spill] sm:$0xff] %v8387_v30 }
 0x2c4   : > { %2547 = vperm.xlu2 %7342, %v8210_v1   ;;  %2542 = vperm.xlu1 %7341, %v8213_v9  }
 0x2c5   : > { %2537 = vperm.xlu0 %7340, %v8216_v14  }
 0x2c6   : > { %v8392_v43 = vpop.permute.xlu2 %2257  ;;  %v8394_v36 = vpop.permute.xlu1 %2207 }
 0x2c7   : > { %13020 = vst [vmem:[#allocation214_spill] sm:$0xff] %v8392_v43  ;;  %v8396_v44 = vpop.permute.xlu0 %2202 }
 0x2c8   : > { %13021 = vst [vmem:[#allocation215_spill] sm:$0xff] %v8394_v36  ;;  %v13150_v36 = vld [vmem:[#allocation30_spill] sm:$0xff] }
 0x2c9   : > { %13022 = vst [vmem:[#allocation216_spill] sm:$0xff] %v8396_v44  ;;  %v13149_v44 = vld [vmem:[#allocation29_spill] sm:$0xff] }
 0x2cc   : > { %2562 = vperm.xlu2 %7342, %v8228_v13   ;;  %2557 = vperm.xlu1 %7341, %v8231_v21   ;;  %v2767_v21 = vld [vmem:[%s7478_s19 + $0x45] sm:$0xff] }
 0x2cd   : > { %2552 = vperm.xlu0 %7340, %v8234_v37  }
 0x2ce   : > { %v8401_v54 = vpop.permute.xlu2 %2272  ;;  %v8403_v1 = vpop.permute.xlu1 %2222 }
 0x2cf   : > { %13023 = vst [vmem:[#allocation217_spill] sm:$0xff] %v8401_v54  ;;  %v8405_v9 = vpop.permute.xlu0 %2217  ;;  %v13148_v54 = vld [vmem:[#allocation27_spill] sm:$0xff] }
 0x2d0   : > { %13024 = vst [vmem:[#allocation218_spill] sm:$0xff] %v8403_v1 }
 0x2d1   : > { %13025 = vst [vmem:[#allocation219_spill] sm:$0xff] %v8405_v9  ;;  %v13144_v9 = vld [vmem:[#allocation25_spill] sm:$0xff] }
 0x2d4   : > { %2577 = vperm.xlu2 %7342, %v8246_v33   ;;  %2572 = vperm.xlu1 %7341, %v8249_v39  }
 0x2d5   : > { %2567 = vperm.xlu0 %7340, %v8252_v55  }
 0x2d6   : > { %v8410_v14 = vpop.permute.xlu2 %2287  ;;  %v8412_v13 = vpop.permute.xlu1 %2237 }
 0x2d7   : > { %13026 = vst [vmem:[#allocation220_spill] sm:$0xff] %v8410_v14  ;;  %v8414_v37 = vpop.permute.xlu0 %2232 }
 0x2d8   : > { %13027 = vst [vmem:[#allocation221_spill] sm:$0xff] %v8412_v13 }
 0x2d9   : > { %13028 = vst [vmem:[#allocation222_spill] sm:$0xff] %v8414_v37 }
 0x2dc   : > { %2592 = vperm.xlu2 %7342, %v8264_v48   ;;  %2587 = vperm.xlu1 %7341, %v8267_v59  }
 0x2dd   : > { %2582 = vperm.xlu0 %7340, %v8270_v26  }
 0x2de   : > { %v8419_v33 = vpop.permute.xlu2 %2302  ;;  %v8421_v39 = vpop.permute.xlu1 %2252 }
 0x2df   : > { %13029 = vst [vmem:[#allocation223_spill] sm:$0xff] %v8419_v33  ;;  %v8423_v55 = vpop.permute.xlu0 %2247  ;;  %v2765_v33 = vld [vmem:[%s7478_s19 + $0x35] sm:$0xff] }
 0x2e0   : > { %13030 = vst [vmem:[#allocation224_spill] sm:$0xff] %v8421_v39  ;;  %v2764_v39 = vld [vmem:[%s7478_s19 + $0x2d] sm:$0xff] }
 0x2e1   : > { %13031 = vst [vmem:[#allocation225_spill] sm:$0xff] %v8423_v55  ;;  %v2769_v55 = vld [vmem:[%s7478_s19 + $0x55] sm:$0xff] }
 0x2e4   : > { %2827 = vperm.xlu2 %7342, %v2767_v21   ;;  %2807 = vperm.xlu1 %7341, %v2763_v53  }
 0x2e5   : > { %2597 = vperm.xlu0 %7340, %v8288_v7  }
 0x2e6   : > { %v8428_v48 = vpop.permute.xlu2 %2317  ;;  %v8430_v59 = vpop.permute.xlu1 %2267 }
 0x2e7   : > { %13032 = vst [vmem:[#allocation226_spill] sm:$0xff] %v8428_v48  ;;  %v8432_v26 = vpop.permute.xlu0 %2262  ;;  %v2770_v48 = vld [vmem:[%s7478_s19 + $0x5d] sm:$0xff] }
 0x2e8   : > { %13033 = vst [vmem:[#allocation227_spill] sm:$0xff] %v8430_v59  ;;  %v2768_v59 = vld [vmem:[%s7478_s19 + $0x4d] sm:$0xff] }
 0x2e9   : > { %13034 = vst [vmem:[#allocation228_spill] sm:$0xff] %v8432_v26  ;;  %v3093_v26 = vld [vmem:[%s7478_s19 + $0x26] sm:$0xff] }
 0x2ec   : > { %2822 = vperm.xlu2 %7342, %v2766_v23   ;;  %2817 = vperm.xlu1 %7341, %v2765_v33  }
 0x2ed   : > { %2812 = vperm.xlu0 %7340, %v2764_v39  }
 0x2ee   : > { %v8437_v21 = vpop.permute.xlu2 %2332  ;;  %v8439_v53 = vpop.permute.xlu1 %2282 }
 0x2ef   : > { %13035 = vst [vmem:[#allocation229_spill] sm:$0xff] %v8437_v21  ;;  %v8441_v7 = vpop.permute.xlu0 %2277  ;;  %v3097_v21 = vld [vmem:[%s7478_s19 + $0x46] sm:$0xff] }
 0x2f0   : > { %13036 = vst [vmem:[#allocation230_spill] sm:$0xff] %v8439_v53  ;;  %v2771_v53 = vld [vmem:[%s7478_s19 + $0x65] sm:$0xff] }
 0x2f1   : > { %13037 = vst [vmem:[#allocation231_spill] sm:$0xff] %v8441_v7  ;;  %v2773_v7 = vld [vmem:[%s7478_s19 + $0x75] sm:$0xff] }
 0x2f4   : > { %2842 = vperm.xlu2 %7342, %v2770_v48   ;;  %2837 = vperm.xlu1 %7341, %v2769_v55  }
 0x2f5   : > { %2832 = vperm.xlu0 %7340, %v2768_v59  }
 0x2f6   : > { %v8446_v23 = vpop.permute.xlu2 %2347  ;;  %v8448_v33 = vpop.permute.xlu1 %2297 }
 0x2f7   : > { %13038 = vst [vmem:[#allocation232_spill] sm:$0xff] %v8446_v23  ;;  %v8450_v39 = vpop.permute.xlu0 %2292  ;;  %v2774_v23 = vld [vmem:[%s7478_s19 + $0x7d] sm:$0xff] }
 0x2f8   : > { %13039 = vst [vmem:[#allocation233_spill] sm:$0xff] %v8448_v33  ;;  %v2772_v33 = vld [vmem:[%s7478_s19 + $0x6d] sm:$0xff] }
 0x2f9   : > { %13040 = vst [vmem:[#allocation234_spill] sm:$0xff] %v8450_v39  ;;  %v3094_v39 = vld [vmem:[%s7478_s19 + $0x2e] sm:$0xff] }
 0x2fc   : > { %3157 = vperm.xlu2 %7342, %v3097_v21   ;;  %3137 = vperm.xlu1 %7341, %v3093_v26  }
 0x2fd   : > { %2847 = vperm.xlu0 %7340, %v2771_v53  }
 0x2fe   : > { %v8455_v48 = vpop.permute.xlu2 %2487  ;;  %v8457_v55 = vpop.permute.xlu1 %2312 }
 0x2ff   : > { %13041 = vst [vmem:[#allocation235_spill] sm:$0xff] %v8455_v48  ;;  %v8459_v59 = vpop.permute.xlu0 %2307  ;;  %v3095_v48 = vld [vmem:[%s7478_s19 + $0x36] sm:$0xff] }
 0x300   : > { %13042 = vst [vmem:[#allocation236_spill] sm:$0xff] %v8457_v55  ;;  %v2775_v55 = vld [vmem:[%s7478_s19 + $0x85] sm:$0xff] }
 0x301   : > { %13043 = vst [vmem:[#allocation237_spill] sm:$0xff] %v8459_v59  ;;  %v3098_v59 = vld [vmem:[%s7478_s19 + $0x4e] sm:$0xff] }
 0x304   : > { %2862 = vperm.xlu2 %7342, %v2774_v23   ;;  %2857 = vperm.xlu1 %7341, %v2773_v7  }
 0x305   : > { %2852 = vperm.xlu0 %7340, %v2772_v33  }
 0x306   : > { %v8464_v21 = vpop.permute.xlu2 %2502  ;;  %v8466_v26 = vpop.permute.xlu1 %2327 }
 0x307   : > { %13044 = vst [vmem:[#allocation238_spill] sm:$0xff] %v8464_v21  ;;  %v8468_v53 = vpop.permute.xlu0 %2322  ;;  %v3099_v21 = vld [vmem:[%s7478_s19 + $0x56] sm:$0xff] }
 0x308   : > { %13045 = vst [vmem:[#allocation239_spill] sm:$0xff] %v8466_v26  ;;  %v3096_v26 = vld [vmem:[%s7478_s19 + $0x3e] sm:$0xff] }
 0x309   : > { %13046 = vst [vmem:[#allocation240_spill] sm:$0xff] %v8468_v53  ;;  %v3101_v53 = vld [vmem:[%s7478_s19 + $0x66] sm:$0xff] }
 0x30c   : > { %3147 = vperm.xlu2 %7342, %v3095_v48   ;;  %3142 = vperm.xlu1 %7341, %v3094_v39  }
 0x30d   : > { %2867 = vperm.xlu0 %7340, %v2775_v55  }
 0x30e   : > { %v8473_v23 = vpop.permute.xlu2 %2517  ;;  %v8475_v7 = vpop.permute.xlu1 %2342 }
 0x30f   : > { %13047 = vst [vmem:[#allocation241_spill] sm:$0xff] %v8473_v23  ;;  %v8477_v33 = vpop.permute.xlu0 %2337  ;;  %v2776_v23 = vld [vmem:[%s7478_s19 + $0x8d] sm:$0xff] }
 0x310   : > { %13048 = vst [vmem:[#allocation242_spill] sm:$0xff] %v8475_v7  ;;  %v3100_v7 = vld [vmem:[%s7478_s19 + $0x5e] sm:$0xff] }
 0x311   : > { %13049 = vst [vmem:[#allocation243_spill] sm:$0xff] %v8477_v33  ;;  %v2778_v33 = vld [vmem:[%s7478_s19 + $0x9d] sm:$0xff] }
 0x314   : > { %3167 = vperm.xlu2 %7342, %v3099_v21   ;;  %3162 = vperm.xlu1 %7341, %v3098_v59  }
 0x315   : > { %3152 = vperm.xlu0 %7340, %v3096_v26  }
 0x316   : > { %v8482_v48 = vpop.permute.xlu2 %2532  ;;  %v8484_v39 = vpop.permute.xlu1 %2482 }
 0x317   : > { %13050 = vst [vmem:[#allocation244_spill] sm:$0xff] %v8482_v48  ;;  %v8486_v55 = vpop.permute.xlu0 %2477  ;;  %v2779_v48 = vld [vmem:[%s7478_s19 + $0xa5] sm:$0xff] }
 0x318   : > { %13051 = vst [vmem:[#allocation245_spill] sm:$0xff] %v8484_v39  ;;  %v2777_v39 = vld [vmem:[%s7478_s19 + $0x95] sm:$0xff] }
 0x319   : > { %13052 = vst [vmem:[#allocation246_spill] sm:$0xff] %v8486_v55  ;;  %v3103_v55 = vld [vmem:[%s7478_s19 + $0x76] sm:$0xff] }
 0x31c   : > { %2872 = vperm.xlu2 %7342, %v2776_v23   ;;  %3177 = vperm.xlu1 %7341, %v3101_v53  }
 0x31d   : > { %3172 = vperm.xlu0 %7340, %v3100_v7  }
 0x31e   : > { %v8491_v21 = vpop.permute.xlu2 %2547  ;;  %v8493_v59 = vpop.permute.xlu1 %2497 }
 0x31f   : > { %13053 = vst [vmem:[#allocation247_spill] sm:$0xff] %v8491_v21  ;;  %v8495_v26 = vpop.permute.xlu0 %2492  ;;  %v3104_v21 = vld [vmem:[%s7478_s19 + $0x7e] sm:$0xff] }
 0x320   : > { %13054 = vst [vmem:[#allocation248_spill] sm:$0xff] %v8493_v59  ;;  %v3102_v59 = vld [vmem:[%s7478_s19 + $0x6e] sm:$0xff] }
 0x321   : > { %13055 = vst [vmem:[#allocation249_spill] sm:$0xff] %v8495_v26  ;;  %v2780_v26 = vld [vmem:[%s7478_s19 + $0xad] sm:$0xff] }
 0x324   : > { %2887 = vperm.xlu2 %7342, %v2779_v48   ;;  %2882 = vperm.xlu1 %7341, %v2778_v33  }
 0x325   : > { %2877 = vperm.xlu0 %7340, %v2777_v39  }
 0x326   : > { %v8500_v23 = vpop.permute.xlu2 %2562  ;;  %v8502_v53 = vpop.permute.xlu1 %2512 }
 0x327   : > { %13056 = vst [vmem:[#allocation250_spill] sm:$0xff] %v8500_v23  ;;  %v8504_v7 = vpop.permute.xlu0 %2507  ;;  %v2781_v23 = vld [vmem:[%s7478_s19 + $0xb5] sm:$0xff] }
 0x328   : > { %13057 = vst [vmem:[#allocation251_spill] sm:$0xff] %v8502_v53  ;;  %v3105_v53 = vld [vmem:[%s7478_s19 + $0x86] sm:$0xff] }
 0x329   : > { %13058 = vst [vmem:[#allocation252_spill] sm:$0xff] %v8504_v7  ;;  %v2783_v7 = vld [vmem:[%s7478_s19 + $0xc5] sm:$0xff] }
 0x32c   : > { %3192 = vperm.xlu2 %7342, %v3104_v21   ;;  %3187 = vperm.xlu1 %7341, %v3103_v55  }
 0x32d   : > { %3182 = vperm.xlu0 %7340, %v3102_v59  }
 0x32e   : > { %v8509_v48 = vpop.permute.xlu2 %2577  ;;  %v8511_v33 = vpop.permute.xlu1 %2527 }
 0x32f   : > { %13059 = vst [vmem:[#allocation253_spill] sm:$0xff] %v8509_v48  ;;  %v8513_v39 = vpop.permute.xlu0 %2522  ;;  %v3106_v48 = vld [vmem:[%s7478_s19 + $0x8e] sm:$0xff] }
 0x330   : > { %13060 = vst [vmem:[#allocation254_spill] sm:$0xff] %v8511_v33  ;;  %v2782_v33 = vld [vmem:[%s7478_s19 + $0xbd] sm:$0xff] }
 0x331   : > { %13061 = vst [vmem:[#allocation255_spill] sm:$0xff] %v8513_v39 }
 0x334   : > { %2897 = vperm.xlu2 %7342, %v2781_v23   ;;  %2892 = vperm.xlu1 %7341, %v2780_v26   ;;  %v3109_v26 = vld [vmem:[%s7478_s19 + $0xa6] sm:$0xff] }
 0x335   : > { %3197 = vperm.xlu0 %7340, %v3105_v53   ;;  %v3108_v53 = vld [vmem:[%s7478_s19 + $0x9e] sm:$0xff] }
 0x336   : > { %v8518_v21 = vpop.permute.xlu2 %2592  ;;  %v8520_v55 = vpop.permute.xlu1 %2542 }
 0x337   : > { %13062 = vst [vmem:[#allocation256_spill] sm:$0xff] %v8518_v21  ;;  %v8522_v59 = vpop.permute.xlu0 %2537  ;;  %v3107_v21 = vld [vmem:[%s7478_s19 + $0x96] sm:$0xff] }
 0x338   : > { %13063 = vst [vmem:[#allocation257_spill] sm:$0xff] %v8520_v55 }
 0x339   : > { %13064 = vst [vmem:[#allocation258_spill] sm:$0xff] %v8522_v59 }
 0x33c   : > { %3202 = vperm.xlu2 %7342, %v3106_v48   ;;  %2907 = vperm.xlu1 %7341, %v2783_v7  }
 0x33d   : > { %2902 = vperm.xlu0 %7340, %v2782_v33  }
 0x33e   : > { %v8527_v39 = vpop.permute.xlu2 %2827  ;;  %v8529_v37 = vpop.permute.xlu1 %2557 }
 0x33f   : > { %13065 = vst [vmem:[#allocation259_spill] sm:$0xff] %v8527_v39  ;;  %v8531_v23 = vpop.permute.xlu0 %2552 }
 0x340   : > { %13066 = vst [vmem:[#allocation260_spill] sm:$0xff] %v8529_v37 }
 0x341   : > { %13067 = vst [vmem:[#allocation261_spill] sm:$0xff] %v8531_v23 }
 0x344   : > { %3217 = vperm.xlu2 %7342, %v3109_v26   ;;  %3212 = vperm.xlu1 %7341, %v3108_v53   ;;  %v2785_v26 = vld [vmem:[%s7478_s19 + $0xd5] sm:$0xff]  ;;  %v2784_v53 = vld [vmem:[%s7478_s19 + $0xcd] sm:$0xff] }
 0x345   : > { %3207 = vperm.xlu0 %7340, %v3107_v21  }
 0x346   : > { %v8536_v59 = vpop.permute.xlu2 %2822  ;;  %v8538_v55 = vpop.permute.xlu1 %2572 }
 0x347   : > { %13068 = vst [vmem:[#allocation262_spill] sm:$0xff] %v8536_v59  ;;  %v8540_v7 = vpop.permute.xlu0 %2567  ;;  %v3111_v59 = vld [vmem:[%s7478_s19 + $0xb6] sm:$0xff] }
 0x348   : > { %13069 = vst [vmem:[#allocation263_spill] sm:$0xff] %v8538_v55  ;;  %v3113_v55 = vld [vmem:[%s7478_s19 + $0xc6] sm:$0xff] }
 0x349   : > { %13070 = vst [vmem:[#allocation264_spill] sm:$0xff] %v8540_v7  ;;  %v2787_v7 = vld [vmem:[%s7478_s19 + $0xe5] sm:$0xff] }
 0x34c   : > { %2612 = vperm.xlu2 %7342, %v8306_v47   ;;  %2607 = vperm.xlu1 %7341, %v8282_v25  }
 0x34d   : > { %2602 = vperm.xlu0 %7340, %v8285_v20  }
 0x34e   : > { %v8545_v48 = vpop.permute.xlu2 %2842  ;;  %v8547_v33 = vpop.permute.xlu1 %2587 }
 0x34f   : > { %13071 = vst [vmem:[#allocation265_spill] sm:$0xff] %v8545_v48  ;;  %v8549_v21 = vpop.permute.xlu0 %2582  ;;  %v3110_v48 = vld [vmem:[%s7478_s19 + $0xae] sm:$0xff] }
 0x350   : > { %13072 = vst [vmem:[#allocation266_spill] sm:$0xff] %v8547_v33  ;;  %v2786_v33 = vld [vmem:[%s7478_s19 + $0xdd] sm:$0xff] }
 0x351   : > { %13073 = vst [vmem:[#allocation267_spill] sm:$0xff] %v8549_v21 }
 0x354   : > { %2917 = vperm.xlu2 %7342, %v2785_v26   ;;  %2912 = vperm.xlu1 %7341, %v2784_v53  }
 0x355   : > { %2617 = vperm.xlu0 %7340, %v8303_v60   ;;  %v3112_v60 = vld [vmem:[%s7478_s19 + $0xbe] sm:$0xff] }
 0x356   : > { %v8554_v47 = vpop.permute.xlu2 %3157  ;;  %v8556_v25 = vpop.permute.xlu1 %2807 }
 0x357   : > { %13074 = vst [vmem:[#allocation268_spill] sm:$0xff] %v8554_v47  ;;  %v8558_v20 = vpop.permute.xlu0 %2597 }
 0x358   : > { %13075 = vst [vmem:[#allocation269_spill] sm:$0xff] %v8556_v25 }
 0x359   : > { %13076 = vst [vmem:[#allocation270_spill] sm:$0xff] %v8558_v20 }
 0x35c   : > { %3222 = vperm.xlu2 %7342, %v3110_v48   ;;  %2927 = vperm.xlu1 %7341, %v2787_v7   ;;  %v3428_v7 = vld [vmem:[%s12762_s3 + $0x20] sm:$0xff] }
 0x35d   : > { %2922 = vperm.xlu0 %7340, %v2786_v33   ;;  %v3424_v33 = vld [vmem:[%s12762_s3] sm:$0xff] }
 0x35e   : > { %v8563_v21 = vpop.permute.xlu2 %2862  ;;  %v8565_v26 = vpop.permute.xlu1 %2817 }
 0x35f   : > { %13077 = vst [vmem:[#allocation271_spill] sm:$0xff] %v8563_v21  ;;  %v8567_v53 = vpop.permute.xlu0 %2812  ;;  %v2789_v21 = vld [vmem:[%s7478_s19 + $0xf5] sm:$0xff] }
 0x360   : > { %13078 = vst [vmem:[#allocation272_spill] sm:$0xff] %v8565_v26 }
 0x361   : > { %13079 = vst [vmem:[#allocation273_spill] sm:$0xff] %v8567_v53  ;;  %v2788_v53 = vld [vmem:[%s7478_s19 + $0xed] sm:$0xff] }
 0x364   : > { %3237 = vperm.xlu2 %7342, %v3113_v55   ;;  %3232 = vperm.xlu1 %7341, %v3112_v60  }
 0x365   : > { %3227 = vperm.xlu0 %7340, %v3111_v59  }
 0x366   : > { %v8572_v25 = vpop.permute.xlu2 %3147  ;;  %v8574_v20 = vpop.permute.xlu1 %2837 }
 0x367   : > { %13080 = vst [vmem:[#allocation274_spill] sm:$0xff] %v8572_v25  ;;  %v8576_v48 = vpop.permute.xlu0 %2832  ;;  %v13133_v25 = vld [vmem:[#allocation16_spill] sm:$0xff] }
 0x368   : > { %13081 = vst [vmem:[#allocation275_spill] sm:$0xff] %v8574_v20 }
 0x369   : > { %13082 = vst [vmem:[#allocation276_spill] sm:$0xff] %v8576_v48 }
 0x36c   : > { %2622 = vperm.xlu2 %7342, %v8300_v3   ;;  %3572 = vperm.xlu1 %7341, %v3428_v7  }
 0x36d   : > { %3552 = vperm.xlu0 %7340, %v3424_v33   ;;  %v2790_v33 = vld [vmem:[%s7478_s19 + $0xfd] sm:$0xff] }
 0x36e   : > { %v8585_v55 = vpop.permute.xlu2 %3167  ;;  %v8587_v59 = vpop.permute.xlu1 %3137 }
 0x36f   : > { %13083 = vst [vmem:[#allocation277_spill] sm:$0xff] %v8585_v55  ;;  %v8589_v60 = vpop.permute.xlu0 %2847  ;;  %v3119_v55 = vld [vmem:[%s7478_s19 + $0xf6] sm:$0xff] }
 0x370   : > { %13084 = vst [vmem:[#allocation278_spill] sm:$0xff] %v8587_v59  ;;  %v2791_v59 = vld [vmem:[%s7478_s19 + $0x105] sm:$0xff] }
 0x371   : > { %13085 = vst [vmem:[#allocation279_spill] sm:$0xff] %v8589_v60 }
 0x374   : > { %2637 = vperm.xlu2 %7342, %v8318_v45   ;;  %2632 = vperm.xlu1 %7341, %v8321_v40  }
 0x375   : > { %2627 = vperm.xlu0 %7340, %v8324_v32   ;;  %v3115_v32 = vld [vmem:[%s7478_s19 + $0xd6] sm:$0xff] }
 0x376   : > { %v8594_v48 = vpop.permute.xlu2 %2872  ;;  %v8596_v3 = vpop.permute.xlu1 %2857 }
 0x377   : > { %13086 = vst [vmem:[#allocation280_spill] sm:$0xff] %v8594_v48  ;;  %v8598_v7 = vpop.permute.xlu0 %2852  ;;  %v3114_v48 = vld [vmem:[%s7478_s19 + $0xce] sm:$0xff] }
 0x378   : > { %13087 = vst [vmem:[#allocation281_spill] sm:$0xff] %v8596_v3 }
 0x379   : > { %13088 = vst [vmem:[#allocation282_spill] sm:$0xff] %v8598_v7 }
 0x37c   : > { %2942 = vperm.xlu2 %7342, %v2790_v33   ;;  %2937 = vperm.xlu1 %7341, %v2789_v21   ;;  %v3425_v21 = vld [vmem:[%s12762_s3 + $0x8] sm:$0xff] }
 0x37d   : > { %2932 = vperm.xlu0 %7340, %v2788_v53   ;;  %v3117_v53 = vld [vmem:[%s7478_s19 + $0xe6] sm:$0xff] }
 0x37e   : > { %v8603_v45 = vpop.permute.xlu2 %2887  ;;  %v8605_v40 = vpop.permute.xlu1 %3142 }
 0x37f   : > { %13089 = vst [vmem:[#allocation283_spill] sm:$0xff] %v8603_v45  ;;  %v8607_v60 = vpop.permute.xlu0 %2867  ;;  %v3116_v45 = vld [vmem:[%s7478_s19 + $0xde] sm:$0xff] }
 0x380   : > { %13090 = vst [vmem:[#allocation284_spill] sm:$0xff] %v8605_v40 }
 0x381   : > { %13091 = vst [vmem:[#allocation285_spill] sm:$0xff] %v8607_v60 }
 0x384   : > { %3247 = vperm.xlu2 %7342, %v3115_v32   ;;  %3242 = vperm.xlu1 %7341, %v3114_v48  }
 0x385   : > { %2947 = vperm.xlu0 %7340, %v2791_v59   ;;  %v3429_v59 = vld [vmem:[%s12762_s3 + $0x28] sm:$0xff] }
 0x386   : > { %v8612_v7 = vpop.permute.xlu2 %3192  ;;  %v8614_v3 = vpop.permute.xlu1 %3162 }
 0x387   : > { %13092 = vst [vmem:[#allocation286_spill] sm:$0xff] %v8612_v7  ;;  %v8616_v33 = vpop.permute.xlu0 %3152  ;;  %v2792_v7 = vld [vmem:[%s7478_s19 + $0x10d] sm:$0xff] }
 0x388   : > { %13093 = vst [vmem:[#allocation287_spill] sm:$0xff] %v8614_v3  ;;  %v2466_v3 = vld [vmem:[%s7478_s19 + $0x12c] sm:$0xff] }
 0x389   : > { %13094 = vst [vmem:[#allocation288_spill] sm:$0xff] %v8616_v33  ;;  %v3427_v33 = vld [vmem:[%s12762_s3 + $0x18] sm:$0xff] }
 0x38c   : > { %3557 = vperm.xlu2 %7342, %v3425_v21   ;;  %3257 = vperm.xlu1 %7341, %v3117_v53   ;;  %v3426_v21 = vld [vmem:[%s12762_s3 + $0x10] sm:$0xff] }
 0x38d   : > { %3252 = vperm.xlu0 %7340, %v3116_v45  }
 0x38e   : > { %v8623_v60 = vpop.permute.xlu2 %2897  ;;  %v8625_v32 = vpop.permute.xlu1 %3177 }
 0x38f   : > { %13095 = vst [vmem:[#allocation289_spill] sm:$0xff] %v8623_v60  ;;  %v8627_v48 = vpop.permute.xlu0 %3172 }
 0x390   : > { %13096 = vst [vmem:[#allocation290_spill] sm:$0xff] %v8625_v32  ;;  %v3431_v32 = vld [vmem:[%s12762_s3 + $0x38] sm:$0xff] }
 0x391   : > { %13097 = vst [vmem:[#allocation291_spill] sm:$0xff] %v8627_v48  ;;  %v3432_v48 = vld [vmem:[%s12762_s3 + $0x40] sm:$0xff] }
 0x394   : > { %3577 = vperm.xlu2 %7342, %v3429_v59   ;;  %3567 = vperm.xlu1 %7341, %v3427_v33   ;;  %v3430_v33 = vld [vmem:[%s12762_s3 + $0x30] sm:$0xff] }
 0x395   : > { %3562 = vperm.xlu0 %7340, %v3426_v21  }
 0x396   : > { %v8638_v45 = vpop.permute.xlu2 %3202  ;;  %v8640_v53 = vpop.permute.xlu1 %2882 }
 0x397   : > { %13098 = vst [vmem:[#allocation292_spill] sm:$0xff] %v8638_v45  ;;  %v8642_v60 = vpop.permute.xlu0 %2877  ;;  %v2467_v45 = vld [vmem:[%s7478_s19 + $0x134] sm:$0xff] }
 0x398   : > { %13099 = vst [vmem:[#allocation293_spill] sm:$0xff] %v8640_v53  ;;  %v2468_v53 = vld [vmem:[%s7478_s19 + $0x13c] sm:$0xff] }
 0x399   : > { %13100 = vst [vmem:[#allocation294_spill] sm:$0xff] %v8642_v60 }
 0x39c   : > { %3592 = vperm.xlu2 %7342, %v3432_v48   ;;  %3587 = vperm.xlu1 %7341, %v3431_v32  }
 0x39d   : > { %3582 = vperm.xlu0 %7340, %v3430_v33  }
 0x39e   : > { %v8653_v59 = vpop.permute.xlu2 %3217  ;;  %v8655_v21 = vpop.permute.xlu1 %3187 }
 0x39f   : > { %13101 = vst [vmem:[#allocation295_spill] sm:$0xff] %v8653_v59  ;;  %v8657_v60 = vpop.permute.xlu0 %3182  ;;  %v2793_v59 = vld [vmem:[%s7478_s19 + $0x115] sm:$0xff] }
 0x3a0   : > { %13102 = vst [vmem:[#allocation296_spill] sm:$0xff] %v8655_v21  ;;  %v2469_v21 = vld [vmem:[%s7478_s19 + $0x144] sm:$0xff] }
 0x3a1   : > { %13103 = vst [vmem:[#allocation297_spill] sm:$0xff] %v8657_v60  ;;  %v2795_v60 = vld [vmem:[%s7478_s19 + $0x125] sm:$0xff] }
 0x3a4   : > { %2652 = vperm.xlu2 %7342, %v2468_v53   ;;  %2647 = vperm.xlu1 %7341, %v2467_v45  }
 0x3a5   : > { %2642 = vperm.xlu0 %7340, %v2466_v3  }
 0x3a6   : > { %v8662_v48 = vpop.permute.xlu2 %2612  ;;  %v8664_v32 = vpop.permute.xlu1 %2892 }
 0x3a7   : > { %13104 = vst [vmem:[#allocation298_spill] sm:$0xff] %v8662_v48  ;;  %v8666_v33 = vpop.permute.xlu0 %3197  ;;  %v3118_v48 = vld [vmem:[%s7478_s19 + $0xee] sm:$0xff] }
 0x3a8   : > { %13105 = vst [vmem:[#allocation299_spill] sm:$0xff] %v8664_v32  ;;  %v2794_v32 = vld [vmem:[%s7478_s19 + $0x11d] sm:$0xff] }
 0x3a9   : > { %13106 = vst [vmem:[#allocation300_spill] sm:$0xff] %v8666_v33 }
 0x3ac   : > { %2957 = vperm.xlu2 %7342, %v2793_v59   ;;  %2952 = vperm.xlu1 %7341, %v2792_v7   ;;  %v3121_v7 = vld [vmem:[%s7478_s19 + $0x106] sm:$0xff] }
 0x3ad   : > { %2657 = vperm.xlu0 %7340, %v2469_v21   ;;  %v3120_v21 = vld [vmem:[%s7478_s19 + $0xfe] sm:$0xff] }
 0x3ae   : > { %v8671_v53 = vpop.permute.xlu2 %2917  ;;  %v8673_v45 = vpop.permute.xlu1 %2907 }
 0x3af   : > { %13107 = vst [vmem:[#allocation301_spill] sm:$0xff] %v8671_v53  ;;  %v8675_v3 = vpop.permute.xlu0 %2902 }
 0x3b0   : > { %13108 = vst [vmem:[#allocation302_spill] sm:$0xff] %v8673_v45  ;;  %v3436_v45 = vld [vmem:[%s12762_s3 + $0x60] sm:$0xff] }
 0x3b1   : > { %13109 = vst [vmem:[#allocation303_spill] sm:$0xff] %v8675_v3 }
 0x3b4   : > { %3262 = vperm.xlu2 %7342, %v3118_v48   ;;  %2967 = vperm.xlu1 %7341, %v2795_v60   ;;  %v3435_v48 = vld [vmem:[%s12762_s3 + $0x58] sm:$0xff] }
 0x3b5   : > { %2962 = vperm.xlu0 %7340, %v2794_v32   ;;  %v3434_v32 = vld [vmem:[%s12762_s3 + $0x50] sm:$0xff] }
 0x3b6   : > { %v8680_v33 = vpop.permute.xlu2 %3222  ;;  %v8682_v40 = vpop.permute.xlu1 %3212 }
 0x3b7   : > { %13110 = vst [vmem:[#allocation304_spill] sm:$0xff] %v8680_v33  ;;  %v8684_v59 = vpop.permute.xlu0 %3207  ;;  %v3122_v33 = vld [vmem:[%s7478_s19 + $0x10e] sm:$0xff] }
 0x3b8   : > { %13111 = vst [vmem:[#allocation305_spill] sm:$0xff] %v8682_v40 }
 0x3b9   : > { %13112 = vst [vmem:[#allocation306_spill] sm:$0xff] %v8684_v59  ;;  %v2798_v59 = vld [vmem:[%s7478_s19 + $0x13d] sm:$0xff] }
 0x3bc   : > { %3277 = vperm.xlu2 %7342, %v3121_v7   ;;  %3272 = vperm.xlu1 %7341, %v3120_v21   ;;  %v3433_v7 = vld [vmem:[%s12762_s3 + $0x48] sm:$0xff] }
 0x3bd   : > { %3267 = vperm.xlu0 %7340, %v3119_v55  }
 0x3be   : > { %v8689_v3 = vpop.permute.xlu2 %3237  ;;  %v8691_v53 = vpop.permute.xlu1 %2607 }
 0x3bf   : > { %13113 = vst [vmem:[#allocation307_spill] sm:$0xff] %v8689_v3  ;;  %v8693_v60 = vpop.permute.xlu0 %2602  ;;  %v2470_v3 = vld [vmem:[%s7478_s19 + $0x14c] sm:$0xff] }
 0x3c0   : > { %13114 = vst [vmem:[#allocation308_spill] sm:$0xff] %v8691_v53  ;;  %v2471_v53 = vld [vmem:[%s7478_s19 + $0x154] sm:$0xff] }
 0x3c1   : > { %13115 = vst [vmem:[#allocation309_spill] sm:$0xff] %v8693_v60 }
 0x3c4   : > { %3607 = vperm.xlu2 %7342, %v3435_v48   ;;  %3602 = vperm.xlu1 %7341, %v3434_v32  }
 0x3c5   : > { %3597 = vperm.xlu0 %7340, %v3433_v7  }
 0x3c6   : > { %v8704_v55 = vpop.permute.xlu2 %2622  ;;  %v8706_v21 = vpop.permute.xlu1 %2912 }
 0x3c7   : > { %13116 = vst [vmem:[#allocation310_spill] sm:$0xff] %v8704_v55  ;;  %v8708_v60 = vpop.permute.xlu0 %2617  ;;  %v2472_v55 = vld [vmem:[%s7478_s19 + $0x15c] sm:$0xff] }
 0x3c8   : > { %13117 = vst [vmem:[#allocation311_spill] sm:$0xff] %v8706_v21  ;;  %v2796_v21 = vld [vmem:[%s7478_s19 + $0x12d] sm:$0xff] }
 0x3c9   : > { %13118 = vst [vmem:[#allocation312_spill] sm:$0xff] %v8708_v60  ;;  %v2473_v60 = vld [vmem:[%s7478_s19 + $0x164] sm:$0xf] }
 0x3cc   : > { %2667 = vperm.xlu2 %7342, %v2471_v53   ;;  %2662 = vperm.xlu1 %7341, %v2470_v3  }
 0x3cd   : > { %3612 = vperm.xlu0 %7340, %v3436_v45  }
 0x3ce   : > { %v8715_v48 = vpop.permute.xlu2 %2637  ;;  %v8717_v32 = vpop.permute.xlu1 %2927 }
 0x3cf   : > { %13119 = vst [vmem:[#allocation313_spill] sm:$0xff] %v8715_v48  ;;  %v8719_v7 = vpop.permute.xlu0 %2922  ;;  %v2799_v48 = vld [vmem:[%s7478_s19 + $0x145] sm:$0xff] }
 0x3d0   : > { %13120 = vst [vmem:[#allocation314_spill] sm:$0xff] %v8717_v32  ;;  %v2797_v32 = vld [vmem:[%s7478_s19 + $0x135] sm:$0xff] }
 0x3d1   : > { %13121 = vst [vmem:[#allocation315_spill] sm:$0xff] %v8719_v7 }
 0x3d4   : > { %2972 = vperm.xlu2 %7342, %v2796_v21   ;;  %2677 = vperm.xlu1 %7341, %v2473_v60   ;;  %v3124_v60 = vld [vmem:[%s7478_s19 + $0x11e] sm:$0xff] }
 0x3d5   : > { %2672 = vperm.xlu0 %7340, %v2472_v55   ;;  %v3123_v55 = vld [vmem:[%s7478_s19 + $0x116] sm:$0xff] }
 0x3d6   : > { %v8724_v53 = vpop.permute.xlu2 %2942  ;;  %v8726_v3 = vpop.permute.xlu1 %3232 }
 0x3d7   : > { %13122 = vst [vmem:[#allocation316_spill] sm:$0xff] %v8724_v53  ;;  %v8728_v45 = vpop.permute.xlu0 %3227  ;;  %v8745_v53 = vld [vmem:[%s12760_s1] ss:$0 sm:$0xff] }
 0x3d8   : > { %13123 = vst [vmem:[#allocation317_spill] sm:$0xff] %v8726_v3  ;;  %v8839_v20 = vmul.f32 %v8745_v53, %v13133_v25  ;;  %v13139_v25 = vld [vmem:[#allocation20_spill] sm:$0xff] }
 0x3d9   : > { %13124 = vst [vmem:[#allocation318_spill] sm:$0xff] %v8728_v45  ;;  %v13131_v45 = vld [vmem:[#allocation14_spill] sm:$0xff]  ;;  %v8857_v13 = vmul.f32 %v8745_v53, %v13139_v25  ;;  %v8875_v25 = vmul.f32 %v8745_v53, %v13144_v9  ;;  %v8895_v9 = vmul.f32 %v8745_v53, %v13150_v36  ;;  %v8915_v36 = vmul.f32 %v8745_v53, %v13157_v24 }
 0x3da   : > { %v8833_v3 = vmul.f32 %v8745_v53, %v13131_v45  ;;  %v13137_v45 = vld [vmem:[#allocation18_spill] sm:$0xff] }
 0x3db   : > { %v760_v37 = vmul.f32 %v8745_v53, %v13137_v45  ;;  %v13143_v45 = vld [vmem:[#allocation24_spill] sm:$0xff]  ;;  %v13162_v24 = vld [vmem:[#allocation42_spill] sm:$0xff] }
 0x3dc   : > { %2987 = vperm.xlu2 %7342, %v2799_v48   ;;  %2982 = vperm.xlu1 %7341, %v2798_v59   ;;  %v8749_v59 = vmul.f32 %v8745_v53, %v7516_v38  ;;  %v8753_v48 = vmul.f32 %v8745_v53, %v7521_v42  ;;  %v8769_v38 = vmul.f32 %v8745_v53, %v7533_v51 }
 0x3dd   : > { %2977 = vperm.xlu0 %7340, %v2797_v32   ;;  %v742_v42 = vmul.f32 %v8745_v53, %v7535_v52  ;;  %v8787_v51 = vmul.f32 %v8745_v53, %v7549_v62  ;;  %v8792_v52 = vld [vmem:[%s12760_s1 + $0x1] ss:$0 sm:$0xff]  ;;  %v8806_v62 = vmul.f32 %v8745_v53, %v7560_v5  ;;  %v754_v5 = vmul.f32 %v8745_v53, %v7571_v12  ;;  %v13135_v12 = vld [vmem:[#allocation28_spill] sm:$0xff] }
 0x3de   : > { %v8733_v7 = vpop.permute.xlu2 %3247  ;;  %v8735_v40 = vpop.permute.xlu1 %3572  ;;  %v1031_v47 = vmul.f32 %v8792_v52, %v13135_v12  ;;  %v13141_v12 = vld [vmem:[#allocation22_spill] sm:$0xff]  ;;  %v1032_v8 = vmul.f32 %v8792_v52, %v13162_v24  ;;  %v1036_v31 = vmul.f32 %v8792_v52, %v13164_v22  ;;  %v1035_v17 = vmul.f32 %v8792_v52, %v13165_v27  ;;  %v13168_v24 = vld [vmem:[#allocation48_spill] sm:$0xff] }
 0x3df   : > { %13125 = vst [vmem:[#allocation319_spill] sm:$0xff] %v8733_v7  ;;  %v8737_v21 = vpop.permute.xlu0 %3552  ;;  %v8829_v7 = vmul.f32 %v8745_v53, %v7576_v16  ;;  %v13136_v16 = vld [vmem:[#allocation31_spill] sm:$0xff]  ;;  %v1038_v41 = vmul.f32 %v8792_v52, %v13168_v24  ;;  %v1042_v18 = vmul.f32 %v8792_v52, %v13170_v15 }
 0x3e0   : > { %13126 = vst [vmem:[#allocation320_spill] sm:$0xff] %v8735_v40  ;;  %v8761_v40 = vmul.f32 %v8745_v53, %v7526_v46  ;;  %v745_v46 = vmul.f32 %v8745_v53, %v7542_v57  ;;  %v748_v57 = vmul.f32 %v8745_v53, %v7553_v0  ;;  %v8818_v0 = vmul.f32 %v8745_v53, %v7567_v10 }
 0x3e1   : > { %13127 = vst [vmem:[#allocation321_spill] sm:$0xff] %v8737_v21  ;;  %v1034_v23 = vmul.f32 %v8792_v52, %v13136_v16  ;;  %v8863_v16 = vmul.f32 %v8745_v53, %v13141_v12 }
 0x3e4   : > { %3292 = vperm.xlu2 %7342, %v3124_v60   ;;  %3287 = vperm.xlu1 %7341, %v3123_v55   ;;  %v8765_v60 = vmul.f32 %v8745_v53, %v7531_v50  ;;  %v8777_v55 = vmul.f32 %v8745_v53, %v7540_v56  ;;  %v8783_v50 = vmul.f32 %v8745_v53, %v7544_v58 }
 0x3e5   : > { %3282 = vperm.xlu0 %7340, %v3122_v33   ;;  %v8796_v56 = vmul.f32 %v8745_v53, %v7551_v63  ;;  %v8802_v58 = vmul.f32 %v8745_v53, %v7558_v4  ;;  %v3437_v63 = vld [vmem:[%s12762_s3 + $0x68] sm:$0xff]  ;;  %v8822_v4 = vmul.f32 %v8745_v53, %v7569_v11  ;;  %v13134_v11 = vld [vmem:[#allocation17_spill] sm:$0xff] }
 0x3e6   : > { %v8755_v32 = vpop.permute.xlu2 %3557  ;;  %v8757_v21 = vpop.permute.xlu1 %2632  ;;  %v8843_v26 = vmul.f32 %v8745_v53, %v13134_v11  ;;  %v13140_v11 = vld [vmem:[#allocation21_spill] sm:$0xff]  ;;  %v8970_v15 = vadd.f32 %v1032_v8, %v8783_v50 }
 0x3e7   : > { %13128 = vst [vmem:[#allocation322_spill] sm:$0xff] %v8755_v32  ;;  %v8773_v33 = vpop.permute.xlu0 %2627  ;;  %v3125_v32 = vld [vmem:[%s7478_s19 + $0x126] sm:$0xff]  ;;  %v763_v14 = vmul.f32 %v8745_v53, %v13140_v11 }
 0x3e8   : > { %13129 = vst [vmem:[#allocation323_spill] sm:$0xff] %v8757_v21  ;;  %v751_v21 = vmul.f32 %v8745_v53, %v7562_v6  ;;  %v13132_v6 = vld [vmem:[#allocation15_spill] sm:$0xff]  ;;  %v13147_v11 = vld [vmem:[#allocation26_spill] sm:$0xff] }
 0x3e9   : > { %13130 = vst [vmem:[#allocation324_spill] sm:$0xff] %v8773_v33  ;;  %v3438_v33 = vld [vmem:[%s12762_s3 + $0x70] sm:$0xff]  ;;  %v757_v10 = vmul.f32 %v8745_v53, %v13132_v6  ;;  %v8883_v12 = vmul.f32 %v8745_v53, %v13147_v11  ;;  %v13154_v11 = vld [vmem:[#allocation32_spill] sm:$0xff] }
 0x3ea   : > { %v13138_v6 = vld [vmem:[#allocation19_spill] sm:$0xff]  ;;  %v8905_v30 = vmul.f32 %v8745_v53, %v13154_v11  ;;  %v3440_v11 = vld [vmem:[%s12762_s3 + $0x80] sm:$0xff] }
 0x3eb   : > { %v8853_v39 = vmul.f32 %v8745_v53, %v13138_v6  ;;  %v8871_v6 = vmul.f32 %v8745_v53, %v13143_v45  ;;  %v8891_v45 = vmul.f32 %v8745_v53, %v13149_v44  ;;  %v13156_v44 = vld [vmem:[#allocation34_spill] sm:$0xff] }
 0x3ec   : > { %3622 = vperm.xlu2 %7342, %v3438_v33   ;;  %3617 = vperm.xlu1 %7341, %v3437_v63   ;;  %v13142_v33 = vld [vmem:[#allocation23_spill] sm:$0xff]  ;;  %v1037_v29 = vmul.f32 %v8792_v52, %v13156_v44  ;;  %v13161_v44 = vld [vmem:[#allocation41_spill] sm:$0xff] }
 0x3ed   : > { %3297 = vperm.xlu0 %7340, %v3125_v32   ;;  %v8867_v63 = vmul.f32 %v8745_v53, %v13142_v33  ;;  %v8887_v33 = vmul.f32 %v8745_v53, %v13148_v54  ;;  %v13155_v54 = vld [vmem:[#allocation33_spill] sm:$0xff]  ;;  %v1033_v2 = vmul.f32 %v8792_v52, %v13161_v44  ;;  %v13167_v44 = vld [vmem:[#allocation47_spill] sm:$0xff] }
 0x3ee   : > { %v8877_v1 = vpop.permute.xlu2 %3577  ;;  %v8879_v32 = vpop.permute.xlu1 %2937  ;;  %v8909_v19 = vmul.f32 %v8745_v53, %v13155_v54  ;;  %v13160_v54 = vld [vmem:[#allocation40_spill] sm:$0xff]  ;;  %v1039_v34 = vmul.f32 %v8792_v52, %v13167_v44  ;;  %v8952_v22 = vadd.f32 %v1037_v29, %v748_v57  ;;  %v13172_v44 = vld [vmem:[#allocation39_spill] sm:$0xff] }
 0x3ef   : > { %13145 = vst [vmem:[#allocation14_spill] sm:$0xff] %v8877_v1  ;;  %v8897_v43 = vpop.permute.xlu0 %2932  ;;  %v8899_v1 = vadd.f32 %v1031_v47, %v742_v42  ;;  %v1043_v28 = vmul.f32 %v8792_v52, %v13160_v54  ;;  %v13166_v54 = vld [vmem:[#allocation46_spill] sm:$0xff] }
 0x3f0   : > { %13146 = vst [vmem:[#allocation15_spill] sm:$0xff] %v8879_v32  ;;  %v8901_v32 = vadd.f32 %v1034_v23, %v745_v46  ;;  %v13159_v23 = vld [vmem:[#allocation37_spill] sm:$0xff]  ;;  %v2800_v46 = vld [vmem:[%s7478_s19 + $0x14d] sm:$0xff]  ;;  %v1049_v35 = vmul.f32 %v8792_v52, %v13166_v54 }
 0x3f1   : > { %13151 = vst [vmem:[#allocation16_spill] sm:$0xff] %v8897_v43  ;;  %v13158_v43 = vld [vmem:[#allocation36_spill] sm:$0xff]  ;;  %v1040_v42 = vmul.f32 %v8792_v52, %v13159_v23  ;;  %v8964_v24 = vadd.f32 %v1043_v28, %v754_v5  ;;  %v8982_v28 = vadd.f32 %v1035_v17, %v8749_v59 }
 0x3f2   : > { %13152 = vst [vmem:[#allocation17_spill] sm:$0xff] %v8899_v1  ;;  %v8919_v47 = vmul.f32 %v8745_v53, %v13158_v43  ;;  %v1046_v43 = vmul.f32 %v8792_v52, %v13163_v61  ;;  %v3439_v23 = vld [vmem:[%s12762_s3 + $0x78] sm:$0xff]  ;;  %v13169_v61 = vld [vmem:[#allocation49_spill] sm:$0xff]  ;;  %v8962_v1 = vmul.f32 %v8745_v53, %v13172_v44  ;;  %v8984_v5 = vadd.f32 %v1049_v35, %v760_v37 }
 0x3f3   : > { %13153 = vst [vmem:[#allocation28_spill] sm:$0xff] %v8901_v32  ;;  %v1052_v49 = vmul.f32 %v8792_v52, %v13169_v61  ;;  %v8954_v27 = vadd.f32 %v1040_v42, %v751_v21  ;;  %v13171_v32 = vld [vmem:[#allocation38_spill] sm:$0xff]  ;;  %v8967_v61 = vadd.f32 %v1033_v2, %v8769_v38  ;;  %v8987_v2 = vadd.f32 %v1039_v34, %v8761_v40  ;;  %v13179_v59 = vld [vmem:[#allocation52_spill] sm:$0xff]  ;;  %v13180_v37 = vld [vmem:[#allocation53_spill] sm:$0xff] }
 0x3f4   : > { %2992 = vperm.xlu2 %7342, %v2800_v46   ;;  %3632 = vperm.xlu1 %7341, %v3440_v11   ;;  %v8958_v54 = vmul.f32 %v8745_v53, %v13171_v32  ;;  %v8972_v29 = vadd.f32 %v1046_v43, %v757_v10  ;;  %v8979_v53 = vadd.f32 %v1036_v31, %v8753_v48  ;;  %v13178_v31 = vld [vmem:[#allocation51_spill] sm:$0xff]  ;;  %v13181_v40 = vld [vmem:[#allocation54_spill] sm:$0xff] }
 0x3f5   : > { %3627 = vperm.xlu0 %7340, %v3439_v23   ;;  %13175 = vst [vmem:[#allocation19_spill] sm:$0xff] %v8984_v5  ;;  %v8992_v38 = vadd.f32 %v1038_v41, %v8796_v56  ;;  %v8994_v50 = vadd.f32 %v1052_v49, %v763_v14  ;;  %v8997_v10 = vadd.f32 %v1042_v18, %v8765_v60  ;;  %v13182_v32 = vld [vmem:[#allocation55_spill] sm:$0xff]  ;;  %v2803_v49 = vld [vmem:[%s7478_s19 + $0x165] sm:$0xf]  ;;  %v2802_v14 = vld [vmem:[%s7478_s19 + $0x15d] sm:$0xff] }
 0x3f6   : > { %v8974_v21 = vpop.permute.xlu2 %3592  ;;  %v8976_v57 = vpop.permute.xlu1 %3242  ;;  %v1041_v17 = vmul.f32 %v8792_v52, %v13178_v31  ;;  %v1055_v35 = vmul.f32 %v8792_v52, %v13179_v59  ;;  %v1045_v34 = vmul.f32 %v8792_v52, %v13180_v37  ;;  %v1044_v48 = vmul.f32 %v8792_v52, %v13181_v40  ;;  %v13183_v56 = vld [vmem:[#allocation56_spill] sm:$0xff]  ;;  %v13184_v60 = vld [vmem:[#allocation57_spill] sm:$0xff]  ;;  %v13185_v46 = vld [vmem:[#allocation58_spill] sm:$0xff] }
 0x3f7   : > { %13173 = vst [vmem:[#allocation31_spill] sm:$0xff] %v8974_v21  ;;  %v8989_v8 = vpop.permute.xlu0 %2947  ;;  %v1058_v41 = vmul.f32 %v8792_v52, %v13182_v32  ;;  %v1048_v18 = vmul.f32 %v8792_v52, %v13183_v56  ;;  %v1047_v42 = vmul.f32 %v8792_v52, %v13184_v60  ;;  %v1061_v11 = vmul.f32 %v8792_v52, %v13185_v46  ;;  %v13186_v43 = vld [vmem:[#allocation59_spill] sm:$0xff]  ;;  %v13187_v31 = vld [vmem:[#allocation60_spill] sm:$0xff]  ;;  %v13188_v37 = vld [vmem:[#allocation61_spill] sm:$0xff] }
 0x3f8   : > { %13174 = vst [vmem:[#allocation18_spill] sm:$0xff] %v8976_v57  ;;  %v1051_v23 = vmul.f32 %v8792_v52, %v13186_v43  ;;  %v2801_v44 = vld [vmem:[%s7478_s19 + $0x155] sm:$0xff]  ;;  %v1050_v59 = vmul.f32 %v8792_v52, %v13187_v31  ;;  %v1064_v40 = vmul.f32 %v8792_v52, %v13188_v37  ;;  %v13189_v32 = vld [vmem:[#allocation62_spill] sm:$0xff]  ;;  %v13192_v46 = vld [vmem:[#allocation65_spill] sm:$0xff]  ;;  %v1082_v31 = vadd.f32 %v1041_v17, %v8806_v62 }
 0x3f9   : > { %13176 = vst [vmem:[#allocation20_spill] sm:$0xff] %v8989_v8  ;;  %v1054_v8 = vmul.f32 %v8792_v52, %v13189_v32  ;;  %v13190_v56 = vld [vmem:[#allocation63_spill] sm:$0xff]  ;;  %v13191_v60 = vld [vmem:[#allocation64_spill] sm:$0xff]  ;;  %v13193_v43 = vld [vmem:[#allocation66_spill] sm:$0xff]  ;;  %v9036_v37 = vadd.f32 %v1055_v35, %v8871_v6  ;;  %v9039_v32 = vadd.f32 %v1045_v34, %v8777_v55  ;;  %v9054_v62 = vadd.f32 %v1047_v42, %v8833_v3 }
 0x3fa   : > { %13177 = vst [vmem:[#allocation21_spill] sm:$0xff] %v8994_v50  ;;  %v1053_v21 = vmul.f32 %v8792_v52, %v13190_v56  ;;  %v1067_v57 = vmul.f32 %v8792_v52, %v13191_v60  ;;  %v1057_v50 = vmul.f32 %v8792_v52, %v13192_v46  ;;  %v1056_v5 = vmul.f32 %v8792_v52, %v13193_v43  ;;  %v9045_v60 = vld [vmem:[%s12760_s1 + $0x2] ss:$0 sm:$0xff]  ;;  %v13207_v43 = vld [vmem:[#allocation76_spill] sm:$0xff] }
 0x3fb   : > { %v1085_v56 = vadd.f32 %v1044_v48, %v8822_v4  ;;  %v9048_v46 = vadd.f32 %v1058_v41, %v8887_v33  ;;  %v9057_v55 = vadd.f32 %v1061_v11, %v8895_v9  ;;  %v9064_v17 = vadd.f32 %v1051_v23, %v8802_v58  ;;  %v13200_v41 = vld [vmem:[#allocation69_spill] sm:$0xff]  ;;  %v13205_v11 = vld [vmem:[#allocation74_spill] sm:$0xff] }
 0x3fc   : > { %3007 = vperm.xlu2 %7342, %v2803_v49   ;;  %3002 = vperm.xlu1 %7341, %v2802_v14   ;;  %v9051_v49 = vadd.f32 %v1048_v18, %v8787_v51  ;;  %v9067_v33 = vadd.f32 %v1050_v59, %v8843_v26  ;;  %v9070_v51 = vadd.f32 %v1064_v40, %v8909_v19  ;;  %v13198_v19 = vld [vmem:[#allocation67_spill] sm:$0xff] }
 0x3fd   : > { %2997 = vperm.xlu0 %7340, %v2801_v44   ;;  %v9073_v3 = vadd.f32 %v1054_v8, %v8818_v0  ;;  %v9078_v35 = vadd.f32 %v1053_v21, %v8857_v13  ;;  %v9081_v34 = vadd.f32 %v1067_v57, %v8919_v47  ;;  %v9084_v58 = vadd.f32 %v1057_v50, %v8829_v7  ;;  %v13199_v0 = vld [vmem:[#allocation68_spill] sm:$0xff]  ;;  %v13201_v13 = vld [vmem:[#allocation70_spill] sm:$0xff]  ;;  %v13202_v18 = vld [vmem:[#allocation71_spill] sm:$0xff] }
 0x3fe   : > { %v9059_v4 = vpop.permute.xlu2 %2652  ;;  %v9061_v6 = vpop.permute.xlu1 %3257  ;;  %v9087_v26 = vadd.f32 %v1056_v5, %v8867_v63  ;;  %v1070_v48 = vmul.f32 %v8792_v52, %v13198_v19  ;;  %v1060_v8 = vmul.f32 %v8792_v52, %v13199_v0  ;;  %v1059_v14 = vmul.f32 %v8792_v52, %v13200_v41  ;;  %v3128_v47 = vld [vmem:[%s7478_s19 + $0x13e] sm:$0xff]  ;;  %v3127_v57 = vld [vmem:[%s7478_s19 + $0x136] sm:$0xff]  ;;  %v3126_v44 = vld [vmem:[%s7478_s19 + $0x12e] sm:$0xff] }
 0x3ff   : > { %13194 = vst [vmem:[#allocation22_spill] sm:$0xff] %v9059_v4  ;;  %v9075_v9 = vpop.permute.xlu0 %3252  ;;  %v1362_v21 = vmul.f32 %v9045_v60, %v13201_v13  ;;  %v1063_v7 = vmul.f32 %v8792_v52, %v13202_v18  ;;  %v13203_v50 = vld [vmem:[#allocation72_spill] sm:$0xff]  ;;  %v13204_v5 = vld [vmem:[#allocation73_spill] sm:$0xff]  ;;  %v1066_v23 = vmul.f32 %v8792_v52, %v13205_v11  ;;  %v13206_v59 = vld [vmem:[#allocation75_spill] sm:$0xff]  ;;  %v1368_v19 = vmul.f32 %v9045_v60, %v13207_v43 }
 0x400   : > { %13195 = vst [vmem:[#allocation23_spill] sm:$0xff] %v9061_v6  ;;  %v1062_v63 = vmul.f32 %v8792_v52, %v13203_v50  ;;  %v1365_v42 = vmul.f32 %v9045_v60, %v13204_v5  ;;  %v1065_v40 = vmul.f32 %v8792_v52, %v13206_v59  ;;  %v13208_v0 = vld [vmem:[#allocation77_spill] sm:$0xff]  ;;  %v13209_v13 = vld [vmem:[#allocation78_spill] sm:$0xff]  ;;  %v13210_v50 = vld [vmem:[#allocation79_spill] sm:$0xff]  ;;  %v9123_v59 = vadd.f32 %v1070_v48, %v8962_v1 }
 0x401   : > { %13196 = vst [vmem:[#allocation24_spill] sm:$0xff] %v9075_v9  ;;  %v1069_v41 = vmul.f32 %v8792_v52, %v13208_v0  ;;  %v1068_v18 = vmul.f32 %v8792_v52, %v13209_v13  ;;  %v1371_v4 = vmul.f32 %v9045_v60, %v13210_v50  ;;  %v13211_v5 = vld [vmem:[#allocation80_spill] sm:$0xff]  ;;  %v13212_v11 = vld [vmem:[#allocation81_spill] sm:$0xff]  ;;  %v9126_v43 = vadd.f32 %v1060_v8, %v8839_v20  ;;  %v13213_v13 = vld [vmem:[#allocation82_spill] sm:$0xff] }
 0x402   : > { %13197 = vst [vmem:[#allocation25_spill] sm:$0xff] %v9081_v34  ;;  %v1361_v9 = vmul.f32 %v9045_v60, %v13211_v5  ;;  %v1071_v6 = vmul.f32 %v8792_v52, %v13212_v11  ;;  %v1100_v0 = vadd.f32 %v1059_v14, %v8883_v12  ;;  %v1374_v34 = vmul.f32 %v9045_v60, %v13213_v13  ;;  %v13228_v13 = vld [vmem:[#allocation92_spill] sm:$0xff] }
 0x403   : > { %v9132_v50 = vadd.f32 %v1362_v21, %v8970_v15  ;;  %v9135_v5 = vadd.f32 %v1063_v7, %v8853_v39  ;;  %v9138_v52 = vadd.f32 %v1062_v63, %v8891_v45  ;;  %v9141_v1 = vadd.f32 %v1365_v42, %v8982_v28  ;;  %v13217_v21 = vld [vmem:[#allocation17_spill] sm:$0xff] }
 0x404   : > { %3312 = vperm.xlu2 %7342, %v3128_v47   ;;  %3307 = vperm.xlu1 %7341, %v3127_v57   ;;  %v9148_v12 = vadd.f32 %v1066_v23, %v8863_v16  ;;  %v9151_v8 = vadd.f32 %v1065_v40, %v8905_v30  ;;  %v9154_v15 = vadd.f32 %v1368_v19, %v8992_v38  ;;  %v13219_v38 = vld [vmem:[#allocation83_spill] sm:$0xff]  ;;  %v13220_v57 = vld [vmem:[#allocation84_spill] sm:$0xff]  ;;  %v13221_v63 = vld [vmem:[#allocation85_spill] sm:$0xff] }
 0x405   : > { %3302 = vperm.xlu0 %7340, %v3126_v44   ;;  %v9157_v39 = vadd.f32 %v1069_v41, %v8875_v25  ;;  %v9162_v28 = vadd.f32 %v1068_v18, %v8915_v36  ;;  %v9164_v14 = vadd.f32 %v1371_v4, %v1082_v31  ;;  %v9167_v16 = vadd.f32 %v1361_v9, %v13217_v21  ;;  %v3442_v31 = vld [vmem:[%s12762_s3 + $0x90] sm:$0xff]  ;;  %v13222_v4 = vld [vmem:[#allocation86_spill] sm:$0xff]  ;;  %v13225_v23 = vld [vmem:[#allocation89_spill] sm:$0xff] }
 0x406   : > { %v9143_v20 = vpop.permute.xlu2 %2957  ;;  %v9145_v48 = vpop.permute.xlu1 %3567  ;;  %v9170_v30 = vadd.f32 %v1071_v6, %v8958_v54  ;;  %v9172_v47 = vadd.f32 %v1374_v34, %v1085_v56  ;;  %v1364_v25 = vmul.f32 %v9045_v60, %v13219_v38  ;;  %v1363_v7 = vmul.f32 %v9045_v60, %v13220_v57  ;;  %v3441_v54 = vld [vmem:[%s12762_s3 + $0x88] sm:$0xff]  ;;  %v13223_v6 = vld [vmem:[#allocation87_spill] sm:$0xff]  ;;  %v13224_v34 = vld [vmem:[#allocation88_spill] sm:$0xff] }
 0x407   : > { %13214 = vst [vmem:[#allocation26_spill] sm:$0xff] %v9143_v20  ;;  %v9159_v45 = vpop.permute.xlu0 %3562  ;;  %v1377_v36 = vmul.f32 %v9045_v60, %v13221_v63  ;;  %v1367_v56 = vmul.f32 %v9045_v60, %v13222_v4  ;;  %v1366_v9 = vmul.f32 %v9045_v60, %v13223_v6  ;;  %v1380_v42 = vmul.f32 %v9045_v60, %v13224_v34  ;;  %v3129_v40 = vld [vmem:[%s7478_s19 + $0x146] sm:$0xff]  ;;  %v13227_v18 = vld [vmem:[#allocation91_spill] sm:$0xff] }
 0x408   : > { %13215 = vst [vmem:[#allocation27_spill] sm:$0xff] %v9145_v48  ;;  %v1370_v44 = vmul.f32 %v9045_v60, %v13225_v23  ;;  %v13226_v19 = vld [vmem:[#allocation90_spill] sm:$0xff]  ;;  %v1383_v11 = vmul.f32 %v9045_v60, %v13227_v18  ;;  %v1373_v21 = vmul.f32 %v9045_v60, %v13228_v13  ;;  %v13229_v38 = vld [vmem:[#allocation93_spill] sm:$0xff]  ;;  %v13231_v6 = vld [vmem:[#allocation95_spill] sm:$0xff]  ;;  %v1404_v18 = vadd.f32 %v1363_v7, %v8967_v61 }
 0x409   : > { %13216 = vst [vmem:[#allocation29_spill] sm:$0xff] %v9159_v45  ;;  %v1369_v41 = vmul.f32 %v9045_v60, %v13226_v19  ;;  %v1372_v57 = vmul.f32 %v9045_v60, %v13229_v38  ;;  %v13230_v63 = vld [vmem:[#allocation94_spill] sm:$0xff]  ;;  %v1376_v34 = vmul.f32 %v9045_v60, %v13231_v6  ;;  %v13232_v23 = vld [vmem:[#allocation96_spill] sm:$0xff]  ;;  %v13234_v13 = vld [vmem:[#allocation97_spill] sm:$0xff]  ;;  %v9221_v6 = vadd.f32 %v1367_v56, %v8952_v22 }
 0x40a   : > { %13218 = vst [vmem:[#allocation30_spill] sm:$0xff] %v9172_v47  ;;  %v1386_v4 = vmul.f32 %v9045_v60, %v13230_v63  ;;  %v1375_v45 = vmul.f32 %v9045_v60, %v13232_v23  ;;  %v13233_v19 = vld [vmem:[#allocation28_spill] sm:$0xff]  ;;  %v1389_v20 = vmul.f32 %v9045_v60, %v13234_v13  ;;  %v13235_v38 = vld [vmem:[#allocation98_spill] sm:$0xff]  ;;  %v9218_v63 = vadd.f32 %v1377_v36, %v9054_v62 }
 0x40b   : > { %v9210_v48 = vadd.f32 %v1364_v25, %v13233_v19  ;;  %v1379_v47 = vmul.f32 %v9045_v60, %v13235_v38  ;;  %v9227_v25 = vadd.f32 %v1380_v42, %v9067_v33  ;;  %v9237_v62 = vadd.f32 %v1369_v41, %v8987_v2  ;;  %v13246_v41 = vld [vmem:[#allocation103_spill] sm:$0xff]  ;;  %v13249_v19 = vld [vmem:[#allocation106_spill] sm:$0xff] }
 0x40c   : > { %3642 = vperm.xlu2 %7342, %v3442_v31   ;;  %3637 = vperm.xlu1 %7341, %v3441_v54   ;;  %v9224_v31 = vadd.f32 %v1366_v9, %v8979_v53  ;;  %v9234_v54 = vadd.f32 %v1370_v44, %v8954_v27  ;;  %v9240_v22 = vadd.f32 %v1383_v11, %v9078_v35  ;;  %v13241_v35 = vld [vmem:[#allocation19_spill] sm:$0xff] }
 0x40d   : > { %3317 = vperm.xlu0 %7340, %v3129_v40   ;;  %v9243_v53 = vadd.f32 %v1373_v21, %v8964_v24  ;;  %v9248_v33 = vadd.f32 %v1372_v57, %v8997_v10  ;;  %v9251_v56 = vadd.f32 %v1386_v4, %v9087_v26  ;;  %v9254_v27 = vadd.f32 %v1376_v34, %v8972_v29  ;;  %v13242_v24 = vld [vmem:[#allocation99_spill] sm:$0xff]  ;;  %v13243_v40 = vld [vmem:[#allocation100_spill] sm:$0xff]  ;;  %v9271_v26 = vld [vmem:[%s12760_s1 + $0x3] ss:$0 sm:$0xff] }
 0x40e   : > { %v9229_v61 = vpop.permute.xlu2 %3262  ;;  %v9231_v7 = vpop.permute.xlu1 %3587  ;;  %v9257_v2 = vadd.f32 %v1375_v45, %v9039_v32  ;;  %v9259_v9 = vadd.f32 %v1389_v20, %v1100_v0  ;;  %v9262_v42 = vadd.f32 %v1379_v47, %v13241_v35  ;;  %v1378_v44 = vmul.f32 %v9045_v60, %v13242_v24  ;;  %v3130_v29 = vld [vmem:[%s7478_s19 + $0x14e] sm:$0xff]  ;;  %v3444_v32 = vld [vmem:[%s12762_s3 + $0xa0] sm:$0xff]  ;;  %v13247_v21 = vld [vmem:[#allocation104_spill] sm:$0xff] }
 0x40f   : > { %13236 = vst [vmem:[#allocation32_spill] sm:$0xff] %v9229_v61  ;;  %v9245_v36 = vpop.permute.xlu0 %3582  ;;  %v1392_v10 = vmul.f32 %v9045_v60, %v13243_v40  ;;  %v13244_v0 = vld [vmem:[#allocation101_spill] sm:$0xff]  ;;  %v13245_v45 = vld [vmem:[#allocation102_spill] sm:$0xff]  ;;  %v1395_v11 = vmul.f32 %v9045_v60, %v13246_v41  ;;  %v1385_v57 = vmul.f32 %v9045_v60, %v13247_v21  ;;  %v3443_v4 = vld [vmem:[%s12762_s3 + $0x98] sm:$0xff]  ;;  %v1398_v13 = vmul.f32 %v9045_v60, %v13249_v19 }
 0x410   : > { %13237 = vst [vmem:[#allocation33_spill] sm:$0xff] %v9231_v7  ;;  %v1382_v20 = vmul.f32 %v9045_v60, %v13244_v0  ;;  %v1381_v47 = vmul.f32 %v9045_v60, %v13245_v45  ;;  %v13248_v34 = vld [vmem:[#allocation105_spill] sm:$0xff]  ;;  %v13250_v38 = vld [vmem:[#allocation107_spill] sm:$0xff]  ;;  %v13251_v24 = vld [vmem:[#allocation108_spill] sm:$0xff] }
 0x411   : > { %13238 = vst [vmem:[#allocation34_spill] sm:$0xff] %v9245_v36  ;;  %v1384_v23 = vmul.f32 %v9045_v60, %v13248_v34  ;;  %v1388_v35 = vmul.f32 %v9045_v60, %v13250_v38  ;;  %v1387_v40 = vmul.f32 %v9045_v60, %v13251_v24  ;;  %v13252_v0 = vld [vmem:[#allocation109_spill] sm:$0xff]  ;;  %v13253_v41 = vld [vmem:[#allocation110_spill] sm:$0xff]  ;;  %v13254_v36 = vld [vmem:[#allocation111_spill] sm:$0xff]  ;;  %v1419_v34 = vadd.f32 %v1378_v44, %v9051_v49 }
 0x412   : > { %13239 = vst [vmem:[#allocation35_spill] sm:$0xff] %v9251_v56  ;;  %v1401_v45 = vmul.f32 %v9045_v60, %v13252_v0  ;;  %v1391_v21 = vmul.f32 %v9045_v60, %v13253_v41  ;;  %v1390_v7 = vmul.f32 %v9045_v60, %v13254_v36  ;;  %v9304_v19 = vadd.f32 %v1392_v10, %v9138_v52  ;;  %v13255_v38 = vld [vmem:[#allocation112_spill] sm:$0xff]  ;;  %v13256_v24 = vld [vmem:[#allocation113_spill] sm:$0xff] }
 0x413   : > { %13240 = vst [vmem:[#allocation36_spill] sm:$0xff] %v9259_v9  ;;  %v1693_v61 = vmul.f32 %v9271_v26, %v13255_v38  ;;  %v1394_v9 = vmul.f32 %v9045_v60, %v13256_v24  ;;  %v13257_v0 = vld [vmem:[#allocation21_spill] sm:$0xff]  ;;  %v1422_v41 = vadd.f32 %v1381_v47, %v9064_v17  ;;  %v9315_v36 = vadd.f32 %v1395_v11, %v9151_v8  ;;  %v13269_v24 = vld [vmem:[#allocation122_spill] sm:$0xff] }
 0x414   : > { %3322 = vperm.xlu2 %7342, %v3130_v29   ;;  %3652 = vperm.xlu1 %7341, %v3444_v32   ;;  %v9311_v56 = vadd.f32 %v1382_v20, %v13257_v0  ;;  %v13258_v29 = vld [vmem:[#allocation114_spill] sm:$0xff]  ;;  %v9324_v10 = vadd.f32 %v1385_v57, %v9036_v37  ;;  %v9327_v32 = vadd.f32 %v1384_v23, %v9073_v3  ;;  %v13262_v57 = vld [vmem:[#allocation115_spill] sm:$0xff]  ;;  %v13263_v23 = vld [vmem:[#allocation116_spill] sm:$0xff] }
 0x415   : > { %3647 = vperm.xlu0 %7340, %v3443_v4   ;;  %v1393_v49 = vmul.f32 %v9045_v60, %v13258_v29  ;;  %v9330_v17 = vadd.f32 %v1398_v13, %v9162_v28  ;;  %v9333_v8 = vadd.f32 %v1388_v35, %v9048_v46  ;;  %v9338_v47 = vadd.f32 %v1387_v40, %v9084_v58  ;;  %v3133_v13 = vld [vmem:[%s7478_s19 + $0x166] sm:$0xf]  ;;  %v13267_v40 = vld [vmem:[#allocation120_spill] sm:$0xff]  ;;  %v13270_v0 = vld [vmem:[#allocation123_spill] sm:$0xff] }
 0x416   : > { %v9319_v52 = vpop.permute.xlu2 %3277  ;;  %v9321_v44 = vpop.permute.xlu1 %2647  ;;  %v9341_v11 = vadd.f32 %v1401_v45, %v9170_v30  ;;  %v9344_v37 = vadd.f32 %v1391_v21, %v9057_v55  ;;  %v9347_v3 = vadd.f32 %v1390_v7, %v9126_v43  ;;  %v9349_v28 = vadd.f32 %v1693_v61, %v1404_v18  ;;  %v3132_v30 = vld [vmem:[%s7478_s19 + $0x15e] sm:$0xff]  ;;  %v13265_v7 = vld [vmem:[#allocation118_spill] sm:$0xff]  ;;  %v13266_v61 = vld [vmem:[#allocation119_spill] sm:$0xff] }
 0x417   : > { %13259 = vst [vmem:[#allocation37_spill] sm:$0xff] %v9319_v52  ;;  %v9335_v20 = vpop.permute.xlu0 %2642  ;;  %v9352_v46 = vadd.f32 %v1394_v9, %v9070_v51  ;;  %v1696_v4 = vmul.f32 %v9271_v26, %v13262_v57  ;;  %v1397_v58 = vmul.f32 %v9045_v60, %v13263_v23  ;;  %v9361_v35 = vadd.f32 %v1393_v49, %v9135_v5  ;;  %v13264_v55 = vld [vmem:[#allocation117_spill] sm:$0xff]  ;;  %v3131_v9 = vld [vmem:[%s7478_s19 + $0x156] sm:$0xff]  ;;  %s7382_s19 = smov 64  }
 0x418   : > { %13260 = vst [vmem:[#allocation40_spill] sm:$0xff] %v9321_v44  ;;  %v1396_v43 = vmul.f32 %v9045_v60, %v13264_v55  ;;  %v1699_v18 = vmul.f32 %v9271_v26, %v13265_v7  ;;  %v1400_v51 = vmul.f32 %v9045_v60, %v13266_v61  ;;  %v1399_v45 = vmul.f32 %v9045_v60, %v13267_v40  ;;  %v13268_v21 = vld [vmem:[#allocation121_spill] sm:$0xff]  ;;  %v13271_v49 = vld [vmem:[#allocation124_spill] sm:$0xff]  ;;  %v13273_v7 = vld [vmem:[#allocation126_spill] sm:$0xff] }
 0x419   : > { %13261 = vst [vmem:[#allocation41_spill] sm:$0xff] %v9335_v20  ;;  %v1702_v38 = vmul.f32 %v9271_v26, %v13268_v21  ;;  %v1692_v5 = vmul.f32 %v9271_v26, %v13269_v24  ;;  %v1691_v29 = vmul.f32 %v9271_v26, %v13270_v0  ;;  %v1705_v57 = vmul.f32 %v9271_v26, %v13271_v49  ;;  %v13272_v23 = vld [vmem:[#allocation125_spill] sm:$0xff]  ;;  %v13275_v24 = vld [vmem:[#allocation127_spill] sm:$0xff]  ;;  %v13276_v20 = vld [vmem:[#allocation128_spill] sm:$0xff] }
 0x41a   : > { %v1695_v55 = vmul.f32 %v9271_v26, %v13272_v23  ;;  %v1694_v61 = vmul.f32 %v9271_v26, %v13273_v7  ;;  %v9385_v60 = vadd.f32 %v1696_v4, %v9224_v31  ;;  %v13274_v40 = vld [vmem:[#allocation25_spill] sm:$0xff]  ;;  %v1708_v0 = vmul.f32 %v9271_v26, %v13275_v24  ;;  %v13278_v4 = vld [vmem:[#allocation130_spill] sm:$0xff]  ;;  %v13295_v44 = vld [vmem:[#allocation144_spill] sm:$0xff] }
 0x41b   : > { %v9388_v21 = vadd.f32 %v1397_v58, %v13274_v40  ;;  %v1698_v49 = vmul.f32 %v9271_v26, %v13276_v20  ;;  %v9395_v23 = vadd.f32 %v1396_v43, %v9148_v12  ;;  %v9398_v7 = vadd.f32 %v1699_v18, %v9237_v62  ;;  %v13316_v52 = vld [vmem:[#allocation36_spill] sm:$0xff] }
 0x41c   : > { %3337 = vperm.xlu2 %7342, %v3133_v13   ;;  %3332 = vperm.xlu1 %7341, %v3132_v30   ;;  %v13277_v13 = vld [vmem:[#allocation129_spill] sm:$0xff]  ;;  %v1711_v58 = vmul.f32 %v9271_v26, %v13278_v4  ;;  %v9409_v24 = vadd.f32 %v1400_v51, %v9123_v59  ;;  %v9412_v20 = vadd.f32 %v1399_v45, %v9157_v39 }
 0x41d   : > { %3327 = vperm.xlu0 %7340, %v3131_v9   ;;  %v1697_v31 = vmul.f32 %v9271_v26, %v13277_v13  ;;  %v9415_v12 = vadd.f32 %v1702_v38, %v9248_v33  ;;  %v9418_v62 = vadd.f32 %v1692_v5, %v9132_v50  ;;  %v9423_v18 = vadd.f32 %v1691_v29, %v9167_v16  ;;  %v13282_v50 = vld [vmem:[#allocation131_spill] sm:$0xff]  ;;  %v13283_v38 = vld [vmem:[#allocation132_spill] sm:$0xff]  ;;  %v13285_v29 = vld [vmem:[#allocation134_spill] sm:$0xff] }
 0x41e   : > { %v9404_v30 = vpop.permute.xlu2 %3607  ;;  %v9406_v40 = vpop.permute.xlu1 %2952  ;;  %v9426_v9 = vadd.f32 %v1705_v57, %v9257_v2  ;;  %v9429_v59 = vadd.f32 %v1695_v55, %v9141_v1  ;;  %v9432_v39 = vadd.f32 %v1694_v61, %v9210_v48  ;;  %v9434_v51 = vadd.f32 %v1708_v0, %v1419_v34  ;;  %v3447_v2 = vld [vmem:[%s12762_s3 + $0xb8] sm:$0xff]  ;;  %v3446_v1 = vld [vmem:[%s12762_s3 + $0xb0] sm:$0xff]  ;;  %v3445_v55 = vld [vmem:[%s12762_s3 + $0xa8] sm:$0xff] }
 0x41f   : > { %13279 = vst [vmem:[#allocation42_spill] sm:$0xff] %v9404_v30  ;;  %v9420_v43 = vpop.permute.xlu0 %2657  ;;  %v9437_v33 = vadd.f32 %v1698_v49, %v9154_v15  ;;  %v1701_v45 = vmul.f32 %v9271_v26, %v13282_v50  ;;  %v1700_v16 = vmul.f32 %v9271_v26, %v13283_v38  ;;  %v9450_v48 = vadd.f32 %v1697_v31, %v9221_v6  ;;  %v13284_v15 = vld [vmem:[#allocation133_spill] sm:$0xff]  ;;  %v13286_v61 = vld [vmem:[#allocation135_spill] sm:$0xff]  ;;  %v13287_v49 = vld [vmem:[#allocation136_spill] sm:$0xff] }
 0x420   : > { %13280 = vst [vmem:[#allocation43_spill] sm:$0xff] %v9406_v40  ;;  %v9452_v34 = vadd.f32 %v1711_v58, %v1422_v41  ;;  %v1714_v5 = vmul.f32 %v9271_v26, %v13284_v15  ;;  %v1704_v57 = vmul.f32 %v9271_v26, %v13285_v29  ;;  %v1703_v0 = vmul.f32 %v9271_v26, %v13286_v61  ;;  %v13288_v6 = vld [vmem:[#allocation137_spill] sm:$0xff]  ;;  %v13289_v31 = vld [vmem:[#allocation138_spill] sm:$0xff]  ;;  %v13290_v58 = vld [vmem:[#allocation139_spill] sm:$0xff] }
 0x421   : > { %13281 = vst [vmem:[#allocation44_spill] sm:$0xff] %v9420_v43  ;;  %v1717_v13 = vmul.f32 %v9271_v26, %v13287_v49  ;;  %v1707_v41 = vmul.f32 %v9271_v26, %v13288_v6  ;;  %v1706_v4 = vmul.f32 %v9271_v26, %v13289_v31  ;;  %v1720_v50 = vmul.f32 %v9271_v26, %v13290_v58  ;;  %v13291_v38 = vld [vmem:[#allocation140_spill] sm:$0xff]  ;;  %v13292_v29 = vld [vmem:[#allocation141_spill] sm:$0xff]  ;;  %v13293_v6 = vld [vmem:[#allocation142_spill] sm:$0xff] }
 0x422   : > { %v1710_v15 = vmul.f32 %v9271_v26, %v13291_v38  ;;  %v1709_v43 = vmul.f32 %v9271_v26, %v13292_v29  ;;  %v9476_v61 = vadd.f32 %v1701_v45, %v9164_v14  ;;  %v9479_v49 = vadd.f32 %v1700_v16, %v9234_v54  ;;  %v13294_v40 = vld [vmem:[#allocation143_spill] sm:$0xff]  ;;  %v13297_v45 = vld [vmem:[#allocation146_spill] sm:$0xff] }
 0x423   : > { %v1723_v31 = vmul.f32 %v9271_v26, %v13293_v6  ;;  %v1713_v58 = vmul.f32 %v9271_v26, %v13294_v40  ;;  %v9486_v38 = vadd.f32 %v1714_v5, %v9327_v32  ;;  %v1716_v54 = vmul.f32 %v9271_v26, %v13297_v45  ;;  %v13300_v6 = vld [vmem:[#allocation30_spill] sm:$0xff]  ;;  %v9513_v5 = vld [vmem:[%s12760_s1 + $0x4] ss:$0 sm:$0xff] }
 0x424   : > { %3667 = vperm.xlu2 %7342, %v3447_v2   ;;  %3662 = vperm.xlu1 %7341, %v3446_v1   ;;  %v1712_v2 = vmul.f32 %v9271_v26, %v13295_v44  ;;  %v13296_v1 = vld [vmem:[#allocation145_spill] sm:$0xff]  ;;  %v9499_v30 = vadd.f32 %v1704_v57, %v13300_v6  ;;  %v9502_v40 = vadd.f32 %v1703_v0, %v9243_v53  ;;  %v13308_v6 = vld [vmem:[#allocation151_spill] sm:$0xff] }
 0x425   : > { %3657 = vperm.xlu0 %7340, %v3445_v55   ;;  %v1726_v14 = vmul.f32 %v9271_v26, %v13296_v1  ;;  %v9505_v32 = vadd.f32 %v1717_v13, %v9338_v47  ;;  %v9508_v44 = vadd.f32 %v1707_v41, %v9218_v63  ;;  %v9518_v1 = vadd.f32 %v1706_v4, %v9254_v27  ;;  %v13302_v13 = vld [vmem:[#allocation147_spill] sm:$0xff]  ;;  %v13303_v27 = vld [vmem:[#allocation148_spill] sm:$0xff] }
 0x426   : > { %v9494_v16 = vpop.permute.xlu2 %2667  ;;  %v9496_v29 = vpop.permute.xlu1 %2967  ;;  %v9521_v57 = vadd.f32 %v1720_v50, %v9347_v3  ;;  %v9524_v53 = vadd.f32 %v1710_v15, %v9227_v25  ;;  %v9527_v47 = vadd.f32 %v1709_v43, %v9262_v42  ;;  %v9530_v63 = vadd.f32 %v1723_v31, %v9361_v35  ;;  %v3450_v25 = vld [vmem:[%s12762_s3 + $0xd0] sm:$0xff]  ;;  %v3449_v42 = vld [vmem:[%s12762_s3 + $0xc8] sm:$0xff]  ;;  %v13306_v50 = vld [vmem:[#allocation149_spill] sm:$0xff] }
 0x427   : > { %13298 = vst [vmem:[#allocation45_spill] sm:$0xff] %v9494_v16  ;;  %v9515_v55 = vpop.permute.xlu0 %2962  ;;  %v9533_v0 = vadd.f32 %v1713_v58, %v9240_v22  ;;  %v1715_v41 = vmul.f32 %v9271_v26, %v13302_v13  ;;  %v1729_v4 = vmul.f32 %v9271_v26, %v13303_v27  ;;  %v9546_v3 = vadd.f32 %v1712_v2, %v9311_v56  ;;  %v13305_v35 = vld [vmem:[#allocation35_spill] sm:$0xff]  ;;  %v3448_v31 = vld [vmem:[%s12762_s3 + $0xc0] sm:$0xff]  ;;  %v13307_v58 = vld [vmem:[#allocation150_spill] sm:$0xff] }
 0x428   : > { %13299 = vst [vmem:[#allocation46_spill] sm:$0xff] %v9496_v29  ;;  %v9549_v22 = vadd.f32 %v1726_v14, %v9395_v23  ;;  %v9552_v43 = vadd.f32 %v1716_v54, %v13305_v35  ;;  %v1719_v15 = vmul.f32 %v9271_v26, %v13306_v50  ;;  %v1718_v45 = vmul.f32 %v9271_v26, %v13307_v58  ;;  %v13309_v2 = vld [vmem:[#allocation152_spill] sm:$0xff]  ;;  %v13310_v14 = vld [vmem:[#allocation153_spill] sm:$0xff]  ;;  %v13311_v13 = vld [vmem:[#allocation154_spill] sm:$0xff] }
 0x429   : > { %13301 = vst [vmem:[#allocation47_spill] sm:$0xff] %v9515_v55  ;;  %v2021_v56 = vmul.f32 %v9513_v5, %v13308_v6  ;;  %v1722_v23 = vmul.f32 %v9271_v26, %v13309_v2  ;;  %v1721_v54 = vmul.f32 %v9271_v26, %v13310_v14  ;;  %v2024_v27 = vmul.f32 %v9513_v5, %v13311_v13  ;;  %v13312_v35 = vld [vmem:[#allocation155_spill] sm:$0xff]  ;;  %v13313_v29 = vld [vmem:[#allocation156_spill] sm:$0xff]  ;;  %v13314_v2 = vld [vmem:[#allocation157_spill] sm:$0xff] }
 0x42a   : > { %13304 = vst [vmem:[#allocation48_spill] sm:$0xff] %v9549_v22  ;;  %v1725_v50 = vmul.f32 %v9271_v26, %v13312_v35  ;;  %v1724_v16 = vmul.f32 %v9271_v26, %v13313_v29  ;;  %v9574_v58 = vadd.f32 %v1715_v41, %v9324_v10  ;;  %v9577_v6 = vadd.f32 %v1729_v4, %v9412_v20  ;;  %v13315_v55 = vld [vmem:[#allocation158_spill] sm:$0xff]  ;;  %v13317_v22 = vld [vmem:[#allocation159_spill] sm:$0xff]  ;;  %v13319_v41 = vld [vmem:[#allocation161_spill] sm:$0xff] }
 0x42b   : > { %v2027_v14 = vmul.f32 %v9513_v5, %v13314_v2  ;;  %v1728_v13 = vmul.f32 %v9271_v26, %v13315_v55  ;;  %v9584_v35 = vadd.f32 %v1719_v15, %v13316_v52  ;;  %v1727_v29 = vmul.f32 %v9271_v26, %v13317_v22  ;;  %v13321_v15 = vld [vmem:[#allocation162_spill] sm:$0xff] }
 0x42c   : > { %3682 = vperm.xlu2 %7342, %v3450_v25   ;;  %3677 = vperm.xlu1 %7341, %v3449_v42   ;;  %v13318_v25 = vld [vmem:[#allocation160_spill] sm:$0xff]  ;;  %v1731_v20 = vmul.f32 %v9271_v26, %v13319_v41  ;;  %v1759_v2 = vadd.f32 %v1718_v45, %v9333_v8  ;;  %v9598_v55 = vadd.f32 %v2021_v56, %v9423_v18 }
 0x42d   : > { %3672 = vperm.xlu0 %7340, %v3448_v31   ;;  %v2030_v10 = vmul.f32 %v9513_v5, %v13318_v25  ;;  %v9601_v52 = vadd.f32 %v1722_v23, %v9304_v19  ;;  %v1730_v22 = vmul.f32 %v9271_v26, %v13321_v15  ;;  %v9608_v25 = vadd.f32 %v1721_v54, %v9344_v37  ;;  %v13323_v26 = vld [vmem:[#allocation163_spill] sm:$0xff]  ;;  %v13324_v37 = vld [vmem:[#allocation164_spill] sm:$0xff] }
 0x42e   : > { %v9592_v4 = vpop.permute.xlu2 %2972  ;;  %v9594_v42 = vpop.permute.xlu1 %3272  ;;  %v9611_v41 = vadd.f32 %v2024_v27, %v9432_v39  ;;  %v9617_v8 = vadd.f32 %v1724_v16, %v9352_v46  ;;  %v9620_v19 = vadd.f32 %v2027_v14, %v9450_v48  ;;  %v9623_v18 = vadd.f32 %v1728_v13, %v9330_v17  ;;  %v3452_v46 = vld [vmem:[%s12762_s3 + $0xe0] sm:$0xff]  ;;  %v3451_v54 = vld [vmem:[%s12762_s3 + $0xd8] sm:$0xff]  ;;  %v13327_v14 = vld [vmem:[#allocation167_spill] sm:$0xff] }
 0x42f   : > { %13320 = vst [vmem:[#allocation49_spill] sm:$0xff] %v9592_v4  ;;  %v9605_v31 = vpop.permute.xlu0 %3267  ;;  %v9614_v4 = vadd.f32 %v1725_v50, %v9315_v36  ;;  %v2033_v45 = vmul.f32 %v9513_v5, %v13323_v26  ;;  %v2023_v56 = vmul.f32 %v9513_v5, %v13324_v37  ;;  %v3453_v36 = vld [vmem:[%s12762_s3 + $0xe8] sm:$0xff]  ;;  %v9636_v39 = vadd.f32 %v1727_v29, %v9388_v21  ;;  %v13325_v16 = vld [vmem:[#allocation165_spill] sm:$0xff]  ;;  %v13328_v13 = vld [vmem:[#allocation168_spill] sm:$0xff] }
 0x430   : > { %13322 = vst [vmem:[#allocation50_spill] sm:$0xff] %v9605_v31  ;;  %v9639_v17 = vadd.f32 %v2030_v10, %v9479_v49  ;;  %v9642_v48 = vadd.f32 %v1731_v20, %v9341_v11  ;;  %v2022_v23 = vmul.f32 %v9513_v5, %v13325_v16  ;;  %v9650_v27 = vadd.f32 %v1730_v22, %v9409_v24  ;;  %v13326_v50 = vld [vmem:[#allocation166_spill] sm:$0xff]  ;;  %v13329_v29 = vld [vmem:[#allocation169_spill] sm:$0xff]  ;;  %v13331_v26 = vld [vmem:[#allocation171_spill] sm:$0xff] }
 0x431   : > { %v2036_v21 = vmul.f32 %v9513_v5, %v13326_v50  ;;  %v2026_v49 = vmul.f32 %v9513_v5, %v13327_v14  ;;  %v2025_v11 = vmul.f32 %v9513_v5, %v13328_v13  ;;  %v2039_v10 = vmul.f32 %v9513_v5, %v13329_v29  ;;  %v13330_v20 = vld [vmem:[#allocation170_spill] sm:$0xff]  ;;  %v13332_v16 = vld [vmem:[#allocation172_spill] sm:$0xff]  ;;  %v13333_v14 = vld [vmem:[#allocation173_spill] sm:$0xff] }
 0x432   : > { %v2029_v15 = vmul.f32 %v9513_v5, %v13330_v20  ;;  %v2028_v37 = vmul.f32 %v9513_v5, %v13331_v26  ;;  %v9665_v24 = vadd.f32 %v2033_v45, %v9502_v40  ;;  %v9668_v22 = vadd.f32 %v2023_v56, %v9349_v28  ;;  %v13334_v20 = vld [vmem:[#allocation174_spill] sm:$0xff]  ;;  %v13336_v45 = vld [vmem:[#allocation176_spill] sm:$0xff] }
 0x433   : > { %v2042_v50 = vmul.f32 %v9513_v5, %v13332_v16  ;;  %v2032_v13 = vmul.f32 %v9513_v5, %v13333_v14  ;;  %v9675_v29 = vadd.f32 %v2022_v23, %v9418_v62  ;;  %v2035_v28 = vmul.f32 %v9513_v5, %v13336_v45  ;;  %v13339_v23 = vld [vmem:[#allocation178_spill] sm:$0xff] }
 0x434   : > { %3697 = vperm.xlu2 %7342, %v3453_v36   ;;  %3692 = vperm.xlu1 %7341, %v3452_v46   ;;  %v2031_v36 = vmul.f32 %v9513_v5, %v13334_v20  ;;  %v13335_v46 = vld [vmem:[#allocation175_spill] sm:$0xff]  ;;  %v9686_v26 = vadd.f32 %v2036_v21, %v9518_v1  ;;  %v9689_v16 = vadd.f32 %v2026_v49, %v9385_v60 }
 0x435   : > { %3687 = vperm.xlu0 %7340, %v3451_v54   ;;  %v2045_v40 = vmul.f32 %v9513_v5, %v13335_v46  ;;  %v13338_v54 = vld [vmem:[#allocation177_spill] sm:$0xff]  ;;  %v2048_v14 = vmul.f32 %v9513_v5, %v13339_v23  ;;  %v9700_v45 = vadd.f32 %v2025_v11, %v9429_v59  ;;  %v9706_v1 = vadd.f32 %v2029_v15, %v9398_v7  ;;  %v13343_v59 = vld [vmem:[#allocation180_spill] sm:$0xff] }
 0x436   : > { %v9683_v56 = vpop.permute.xlu1 %3602  ;;  %v2034_v62 = vmul.f32 %v9513_v5, %v13338_v54  ;;  %v9695_v20 = vpop.permute.xlu2 %2987  ;;  %v9709_v60 = vadd.f32 %v2028_v37, %v9437_v33  ;;  %v9712_v21 = vadd.f32 %v2042_v50, %v9546_v3  ;;  %v9715_v49 = vadd.f32 %v2032_v13, %v9415_v12  ;;  %v13342_v54 = vld [vmem:[#allocation179_spill] sm:$0xff]  ;;  %v3456_v7 = vld [vmem:[%s12762_s3 + $0x100] sm:$0xff]  ;;  %v3455_v33 = vld [vmem:[%s12762_s3 + $0xf8] sm:$0xff] }
 0x437   : > { %13337 = vst [vmem:[#allocation38_spill] sm:$0xff] %v9683_v56  ;;  %v9697_v46 = vpop.permute.xlu0 %3597  ;;  %v9703_v56 = vadd.f32 %v2039_v10, %v9527_v47  ;;  %v2038_v23 = vmul.f32 %v9513_v5, %v13342_v54  ;;  %v2037_v11 = vmul.f32 %v9513_v5, %v13343_v59  ;;  %v9728_v47 = vadd.f32 %v2031_v36, %v9476_v61  ;;  %v13344_v10 = vld [vmem:[#allocation181_spill] sm:$0xff]  ;;  %v3454_v37 = vld [vmem:[%s12762_s3 + $0xf0] sm:$0xff]  ;;  %v13345_v61 = vld [vmem:[#allocation182_spill] sm:$0xff] }
 0x438   : > { %13340 = vst [vmem:[#allocation39_spill] sm:$0xff] %v9695_v20  ;;  %v9731_v12 = vadd.f32 %v2045_v40, %v9574_v58  ;;  %v9734_v3 = vadd.f32 %v2035_v28, %v9426_v9  ;;  %v2051_v15 = vmul.f32 %v9513_v5, %v13344_v10  ;;  %v9742_v50 = vadd.f32 %v2034_v62, %v9499_v30  ;;  %v13346_v58 = vld [vmem:[#allocation183_spill] sm:$0xff]  ;;  %v9753_v9 = vld [vmem:[%s12760_s1 + $0x5] ss:$0 sm:$0xff]  ;;  %v13347_v28 = vld [vmem:[#allocation184_spill] sm:$0xff] }
 0x439   : > { %13341 = vst [vmem:[#allocation51_spill] sm:$0xff] %v9697_v46  ;;  %v9744_v13 = vadd.f32 %v2048_v14, %v1759_v2  ;;  %v2041_v36 = vmul.f32 %v9513_v5, %v13345_v61  ;;  %v2040_v40 = vmul.f32 %v9513_v5, %v13346_v58  ;;  %v2054_v54 = vmul.f32 %v9513_v5, %v13347_v28  ;;  %v13348_v59 = vld [vmem:[#allocation185_spill] sm:$0xff]  ;;  %v13349_v62 = vld [vmem:[#allocation186_spill] sm:$0xff]  ;;  %v13350_v61 = vld [vmem:[#allocation187_spill] sm:$0xff] }
 0x43a   : > { %v2044_v30 = vmul.f32 %v9513_v5, %v13348_v59  ;;  %v2043_v2 = vmul.f32 %v9513_v5, %v13349_v62  ;;  %v9762_v14 = vadd.f32 %v2038_v23, %v9434_v51  ;;  %v9765_v10 = vadd.f32 %v2037_v11, %v9508_v44  ;;  %v13351_v20 = vld [vmem:[#allocation188_spill] sm:$0xff]  ;;  %v13352_v46 = vld [vmem:[#allocation189_spill] sm:$0xff]  ;;  %v13354_v23 = vld [vmem:[#allocation191_spill] sm:$0xff] }
 0x43b   : > { %v2057_v58 = vmul.f32 %v9513_v5, %v13350_v61  ;;  %v2047_v28 = vmul.f32 %v9513_v5, %v13351_v20  ;;  %v9772_v59 = vadd.f32 %v2051_v15, %v9608_v25  ;;  %v2050_v44 = vmul.f32 %v9513_v5, %v13354_v23  ;;  %v13356_v61 = vld [vmem:[#allocation192_spill] sm:$0xff]  ;;  %v13358_v15 = vld [vmem:[#allocation194_spill] sm:$0xff] }
 0x43c   : > { %3712 = vperm.xlu2 %7342, %v3456_v7   ;;  %3707 = vperm.xlu1 %7341, %v3455_v33   ;;  %v2046_v7 = vmul.f32 %v9513_v5, %v13352_v46  ;;  %v13353_v33 = vld [vmem:[#allocation190_spill] sm:$0xff]  ;;  %v9783_v62 = vadd.f32 %v2041_v36, %v9452_v34  ;;  %v2049_v20 = vmul.f32 %v9513_v5, %v13356_v61 }
 0x43d   : > { %3702 = vperm.xlu0 %7340, %v3454_v37   ;;  %v2060_v51 = vmul.f32 %v9513_v5, %v13353_v33  ;;  %v13357_v37 = vld [vmem:[#allocation193_spill] sm:$0xff]  ;;  %v2053_v46 = vmul.f32 %v9513_v5, %v13358_v15  ;;  %v9794_v33 = vadd.f32 %v2040_v40, %v9524_v53  ;;  %v9797_v23 = vadd.f32 %v2054_v54, %v9617_v8  ;;  %v13360_v15 = vld [vmem:[#allocation195_spill] sm:$0xff]  ;;  %v13361_v53 = vld [vmem:[#allocation196_spill] sm:$0xff] }
 0x43e   : > { %v9780_v11 = vpop.permute.xlu1 %2662  ;;  %v2352_v25 = vmul.f32 %v9753_v9, %v13357_v37  ;;  %v9800_v34 = vadd.f32 %v2044_v30, %v9486_v38  ;;  %v9803_v36 = vadd.f32 %v2043_v2, %v9533_v0  ;;  %v9806_v61 = vadd.f32 %v2057_v58, %v9636_v39  ;;  %v9815_v8 = vpop.permute.xlu2 %3292  ;;  %v3459_v38 = vld [vmem:[%s12762_s3 + $0x118] sm:$0xff]  ;;  %v3458_v0 = vld [vmem:[%s12762_s3 + $0x110] sm:$0xff]  ;;  %v13363_v30 = vld [vmem:[#allocation197_spill] sm:$0xff] }
 0x43f   : > { %13355 = vst [vmem:[#allocation52_spill] sm:$0xff] %v9780_v11  ;;  %v9791_v31 = vpop.permute.xlu0 %3612  ;;  %v9809_v37 = vadd.f32 %v2047_v28, %v9505_v32  ;;  %v2052_v11 = vmul.f32 %v9513_v5, %v13360_v15  ;;  %v2355_v40 = vmul.f32 %v9753_v9, %v13361_v53  ;;  %v9824_v39 = vadd.f32 %v2046_v7, %v9552_v43  ;;  %v3457_v58 = vld [vmem:[%s12762_s3 + $0x108] sm:$0xff]  ;;  %v13365_v7 = vld [vmem:[#allocation199_spill] sm:$0xff] }
 0x440   : > { %13359 = vst [vmem:[#allocation53_spill] sm:$0xff] %v9791_v31  ;;  %v9827_v32 = vadd.f32 %v2060_v51, %v9650_v27  ;;  %v9830_v54 = vadd.f32 %v2050_v44, %v9521_v57  ;;  %v2056_v2 = vmul.f32 %v9513_v5, %v13363_v30  ;;  %v9838_v28 = vadd.f32 %v2049_v20, %v9584_v35  ;;  %v13364_v27 = vld [vmem:[#allocation198_spill] sm:$0xff]  ;;  %v13366_v44 = vld [vmem:[#allocation200_spill] sm:$0xff]  ;;  %v13367_v30 = vld [vmem:[#allocation201_spill] sm:$0xff] }
 0x441   : > { %13362 = vst [vmem:[#allocation54_spill] sm:$0xff] %v9815_v8  ;;  %v9841_v15 = vadd.f32 %v2352_v25, %v9675_v29  ;;  %v9844_v43 = vadd.f32 %v2053_v46, %v9530_v63  ;;  %v2055_v57 = vmul.f32 %v9513_v5, %v13364_v27  ;;  %v2358_v51 = vmul.f32 %v9753_v9, %v13365_v7  ;;  %v13368_v29 = vld [vmem:[#allocation202_spill] sm:$0xff]  ;;  %v13369_v25 = vld [vmem:[#allocation203_spill] sm:$0xff]  ;;  %v13370_v27 = vld [vmem:[#allocation48_spill] sm:$0xff] }
 0x442   : > { %v2059_v53 = vmul.f32 %v9513_v5, %v13366_v44  ;;  %v2058_v31 = vmul.f32 %v9513_v5, %v13367_v30  ;;  %v9855_v35 = vadd.f32 %v2052_v11, %v9601_v52  ;;  %v9858_v63 = vadd.f32 %v2355_v40, %v9700_v45  ;;  %v13371_v44 = vld [vmem:[#allocation204_spill] sm:$0xff]  ;;  %v13373_v11 = vld [vmem:[#allocation206_spill] sm:$0xff] }
 0x443   : > { %v2361_v20 = vmul.f32 %v9753_v9, %v13368_v29  ;;  %v2351_v46 = vmul.f32 %v9753_v9, %v13369_v25  ;;  %v9865_v7 = vadd.f32 %v2056_v2, %v13370_v27  ;;  %v2354_v45 = vmul.f32 %v9753_v9, %v13373_v11  ;;  %v13375_v29 = vld [vmem:[#allocation207_spill] sm:$0xff]  ;;  %v13376_v25 = vld [vmem:[#allocation208_spill] sm:$0xff]  ;;  %v13377_v27 = vld [vmem:[#allocation209_spill] sm:$0xff] }
 0x444   : > { %3727 = vperm.xlu2 %7342, %v3459_v38   ;;  %3722 = vperm.xlu1 %7341, %v3458_v0   ;;  %v2061_v38 = vmul.f32 %v9513_v5, %v13371_v44  ;;  %v13372_v0 = vld [vmem:[#allocation205_spill] sm:$0xff]  ;;  %v9876_v30 = vadd.f32 %v2055_v57, %v9614_v4  ;;  %v2367_v2 = vmul.f32 %v9753_v9, %v13376_v25  ;;  %v13379_v57 = vld [vmem:[#allocation210_spill] sm:$0xff]  ;;  %v13400_v8 = vld [vmem:[#allocation228_spill] sm:$0xff] }
 0x445   : > { %3717 = vperm.xlu0 %7340, %v3457_v58   ;;  %v2364_v52 = vmul.f32 %v9753_v9, %v13372_v0  ;;  %v2353_v58 = vmul.f32 %v9753_v9, %v13375_v29  ;;  %v2357_v5 = vmul.f32 %v9753_v9, %v13377_v27  ;;  %v9887_v0 = vadd.f32 %v2358_v51, %v9709_v60  ;;  %v13380_v27 = vld [vmem:[#allocation211_spill] sm:$0xff]  ;;  %v13381_v60 = vld [vmem:[#allocation212_spill] sm:$0xff] }
 0x446   : > { %v9873_v40 = vpop.permute.xlu1 %2677  ;;  %v9890_v11 = vadd.f32 %v2059_v53, %v9577_v6  ;;  %v9893_v4 = vadd.f32 %v2058_v31, %v9623_v18  ;;  %v2356_v29 = vmul.f32 %v9753_v9, %v13379_v57  ;;  %v9901_v25 = vadd.f32 %v2351_v46, %v9598_v55  ;;  %v3462_v6 = vld [vmem:[%s12762_s3 + $0x130] sm:$0xff]  ;;  %v3461_v31 = vld [vmem:[%s12762_s3 + $0x128] sm:$0xff]  ;;  %v13382_v53 = vld [vmem:[#allocation213_spill] sm:$0xff] }
 0x447   : > { %13374 = vst [vmem:[#allocation55_spill] sm:$0xff] %v9873_v40  ;;  %v9884_v44 = vpop.permute.xlu0 %2672  ;;  %v9898_v40 = vadd.f32 %v2361_v20, %v9728_v47  ;;  %v2360_v51 = vmul.f32 %v9753_v9, %v13381_v60  ;;  %v9914_v18 = vadd.f32 %v2061_v38, %v9642_v48  ;;  %v9917_v55 = vadd.f32 %v2364_v52, %v9742_v50  ;;  %v3460_v46 = vld [vmem:[%s12762_s3 + $0x120] sm:$0xff]  ;;  %v13383_v50 = vld [vmem:[#allocation214_spill] sm:$0xff]  ;;  %v9938_v38 = vpop.permute.xlu2 %3622 }
 0x448   : > { %13378 = vst [vmem:[#allocation56_spill] sm:$0xff] %v9884_v44  ;;  %v2370_v44 = vmul.f32 %v9753_v9, %v13380_v27  ;;  %v9920_v47 = vadd.f32 %v2354_v45, %v9611_v41  ;;  %v2359_v20 = vmul.f32 %v9753_v9, %v13382_v53  ;;  %v9928_v57 = vadd.f32 %v2353_v58, %v9668_v22  ;;  %v13385_v45 = vld [vmem:[#allocation215_spill] sm:$0xff]  ;;  %v13386_v53 = vld [vmem:[#allocation216_spill] sm:$0xff]  ;;  %v13387_v58 = vld [vmem:[#allocation217_spill] sm:$0xff] }
 0x449   : > { %v9931_v27 = vadd.f32 %v2367_v2, %v9765_v10  ;;  %v9934_v48 = vadd.f32 %v2357_v5, %v9620_v19  ;;  %v2373_v41 = vmul.f32 %v9753_v9, %v13383_v50  ;;  %13384 = vst [vmem:[#allocation57_spill] sm:$0xff] %v9938_v38  ;;  %v9941_v52 = vadd.f32 %v2356_v29, %v9689_v16  ;;  %v13388_v5 = vld [vmem:[#allocation218_spill] sm:$0xff]  ;;  %v13389_v50 = vld [vmem:[#allocation219_spill] sm:$0xff] }
 0x44a   : > { %v2363_v60 = vmul.f32 %v9753_v9, %v13385_v45  ;;  %v2362_v22 = vmul.f32 %v9753_v9, %v13386_v53  ;;  %v9948_v10 = vadd.f32 %v2370_v44, %v9794_v33  ;;  %v9951_v19 = vadd.f32 %v2360_v51, %v9639_v17  ;;  %v13391_v44 = vld [vmem:[#allocation221_spill] sm:$0xff]  ;;  %v13393_v53 = vld [vmem:[#allocation222_spill] sm:$0xff] }
 0x44b   : > { %v2376_v2 = vmul.f32 %v9753_v9, %v13387_v58  ;;  %v2366_v16 = vmul.f32 %v9753_v9, %v13388_v5  ;;  %v9958_v29 = vadd.f32 %v2359_v20, %v9706_v1  ;;  %v2369_v17 = vmul.f32 %v9753_v9, %v13391_v44  ;;  %v13394_v58 = vld [vmem:[#allocation223_spill] sm:$0xff]  ;;  %v13395_v20 = vld [vmem:[#allocation224_spill] sm:$0xff] }
 0x44c   : > { %3742 = vperm.xlu2 %7342, %v3462_v6   ;;  %3737 = vperm.xlu1 %7341, %v3461_v31   ;;  %v2365_v6 = vmul.f32 %v9753_v9, %v13389_v50  ;;  %v13390_v31 = vld [vmem:[#allocation220_spill] sm:$0xff]  ;;  %v9969_v45 = vadd.f32 %v2373_v41, %v9803_v36  ;;  %v2382_v1 = vmul.f32 %v9753_v9, %v13394_v58  ;;  %v13398_v41 = vld [vmem:[#allocation226_spill] sm:$0xff] }
 0x44d   : > { %3732 = vperm.xlu0 %7340, %v3460_v46   ;;  %v2379_v33 = vmul.f32 %v9753_v9, %v13390_v31  ;;  %v2368_v46 = vmul.f32 %v9753_v9, %v13393_v53  ;;  %v2372_v5 = vmul.f32 %v9753_v9, %v13395_v20  ;;  %v9980_v31 = vadd.f32 %v2363_v60, %v9665_v24  ;;  %v13399_v20 = vld [vmem:[#allocation227_spill] sm:$0xff] }
 0x44e   : > { %v9966_v51 = vpop.permute.xlu1 %2982  ;;  %v2403_v44 = vadd.f32 %v2362_v22, %v9715_v49  ;;  %v2385_v38 = vmul.f32 %v9753_v9, %v13398_v41  ;;  %v9988_v53 = vadd.f32 %v2376_v2, %v9824_v39  ;;  %v9991_v58 = vadd.f32 %v2366_v16, %v9686_v26  ;;  %v3464_v49 = vld [vmem:[%s12762_s3 + $0x140] sm:$0xf]  ;;  %v3463_v16 = vld [vmem:[%s12762_s3 + $0x138] sm:$0xff]  ;;  %v13403_v41 = vld [vmem:[#allocation231_spill] sm:$0xff] }
 0x44f   : > { %13392 = vst [vmem:[#allocation58_spill] sm:$0xff] %v9966_v51  ;;  %v9977_v50 = vpop.permute.xlu0 %2977  ;;  %v13397_v51 = vld [vmem:[#allocation225_spill] sm:$0xff]  ;;  %v2374_v24 = vmul.f32 %v9753_v9, %v13400_v8  ;;  %v10001_v60 = vadd.f32 %v2365_v6, %v9734_v3  ;;  %v10004_v22 = vadd.f32 %v2379_v33, %v9838_v28  ;;  %v10007_v39 = vadd.f32 %v2369_v17, %v9703_v56  ;;  %v13402_v6 = vld [vmem:[#allocation230_spill] sm:$0xff] }
 0x450   : > { %13396 = vst [vmem:[#allocation59_spill] sm:$0xff] %v9977_v50  ;;  %v2371_v36 = vmul.f32 %v9753_v9, %v13397_v51  ;;  %v2375_v50 = vmul.f32 %v9753_v9, %v13399_v20  ;;  %v13401_v26 = vld [vmem:[#allocation229_spill] sm:$0xff]  ;;  %v10020_v3 = vadd.f32 %v2368_v46, %v9762_v14  ;;  %v10023_v28 = vadd.f32 %v2382_v1, %v9855_v35  ;;  %v13404_v14 = vld [vmem:[#allocation232_spill] sm:$0xff] }
 0x451   : > { %v2388_v2 = vmul.f32 %v9753_v9, %v13401_v26  ;;  %v10014_v8 = vld [vmem:[%s12760_s1 + $0x6] ss:$0 sm:$0xff]  ;;  %v10026_v56 = vadd.f32 %v2372_v5, %v9712_v21  ;;  %v2378_v33 = vmul.f32 %v9753_v9, %v13402_v6  ;;  %v10034_v51 = vadd.f32 %v2385_v38, %v9876_v30  ;;  %v13406_v5 = vld [vmem:[#allocation234_spill] sm:$0xff]  ;;  %v10050_v38 = vpop.permute.xlu2 %2992  ;;  %v13409_v26 = vld [vmem:[#allocation235_spill] sm:$0xff] }
 0x452   : > { %v10031_v17 = vadd.f32 %v2371_v36, %v9783_v62  ;;  %v2377_v20 = vmul.f32 %v9753_v9, %v13403_v41  ;;  %v2391_v46 = vmul.f32 %v9753_v9, %v13404_v14  ;;  %v10041_v35 = vadd.f32 %v2375_v50, %v9731_v12  ;;  %v13405_v1 = vld [vmem:[#allocation233_spill] sm:$0xff]  ;;  %13407 = vst [vmem:[#allocation60_spill] sm:$0xff] %v10050_v38  ;;  %v13410_v12 = vld [vmem:[#allocation236_spill] sm:$0xff]  ;;  %v13413_v14 = vld [vmem:[#allocation238_spill] sm:$0xff] }
 0x453   : > { %v10044_v21 = vadd.f32 %v2374_v24, %v9800_v34  ;;  %v2381_v62 = vmul.f32 %v9753_v9, %v13405_v1  ;;  %v2380_v30 = vmul.f32 %v9753_v9, %v13406_v5  ;;  %v10053_v36 = vadd.f32 %v2388_v2, %v9893_v4  ;;  %v13411_v34 = vld [vmem:[#allocation237_spill] sm:$0xff]  ;;  %v13414_v1 = vld [vmem:[#allocation239_spill] sm:$0xff]  ;;  %v13415_v2 = vld [vmem:[#allocation240_spill] sm:$0xff] }
 0x454   : > { %3752 = vperm.xlu1 %7341, %v3464_v49   ;;  %v2683_v49 = vmul.f32 %v10014_v8, %v13409_v26  ;;  %v2384_v50 = vmul.f32 %v9753_v9, %v13410_v12  ;;  %v2383_v24 = vmul.f32 %v9753_v9, %v13411_v34  ;;  %v10064_v41 = vadd.f32 %v2378_v33, %v9744_v13  ;;  %v13418_v38 = vld [vmem:[#allocation241_spill] sm:$0xff]  ;;  %v13419_v33 = vld [vmem:[#allocation242_spill] sm:$0xff] }
 0x455   : > { %3747 = vperm.xlu0 %7340, %v3463_v16   ;;  %13408 = vst [vmem:[#allocation61_spill] sm:$0xff] %v10053_v36  ;;  %v2686_v16 = vmul.f32 %v10014_v8, %v13413_v14  ;;  %v2387_v4 = vmul.f32 %v9753_v9, %v13414_v1  ;;  %v2386_v5 = vmul.f32 %v9753_v9, %v13415_v2  ;;  %v13420_v2 = vld [vmem:[#allocation243_spill] sm:$0xff] }
 0x456   : > { %v10061_v6 = vpop.permute.xlu1 %3287  ;;  %v10075_v12 = vadd.f32 %v2377_v20, %v9809_v37  ;;  %v10078_v34 = vadd.f32 %v2391_v46, %v9914_v18  ;;  %v2689_v13 = vmul.f32 %v10014_v8, %v13418_v38  ;;  %v2390_v14 = vmul.f32 %v9753_v9, %v13419_v33  ;;  %v13421_v37 = vld [vmem:[#allocation244_spill] sm:$0xff]  ;;  %v13431_v33 = vld [vmem:[#allocation250_spill] sm:$0xff] }
 0x457   : > { %13412 = vst [vmem:[#allocation62_spill] sm:$0xff] %v10061_v6  ;;  %v10072_v26 = vpop.permute.xlu0 %3282  ;;  %v10085_v36 = vadd.f32 %v2381_v62, %v9772_v59  ;;  %v10088_v1 = vadd.f32 %v2380_v30, %v9830_v54  ;;  %v2692_v20 = vmul.f32 %v10014_v8, %v13421_v37  ;;  %v10095_v18 = vadd.f32 %v2683_v49, %v9928_v57  ;;  %v13423_v59 = vld [vmem:[#allocation245_spill] sm:$0xff]  ;;  %v13425_v57 = vld [vmem:[#allocation246_spill] sm:$0xff] }
 0x458   : > { %13416 = vst [vmem:[#allocation63_spill] sm:$0xff] %v10072_v26  ;;  %v2389_v26 = vmul.f32 %v9753_v9, %v13420_v2  ;;  %v10098_v46 = vadd.f32 %v2384_v50, %v9797_v23  ;;  %v10101_v38 = vadd.f32 %v2383_v24, %v9844_v43  ;;  %v2682_v62 = vmul.f32 %v10014_v8, %v13423_v59  ;;  %v13427_v50 = vld [vmem:[#allocation247_spill] sm:$0xff]  ;;  %v13434_v2 = vld [vmem:[#allocation253_spill] sm:$0xff] }
 0x459   : > { %13417 = vst [vmem:[#allocation64_spill] sm:$0xff] %v10078_v34  ;;  %v10106_v54 = vadd.f32 %v2686_v16, %v9941_v52  ;;  %v10109_v9 = vadd.f32 %v2387_v4, %v9806_v61  ;;  %v10112_v30 = vadd.f32 %v2386_v5, %v9865_v7  ;;  %v2681_v49 = vmul.f32 %v10014_v8, %v13425_v57  ;;  %v13428_v52 = vld [vmem:[#allocation248_spill] sm:$0xff]  ;;  %v13430_v4 = vld [vmem:[#allocation249_spill] sm:$0xff]  ;;  %v13436_v57 = vld [vmem:[#allocation254_spill] sm:$0xff] }
 0x45a   : > { %13422 = vst [vmem:[#allocation65_spill] sm:$0xff] %v10098_v46  ;;  %v10117_v23 = vadd.f32 %v2689_v13, %v9958_v29  ;;  %v10120_v43 = vadd.f32 %v2390_v14, %v9827_v32  ;;  %v2695_v24 = vmul.f32 %v10014_v8, %v13427_v50  ;;  %v2685_v16 = vmul.f32 %v10014_v8, %v13428_v52  ;;  %v10138_v32 = vld [vmem:[%s12760_s1 + $0x7] ss:$0 sm:$0xff]  ;;  %v13432_v14 = vld [vmem:[#allocation251_spill] sm:$0xff] }
 0x45b   : > { %13424 = vst [vmem:[#allocation66_spill] sm:$0xff] %v10109_v9  ;;  %v10127_v61 = vadd.f32 %v2389_v26, %v9890_v11  ;;  %v10129_v7 = vadd.f32 %v2692_v20, %v2403_v44  ;;  %v2684_v5 = vmul.f32 %v10014_v8, %v13430_v4  ;;  %v2698_v29 = vmul.f32 %v10014_v8, %v13431_v33  ;;  %v13433_v26 = vld [vmem:[#allocation252_spill] sm:$0xff]  ;;  %v13437_v52 = vld [vmem:[#allocation255_spill] sm:$0xff]  ;;  %v10158_v33 = vpop.permute.xlu2 %3007  ;;  %v13445_v34 = vld [vmem:[#allocation261_spill] sm:$0xff] }
 0x45c   : > { %13426 = vst [vmem:[#allocation67_spill] sm:$0xff] %v10120_v43  ;;  %v10141_v13 = vadd.f32 %v2682_v62, %v9841_v15  ;;  %v2688_v11 = vmul.f32 %v10014_v8, %v13432_v14  ;;  %v2687_v44 = vmul.f32 %v10014_v8, %v13433_v26  ;;  %v2701_v37 = vmul.f32 %v10014_v8, %v13434_v2  ;;  %v13438_v62 = vld [vmem:[#allocation256_spill] sm:$0xff]  ;;  %v13441_v43 = vld [vmem:[#allocation257_spill] sm:$0xff] }
 0x45d   : > { %13429 = vst [vmem:[#allocation68_spill] sm:$0xff] %v10127_v61  ;;  %v2722_v59 = vadd.f32 %v2681_v49, %v9901_v25  ;;  %v2691_v50 = vmul.f32 %v10014_v8, %v13436_v57  ;;  %v2690_v15 = vmul.f32 %v10014_v8, %v13437_v52  ;;  %v2704_v4 = vmul.f32 %v10014_v8, %v13438_v62  ;;  %v13442_v49 = vld [vmem:[#allocation258_spill] sm:$0xff]  ;;  %v13460_v6 = vld [vmem:[#allocation273_spill] sm:$0xff] }
 0x45e   : > { %v10149_v20 = vpop.permute.xlu1 %3617  ;;  %13439 = vst [vmem:[#allocation70_spill] sm:$0xff] %v10158_v33  ;;  %v10163_v26 = vadd.f32 %v2695_v24, %v10001_v60  ;;  %v2726_v2 = vadd.f32 %v2685_v16, %v9858_v63  ;;  %v2694_v25 = vmul.f32 %v10014_v8, %v13441_v43  ;;  %v2693_v57 = vmul.f32 %v10014_v8, %v13442_v49  ;;  %v10173_v52 = vld [vmem:[%s12760_s1 + $0x8] ss:$0 sm:$0xff]  ;;  %v13443_v60 = vld [vmem:[#allocation259_spill] sm:$0xff]  ;;  %v13444_v63 = vld [vmem:[#allocation260_spill] sm:$0xff] }
 0x45f   : > { %13435 = vst [vmem:[#allocation69_spill] sm:$0xff] %v10149_v20  ;;  %v10160_v14 = vpop.permute.xlu0 %3297  ;;  %v2725_v62 = vadd.f32 %v2684_v5, %v9920_v47  ;;  %v10177_v20 = vadd.f32 %v2698_v29, %v10020_v3  ;;  %v3015_v24 = vmul.f32 %v10138_v32, %v13443_v60  ;;  %v2697_v16 = vmul.f32 %v10014_v8, %v13444_v63  ;;  %v13446_v29 = vld [vmem:[#allocation262_spill] sm:$0xff] }
 0x460   : > { %13440 = vst [vmem:[#allocation71_spill] sm:$0xff] %v10160_v14  ;;  %v2729_v43 = vadd.f32 %v2688_v11, %v9887_v0  ;;  %v2728_v49 = vadd.f32 %v2687_v44, %v9934_v48  ;;  %v10186_v33 = vadd.f32 %v2701_v37, %v10031_v17  ;;  %v2696_v14 = vmul.f32 %v10014_v8, %v13445_v34  ;;  %v13447_v11 = vld [vmem:[#allocation268_spill] sm:$0xff]  ;;  %v13453_v63 = vld [vmem:[#allocation274_spill] sm:$0xff] }
 0x461   : > { %v10191_v47 = vadd.f32 %v2691_v50, %v9898_v40  ;;  %v10194_v3 = vadd.f32 %v2690_v15, %v9951_v19  ;;  %v10197_v5 = vadd.f32 %v2704_v4, %v10044_v21  ;;  %v3014_v0 = vmul.f32 %v10138_v32, %v13446_v29  ;;  %v13448_v40 = vld [vmem:[#allocation272_spill] sm:$0xff]  ;;  %v13449_v21 = vld [vmem:[#allocation269_spill] sm:$0xff]  ;;  %v13450_v15 = vld [vmem:[#allocation275_spill] sm:$0xff] }
 0x462   : > { %v10202_v48 = vadd.f32 %v2694_v25, %v9917_v55  ;;  %v10205_v17 = vadd.f32 %v2693_v57, %v9980_v31  ;;  %v3345_v34 = vmul.f32 %v10173_v52, %v13447_v11  ;;  %v3013_v44 = vmul.f32 %v10138_v32, %v13448_v40  ;;  %v13451_v31 = vld [vmem:[#allocation263_spill] sm:$0xff]  ;;  %v13452_v57 = vld [vmem:[#allocation264_spill] sm:$0xff]  ;;  %v13456_v11 = vld [vmem:[#allocation277_spill] sm:$0xff] }
 0x463   : > { %v3056_v19 = vadd.f32 %v3015_v24, %v2726_v2  ;;  %v10212_v37 = vadd.f32 %v2697_v16, %v9931_v27  ;;  %v3011_v50 = vmul.f32 %v10138_v32, %v13449_v21  ;;  %v3017_v55 = vmul.f32 %v10138_v32, %v13450_v15  ;;  %v13455_v16 = vld [vmem:[#allocation265_spill] sm:$0xff]  ;;  %v13459_v15 = vld [vmem:[#allocation266_spill] sm:$0xff] }
 0x464   : > { %v10219_v4 = vadd.f32 %v2696_v14, %v9991_v58  ;;  %v2700_v25 = vmul.f32 %v10014_v8, %v13451_v31  ;;  %v2699_v60 = vmul.f32 %v10014_v8, %v13452_v57  ;;  %v3343_v2 = vmul.f32 %v10173_v52, %v13453_v63  ;;  %v13457_v58 = vld [vmem:[#allocation278_spill] sm:$0xff] }
 0x465   : > { %v3055_v24 = vadd.f32 %v3014_v0, %v2725_v62  ;;  %v3018_v29 = vmul.f32 %v10138_v32, %v13455_v16  ;;  %v3347_v40 = vmul.f32 %v10173_v52, %v13456_v11  ;;  %v3341_v14 = vmul.f32 %v10173_v52, %v13457_v58  ;;  %v13462_v11 = vld [vmem:[#allocation276_spill] sm:$0xff]  ;;  %v10249_v58 = vld [vmem:[%s12761_s2] ss:$0 sm:$0xff] }
 0x466   : > { %v10227_v27 = vpop.permute.xlu1 %3632  ;;  %v2703_v31 = vmul.f32 %v10014_v8, %v13459_v15  ;;  %v3386_v57 = vadd.f32 %v3345_v34, %v3056_v19  ;;  %v3054_v63 = vadd.f32 %v3013_v44, %v10095_v18  ;;  %v3012_v62 = vmul.f32 %v10138_v32, %v13460_v6  ;;  %v10251_v15 = vpop.permute.xlu2 %3312  ;;  %v13464_v34 = vld [vmem:[#allocation284_spill] sm:$0xff]  ;;  %v13465_v19 = vld [vmem:[#allocation267_spill] sm:$0xff] }
 0x467   : > { %13454 = vst [vmem:[#allocation72_spill] sm:$0xff] %v10227_v27  ;;  %v10235_v21 = vpop.permute.xlu0 %3627  ;;  %v3052_v0 = vadd.f32 %v3011_v50, %v2722_v59  ;;  %v13461_v27 = vld [vmem:[#allocation271_spill] sm:$0xff]  ;;  %v3058_v61 = vadd.f32 %v3017_v55, %v2728_v49  ;;  %v3016_v9 = vmul.f32 %v10138_v32, %v13462_v11  ;;  %v10254_v18 = vadd.f32 %v2700_v25, %v9948_v10  ;;  %v13466_v10 = vld [vmem:[#allocation286_spill] sm:$0xff] }
 0x468   : > { %13458 = vst [vmem:[#allocation73_spill] sm:$0xff] %v10235_v21  ;;  %v3022_v16 = vmul.f32 %v10138_v32, %v13461_v27  ;;  %v10257_v6 = vadd.f32 %v2699_v60, %v10007_v39  ;;  %v3384_v59 = vadd.f32 %v3343_v2, %v3054_v63  ;;  %v3342_v49 = vmul.f32 %v10173_v52, %v13464_v34  ;;  %v13467_v39 = vld [vmem:[#allocation287_spill] sm:$0xff]  ;;  %v13468_v2 = vld [vmem:[#allocation270_spill] sm:$0xff] }
 0x469   : > { %13463 = vst [vmem:[#allocation74_spill] sm:$0xff] %v10251_v15  ;;  %v3059_v44 = vadd.f32 %v3018_v29, %v2729_v43  ;;  %v2702_v50 = vmul.f32 %v10014_v8, %v13465_v19  ;;  %v3388_v55 = vadd.f32 %v3347_v40, %v3058_v61  ;;  %v3382_v27 = vadd.f32 %v3341_v14, %v3052_v0  ;;  %v13470_v14 = vld [vmem:[#allocation288_spill] sm:$0xff]  ;;  %v13494_v15 = vld [vmem:[#allocation306_spill] sm:$0xff] }
 0x46a   : > { %v10264_v11 = vadd.f32 %v2703_v31, %v9969_v45  ;;  %v3053_v21 = vadd.f32 %v3012_v62, %v10141_v13  ;;  %v3352_v25 = vmul.f32 %v10173_v52, %v13466_v10  ;;  %v3346_v60 = vmul.f32 %v10173_v52, %v13467_v39  ;;  %v13469_v45 = vld [vmem:[#allocation279_spill] sm:$0xff] }
 0x46b   : > { %v2705_v63 = vmul.f32 %v10014_v8, %v13468_v2  ;;  %v3063_v43 = vadd.f32 %v3022_v16, %v10129_v7  ;;  %v3057_v29 = vadd.f32 %v3016_v9, %v10106_v54  ;;  %v10276_v61 = vadd.f32 %v10249_v58, %v3386_v57  ;;  %v13472_v7 = vld [vmem:[#allocation280_spill] sm:$0xff]  ;;  %v13474_v16 = vld [vmem:[#allocation281_spill] sm:$0xff]  ;;  %v13476_v39 = vld [vmem:[#allocation283_spill] sm:$0xff] }
 0x46c   : > { %v3019_v40 = vmul.f32 %v10138_v32, %v13469_v45  ;;  %v3383_v13 = vadd.f32 %v3342_v49, %v3053_v21  ;;  %v3344_v31 = vmul.f32 %v10173_v52, %v13470_v14  ;;  %v10283_v62 = vadd.f32 %v10249_v58, %v3384_v59  ;;  %v13475_v49 = vld [vmem:[#allocation282_spill] sm:$0xff]  ;;  %v13477_v2 = vld [vmem:[#allocation285_spill] sm:$0xff] }
 0x46d   : > { %v10288_v34 = vadd.f32 %v2702_v50, %v10026_v56  ;;  %v3024_v54 = vmul.f32 %v10138_v32, %v13472_v7  ;;  %v10293_v9 = vadd.f32 %v10249_v58, %v3382_v27  ;;  %v10296_v57 = vadd.f32 %v10249_v58, %v3388_v55 }
 0x46e   : > { %v10285_v0 = vpop.permute.xlu1 %3002  ;;  %v3021_v59 = vmul.f32 %v10138_v32, %v13474_v16  ;;  %v3020_v19 = vmul.f32 %v10138_v32, %v13475_v49  ;;  %v3393_v10 = vadd.f32 %v3352_v25, %v3063_v43  ;;  %v3387_v56 = vadd.f32 %v3346_v60, %v3057_v29  ;;  %v10322_v49 = vpop.permute.xlu2 %3642  ;;  %v13482_v25 = vld [vmem:[#allocation295_spill] sm:$0xff]  ;;  %v13490_v43 = vld [vmem:[#allocation300_spill] sm:$0xff] }
 0x46f   : > { %13471 = vst [vmem:[#allocation75_spill] sm:$0xff] %v10285_v0  ;;  %v10298_v21 = vpop.permute.xlu0 %2997  ;;  %v10305_v50 = vadd.f32 %v2705_v63, %v10041_v35  ;;  %v3027_v27 = vmul.f32 %v10138_v32, %v13476_v39  ;;  %v3023_v55 = vmul.f32 %v10138_v32, %v13477_v2  ;;  %v3060_v14 = vadd.f32 %v3019_v40, %v10117_v23  ;;  %v13478_v35 = vld [vmem:[#allocation290_spill] sm:$0xff]  ;;  %v13481_v2 = vld [vmem:[#allocation292_spill] sm:$0xff]  ;;  %v13492_v0 = vld [vmem:[#allocation305_spill] sm:$0xff] }
 0x470   : > { %13473 = vst [vmem:[#allocation76_spill] sm:$0xff] %v10298_v21  ;;  %v3385_v7 = vadd.f32 %v3344_v31, %v3055_v24  ;;  %v10314_v16 = vadd.f32 %v10249_v58, %v3383_v13  ;;  %v3065_v60 = vadd.f32 %v3024_v54, %v10202_v48  ;;  %v3349_v63 = vmul.f32 %v10173_v52, %v13478_v35  ;;  %v13480_v31 = vld [vmem:[#allocation291_spill] sm:$0xff]  ;;  %v13491_v21 = vld [vmem:[#allocation304_spill] sm:$0xff] }
 0x471   : > { %13479 = vst [vmem:[#allocation77_spill] sm:$0xff] %v10322_v49  ;;  %v3062_v39 = vadd.f32 %v3021_v59, %v10191_v47  ;;  %v3061_v23 = vadd.f32 %v3020_v19, %v10194_v3  ;;  %v10327_v24 = vadd.f32 %v10249_v58, %v3387_v56  ;;  %v10330_v40 = vadd.f32 %v10249_v58, %v3393_v10  ;;  %v13483_v3 = vld [vmem:[#allocation296_spill] sm:$0xff]  ;;  %v13485_v56 = vld [vmem:[#allocation293_spill] sm:$0xff] }
 0x472   : > { %v3068_v48 = vadd.f32 %v3027_v27, %v10212_v37  ;;  %v3064_v13 = vadd.f32 %v3023_v55, %v10205_v17  ;;  %v3348_v54 = vmul.f32 %v10173_v52, %v13480_v31  ;;  %v3354_v35 = vmul.f32 %v10173_v52, %v13481_v2  ;;  %v13486_v55 = vld [vmem:[#allocation297_spill] sm:$0xff]  ;;  %v13487_v2 = vld [vmem:[#allocation299_spill] sm:$0xff] }
 0x473   : > { %v3357_v47 = vmul.f32 %v10173_v52, %v13482_v25  ;;  %v3351_v59 = vmul.f32 %v10173_v52, %v13483_v3  ;;  %v10344_v10 = vadd.f32 %v10249_v58, %v3385_v7  ;;  %v3390_v17 = vadd.f32 %v3349_v63, %v3060_v14  ;;  %v13489_v3 = vld [vmem:[#allocation294_spill] sm:$0xff]  ;;  %v13493_v49 = vld [vmem:[#allocation289_spill] sm:$0xff] }
 0x474   : > { %v3026_v27 = vmul.f32 %v10138_v32, %v13485_v56  ;;  %v3350_v31 = vmul.f32 %v10173_v52, %v13486_v55  ;;  %v3028_v25 = vmul.f32 %v10138_v32, %v13487_v2  ;;  %v3025_v19 = vmul.f32 %v10138_v32, %v13489_v3 }
 0x475   : > { %v3353_v7 = vmul.f32 %v10173_v52, %v13490_v43  ;;  %v3389_v63 = vadd.f32 %v3348_v54, %v3059_v44  ;;  %v3395_v56 = vadd.f32 %v3354_v35, %v3065_v60  ;;  %v3358_v55 = vmul.f32 %v10173_v52, %v13491_v21 }
 0x476   : > { %v10346_v37 = vpop.permute.xlu1 %3307  ;;  %v3356_v2 = vmul.f32 %v10173_v52, %v13492_v0  ;;  %v3392_v3 = vadd.f32 %v3351_v59, %v3062_v39  ;;  %v3355_v43 = vmul.f32 %v10173_v52, %v13494_v15  ;;  %v3067_v45 = vadd.f32 %v3026_v27, %v10219_v4  ;;  %v13495_v0 = vld [vmem:[#allocation302_spill] sm:$0xff] }
 0x477   : > { %13484 = vst [vmem:[#allocation78_spill] sm:$0xff] %v10346_v37  ;;  %v10354_v29 = vpop.permute.xlu0 %3302  ;;  %v3398_v37 = vadd.f32 %v3357_v47, %v3068_v48  ;;  %v3391_v46 = vadd.f32 %v3350_v31, %v3061_v23  ;;  %v3069_v44 = vadd.f32 %v3028_v25, %v10177_v20  ;;  %v10373_v60 = vadd.f32 %v10249_v58, %v3390_v17  ;;  %v10385_v20 = vpop.permute.xlu2 %3322  ;;  %v13496_v47 = vld [vmem:[#allocation307_spill] sm:$0xff]  ;;  %v13497_v17 = vld [vmem:[#allocation298_spill] sm:$0xff] }
 0x478   : > { %13488 = vst [vmem:[#allocation79_spill] sm:$0xff] %v10354_v29  ;;  %v3029_v29 = vmul.f32 %v10138_v32, %v13493_v49  ;;  %v3066_v21 = vadd.f32 %v3025_v19, %v10163_v26  ;;  %v3394_v54 = vadd.f32 %v3353_v7, %v3064_v13  ;;  %v3031_v35 = vmul.f32 %v10138_v32, %v13495_v0  ;;  %v13503_v0 = vld [vmem:[#allocation309_spill] sm:$0xff] }
 0x479   : > { %v3399_v39 = vadd.f32 %v3358_v55, %v3069_v44  ;;  %v3397_v48 = vadd.f32 %v3356_v2, %v3067_v45  ;;  %v10380_v15 = vadd.f32 %v10249_v58, %v3389_v63  ;;  %v10383_v4 = vadd.f32 %v10249_v58, %v3395_v56  ;;  %v13498_v63 = vld [vmem:[#allocation301_spill] sm:$0xff]  ;;  %v13499_v55 = vld [vmem:[#allocation303_spill] sm:$0xff] }
 0x47a   : > { %v3396_v23 = vadd.f32 %v3355_v43, %v3066_v21  ;;  %v3361_v26 = vmul.f32 %v10173_v52, %v13496_v47  ;;  %v10390_v13 = vadd.f32 %v10249_v58, %v3392_v3  ;;  %v10393_v59 = vadd.f32 %v10249_v58, %v3398_v37 }
 0x47b   : > { %v3070_v45 = vadd.f32 %v3029_v29, %v10257_v6  ;;  %v2708_v27 = vmul.f32 %v10014_v8, %v13497_v17  ;;  %v10402_v25 = vadd.f32 %v10249_v58, %v3391_v46  ;;  %v3033_v56 = vmul.f32 %v10138_v32, %v13498_v63  ;;  %v13501_v17 = vld [vmem:[#allocation317_spill] sm:$0xff]  ;;  %v13505_v63 = vld [vmem:[#allocation310_spill] sm:$0xff]  ;;  %v13512_v29 = vld [vmem:[#allocation315_spill] sm:$0xff] }
 0x47c   : > { %v3072_v37 = vadd.f32 %v3031_v35, %v10186_v33  ;;  %v3030_v2 = vmul.f32 %v10138_v32, %v13499_v55  ;;  %v10412_v6 = vadd.f32 %v10249_v58, %v3394_v54  ;;  %v10417_v46 = vadd.f32 %v10249_v58, %v3397_v48  ;;  %v13500_v35 = vld [vmem:[#allocation308_spill] sm:$0xff] }
 0x47d   : > { %v10420_v43 = vadd.f32 %v10249_v58, %v3399_v39  ;;  %v10424_v33 = vadd.f32 %v10249_v58, %v3396_v23  ;;  %v2749_v54 = vadd.f32 %v2708_v27, %v10064_v41  ;;  %v2707_v47 = vmul.f32 %v10014_v8, %v13500_v35  ;;  %v13504_v27 = vld [vmem:[#allocation319_spill] sm:$0xff] }
 0x47e   : > { %v10395_v19 = vpop.permute.xlu1 %3637  ;;  %v3402_v44 = vadd.f32 %v3361_v26, %v3072_v37  ;;  %v3360_v48 = vmul.f32 %v10173_v52, %v13501_v17  ;;  %v3074_v39 = vadd.f32 %v3033_v56, %v10264_v11  ;;  %v3071_v26 = vadd.f32 %v3030_v2, %v10254_v18  ;;  %v13502_v37 = vld [vmem:[#allocation318_spill] sm:$0xff]  ;;  %v13506_v56 = vld [vmem:[#allocation311_spill] sm:$0xff]  ;;  %v13509_v17 = vld [vmem:[#allocation313_spill] sm:$0xff] }
 0x47f   : > { %v10404_v7 = vpop.permute.xlu0 %3317  ;;  %v3359_v23 = vmul.f32 %v10173_v52, %v13502_v37  ;;  %v2706_v41 = vmul.f32 %v10014_v8, %v13503_v0  ;;  %v3363_v35 = vmul.f32 %v10173_v52, %v13504_v27  ;;  %v2710_v11 = vmul.f32 %v10014_v8, %v13505_v63  ;;  %v13508_v27 = vld [vmem:[#allocation312_spill] sm:$0xff]  ;;  %v10461_v14 = vpop.permute.xlu2 %3337  ;;  %v13511_v2 = vld [vmem:[#allocation314_spill] sm:$0xff] }
 0x480   : > { %v3032_v18 = vmul.f32 %v10138_v32, %v13506_v56  ;;  %v10452_v55 = vadd.f32 %v10249_v58, %v3402_v44  ;;  %v10455_v0 = vadd.f32 %v2707_v47, %v10075_v12  ;;  %v2709_v3 = vmul.f32 %v10014_v8, %v13508_v27 }
 0x481   : > { %v2713_v21 = vmul.f32 %v10014_v8, %v13509_v17  ;;  %v3401_v63 = vadd.f32 %v3360_v48, %v3071_v26  ;;  %v3035_v49 = vmul.f32 %v10138_v32, %v13511_v2  ;;  %v3034_v44 = vmul.f32 %v10138_v32, %v13512_v29  ;;  %v13517_v26 = vld [vmem:[#allocation321_spill] sm:$0xff] }
 0x482   : > { %v3400_v31 = vadd.f32 %v3359_v23, %v3070_v45  ;;  %v2747_v12 = vadd.f32 %v2706_v41, %v9988_v53  ;;  %v3404_v47 = vadd.f32 %v3363_v35, %v3074_v39  ;;  %v13513_v27 = vmax.f32 %v10276_v61, 0.0  ;;  %v13519_v45 = vld [vmem:[#allocation316_spill] sm:$0xff]  ;;  %v13520_v41 = vld [vmem:[#allocation18_spill] sm:$0xff] }
 0x483   : > { %v13516_v48 = vmax.f32 %v10293_v9, 0.0  ;;  %v10481_v2 = vadd.f32 %v2710_v11, %v10088_v1  ;;  %v3073_v29 = vadd.f32 %v3032_v18, %v10288_v34  ;;  %v3038_v23 = vmul.f32 %v10138_v32, %v13519_v45  ;;  %v13521_v11 = vld [vmem:[#allocation23_spill] sm:$0xff] }
 0x484   : > { %v2750_v61 = vadd.f32 %v2709_v3, %v10004_v22  ;;  %v10489_v39 = vadd.f32 %v2713_v21, %v10101_v38  ;;  %v3362_v9 = vmul.f32 %v10173_v52, %v13520_v41  ;;  %v10494_v35 = vadd.f32 %v10249_v58, %v3401_v63  ;;  %v13523_v21 = vld [vmem:[#allocation322_spill] sm:$0xff]  ;;  %v13530_v41 = vld [vmem:[#allocation323_spill] sm:$0xff] }
 0x485   : > { %v3076_v1 = vadd.f32 %v3035_v49, %v10305_v50  ;;  %v3075_v34 = vadd.f32 %v3034_v44, %v10197_v5  ;;  %v3365_v18 = vmul.f32 %v10173_v52, %v13521_v11  ;;  %v13522_v3 = vmax.f32 %v10314_v16, 0.0 }
 0x486   : > { %v10449_v37 = vpop.permute.xlu1 %3652  ;;  %v10513_v50 = vadd.f32 %v10249_v58, %v3404_v47  ;;  %v10515_v5 = vadd.f32 %v3038_v23, %v2749_v54  ;;  %v13525_v49 = vmax.f32 %v10327_v24, 0.0  ;;  %v2712_v11 = vmul.f32 %v10014_v8, %v13530_v41  ;;  %v13532_v54 = vld [vmem:[#allocation31_spill] sm:$0xff] }
 0x487   : > { %13507 = vst [vmem:[#allocation80_spill] sm:$0xff] %v10449_v37  ;;  %v10463_v56 = vpop.permute.xlu0 %3647  ;;  %v13514_v37 = vld [vmem:[#allocation320_spill] sm:$0xff]  ;;  %v10510_v63 = vmul.f32 %v13523_v21, %v13522_v3  ;;  %v13531_v47 = vmax.f32 %v10373_v60, 0.0  ;;  %v3403_v24 = vadd.f32 %v3362_v9, %v3073_v29  ;;  %v10549_v9 = vpop.permute.xlu2 %3667 }
 0x488   : > { %13510 = vst [vmem:[#allocation81_spill] sm:$0xff] %v10463_v56  ;;  %v10473_v17 = vmul.f32 %v13514_v37, %v13513_v27  ;;  %v10478_v56 = vmul.f32 %v13517_v26, %v13516_v48  ;;  %v10501_v37 = vadd.f32 %v10249_v58, %v3400_v31  ;;  %v13526_v31 = vld [vmem:[#allocation14_spill] sm:$0xff]  ;;  %v13528_v27 = vld [vmem:[#allocation16_spill] sm:$0xff]  ;;  %v2753_v53 = vadd.f32 %v2712_v11, %v10023_v28 }
 0x489   : > { %13524 = vst [vmem:[#allocation83_spill] sm:$0xff] %v10510_v63  ;;  %v10520_v44 = vmul.f32 %v13526_v31, %v13525_v49  ;;  %v3036_v48 = vmul.f32 %v10138_v32, %v13528_v27  ;;  %v13529_v26 = vld [vmem:[#allocation24_spill] sm:$0xff]  ;;  %v10533_v23 = vmul.f32 %v13532_v54, %v13531_v47  ;;  %v3406_v31 = vadd.f32 %v3365_v18, %v3076_v1  ;;  %v13536_v54 = vld [vmem:[#allocation15_spill] sm:$0xff] }
 0x48a   : > { %13515 = vst [vmem:[#allocation82_spill] sm:$0xff] %v10473_v17  ;;  %v3800_v22 = vsel %vm467_vm0, %v10473_v17, -inf  ;;  %v3796_v38 = vsel %vm467_vm0, %v10478_v56, -inf  ;;  %v3364_v45 = vmul.f32 %v10173_v52, %v13529_v26  ;;  %v13534_v27 = vld [vmem:[#allocation32_spill] sm:$0xff]  ;;  %v10543_v41 = vsel %vm467_vm0, %v10510_v63, -inf  ;;  %v13538_v63 = vld [vmem:[#allocation22_spill] sm:$0xff] }
 0x48b   : > { %13518 = vst [vmem:[#allocation17_spill] sm:$0xff] %v10478_v56  ;;  %v3801_v49 = vmax.f32 %v3796_v38, %v3800_v22  ;;  %v3366_v26 = vmul.f32 %v10173_v52, %v13534_v27  ;;  %v13535_v60 = vld [vmem:[#allocation324_spill] sm:$0xff]  ;;  %v3037_v29 = vmul.f32 %v10138_v32, %v13536_v54  ;;  %v10554_v1 = vsel %vm467_vm0, %v10520_v44, -inf  ;;  %v13540_v17 = vld [vmem:[#allocation33_spill] sm:$0xff] }
 0x48c   : > { %13527 = vst [vmem:[#allocation84_spill] sm:$0xff] %v10520_v44  ;;  %v2711_v47 = vmul.f32 %v10014_v8, %v13535_v60  ;;  %v3077_v18 = vadd.f32 %v3036_v48, %v2747_v12  ;;  %v13537_v38 = vld [vmem:[#allocation20_spill] sm:$0xff]  ;;  %v3405_v3 = vadd.f32 %v3364_v45, %v3075_v34  ;;  %v3808_v60 = vsel %vm467_vm0, %v10533_v23, -inf  ;;  %v13542_v48 = vld [vmem:[#allocation37_spill] sm:$0xff] }
 0x48d   : > { %13533 = vst [vmem:[#allocation85_spill] sm:$0xff] %v10533_v23  ;;  %v3039_v27 = vmul.f32 %v10138_v32, %v13537_v38  ;;  %v2716_v54 = vmul.f32 %v10014_v8, %v13538_v63  ;;  %v10564_v56 = vadd.f32 %v10249_v58, %v3403_v24  ;;  %v13539_v44 = vmax.f32 %v10380_v15, 0.0  ;;  %v13562_v63 = vld [vmem:[#allocation43_spill] sm:$0xff] }
 0x48e   : > { %v10526_v16 = vpop.permute.xlu1 %3332  ;;  %v3407_v22 = vadd.f32 %v3366_v26, %v3077_v18  ;;  %v3369_v34 = vmul.f32 %v10173_v52, %v13542_v48  ;;  %v10574_v28 = vadd.f32 %v10249_v58, %v3406_v31  ;;  %v2752_v45 = vadd.f32 %v2711_v47, %v10085_v36  ;;  %v13545_v26 = vld [vmem:[#allocation34_spill] sm:$0xff]  ;;  %v13549_v31 = vld [vmem:[#allocation27_spill] sm:$0xff] }
 0x48f   : > { %v10536_v21 = vpop.permute.xlu0 %3327  ;;  %v10569_v12 = vmul.f32 %v13540_v17, %v13539_v44  ;;  %v3078_v11 = vadd.f32 %v3037_v29, %v10455_v0  ;;  %v13544_v24 = vmax.f32 %v10296_v57, 0.0  ;;  %v3080_v17 = vadd.f32 %v3039_v27, %v2750_v61  ;;  %v13547_v44 = vld [vmem:[#allocation26_spill] sm:$0xff]  ;;  %v13552_v29 = vld [vmem:[#allocation29_spill] sm:$0xff] }
 0x490   : > { %13543 = vst [vmem:[#allocation87_spill] sm:$0xff] %v10574_v28  ;;  %v3041_v18 = vmul.f32 %v10138_v32, %v13547_v44  ;;  %v13548_v38 = vmax.f32 %v10344_v10, 0.0  ;;  %v10593_v36 = vadd.f32 %v10249_v58, %v3405_v3  ;;  %v10597_v0 = vmax.f32 %v3801_v49, %v3808_v60  ;;  %v13556_v60 = vld [vmem:[#allocation42_spill] sm:$0xff]  ;;  %v13561_v10 = vld [vmem:[#allocation47_spill] sm:$0xff] }
 0x491   : > { %13541 = vst [vmem:[#allocation86_spill] sm:$0xff] %v10569_v12  ;;  %v10583_v15 = vmul.f32 %v13545_v26, %v13544_v24  ;;  %v10600_v57 = vadd.f32 %v2716_v54, %v10112_v30  ;;  %v13551_v61 = vmax.f32 %v10283_v62, 0.0  ;;  %v3806_v3 = vsel %vm467_vm0, %v10569_v12, -inf  ;;  %v13563_v12 = vld [vmem:[#allocation54_spill] sm:$0xff] }
 0x492   : > { %v10590_v48 = vmul.f32 %v13549_v31, %v13548_v38  ;;  %v3410_v26 = vadd.f32 %v3369_v34, %v3080_v17  ;;  %v10613_v44 = vadd.f32 %v10249_v58, %v3407_v22  ;;  %v13555_v62 = vmax.f32 %v10330_v40, 0.0  ;;  %v13558_v31 = vld [vmem:[#allocation50_spill] sm:$0xff]  ;;  %v13559_v17 = vld [vmem:[#allocation40_spill] sm:$0xff] }
 0x493   : > { %13546 = vst [vmem:[#allocation88_spill] sm:$0xff] %v10583_v15  ;;  %v10605_v27 = vmul.f32 %v13552_v29, %v13551_v61  ;;  %v3804_v30 = vsel %vm467_vm0, %v10583_v15, -inf  ;;  %v3368_v38 = vmul.f32 %v10173_v52, %v9594_v42  ;;  %v3367_v61 = vmul.f32 %v10173_v52, %v13558_v31 }
 0x494   : > { %13550 = vst [vmem:[#allocation89_spill] sm:$0xff] %v10590_v48  ;;  %v10621_v54 = vmul.f32 %v13556_v60, %v13555_v62  ;;  %v10627_v34 = vadd.f32 %v3041_v18, %v2752_v45  ;;  %v3799_v22 = vsel %vm467_vm0, %v10590_v48, -inf  ;;  %v2715_v29 = vmul.f32 %v10014_v8, %v13559_v17  ;;  %v13560_v60 = vld [vmem:[#allocation41_spill] sm:$0xff]  ;;  %v10640_v45 = vpop.permute.xlu2 %3682 }
 0x495   : > { %13553 = vst [vmem:[#allocation90_spill] sm:$0xff] %v10605_v27  ;;  %v3798_v40 = vsel %vm467_vm0, %v10605_v27, -inf  ;;  %v3807_v62 = vmax.f32 %v3799_v22, %v3806_v3  ;;  %v2714_v42 = vmul.f32 %v10014_v8, %v13560_v60  ;;  %v3042_v31 = vmul.f32 %v10138_v32, %v13561_v10 }
 0x496   : > { %v10595_v47 = vpop.permute.xlu1 %3662  ;;  %13554 = vst [vmem:[#allocation91_spill] sm:$0xff] %v10613_v44  ;;  %v3805_v18 = vmax.f32 %v3798_v40, %v3804_v30  ;;  %v3040_v23 = vmul.f32 %v10138_v32, %v13562_v63  ;;  %v10646_v49 = vadd.f32 %v10249_v58, %v3410_v26  ;;  %v3814_v3 = vsel %vm467_vm0, %v10621_v54, -inf  ;;  %v13564_v30 = vld [vmem:[#allocation44_spill] sm:$0xff]  ;;  %v13565_v40 = vld [vmem:[#allocation45_spill] sm:$0xff]  ;;  %v13566_v26 = vld [vmem:[#allocation46_spill] sm:$0xff] }
 0x497   : > { %v10608_v24 = vpop.permute.xlu0 %3657  ;;  %13557 = vst [vmem:[#allocation92_spill] sm:$0xff] %v10621_v54  ;;  %v3409_v22 = vadd.f32 %v3368_v38, %v10515_v5  ;;  %v3408_v60 = vadd.f32 %v3367_v61, %v3078_v11  ;;  %v3372_v10 = vmul.f32 %v10173_v52, %v13563_v12  ;;  %v10654_v15 = vadd.f32 %v2715_v29, %v10034_v51  ;;  %v13568_v54 = vld [vmem:[#allocation65_spill] sm:$0xff]  ;;  %v13571_v61 = vld [vmem:[#allocation38_spill] sm:$0xff] }
 0x498   : > { %v2717_v63 = vmul.f32 %v10014_v8, %v13564_v30  ;;  %v2719_v17 = vmul.f32 %v10014_v8, %v13565_v40  ;;  %v3043_v48 = vmul.f32 %v10138_v32, %v13566_v26  ;;  %v2755_v5 = vadd.f32 %v2714_v42, %v13568_v54  ;;  %v13569_v38 = vld [vmem:[#allocation49_spill] sm:$0xff]  ;;  %v13576_v54 = vld [vmem:[#allocation39_spill] sm:$0xff] }
 0x499   : > { %v3083_v11 = vadd.f32 %v3042_v31, %v2753_v53  ;;  %v3044_v12 = vmul.f32 %v10138_v32, %v13569_v38  ;;  %v13570_v51 = vmax.f32 %v10390_v13, 0.0  ;;  %v10674_v44 = vmax.f32 %v3807_v62, %v3814_v3  ;;  %v13578_v62 = vld [vmem:[#allocation66_spill] sm:$0xff] }
 0x49a   : > { %v3081_v40 = vadd.f32 %v3040_v23, %v10481_v2  ;;  %v13573_v26 = vmax.f32 %v10402_v25, 0.0  ;;  %v3047_v42 = vmul.f32 %v10138_v32, %v13576_v54  ;;  %v10686_v31 = vadd.f32 %v10249_v58, %v3408_v60  ;;  %v13579_v2 = vld [vmem:[#allocation68_spill] sm:$0xff]  ;;  %v13588_v54 = vld [vmem:[#allocation62_spill] sm:$0xff] }
 0x49b   : > { %v10670_v29 = vmul.f32 %v13571_v61, %v13570_v51  ;;  %v3413_v13 = vadd.f32 %v3372_v10, %v3083_v11  ;;  %v10689_v38 = vadd.f32 %v10249_v58, %v3409_v22  ;;  %v2758_v3 = vadd.f32 %v2717_v63, %v13578_v62  ;;  %v13581_v51 = vld [vmem:[#allocation53_spill] sm:$0xff]  ;;  %v13583_v10 = vld [vmem:[#allocation52_spill] sm:$0xff] }
 0x49c   : > { %v10693_v23 = vadd.f32 %v2719_v17, %v13579_v2  ;;  %v3084_v25 = vadd.f32 %v3043_v48, %v10489_v39  ;;  %v2718_v22 = vmul.f32 %v10014_v8, %v13583_v10  ;;  %v13584_v63 = vmax.f32 %v10424_v33, 0.0  ;;  %v13585_v11 = vld [vmem:[#allocation57_spill] sm:$0xff]  ;;  %v10723_v33 = vpop.permute.xlu2 %3697 }
 0x49d   : > { %13572 = vst [vmem:[#allocation94_spill] sm:$0xff] %v10670_v29  ;;  %v3812_v60 = vsel %vm467_vm0, %v10670_v29, -inf  ;;  %v10720_v2 = vadd.f32 %v3047_v42, %v2758_v3  ;;  %v10727_v10 = vadd.f32 %v10249_v58, %v3413_v13  ;;  %v13593_v3 = vld [vmem:[#allocation71_spill] sm:$0xff]  ;;  %v13594_v13 = vmax.f32 %v10543_v41, %v10554_v1  ;;  %v13595_v29 = vld [vmem:[#allocation61_spill] sm:$0xff]  ;;  %v13598_v1 = vld [vmem:[#allocation56_spill] sm:$0xff] }
 0x49e   : > { %v10662_v27 = vpop.permute.xlu1 %3677  ;;  %13577 = vst [vmem:[#allocation96_spill] sm:$0xff] %v10689_v38  ;;  %v10710_v17 = vmul.f32 %v13585_v11, %v13584_v63  ;;  %v13591_v11 = vld [vmem:[#allocation55_spill] sm:$0xff] }
 0x49f   : > { %13567 = vst [vmem:[#allocation93_spill] sm:$0xff] %v10662_v27  ;;  %v10672_v30 = vpop.permute.xlu0 %3672  ;;  %v13574_v27 = vld [vmem:[#allocation51_spill] sm:$0xff] }
 0x4a0   : > { %v10680_v28 = vmul.f32 %v13574_v27, %v13573_v26  ;;  %v13580_v27 = vmax.f32 %v10412_v6, 0.0  ;;  %v10701_v26 = vadd.f32 %v3044_v12, %v2755_v5  ;;  %13586 = vst [vmem:[#allocation97_spill] sm:$0xff] %v10710_v17  ;;  %v13587_v6 = vld [vmem:[#allocation58_spill] sm:$0xff]  ;;  %v3371_v5 = vmul.f32 %v10173_v52, %v13588_v54  ;;  %v13589_v12 = vld [vmem:[#allocation63_spill] sm:$0xff] }
 0x4a1   : > { %v3046_v48 = vmul.f32 %v10138_v32, %v13587_v6  ;;  %v3370_v62 = vmul.f32 %v10173_v52, %v13589_v12  ;;  %13590 = vst [vmem:[#allocation98_spill] sm:$0xff] %v10723_v33  ;;  %v2721_v6 = vmul.f32 %v10014_v8, %v13591_v11  ;;  %v13592_v54 = vld [vmem:[#allocation74_spill] sm:$0xff]  ;;  %v3373_v12 = vmul.f32 %v10173_v52, %v13593_v3  ;;  %v13597_v33 = vld [vmem:[#allocation60_spill] sm:$0xff] }
 0x4a2   : > { %13575 = vst [vmem:[#allocation95_spill] sm:$0xff] %v10680_v28  ;;  %v10699_v61 = vmul.f32 %v13581_v51, %v13580_v27  ;;  %v3810_v39 = vsel %vm467_vm0, %v10680_v28, -inf  ;;  %v3376_v42 = vmul.f32 %v10173_v52, %v13592_v54  ;;  %v3813_v27 = vmax.f32 %v3805_v18, %v3812_v60 }
 0x4a3   : > { %v10744_v51 = vmax.f32 %v13594_v13, %v3810_v39  ;;  %v3820_v28 = vsel %vm467_vm0, %v10710_v17, -inf  ;;  %v3048_v54 = vmul.f32 %v10138_v32, %v13597_v33  ;;  %v3087_v3 = vadd.f32 %v3046_v48, %v10600_v57  ;;  %v13600_v13 = vld [vmem:[#allocation64_spill] sm:$0xff] }
 0x4a4   : > { %13582 = vst [vmem:[#allocation28_spill] sm:$0xff] %v10699_v61  ;;  %v10731_v63 = vsel %vm467_vm0, %v10699_v61, -inf  ;;  %v2759_v61 = vadd.f32 %v2718_v22, %v13595_v29  ;;  %v3412_v38 = vadd.f32 %v3371_v5, %v10627_v34  ;;  %v3411_v18 = vadd.f32 %v3370_v62, %v3081_v40  ;;  %v13599_v29 = vld [vmem:[#allocation59_spill] sm:$0xff]  ;;  %v13603_v5 = vld [vmem:[#allocation69_spill] sm:$0xff]  ;;  %v13604_v62 = vld [vmem:[#allocation78_spill] sm:$0xff] }
 0x4a5   : > { %v3817_v41 = vmax.f32 %v10597_v0, %v10731_v63  ;;  %v2720_v60 = vmul.f32 %v10014_v8, %v13598_v1  ;;  %v3045_v22 = vmul.f32 %v10138_v32, %v13599_v29  ;;  %v3540_v39 = vmax.f32 %v10727_v10, 0.0 }
 0x4a6   : > { %v10739_v53 = vpop.permute.xlu1 %3692  ;;  %v2762_v17 = vadd.f32 %v2721_v6, %v13600_v13  ;;  %v3417_v57 = vadd.f32 %v3376_v42, %v3087_v3  ;;  %v3414_v48 = vadd.f32 %v3373_v12, %v3084_v25  ;;  %v3821_v34 = vmax.f32 %v3813_v27, %v3820_v28  ;;  %v13606_v27 = vld [vmem:[#allocation77_spill] sm:$0xff]  ;;  %v13608_v12 = vld [vmem:[#allocation72_spill] sm:$0xff] }
 0x4a7   : > { %v10749_v11 = vpop.permute.xlu0 %3687  ;;  %v13602_v40 = vmax.f32 %v10383_v4, 0.0  ;;  %v3378_v8 = vmul.f32 %v10173_v52, %v10385_v20  ;;  %v3375_v63 = vmul.f32 %v10173_v52, %v13604_v62  ;;  %v3089_v1 = vadd.f32 %v3048_v54, %v2759_v61  ;;  %v13609_v54 = vld [vmem:[#allocation79_spill] sm:$0xff] }
 0x4a8   : > { %13596 = vst [vmem:[#allocation19_spill] sm:$0xff] %v10749_v11  ;;  %v13601_v11 = vld [vmem:[#allocation70_spill] sm:$0xff]  ;;  %v3381_v6 = vmul.f32 %v10173_v52, %v10461_v14  ;;  %v10780_v28 = vadd.f32 %v10249_v58, %v3412_v38  ;;  %v3086_v4 = vadd.f32 %v3045_v22, %v10654_v15  ;;  %v13605_v25 = vmax.f32 %v10501_v37, 0.0  ;;  %v13611_v38 = vld [vmem:[#allocation73_spill] sm:$0xff] }
 0x4a9   : > { %v3051_v33 = vmul.f32 %v10138_v32, %v13601_v11  ;;  %v10768_v0 = vmul.f32 %v13603_v5, %v13602_v40  ;;  %v10777_v11 = vadd.f32 %v10249_v58, %v3411_v18  ;;  %v13607_v20 = vmax.f32 %v10393_v59, 0.0  ;;  %v13612_v5 = vld [vmem:[#allocation67_spill] sm:$0xff] }
 0x4aa   : > { %v10786_v42 = vmul.f32 %v13606_v27, %v13605_v25  ;;  %v3374_v14 = vmul.f32 %v10173_v52, %v13609_v54  ;;  %v13610_v18 = vmax.f32 %v10417_v46, 0.0  ;;  %v10801_v15 = vadd.f32 %v10249_v58, %v3414_v48  ;;  %v10812_v46 = vpop.permute.xlu2 %3712 }
 0x4ab   : > { %v10791_v61 = vmul.f32 %v13608_v12, %v13607_v20  ;;  %v3092_v3 = vadd.f32 %v3051_v33, %v2762_v17  ;;  %v10804_v37 = vadd.f32 %v10249_v58, %v3417_v57  ;;  %v3818_v59 = vsel %vm467_vm0, %v10768_v0, -inf }
 0x4ac   : > { %v10798_v29 = vmul.f32 %v13611_v38, %v13610_v18  ;;  %v3419_v13 = vadd.f32 %v3378_v8, %v3089_v1  ;;  %v3416_v40 = vadd.f32 %v3375_v63, %v3086_v4  ;;  %v3377_v17 = vmul.f32 %v10173_v52, %v10404_v7  ;;  %v13613_v63 = vld [vmem:[#allocation75_spill] sm:$0xff] }
 0x4ad   : > { %v2761_v62 = vadd.f32 %v2720_v60, %v13612_v5  ;;  %v3422_v48 = vadd.f32 %v3381_v6, %v3092_v3  ;;  %v3538_v25 = vmax.f32 %v10777_v11, 0.0  ;;  %v3539_v57 = vmax.f32 %v10780_v28, 0.0  ;;  %v13614_v28 = vld [vmem:[#allocation76_spill] sm:$0xff] }
 0x4ae   : > { %v10806_v22 = vpop.permute.xlu1 %3707  ;;  %v3828_v27 = vsel %vm467_vm0, %v10786_v42, -inf  ;;  %v3824_v8 = vsel %vm467_vm0, %v10791_v61, -inf  ;;  %v3050_v1 = vmul.f32 %v10138_v32, %v13613_v63  ;;  %v3415_v7 = vadd.f32 %v3374_v14, %v10701_v26 }
 0x4af   : > { %v3703_v33 = vpop.permute.xlu0 %3702  ;;  %v3819_v4 = vmax.f32 %v10744_v51, %v3818_v59  ;;  %v3822_v60 = vsel %vm467_vm0, %v10798_v29, -inf  ;;  %v3541_v6 = vmax.f32 %v10801_v15, 0.0  ;;  %v3544_v11 = vmax.f32 %v10804_v37, 0.0  ;;  %v13617_v59 = vld [vmem:[#allocation80_spill] sm:$0xff] }
 0x4b0   : > { %v3049_v20 = vmul.f32 %v10138_v32, %v13614_v28  ;;  %v3418_v12 = vadd.f32 %v3377_v17, %v10720_v2  ;;  %v3502_v54 = vadd.f32 %v10249_v58, %v3416_v40  ;;  %v10834_v3 = vadd.f32 %v10249_v58, %v3419_v13  ;;  %v13620_v13 = vld [vmem:[#allocation81_spill] sm:$0xff] }
 0x4b1   : > { %v10836_v26 = vmax.f32 %v3821_v34, %v3828_v27  ;;  %v3825_v51 = vmax.f32 %v3817_v41, %v3824_v8  ;;  %v13615_v14 = vmax.f32 %v10420_v43, 0.0  ;;  %v10844_v38 = vadd.f32 %v10249_v58, %v3422_v48 }
 0x4b2   : > { %v3823_v32 = vmax.f32 %v10674_v44, %v3822_v60  ;;  %v3091_v15 = vadd.f32 %v3050_v1, %v2761_v62  ;;  %v13616_v2 = vmax.f32 %v10452_v55, 0.0  ;;  %v3501_v34 = vadd.f32 %v10249_v58, %v3415_v7  ;;  %v3728_v60 = vpop.permute.xlu2 %3727 }
 0x4b3   : > { %v10841_v18 = vmul.f32 %v10395_v19, %v13615_v14  ;;  %v13618_v41 = vmax.f32 %v10593_v36, 0.0  ;;  %v13619_v19 = vmax.f32 %v10494_v35, 0.0  ;;  %v3380_v44 = vmul.f32 %v10173_v52, %v10526_v16 }
 0x4b4   : > { %v10850_v40 = vmul.f32 %v13617_v59, %v13616_v2  ;;  %v3379_v55 = vmul.f32 %v10173_v52, %v10536_v21  ;;  %v3090_v62 = vadd.f32 %v3049_v20, %v10693_v23  ;;  %v3543_v48 = vmax.f32 %v3502_v54, 0.0 }
 0x4b5   : > { %v10856_v43 = vmul.f32 %v10549_v9, %v13618_v41  ;;  %v10861_v17 = vmul.f32 %v13620_v13, %v13619_v19  ;;  %v3546_v36 = vmax.f32 %v10834_v3, 0.0  ;;  %v3504_v9 = vadd.f32 %v10249_v58, %v3418_v12  ;;  %v13630_v13 = vld [vmem:[#allocation96_spill] sm:$0xff] }
 0x4b6   : > { %v3723_v5 = vpop.permute.xlu1 %3722  ;;  %v3826_v35 = vsel %vm467_vm0, %v10841_v18, -inf  ;;  %v13621_v8 = vmax.f32 %v10686_v31, 0.0  ;;  %v13622_v16 = vmax.f32 %v10513_v50, 0.0  ;;  %v3549_v21 = vmax.f32 %v10844_v38, 0.0  ;;  %v13624_v31 = vld [vmem:[#allocation87_spill] sm:$0xff] }
 0x4b7   : > { %v3718_v27 = vpop.permute.xlu0 %3717  ;;  %v3832_v23 = vsel %vm467_vm0, %v10850_v40, -inf  ;;  %v13623_v1 = vmax.f32 %v10564_v56, 0.0  ;;  %v13625_v28 = vmax.f32 %v13624_v31, 0.0  ;;  %v3542_v50 = vmax.f32 %v3501_v34, 0.0  ;;  %v13626_v56 = vld [vmem:[#allocation91_spill] sm:$0xff] }
 0x4b8   : > { %v10875_v63 = vmul.f32 %v10640_v45, %v13621_v8  ;;  %v10880_v52 = vmul.f32 %v10595_v47, %v13622_v16  ;;  %v3838_v47 = vsel %vm467_vm0, %v10856_v43, -inf  ;;  %v3830_v20 = vsel %vm467_vm0, %v10861_v17, -inf }
 0x4b9   : > { %v10888_v7 = vmul.f32 %v10608_v24, %v13623_v1  ;;  %v10893_v45 = vmul.f32 %v10672_v30, %v13625_v28  ;;  %v3421_v12 = vadd.f32 %v3380_v44, %v3091_v15  ;;  %v3420_v54 = vadd.f32 %v3379_v55, %v3090_v62  ;;  %v13628_v24 = vld [vmem:[#allocation93_spill] sm:$0xff]  ;;  %v13632_v44 = vld [vmem:[#allocation19_spill] sm:$0xff] }
 0x4ba   : > { %v3827_v3 = vmax.f32 %v3819_v4, %v3826_v35  ;;  %v13627_v14 = vmax.f32 %v13626_v56, 0.0  ;;  %v13629_v59 = vmax.f32 %v10646_v49, 0.0  ;;  %v3545_v34 = vmax.f32 %v3504_v9, 0.0  ;;  %v13633_v35 = vld [vmem:[#allocation98_spill] sm:$0xff]  ;;  %v3743_v56 = vpop.permute.xlu2 %3742 }
 0x4bb   : > { %v3844_v41 = vsel %vm467_vm0, %v10875_v63, -inf  ;;  %v3833_v19 = vmax.f32 %v3825_v51, %v3832_v23  ;;  %v3836_v15 = vsel %vm467_vm0, %v10880_v52, -inf  ;;  %v13631_v4 = vmax.f32 %v13630_v13, 0.0 }
 0x4bc   : > { %v10902_v2 = vmul.f32 %v13628_v24, %v13627_v14  ;;  %v10907_v30 = vmul.f32 %v10739_v53, %v13629_v59  ;;  %v3831_v62 = vmax.f32 %v3823_v32, %v3830_v20  ;;  %v10919_v8 = vmul.f32 %v13633_v35, %v3538_v25 }
 0x4bd   : > { %v10916_v55 = vmul.f32 %v13632_v44, %v13631_v4  ;;  %v3834_v49 = vsel %vm467_vm0, %v10888_v7, -inf  ;;  %v3840_v53 = vsel %vm467_vm0, %v10893_v45, -inf  ;;  %v3506_v51 = vadd.f32 %v10249_v58, %v3420_v54 }
 0x4be   : > { %v10929_v9 = vmul.f32 %v10806_v22, %v3540_v39  ;;  %v10931_v16 = vmul.f32 %v3703_v33, %v3539_v57  ;;  %v3738_v23 = vpop.permute.xlu1 %3737  ;;  %v3507_v32 = vadd.f32 %v10249_v58, %v3421_v12  ;;  %v10935_v25 = vmul.f32 %v10812_v46, %v3541_v6 }
 0x4bf   : > { %v3837_v1 = vmax.f32 %v10836_v26, %v3836_v15  ;;  %v3842_v31 = vsel %vm467_vm0, %v10902_v2, -inf  ;;  %v3848_v28 = vsel %vm467_vm0, %v10907_v30, -inf  ;;  %v3733_v10 = vpop.permute.xlu0 %3732  ;;  %v3835_v20 = vmax.f32 %v3827_v3, %v3834_v49 }
 0x4c0   : > { %v3841_v39 = vmax.f32 %v3833_v19, %v3840_v53  ;;  %v3846_v22 = vsel %vm467_vm0, %v10916_v55, -inf  ;;  %v10944_v33 = vmul.f32 %v3723_v5, %v3543_v48  ;;  %v3850_v58 = vsel %vm467_vm0, %v10919_v8, -inf }
 0x4c1   : > { %v3839_v46 = vmax.f32 %v3831_v62, %v3838_v47  ;;  %v10948_v57 = vmul.f32 %v3718_v27, %v3542_v50  ;;  %v10950_v6 = vmul.f32 %v3733_v10, %v3545_v34  ;;  %v3843_v26 = vmax.f32 %v3835_v20, %v3842_v31 }
 0x4c2   : > { %v3849_v12 = vmax.f32 %v3841_v39, %v3848_v28  ;;  %v3854_v54 = vsel %vm467_vm0, %v10929_v9, -inf  ;;  %v3852_v3 = vsel %vm467_vm0, %v10931_v16, -inf  ;;  %v3845_v5 = vmax.f32 %v3837_v1, %v3844_v41 }
 0x4c3   : > { %v3847_v14 = vmax.f32 %v3839_v46, %v3846_v22  ;;  %v10956_v48 = vmul.f32 %v3738_v23, %v3546_v36  ;;  %v3548_v24 = vmax.f32 %v3507_v32, 0.0  ;;  %v3856_v27 = vsel %vm467_vm0, %v10935_v25, -inf }
 0x4c4   : > { %v10962_v50 = vmul.f32 %v3728_v60, %v3544_v11  ;;  %v3547_v47 = vmax.f32 %v3506_v51, 0.0  ;;  %v3860_v59 = vsel %vm467_vm0, %v10944_v33, -inf  ;;  %v3853_v19 = vmax.f32 %v3845_v5, %v3852_v3 }
 0x4c5   : > { %v3855_v34 = vmax.f32 %v3847_v14, %v3854_v54  ;;  %v3858_v15 = vsel %vm467_vm0, %v10948_v57, -inf  ;;  %v3864_v36 = vsel %vm467_vm0, %v10950_v6, -inf  ;;  %v3851_v13 = vmax.f32 %v3843_v26, %v3850_v58 }
 0x4c6   : > { %v10970_v41 = vmul.f32 %v3743_v56, %v3547_v47  ;;  %v3857_v4 = vmax.f32 %v3849_v12, %v3856_v27  ;;  %v3753_v37 = vpop.permute.xlu1 %3752  ;;  %v3861_v11 = vmax.f32 %v3853_v19, %v3860_v59  ;;  %v3866_v60 = vsel %vm467_vm0, %v10956_v48, -inf }
 0x4c7   : > { %v10976_v44 = vmul.f32 %v3753_v37, %v3549_v21  ;;  %v3748_v62 = vpop.permute.xlu0 %3747  ;;  %v3862_v35 = vsel %vm467_vm0, %v10962_v50, -inf  ;;  %v3859_v49 = vmax.f32 %v3851_v13, %v3858_v15  ;;  %v12791_v14 = vmov 0.0  }
 0x4c8   : > { %v3865_v53 = vmax.f32 %v3857_v4, %v3864_v36  ;;  %v10980_v51 = vmul.f32 %v3748_v62, %v3548_v24  ;;  %v3863_v32 = vmax.f32 %v3855_v34, %v3862_v35  ;;  %v3868_v1 = vsel %vm467_vm0, %v10970_v41, -inf  ;;  %468 = vst.msk [vmem:[#allocation4] sm:$0xff] %vm467_vm0, %v12791_v14 }
 0x4c9   : > { %v3873_v23 = vsel %vm3872_vm1, %v10976_v44, -inf  ;;  %v3867_v31 = vmax.f32 %v3859_v49, %v3866_v60  ;;  %v3869_v21 = vmax.f32 %v3861_v11, %v3868_v1  ;;  %469 = vst.msk [vmem:[#allocation4 + $0x8] sm:$0xff] %vm467_vm0, %v12791_v14 }
 0x4ca   : > { %v3874_v28 = vmax.f32 %v3865_v53, %v3873_v23  ;;  %v3870_v38 = vsel %vm467_vm0, %v10980_v51, -inf  ;;  %470 = vst.msk [vmem:[#allocation4 + $0x10] sm:$0xff] %vm467_vm0, %v12791_v14 }
 0x4cb   : > { %v3871_v10 = vmax.f32 %v3863_v32, %v3870_v38  ;;  %471 = vst.msk [vmem:[#allocation4 + $0x18] sm:$0xff] %vm467_vm0, %v12791_v14 }
 0x4cc   : > { %v3875_v20 = vmax.f32 %v3874_v28, %v3867_v31  ;;  %472 = vst.msk [vmem:[#allocation4 + $0x20] sm:$0xff] %vm467_vm0, %v12791_v14 }
 0x4cd   : > { %v3876_v39 = vmax.f32 %v3869_v21, %v3871_v10  ;;  %473 = vst.msk [vmem:[#allocation4 + $0x28] sm:$0xff] %vm467_vm0, %v12791_v14  ;;  %v13634_v10 = vld [vmem:[#allocation90_spill] sm:$0xff] }
 0x4ce   : > { %474 = vst.msk [vmem:[#allocation4 + $0x30] sm:$0xff] %vm467_vm0, %v12791_v14 }
 0x4cf   : > { %v3877_v22 = vmax.f32 %v3875_v20, %v3876_v39  ;;  %475 = vst.msk [vmem:[#allocation4 + $0x38] sm:$0xff] %vm467_vm0, %v12791_v14  ;;  %v13635_v39 = vld [vmem:[#allocation89_spill] sm:$0xff] }
 0x4d0   : > { %v4445_v5 = vld [vmem:[#allocation4 + $0x1] sm:$0xff]  ;;  %476 = vst.msk [vmem:[#allocation4 + $0x40] sm:$0xff] %vm467_vm0, %v12791_v14 }
 0x4d1   : > { %3878 = vmax.xlane.f32.xlu2 %v3877_v22  ;;  %v4458_v24 = vpack.c.bf16 %v4445_v5, %v4445_v5  ;;  %477 = vst.msk [vmem:[#allocation4 + $0x48] sm:$0xff] %vm467_vm0, %v12791_v14  ;;  %v4446_v27 = vld [vmem:[#allocation4 + $0x9] sm:$0xff] }
 0x4d2   : > { %478 = vst.msk [vmem:[#allocation4 + $0x50] sm:$0xff] %vm467_vm0, %v12791_v14  ;;  %v4538_v47 = vld [vmem:[#allocation4 + $0x2] sm:$0xff]  ;;  %v4459_v59 = vpack.c.bf16 %v4446_v27, %v4446_v27  ;;  %v4631_v19 = vld [vmem:[#allocation4 + $0xa] sm:$0xff] }
 0x4d3   : > { %4484 = vrot.lane.b32.xlu0 %v4458_v24, %s7375_s20  ;;  %479 = vst.msk [vmem:[#allocation4 + $0x58] sm:$0xff] %vm467_vm0, %v12791_v14  ;;  %v4551_v34 = vpack.c.bf16 %v4538_v47, %v4538_v47  ;;  %v4644_v15 = vpack.c.bf16 %v4631_v19, %v4631_v19  ;;  %v4724_v36 = vld [vmem:[#allocation4 + $0xb] sm:$0xff]  ;;  %v13641_v47 = vld [vmem:[#allocation95_spill] sm:$0xff] }
 0x4d4   : > { %480 = vst.msk [vmem:[#allocation4 + $0x60] sm:$0xff] %vm467_vm0, %v12791_v14  ;;  %4486 = vrot.lane.b32.xlu1 %v4459_v59, %s7375_s20  ;;  %v4737_v13 = vpack.c.bf16 %v4724_v36, %v4724_v36  ;;  %v4817_v11 = vld [vmem:[#allocation4 + $0xc] sm:$0xff] }
 0x4d5   : > { %481 = vst.msk [vmem:[#allocation4 + $0x68] sm:$0xff] %vm467_vm0, %v12791_v14  ;;  %v4830_v62 = vpack.c.bf16 %v4817_v11, %v4817_v11  ;;  %v13640_v24 = vld [vmem:[#allocation85_spill] sm:$0xff] }
 0x4d6   : > { %482 = vst.msk [vmem:[#allocation4 + $0x70] sm:$0xff] %vm467_vm0, %v12791_v14 }
 0x4db   : > { %4577 = vrot.lane.b32.xlu0 %v4551_v34, %s7376_s21 }
 0x4dc   : > { %4579 = vrot.lane.b32.xlu1 %v4644_v15, %s7376_s21 }
 0x4e3   : > { %4670 = vrot.lane.b32.xlu0 %v4644_v15, %s7377_s22  ;;  %v13642_v15 = vld [vmem:[#allocation94_spill] sm:$0xff] }
 0x4eb   : > { %4763 = vrot.lane.b32.xlu0 %v4737_v13, %s7378_s24  ;;  %v13643_v13 = vld [vmem:[#allocation92_spill] sm:$0xff] }
 0x4f3   : > { %4856 = vrot.lane.b32.xlu0 %v4830_v62, %s7379_s25 }
 0x544   : > { %v3879_v58 = vpop.xlane.xlu2 %3878 }
 0x545   : > { %v3880_v46 = vrot.slane %v3879_v58, 4 }
 0x547   : > { %v3881_v26 = vmax.f32 %v3879_v58, %v3880_v46  ;;  %v13636_v58 = vld [vmem:[#allocation82_spill] sm:$0xff] }
 0x549   : > { %v3882_v12 = vrot.slane %v3881_v26, 2 }
 0x54b   : > { %v3883_v54 = vmax.f32 %v3881_v26, %v3882_v12  ;;  %v13637_v26 = vld [vmem:[#allocation84_spill] sm:$0xff] }
 0x54d   : > { %v3884_v3 = vrot.slane %v3883_v54, 1 }
 0x54f   : > { %v3885_v56 = vmax.f32 %v3883_v54, %v3884_v3  ;;  %v13638_v54 = vld [vmem:[#allocation88_spill] sm:$0xff] }
 0x551   : > { %6841 = vpush %v3885_v56  ;;  %v13639_v56 = vld [vmem:[#allocation86_spill] sm:$0xff] }
 0x582   : > { %s6842_s23 = spop %6841 }
 0x583   : > { %v3887_v4 = vstv %s6842_s23 }
 0x584   : > { %v3888_v37 = vmax.f32 %v3887_v4, 1e-12 }
 0x586   : > { %v11024_v60 = vmul.f32 0.06666667, %v3888_v37 }
 0x588   : > { %7355 = vrcp.f32 %v11024_v60  ;;  %v3901_v23 = vand.u32 2147483648, %v11024_v60  ;;  %v3899_v1 = vand.u32 2147483647, %v11024_v60  ;;  %vm3895_vm3 = vweird.f32 %v11024_v60 }
 0x58a   : > { %v3902_v28 = vor.u32 1.1754944e-38, %v3901_v23  ;;  %vm3900_vm5 = vcmp.eq.f32.partialorder %v3899_v1, 8.507059e+37 }
 0x58e   : > { %v7356_v35 = vpop.eup %7355 }
 0x58f   : > { %v3891_v49 = vmul.f32 %v7356_v35, %v11024_v60  ;;  %vm3896_vm2 = vweird.f32 %v7356_v35 }
 0x590   : > { %vm3897_vm4 = vmor %vm3895_vm3, %vm3896_vm2 }
 0x591   : > { %v3892_v53 = vsub.f32 1.0, %v3891_v49 }
 0x593   : > { %v3893_v32 = vmul.f32 %v7356_v35, %v3892_v53 }
 0x595   : > { %v3894_v31 = vadd.f32 %v7356_v35, %v3893_v32 }
 0x597   : > { %v3898_v38 = vsel %vm3897_vm4, %v7356_v35, %v3894_v31 }
 0x598   : > { %v11032_v21 = vsel %vm3900_vm5, %v3902_v28, %v3898_v38 }
 0x599   : > { %v11036_v20 = vmul.f32 %v11032_v21, %v13634_v10  ;;  %v11040_v22 = vmul.f32 %v11032_v21, %v13635_v39  ;;  %v11044_v46 = vmul.f32 %v11032_v21, %v13636_v58  ;;  %v11048_v12 = vmul.f32 %v11032_v21, %v13637_v26 }
 0x59a   : > { %v11052_v3 = vmul.f32 %v11032_v21, %v13638_v54  ;;  %v11056_v5 = vmul.f32 %v11032_v21, %v13639_v56  ;;  %v11060_v27 = vmul.f32 %v11032_v21, %v13640_v24  ;;  %v11064_v59 = vmul.f32 %v11032_v21, %v13641_v47 }
 0x59b   : > { %v6859_v34 = vand.u32 2147483647, %v11036_v20  ;;  %v6861_v19 = vcvt.f32.s32 %v11036_v20  ;;  %v11070_v36 = vmul.f32 %v11032_v21, %v13642_v15  ;;  %v11074_v4 = vmul.f32 %v11032_v21, %v13643_v13 }
 0x59c   : > { %v6867_v37 = vand.u32 2147483647, %v11040_v22  ;;  %v6869_v11 = vcvt.f32.s32 %v11040_v22  ;;  %v6864_v35 = vand.u32 2147483648, %v11036_v20  ;;  %v6875_v49 = vand.u32 2147483647, %v11044_v46 }
 0x59d   : > { %v6862_v62 = vcvt.s32.f32 %v6861_v19  ;;  %v6877_v53 = vcvt.f32.s32 %v11044_v46  ;;  %vm11081_vm6 = vcmp.lt.f32.partialorder %v6859_v34, 8388608.0  ;;  %v6872_v1 = vand.u32 2147483648, %v11040_v22 }
 0x59e   : > { %v6870_v32 = vcvt.s32.f32 %v6869_v11  ;;  %v6883_v31 = vand.u32 2147483647, %v11048_v12  ;;  %vm11087_vm7 = vcmp.lt.f32.partialorder %v6867_v37, 8388608.0  ;;  %v6885_v39 = vcvt.f32.s32 %v11048_v12 }
 0x59f   : > { %v6863_v28 = vand.u32 2147483647, %v6862_v62  ;;  %v6878_v10 = vcvt.s32.f32 %v6877_v53  ;;  %vm11092_vm8 = vcmp.lt.f32.partialorder %v6875_v49, 8388608.0  ;;  %v6880_v54 = vand.u32 2147483648, %v11044_v46 }
 0x5a0   : > { %v6871_v58 = vand.u32 2147483647, %v6870_v32  ;;  %v6891_v56 = vand.u32 2147483647, %v11052_v3  ;;  %v6886_v34 = vcvt.s32.f32 %v6885_v39  ;;  %v6893_v19 = vcvt.f32.s32 %v11052_v3 }
 0x5a1   : > { %v6865_v24 = vor.u32 %v6864_v35, %v6863_v28  ;;  %v6879_v47 = vand.u32 2147483647, %v6878_v10  ;;  %vm11099_vm9 = vcmp.lt.f32.partialorder %v6883_v31, 8388608.0  ;;  %v6888_v37 = vand.u32 2147483648, %v11048_v12 }
 0x5a2   : > { %v6873_v15 = vor.u32 %v6872_v1, %v6871_v58  ;;  %v6899_v11 = vand.u32 2147483647, %v11056_v5  ;;  %v6887_v49 = vand.u32 2147483647, %v6886_v34  ;;  %vm11105_vm10 = vcmp.lt.f32.partialorder %v6891_v56, 8388608.0 }
 0x5a3   : > { %v6881_v62 = vor.u32 %v6880_v54, %v6879_v47  ;;  %v6894_v35 = vcvt.s32.f32 %v6893_v19  ;;  %v6866_v32 = vsel %vm11081_vm6, %v6865_v24, %v11036_v20  ;;  %v6896_v31 = vand.u32 2147483648, %v11052_v3 }
 0x5a4   : > { %v6874_v1 = vsel %vm11087_vm7, %v6873_v15, %v11040_v22  ;;  %v6901_v28 = vcvt.f32.s32 %v11056_v5  ;;  %v6889_v10 = vor.u32 %v6888_v37, %v6887_v49  ;;  %vm11117_vm11 = vcmp.lt.f32.partialorder %v6899_v11, 8388608.0 }
 0x5a5   : > { %v6895_v39 = vand.u32 2147483647, %v6894_v35  ;;  %v6907_v54 = vand.u32 2147483647, %v11060_v27  ;;  %v6904_v23 = vand.u32 2147483648, %v11056_v5  ;;  %v6909_v20 = vcvt.f32.s32 %v11060_v27 }
 0x5a6   : > { %v6902_v56 = vcvt.s32.f32 %v6901_v28  ;;  %v6915_v38 = vand.u32 2147483647, %v11064_v59  ;;  %v6882_v22 = vsel %vm11092_vm8, %v6881_v62, %v11044_v46  ;;  %v6912_v47 = vand.u32 2147483648, %v11060_v27 }
 0x5a7   : > { %v6897_v24 = vor.u32 %v6896_v31, %v6895_v39  ;;  %v6917_v34 = vcvt.f32.s32 %v11064_v59  ;;  %v6890_v19 = vsel %vm11099_vm9, %v6889_v10, %v11048_v12  ;;  %vm11133_vm12 = vcmp.lt.f32.partialorder %v6907_v54, 8388608.0 }
 0x5a8   : > { %v6903_v15 = vand.u32 2147483647, %v6902_v56  ;;  %v6910_v11 = vcvt.s32.f32 %v6909_v20  ;;  %vm11137_vm13 = vcmp.lt.f32.partialorder %v6915_v38, 8388608.0  ;;  %v6920_v26 = vand.u32 2147483648, %v11064_v59 }
 0x5a9   : > { %v6918_v46 = vcvt.s32.f32 %v6917_v34  ;;  %v6925_v62 = vcvt.f32.s32 %v11070_v36  ;;  %v6898_v13 = vsel %vm11105_vm10, %v6897_v24, %v11052_v3  ;;  %v6923_v31 = vand.u32 2147483647, %v11070_v36 }
 0x5aa   : > { %v6905_v12 = vor.u32 %v6904_v23, %v6903_v15  ;;  %v6911_v35 = vand.u32 2147483647, %v6910_v11  ;;  %v6928_v39 = vand.u32 2147483648, %v11070_v36  ;;  %v6933_v54 = vcvt.f32.s32 %v11074_v4 }
 0x5ab   : > { %v6919_v28 = vand.u32 2147483647, %v6918_v46  ;;  %v6926_v10 = vcvt.s32.f32 %v6925_v62  ;;  %v6931_v38 = vand.u32 2147483647, %v11074_v4  ;;  %v6936_v53 = vand.u32 2147483648, %v11074_v4 }
 0x5ac   : > { %v6906_v56 = vsel %vm11117_vm11, %v6905_v12, %v11056_v5  ;;  %v6913_v20 = vor.u32 %v6912_v47, %v6911_v35  ;;  %v6934_v24 = vcvt.s32.f32 %v6933_v54  ;;  %v3989_v34 = vmul.f32 %v6866_v32, %v11024_v60 }
 0x5ad   : > { %v6921_v3 = vor.u32 %v6920_v26, %v6919_v28  ;;  %v6927_v23 = vand.u32 2147483647, %v6926_v10  ;;  %v3990_v11 = vmul.f32 %v6874_v1, %v11024_v60  ;;  %v3991_v46 = vmul.f32 %v6882_v22, %v11024_v60 }
 0x5ae   : > { %v6914_v15 = vsel %vm11133_vm12, %v6913_v20, %v11060_v27  ;;  %v3992_v5 = vmul.f32 %v6890_v19, %v11024_v60  ;;  %v6935_v26 = vand.u32 2147483647, %v6934_v24  ;;  %v3993_v62 = vmul.f32 %v6898_v13, %v11024_v60  ;;  %4030 = vst.msk [vmem:[#allocation2 + $0x10] sm:$0xff] %vm467_vm0, %v3989_v34 }
 0x5af   : > { %v6922_v58 = vsel %vm11137_vm13, %v6921_v3, %v11064_v59  ;;  %v6929_v47 = vor.u32 %v6928_v39, %v6927_v23  ;;  %vm6924_vm14 = vcmp.lt.f32.partialorder %v6923_v31, 8388608.0  ;;  %v3994_v32 = vmul.f32 %v6906_v56, %v11024_v60  ;;  %4031 = vst.msk [vmem:[#allocation2 + $0x18] sm:$0xff] %vm467_vm0, %v3990_v11 }
 0x5b0   : > { %v6937_v1 = vor.u32 %v6936_v53, %v6935_v26  ;;  %v3995_v22 = vmul.f32 %v6914_v15, %v11024_v60  ;;  %4032 = vst.msk [vmem:[#allocation2 + $0x20] sm:$0xff] %vm467_vm0, %v3991_v46  ;;  %vm6932_vm15 = vcmp.lt.f32.partialorder %v6931_v38, 8388608.0  ;;  %v3996_v59 = vmul.f32 %v6922_v58, %v11024_v60 }
 0x5b1   : > { %v6930_v27 = vsel %vm6924_vm14, %v6929_v47, %v11070_v36  ;;  %4033 = vst.msk [vmem:[#allocation2 + $0x28] sm:$0xff] %vm467_vm0, %v3992_v5 }
 0x5b2   : > { %v6938_v19 = vsel %vm6932_vm15, %v6937_v1, %v11074_v4  ;;  %v3997_v37 = vmul.f32 %v6930_v27, %v11024_v60  ;;  %4034 = vst.msk [vmem:[#allocation2 + $0x30] sm:$0xff] %vm467_vm0, %v3993_v62 }
 0x5b3   : > { %v3998_v49 = vmul.f32 %v6938_v19, %v11024_v60  ;;  %4035 = vst.msk [vmem:[#allocation2 + $0x38] sm:$0xff] %vm467_vm0, %v3994_v32 }
 0x5b4   : > { %4036 = vst.msk [vmem:[#allocation2 + $0x40] sm:$0xff] %vm467_vm0, %v3995_v22 }
 0x5b5   : > { %4037 = vst.msk [vmem:[#allocation2 + $0x48] sm:$0xff] %vm467_vm0, %v3996_v59  ;;  %v4071_v36 = vld [vmem:[#allocation2 + $0x10] sm:$0xff] }
 0x5b6   : > { %4038 = vst.msk [vmem:[#allocation2 + $0x50] sm:$0xff] %vm467_vm0, %v3997_v37  ;;  %v4072_v13 = vld [vmem:[#allocation2 + $0x18] sm:$0xff] }
 0x5b7   : > { %v4110_v12 = vld [vmem:[#allocation2 + $0x11] sm:$0xff]  ;;  %4039 = vst.msk [vmem:[#allocation2 + $0x58] sm:$0xff] %vm467_vm0, %v3998_v49  ;;  %v4073_v4 = vld [vmem:[#allocation2 + $0x20] sm:$0xff] }
 0x5b8   : > { %v4111_v35 = vld [vmem:[#allocation2 + $0x19] sm:$0xff]  ;;  %v4149_v31 = vmax.f32 %v4071_v36, %v4110_v12  ;;  %v4112_v28 = vld [vmem:[#allocation2 + $0x21] sm:$0xff] }
 0x5b9   : > { %v4150_v10 = vmax.f32 %v4072_v13, %v4111_v35  ;;  %v4188_v39 = vld [vmem:[#allocation2 + $0x22] sm:$0xff]  ;;  %v4075_v56 = vld [vmem:[#allocation2 + $0x30] sm:$0xff]  ;;  %v4151_v24 = vmax.f32 %v4073_v4, %v4112_v28 }
 0x5ba   : > { %v4227_v54 = vld [vmem:[#allocation2 + $0x23] sm:$0xff]  ;;  %v4228_v38 = vld [vmem:[#allocation2 + $0x2b] sm:$0xff]  ;;  %v4076_v3 = vld [vmem:[#allocation2 + $0x38] sm:$0xff] }
 0x5bb   : > { %v4189_v20 = vld [vmem:[#allocation2 + $0x2a] sm:$0xff]  ;;  %v4266_v53 = vmax.f32 %v4188_v39, %v4227_v54  ;;  %v4190_v34 = vld [vmem:[#allocation2 + $0x32] sm:$0xff]  ;;  %v4077_v11 = vld [vmem:[#allocation2 + $0x40] sm:$0xff] }
 0x5bc   : > { %v4114_v23 = vld [vmem:[#allocation2 + $0x31] sm:$0xff]  ;;  %v4267_v15 = vmax.f32 %v4189_v20, %v4228_v38  ;;  %v4115_v46 = vld [vmem:[#allocation2 + $0x39] sm:$0xff]  ;;  %v4116_v26 = vld [vmem:[#allocation2 + $0x41] sm:$0xff] }
 0x5bd   : > { %v4153_v5 = vmax.f32 %v4075_v56, %v4114_v23  ;;  %v4229_v58 = vld [vmem:[#allocation2 + $0x33] sm:$0xff]  ;;  %v4305_v47 = vmax.f32 %v4149_v31, %v4266_v53  ;;  %v4154_v62 = vmax.f32 %v4076_v3, %v4115_v46  ;;  %v4192_v32 = vld [vmem:[#allocation2 + $0x42] sm:$0xff]  ;;  %v4155_v59 = vmax.f32 %v4077_v11, %v4116_v26  ;;  %v4193_v19 = vld [vmem:[#allocation2 + $0x4a] sm:$0xff] }
 0x5be   : > { %v4231_v27 = vld [vmem:[#allocation2 + $0x43] sm:$0xff]  ;;  %v4268_v1 = vmax.f32 %v4190_v34, %v4229_v58  ;;  %v4306_v22 = vmax.f32 %v4150_v10, %v4267_v15  ;;  %v4232_v37 = vld [vmem:[#allocation2 + $0x4b] sm:$0xff]  ;;  %v4233_v13 = vld [vmem:[#allocation2 + $0x53] sm:$0xff]  ;;  %v11212_v11 = vmul.f32 %v11032_v21, %v10798_v29  ;;  %v11216_v46 = vmul.f32 %v11032_v21, %v10791_v61 }
 0x5bf   : > { %v4270_v49 = vmax.f32 %v4192_v32, %v4231_v27  ;;  %4344 = vst.msk [vmem:[#allocation3 + $0x10] sm:$0xff] %vm467_vm0, %v4305_v47  ;;  %v4194_v36 = vld [vmem:[#allocation2 + $0x52] sm:$0xff]  ;;  %v4271_v12 = vmax.f32 %v4193_v19, %v4232_v37  ;;  %v13660_v56 = vld [vmem:[#allocation17_spill] sm:$0xff]  ;;  %v11228_v47 = vmul.f32 %v11032_v21, %v10861_v17  ;;  %v11232_v29 = vmul.f32 %v11032_v21, %v10850_v40 }
 0x5c0   : > { %v4307_v4 = vmax.f32 %v4151_v24, %v4268_v1  ;;  %4345 = vst.msk [vmem:[#allocation3 + $0x18] sm:$0xff] %vm467_vm0, %v4306_v22  ;;  %v4272_v35 = vmax.f32 %v4194_v36, %v4233_v13  ;;  %v11192_v20 = vmul.f32 %v11032_v21, %v13660_v56  ;;  %v13661_v38 = vld [vmem:[#allocation83_spill] sm:$0xff]  ;;  %v13662_v3 = vld [vmem:[#allocation28_spill] sm:$0xff]  ;;  %v11204_v24 = vmul.f32 %v11032_v21, %v10768_v0  ;;  %v13663_v34 = vld [vmem:[#allocation97_spill] sm:$0xff] }
 0x5c1   : > { %v4309_v31 = vmax.f32 %v4153_v5, %v4270_v49  ;;  %v4310_v28 = vmax.f32 %v4154_v62, %v4271_v12  ;;  %v11196_v53 = vmul.f32 %v11032_v21, %v13661_v38  ;;  %v11200_v23 = vmul.f32 %v11032_v21, %v13662_v3 }
 0x5c2   : > { %4346 = vst.msk [vmem:[#allocation3 + $0x20] sm:$0xff] %vm467_vm0, %v4307_v4  ;;  %v4311_v39 = vmax.f32 %v4155_v59, %v4272_v35  ;;  %v11208_v15 = vmul.f32 %v11032_v21, %v13663_v34  ;;  %v11220_v5 = vmul.f32 %v11032_v21, %v10841_v18  ;;  %v11224_v0 = vmul.f32 %v11032_v21, %v10786_v42 }
 0x5c3   : > { %4348 = vst.msk [vmem:[#allocation3 + $0x30] sm:$0xff] %vm467_vm0, %v4309_v31  ;;  %v11238_v61 = vmul.f32 %v11032_v21, %v10888_v7  ;;  %v11242_v18 = vmul.f32 %v11032_v21, %v10880_v52  ;;  %v11246_v42 = vmul.f32 %v11032_v21, %v10856_v43  ;;  %v11250_v17 = vmul.f32 %v11032_v21, %v10893_v45 }
 0x5c4   : > { %4349 = vst.msk [vmem:[#allocation3 + $0x38] sm:$0xff] %vm467_vm0, %v4310_v28  ;;  %v11254_v62 = vmul.f32 %v11032_v21, %v10902_v2  ;;  %v11258_v7 = vmul.f32 %v11032_v21, %v10875_v63  ;;  %v11262_v52 = vmul.f32 %v11032_v21, %v10916_v55  ;;  %v11266_v43 = vmul.f32 %v11032_v21, %v10907_v30 }
 0x5c5   : > { %4350 = vst.msk [vmem:[#allocation3 + $0x40] sm:$0xff] %vm467_vm0, %v4311_v39  ;;  %v11272_v2 = vmul.f32 %v11032_v21, %v10919_v8  ;;  %v11276_v63 = vmul.f32 %v11032_v21, %v10931_v16  ;;  %v11280_v55 = vmul.f32 %v11032_v21, %v10929_v9  ;;  %v11284_v30 = vmul.f32 %v11032_v21, %v10935_v25 }
 0x5c6   : > { %13664 = vst [vmem:[#allocation99_spill] sm:$0xff] %v11262_v52  ;;  %v11288_v27 = vmul.f32 %v11032_v21, %v10948_v57  ;;  %v11292_v8 = vmul.f32 %v11032_v21, %v10944_v33  ;;  %v11296_v16 = vmul.f32 %v11032_v21, %v10962_v50  ;;  %v11301_v9 = vmul.f32 %v11032_v21, %v10950_v6 }
 0x5c7   : > { %13665 = vst [vmem:[#allocation100_spill] sm:$0xff] %v11266_v43  ;;  %v11305_v25 = vmul.f32 %v11032_v21, %v10956_v48  ;;  %v11309_v57 = vmul.f32 %v11032_v21, %v10970_v41  ;;  %v11313_v33 = vmul.f32 %v11032_v21, %v10980_v51  ;;  %v11317_v50 = vmul.f32 %v11032_v21, %v10976_v44 }
 0x5c8   : > { %13666 = vst [vmem:[#allocation101_spill] sm:$0xff] %v11272_v2  ;;  %v6843_v1 = vand.u32 2147483647, %v11192_v20  ;;  %v6845_v6 = vcvt.f32.s32 %v11192_v20  ;;  %v6853_v41 = vcvt.f32.s32 %v11196_v53  ;;  %v6941_v37 = vcvt.f32.s32 %v11200_v23 }
 0x5c9   : > { %v4383_v10 = vld [vmem:[#allocation3 + $0x13] ss:$2 sm:$0xff]  ;;  %13667 = vst [vmem:[#allocation102_spill] sm:$0xff] %v11276_v63  ;;  %v6949_v49 = vcvt.f32.s32 %v11204_v24  ;;  %v6957_v12 = vcvt.f32.s32 %v11208_v15  ;;  %v6965_v31 = vcvt.f32.s32 %v11212_v11  ;;  %v6973_v28 = vcvt.f32.s32 %v11216_v46 }
 0x5ca   : > { %4384 = vst.msk [vmem:[#allocation4 + $0x16] sm:$0xff] %vm467_vm0, %v4383_v10  ;;  %v6981_v56 = vcvt.f32.s32 %v11220_v5  ;;  %v7005_v39 = vcvt.f32.s32 %v11232_v29  ;;  %v7013_v36 = vcvt.f32.s32 %v11238_v61  ;;  %v7101_v59 = vcvt.f32.s32 %v11284_v30 }
 0x5cb   : > { %13668 = vst [vmem:[#allocation103_spill] sm:$0xff] %v11284_v30  ;;  %v7109_v4 = vcvt.f32.s32 %v11288_v27  ;;  %v7117_v21 = vcvt.f32.s32 %v11292_v8  ;;  %v7125_v10 = vcvt.f32.s32 %v11296_v16  ;;  %v7133_v35 = vcvt.f32.s32 %v11301_v9 }
 0x5cc   : > { %v4386_v54 = vld [vmem:[#allocation3 + $0x37] ss:$2 sm:$0xff]  ;;  %13669 = vst [vmem:[#allocation104_spill] sm:$0xff] %v11288_v27  ;;  %v7141_v38 = vcvt.f32.s32 %v11305_v25  ;;  %v7157_v51 = vcvt.f32.s32 %v11313_v33  ;;  %v6854_v48 = vcvt.s32.f32 %v6853_v41  ;;  %v6950_v19 = vcvt.s32.f32 %v6949_v49 }
 0x5cd   : > { %4387 = vst.msk [vmem:[#allocation4 + $0x20] sm:$0xff] %vm467_vm0, %v4386_v54  ;;  %v6958_v3 = vcvt.s32.f32 %v6957_v12  ;;  %v11432_v54 = vcvt.s32.f32 %v6973_v28  ;;  %v11448_v49 = vcvt.s32.f32 %v7005_v39  ;;  %v11452_v12 = vcvt.s32.f32 %v7013_v36 }
 0x5ce   : > { %13670 = vst [vmem:[#allocation105_spill] sm:$0xff] %v11292_v8  ;;  %vm11456_vm2 = vcmp.lt.f32.partialorder %v6843_v1, 8388608.0  ;;  %v13681_v39 = vcvt.f32.s32 %v11250_v17  ;;  %v13682_v36 = vcvt.f32.s32 %v11254_v62  ;;  %v13683_v1 = vand.u32 2147483647, %v11196_v53 }
 0x5cf   : > { %13671 = vst [vmem:[#allocation106_spill] sm:$0xff] %v11296_v16  ;;  %v13693_v8 = vand.u32 2147483647, %v11204_v24  ;;  %v13697_v27 = vcvt.f32.s32 %v11276_v63  ;;  %v6855_v30 = vand.u32 2147483647, %v6854_v48 }
 0x5d0   : > { %13672 = vst [vmem:[#allocation107_spill] sm:$0xff] %v11301_v9  ;;  %vm11480_vm3 = vcmp.lt.f32.partialorder %v13683_v1, 8388608.0  ;;  %v6959_v63 = vand.u32 2147483647, %v6958_v3  ;;  %v6975_v3 = vand.u32 2147483647, %v11432_v54 }
 0x5d1   : > { %v4910_v58 = vld [vmem:[#allocation4 + $0x14] sm:$0xff]  ;;  %13673 = vst [vmem:[#allocation108_spill] sm:$0xff] %v11305_v25  ;;  %vm11504_vm5 = vcmp.lt.f32.partialorder %v13693_v8, 8388608.0  ;;  %v13702_v8 = vcvt.f32.s32 %v11280_v55 }
 0x5d2   : > { %v11234_v26 = vpack.c.bf16 %v4910_v58, %v4910_v58  ;;  %v4632_v32 = vld [vmem:[#allocation4 + $0x12] sm:$0xff]  ;;  %13674 = vst [vmem:[#allocation109_spill] sm:$0xff] %v11309_v57  ;;  %v6989_v58 = vcvt.f32.s32 %v11224_v0 }
 0x5d3   : > { %13675 = vst [vmem:[#allocation110_spill] sm:$0xff] %v11313_v33  ;;  %v11321_v22 = vpack.c.bf16 %v4632_v32, %v4632_v32  ;;  %v6997_v32 = vcvt.f32.s32 %v11228_v47  ;;  %v4725_v44 = vld [vmem:[#allocation4 + $0x13] sm:$0xff]  ;;  %v13740_v33 = vand.u32 2147483647, %v11246_v42 }
 0x5d4   : > { %v4911_v40 = vld [vmem:[#allocation4 + $0x1c] sm:$0xff]  ;;  %4949 = vrot.lane.b32.xlu2 %v11234_v26, %s7380_s26  ;;  %13676 = vst [vmem:[#allocation111_spill] sm:$0xff] %v11317_v50  ;;  %v4738_v14 = vpack.c.bf16 %v4725_v44, %v4725_v44  ;;  %v7149_v44 = vcvt.f32.s32 %v11309_v57  ;;  %v11440_v41 = vcvt.s32.f32 %v6989_v58 }
 0x5d5   : > { %v4924_v45 = vpack.c.bf16 %v4911_v40, %v4911_v40  ;;  %13677 = vst [vmem:[#allocation112_spill] sm:$0xff] %v11321_v22  ;;  %4672 = vrot.lane.b32.xlu1 %v11321_v22, %s7377_s22  ;;  %v5004_v13 = vld [vmem:[#allocation4 + $0x1d] sm:$0xff]  ;;  %v6942_v40 = vcvt.s32.f32 %v6941_v37  ;;  %v11444_v37 = vcvt.s32.f32 %v6997_v32  ;;  %v11470_v32 = vcvt.s32.f32 %v13681_v39 }
 0x5d6   : > { %v5017_v34 = vpack.c.bf16 %v5004_v13, %v5004_v13  ;;  %v7165_v13 = vcvt.f32.s32 %v11317_v50  ;;  %v11474_v50 = vcvt.s32.f32 %v13682_v36  ;;  %v13689_v39 = vcvt.f32.s32 %v11258_v7  ;;  %v4448_v16 = vld [vmem:[#allocation4 + $0x19] sm:$0xff] }
 0x5d7   : > { %4951 = vrot.lane.b32.xlu0 %v4924_v45, %s7380_s26  ;;  %v7021_v45 = vcvt.f32.s32 %v11242_v18  ;;  %v13690_v36 = vcvt.f32.s32 %v11262_v52  ;;  %v13696_v22 = vcvt.f32.s32 %v11272_v2  ;;  %v11526_v52 = vcvt.s32.f32 %v7101_v59 }
 0x5d8   : > { %v11492_v57 = vcvt.s32.f32 %v13689_v39  ;;  %v6951_v2 = vand.u32 2147483647, %v6950_v19  ;;  %v11548_v19 = vcvt.s32.f32 %v7141_v38  ;;  %v13717_v38 = vand.u32 2147483648, %v11200_v23 }
 0x5d9   : > { %v11462_v28 = vcvt.s32.f32 %v7021_v45  ;;  %v11496_v25 = vcvt.s32.f32 %v13690_v36  ;;  %v11510_v39 = vcvt.s32.f32 %v13696_v22  ;;  %v11514_v36 = vcvt.s32.f32 %v13697_v27  ;;  %13703 = vst [vmem:[#allocation114_spill] sm:$0xff] %v11526_v52 }
 0x5da   : > { %v11528_v22 = vcvt.s32.f32 %v7109_v4  ;;  %v13705_v27 = vand.u32 2147483647, %v11212_v11  ;;  %v11546_v4 = vcvt.s32.f32 %v7133_v35  ;;  %13711 = vst [vmem:[#allocation116_spill] sm:$0xff] %v11548_v19  ;;  %vm11633_vm15 = vcmp.lt.f32.partialorder %v13740_v33, 8388608.0 }
 0x5db   : > { %13698 = vst [vmem:[#allocation21_spill] sm:$0xff] %v11514_v36  ;;  %v4461_v36 = vpack.c.bf16 %v4448_v16, %v4448_v16  ;;  %v11558_v16 = vcvt.s32.f32 %v7149_v44  ;;  %v11574_v44 = vcvt.s32.f32 %v7165_v13  ;;  %v13727_v13 = vand.u32 2147483648, %v11208_v15 }
 0x5dc   : > { %13704 = vst [vmem:[#allocation115_spill] sm:$0xff] %v11528_v22  ;;  %vm11532_vm7 = vcmp.lt.f32.partialorder %v13705_v27, 8388608.0  ;;  %v13712_v22 = vand.u32 2147483648, %v11192_v20  ;;  %v13743_v45 = vand.u32 2147483648, %v11224_v0 }
 0x5dd   : > { %4765 = vrot.lane.b32.xlu1 %v4738_v14, %s7378_s24  ;;  %v6846_v14 = vcvt.s32.f32 %v6845_v6  ;;  %v11436_v6 = vcvt.s32.f32 %v6981_v56  ;;  %v13680_v56 = vcvt.f32.s32 %v11246_v42  ;;  %4490 = vrot.lane.b32.xlu2 %v4461_v36, %s7375_s20  ;;  %13722 = vst [vmem:[#allocation118_spill] sm:$0xff] %v11574_v44  ;;  %v6991_v36 = vand.u32 2147483647, %v11440_v41 }
 0x5df   : > { %5044 = vrot.lane.b32.xlu0 %v5017_v34, %s7381_s27  ;;  %v6966_v34 = vcvt.s32.f32 %v6965_v31  ;;  %v11466_v58 = vcvt.s32.f32 %v13680_v56  ;;  %v13686_v56 = vand.u32 2147483647, %v11200_v23  ;;  %v6847_v9 = vand.u32 2147483647, %v6846_v14 }
 0x5e0   : > { %v6983_v54 = vand.u32 2147483647, %v11436_v6  ;;  %v13728_v6 = vand.u32 2147483647, %v11232_v29  ;;  %v13748_v14 = vand.u32 2147483647, %v11254_v62 }
 0x5e1   : > { %vm11486_vm4 = vcmp.lt.f32.partialorder %v13686_v56, 8388608.0  ;;  %v6967_v27 = vand.u32 2147483647, %v6966_v34  ;;  %v6849_v52 = vor.u32 %v13712_v22, %v6847_v9  ;;  %v13718_v9 = vand.u32 2147483647, %v11224_v0 }
 0x5e2   : > { %v11572_v22 = vcvt.s32.f32 %v7157_v51  ;;  %v7007_v51 = vand.u32 2147483647, %v11448_v49  ;;  %vm11592_vm12 = vcmp.lt.f32.partialorder %v13728_v6, 8388608.0  ;;  %v5097_v49 = vld [vmem:[#allocation4 + $0x1e] sm:$0xff]  ;;  %v7031_v6 = vand.u32 2147483647, %v11466_v58 }
 0x5e3   : > { %vm11568_vm10 = vcmp.lt.f32.partialorder %v13718_v9, 8388608.0  ;;  %v6961_v9 = vor.u32 %v13727_v13, %v6959_v63  ;;  %v13732_v63 = vand.u32 2147483647, %v11238_v61  ;;  %v7047_v58 = vand.u32 2147483647, %v11474_v50 }
 0x5e4   : > { %13721 = vst [vmem:[#allocation117_spill] sm:$0xff] %v11572_v22  ;;  %v13747_v56 = vand.u32 2147483648, %v11228_v47 }
 0x5e5   : > { %4858 = vrot.lane.b32.xlu1 %v11234_v26, %s7379_s25  ;;  %v13691_v26 = vcvt.f32.s32 %v11266_v43  ;;  %v6943_v43 = vand.u32 2147483647, %v6942_v40  ;;  %v11536_v40 = vcvt.s32.f32 %v7117_v21  ;;  %v13713_v21 = vand.u32 2147483647, %v11220_v5 }
 0x5e6   : > { %vm11605_vm13 = vcmp.lt.f32.partialorder %v13732_v63, 8388608.0 }
 0x5e7   : > { %v11500_v1 = vcvt.s32.f32 %v13691_v26  ;;  %v13699_v26 = vand.u32 2147483647, %v11208_v15  ;;  %vm11554_vm9 = vcmp.lt.f32.partialorder %v13713_v21, 8388608.0  ;;  %v6945_v19 = vor.u32 %v13717_v38, %v6943_v43 }
 0x5e8   : > { %v13723_v21 = vand.u32 2147483648, %v11204_v24  ;;  %v6999_v38 = vand.u32 2147483647, %v11444_v37  ;;  %v6850_v37 = vsel %vm11456_vm2, %v6849_v52, %v11192_v20  ;;  %v13736_v52 = vand.u32 2147483647, %v11242_v18 }
 0x5e9   : > { %13692 = vst [vmem:[#allocation113_spill] sm:$0xff] %v11500_v1  ;;  %vm11518_vm6 = vcmp.lt.f32.partialorder %v13699_v26, 8388608.0  ;;  %v11524_v1 = vcvt.s32.f32 %v13702_v8  ;;  %v11538_v26 = vcvt.s32.f32 %v7125_v10  ;;  %v13708_v8 = vand.u32 2147483647, %v11216_v46 }
 0x5ea   : > { %v6946_v20 = vsel %vm11486_vm4, %v6945_v19, %v11200_v23  ;;  %vm11620_vm14 = vcmp.lt.f32.partialorder %v13736_v52, 8388608.0  ;;  %v6993_v19 = vor.u32 %v13743_v45, %v6991_v36  ;;  %v6962_v50 = vsel %vm11518_vm6, %v6961_v9, %v11208_v15 }
 0x5eb   : > { %vm11542_vm8 = vcmp.lt.f32.partialorder %v13708_v8, 8388608.0  ;;  %v13716_v8 = vand.u32 2147483648, %v11196_v53  ;;  %v3999_v15 = vmul.f32 %v6946_v20, %v11024_v60  ;;  %v4001_v59 = vmul.f32 %v6962_v50, %v11024_v60 }
 0x5ec   : > { %v6994_v10 = vsel %vm11568_vm10, %v6993_v19, %v11224_v0  ;;  %v7079_v50 = vand.u32 2147483647, %v11510_v39  ;;  %v13767_v19 = vld [vmem:[#allocation101_spill] sm:$0xff]  ;;  %v7127_v9 = vand.u32 2147483647, %v11538_v26 }
 0x5ed   : > { %v6857_v35 = vor.u32 %v13716_v8, %v6855_v30  ;;  %v6953_v30 = vor.u32 %v13723_v21, %v6951_v2  ;;  %v13724_v8 = vand.u32 2147483647, %v11228_v47  ;;  %v7015_v2 = vand.u32 2147483647, %v11452_v12  ;;  %4040 = vst.msk [vmem:[#allocation2 + $0x60] sm:$0xff] %vm467_vm0, %v3999_v15 }
 0x5ee   : > { %v7023_v21 = vand.u32 2147483647, %v11462_v28  ;;  %v13735_v12 = vand.u32 2147483648, %v11216_v46  ;;  %4042 = vst.msk [vmem:[#allocation2 + $0x70] sm:$0xff] %vm467_vm0, %v4001_v59  ;;  %v13786_v59 = vld [vmem:[#allocation114_spill] sm:$0xff] }
 0x5ef   : > { %vm11581_vm11 = vcmp.lt.f32.partialorder %v13724_v8, 8388608.0  ;;  %v13731_v8 = vand.u32 2147483648, %v11212_v11  ;;  %v6858_v28 = vsel %vm11480_vm3, %v6857_v35, %v11196_v53  ;;  %v6954_v53 = vsel %vm11504_vm5, %v6953_v30, %v11204_v24 }
 0x5f0   : > { %v6977_v22 = vor.u32 %v13735_v12, %v6975_v3  ;;  %v13739_v3 = vand.u32 2147483648, %v11220_v5  ;;  %v3987_v35 = vmul.f32 %v6850_v37, %v11024_v60  ;;  %v7001_v30 = vor.u32 %v13747_v56, %v6999_v38 }
 0x5f1   : > { %v6969_v41 = vor.u32 %v13731_v8, %v6967_v27  ;;  %v7039_v27 = vand.u32 2147483647, %v11470_v32  ;;  %v5110_v32 = vpack.c.bf16 %v5097_v49, %v5097_v49  ;;  %v3988_v63 = vmul.f32 %v6858_v28, %v11024_v60 }
 0x5f2   : > { %v6985_v8 = vor.u32 %v13739_v3, %v6983_v54  ;;  %v13744_v54 = vand.u32 2147483647, %v11250_v17  ;;  %vm11658_vm3 = vcmp.lt.f32.partialorder %v13748_v14, 8388608.0  ;;  %v7055_v37 = vand.u32 2147483647, %v11492_v57  ;;  %4028 = vst.msk [vmem:[#allocation2] sm:$0xff] %vm467_vm0, %v3987_v35 }
 0x5f3   : > { %v6970_v36 = vsel %vm11532_vm7, %v6969_v41, %v11212_v11  ;;  %v13751_v49 = vand.u32 2147483648, %v11232_v29  ;;  %v6978_v48 = vsel %vm11542_vm8, %v6977_v22, %v11216_v46  ;;  %5137 = vrot.lane.b32.xlu0 %v5110_v32, %s7382_s19  ;;  %v4000_v11 = vmul.f32 %v6954_v53, %v11024_v60  ;;  %v13756_v22 = vld [vmem:[#allocation99_spill] sm:$0xff]  ;;  %v13760_v3 = vld [vmem:[#allocation113_spill] sm:$0xff]  ;;  %4029 = vst.msk [vmem:[#allocation2 + $0x8] sm:$0xff] %vm467_vm0, %v3988_v63 }
 0x5f4   : > { %vm11645_vm2 = vcmp.lt.f32.partialorder %v13744_v54, 8388608.0  ;;  %v13752_v38 = vand.u32 2147483647, %v11258_v7  ;;  %v7063_v57 = vand.u32 2147483647, %v11496_v25  ;;  %v13755_v28 = vand.u32 2147483648, %v11238_v61 }
 0x5f5   : > { %v7009_v12 = vor.u32 %v13751_v49, %v7007_v51  ;;  %v6986_v46 = vsel %vm11554_vm9, %v6985_v8, %v11220_v5  ;;  %v13757_v20 = vand.u32 2147483647, %v13756_v22  ;;  %v7071_v53 = vand.u32 2147483647, %v13760_v3  ;;  %4041 = vst.msk [vmem:[#allocation2 + $0x68] sm:$0xff] %vm467_vm0, %v4000_v11 }
 0x5f6   : > { %vm11672_vm4 = vcmp.lt.f32.partialorder %v13752_v38, 8388608.0  ;;  %v7017_v51 = vor.u32 %v13755_v28, %v7015_v2  ;;  %v13761_v25 = vand.u32 2147483648, %v11242_v18  ;;  %v4002_v5 = vmul.f32 %v6970_v36, %v11024_v60  ;;  %v13762_v2 = vld [vmem:[#allocation100_spill] sm:$0xff]  ;;  %v13771_v36 = vld [vmem:[#allocation21_spill] sm:$0xff]  ;;  %v13782_v28 = vld [vmem:[#allocation103_spill] sm:$0xff] }
 0x5f7   : > { %vm11686_vm5 = vcmp.lt.f32.partialorder %v13757_v20, 8388608.0  ;;  %v13763_v8 = vand.u32 2147483647, %v13762_v2  ;;  %v13766_v32 = vand.u32 2147483648, %v11246_v42  ;;  %v7002_v34 = vsel %vm11581_vm11, %v7001_v30, %v11228_v47  ;;  %v13773_v30 = vld [vmem:[#allocation102_spill] sm:$0xff] }
 0x5f8   : > { %v7025_v33 = vor.u32 %v13761_v25, %v7023_v21  ;;  %v4003_v0 = vmul.f32 %v6978_v48, %v11024_v60  ;;  %v4633_v21 = vld [vmem:[#allocation4 + $0x1a] sm:$0xff]  ;;  %v13768_v54 = vand.u32 2147483647, %v13767_v19  ;;  %v7087_v39 = vand.u32 2147483647, %v13771_v36  ;;  %4043 = vst.msk [vmem:[#allocation2 + $0x78] sm:$0xff] %vm467_vm0, %v4002_v5 }
 0x5f9   : > { %vm11700_vm6 = vcmp.lt.f32.partialorder %v13763_v8, 8388608.0  ;;  %v7033_v35 = vor.u32 %v13766_v32, %v7031_v6  ;;  %v13772_v63 = vand.u32 2147483648, %v11250_v17  ;;  %v7010_v47 = vsel %vm11592_vm12, %v7009_v12, %v11232_v29  ;;  %v13788_v25 = vld [vmem:[#allocation104_spill] sm:$0xff]  ;;  %v13794_v32 = vld [vmem:[#allocation115_spill] sm:$0xff] }
 0x5fa   : > { %vm11714_vm7 = vcmp.lt.f32.partialorder %v13768_v54, 8388608.0  ;;  %v4004_v43 = vmul.f32 %v6986_v46, %v11024_v60  ;;  %v13774_v15 = vand.u32 2147483647, %v13773_v30  ;;  %v7095_v49 = vand.u32 2147483647, %v11524_v1  ;;  %4044 = vst.msk [vmem:[#allocation2 + $0x80] sm:$0xff] %vm467_vm0, %v4003_v0 }
 0x5fb   : > { %v7041_v6 = vor.u32 %v13772_v63, %v7039_v27  ;;  %v13777_v48 = vand.u32 2147483648, %v11254_v62  ;;  %v7018_v44 = vsel %vm11605_vm13, %v7017_v51, %v11238_v61  ;;  %v4005_v29 = vmul.f32 %v6994_v10, %v11024_v60 }
 0x5fc   : > { %vm11728_vm8 = vcmp.lt.f32.partialorder %v13774_v15, 8388608.0  ;;  %v13778_v27 = vand.u32 2147483647, %v11280_v55  ;;  %v13781_v11 = vand.u32 2147483648, %v11258_v7  ;;  %v4006_v13 = vmul.f32 %v7002_v34, %v11024_v60  ;;  %4045 = vst.msk [vmem:[#allocation2 + $0x88] sm:$0xff] %vm467_vm0, %v4004_v43  ;;  %v13799_v43 = vld [vmem:[#allocation116_spill] sm:$0xff] }
 0x5fd   : > { %v7049_v38 = vor.u32 %v13777_v48, %v7047_v58  ;;  %v7026_v58 = vsel %vm11620_vm14, %v7025_v33, %v11242_v18  ;;  %v11753_v61 = vpack.c.bf16 %v4633_v21, %v4633_v21  ;;  %v13783_v51 = vand.u32 2147483647, %v13782_v28  ;;  %4046 = vst.msk [vmem:[#allocation2 + $0x90] sm:$0xff] %vm467_vm0, %v4005_v29 }
 0x5fe   : > { %vm11742_vm9 = vcmp.lt.f32.partialorder %v13778_v27, 8388608.0  ;;  %v7057_v1 = vor.u32 %v13781_v11, %v7055_v37  ;;  %v7103_v20 = vand.u32 2147483647, %v13786_v59  ;;  %v13787_v37 = vand.u32 2147483648, %v13756_v22  ;;  %4047 = vst.msk [vmem:[#allocation2 + $0x98] sm:$0xff] %vm467_vm0, %v4006_v13  ;;  %v13803_v27 = vld [vmem:[#allocation117_spill] sm:$0xff] }
 0x5ff   : > { %vm11757_vm10 = vcmp.lt.f32.partialorder %v13783_v51, 8388608.0  ;;  %v7034_v18 = vsel %vm11633_vm15, %v7033_v35, %v11246_v42  ;;  %v4007_v31 = vmul.f32 %v7010_v47, %v11024_v60  ;;  %v13789_v33 = vand.u32 2147483647, %v13788_v25  ;;  %4674 = vrot.lane.b32.xlu2 %v11753_v61, %s7377_s22  ;;  %v13793_v42 = vld [vmem:[#allocation112_spill] sm:$0xff]  ;;  %v13806_v13 = vld [vmem:[#allocation118_spill] sm:$0xff] }
 0x600   : > { %v7065_v3 = vor.u32 %v13787_v37, %v7063_v57  ;;  %v13792_v5 = vand.u32 2147483648, %v13762_v2  ;;  %v7042_v57 = vsel %vm11645_vm2, %v7041_v6, %v11250_v17  ;;  %v4008_v23 = vmul.f32 %v7018_v44, %v11024_v60  ;;  %4581 = vrot.lane.b32.xlu0 %v13793_v42, %s7376_s21 }
 0x601   : > { %vm11771_vm11 = vcmp.lt.f32.partialorder %v13789_v33, 8388608.0  ;;  %v7111_v35 = vand.u32 2147483647, %v13794_v32  ;;  %v13795_v34 = vand.u32 2147483648, %v13767_v19  ;;  %v7050_v24 = vsel %vm11658_vm3, %v7049_v38, %v11254_v62  ;;  %4048 = vst.msk [vmem:[#allocation2 + $0xa0] sm:$0xff] %vm467_vm0, %v4007_v31 }
 0x602   : > { %v7073_v8 = vor.u32 %v13792_v5, %v7071_v53  ;;  %v4009_v17 = vmul.f32 %v7026_v58, %v11024_v60  ;;  %v7119_v53 = vand.u32 2147483647, %v11536_v40  ;;  %v13796_v21 = vand.u32 2147483648, %v13773_v30  ;;  %4049 = vst.msk [vmem:[#allocation2 + $0xa8] sm:$0xff] %vm467_vm0, %v4008_v23 }
 0x603   : > { %v7081_v0 = vor.u32 %v13795_v34, %v7079_v50  ;;  %v7058_v36 = vsel %vm11672_vm4, %v7057_v1, %v11258_v7  ;;  %v4010_v63 = vmul.f32 %v7034_v18, %v11024_v60  ;;  %v13797_v62 = vand.u32 2147483648, %v11280_v55 }
 0x604   : > { %v7089_v54 = vor.u32 %v13796_v21, %v7087_v39  ;;  %v7066_v40 = vsel %vm11686_vm5, %v7065_v3, %v13756_v22  ;;  %v4011_v6 = vmul.f32 %v7042_v57, %v11024_v60  ;;  %v7135_v41 = vand.u32 2147483647, %v11546_v4  ;;  %4050 = vst.msk [vmem:[#allocation2 + $0xb0] sm:$0xff] %vm467_vm0, %v4009_v17  ;;  %v13812_v3 = vld [vmem:[#allocation108_spill] sm:$0xff] }
 0x605   : > { %v7097_v50 = vor.u32 %v13797_v62, %v7095_v49  ;;  %v13798_v7 = vand.u32 2147483648, %v13782_v28  ;;  %v7074_v26 = vsel %vm11700_vm6, %v7073_v8, %v13762_v2  ;;  %v4012_v47 = vmul.f32 %v7050_v24, %v11024_v60  ;;  %v13801_v2 = vld [vmem:[#allocation105_spill] sm:$0xff]  ;;  %4051 = vst.msk [vmem:[#allocation2 + $0xb8] sm:$0xff] %vm467_vm0, %v4010_v63 }
 0x606   : > { %v7143_v52 = vand.u32 2147483647, %v13799_v43  ;;  %v13800_v22 = vand.u32 2147483648, %v13788_v25  ;;  %v7082_v4 = vsel %vm11714_vm7, %v7081_v0, %v13767_v19  ;;  %v4013_v49 = vmul.f32 %v7058_v36, %v11024_v60  ;;  %v13804_v19 = vld [vmem:[#allocation106_spill] sm:$0xff]  ;;  %4052 = vst.msk [vmem:[#allocation2 + $0xc0] sm:$0xff] %vm467_vm0, %v4011_v6  ;;  %v13817_v8 = vld [vmem:[#allocation109_spill] sm:$0xff] }
 0x607   : > { %v7105_v39 = vor.u32 %v13798_v7, %v7103_v20  ;;  %v7151_v45 = vand.u32 2147483647, %v11558_v16  ;;  %v13802_v48 = vand.u32 2147483648, %v13801_v2  ;;  %v7090_v44 = vsel %vm11728_vm8, %v7089_v54, %v13773_v30  ;;  %v13807_v30 = vld [vmem:[#allocation107_spill] sm:$0xff]  ;;  %4053 = vst.msk [vmem:[#allocation2 + $0xc8] sm:$0xff] %vm467_vm0, %v4012_v47 }
 0x608   : > { %v7113_v15 = vor.u32 %v13800_v22, %v7111_v35  ;;  %v4014_v29 = vmul.f32 %v7066_v40, %v11024_v60  ;;  %v7159_v56 = vand.u32 2147483647, %v13803_v27  ;;  %v13805_v11 = vand.u32 2147483648, %v13804_v19  ;;  %4054 = vst.msk [vmem:[#allocation2 + $0xd0] sm:$0xff] %vm467_vm0, %v4013_v49  ;;  %v13822_v35 = vld [vmem:[#allocation110_spill] sm:$0xff]  ;;  %v13827_v54 = vld [vmem:[#allocation111_spill] sm:$0xff] }
 0x609   : > { %v7121_v38 = vor.u32 %v13802_v48, %v7119_v53  ;;  %v7098_v16 = vsel %vm11742_vm9, %v7097_v50, %v11280_v55  ;;  %v4015_v58 = vmul.f32 %v7074_v26, %v11024_v60  ;;  %v7167_v14 = vand.u32 2147483647, %v13806_v13  ;;  %v4082_v48 = vld [vmem:[#allocation2 + $0x68] sm:$0xff]  ;;  %v4202_v13 = vld [vmem:[#allocation2 + $0x92] sm:$0xff]  ;;  %v4242_v5 = vld [vmem:[#allocation2 + $0x9b] sm:$0xff] }
 0x60a   : > { %v7129_v1 = vor.u32 %v13805_v11, %v7127_v9  ;;  %v13808_v51 = vand.u32 2147483648, %v13807_v30  ;;  %v7106_v20 = vsel %vm11757_vm10, %v7105_v39, %v13782_v28  ;;  %v4016_v37 = vmul.f32 %v7082_v4, %v11024_v60  ;;  %4055 = vst.msk [vmem:[#allocation2 + $0xd8] sm:$0xff] %vm467_vm0, %v4014_v29  ;;  %v4121_v29 = vld [vmem:[#allocation2 + $0x69] sm:$0xff]  ;;  %v4199_v11 = vld [vmem:[#allocation2 + $0x7a] sm:$0xff] }
 0x60b   : > { %v13809_v12 = vand.u32 2147483647, %v13801_v2  ;;  %v13813_v18 = vand.u32 2147483648, %v13812_v3  ;;  %v7114_v33 = vsel %vm11771_vm11, %v7113_v15, %v13788_v25  ;;  %v4017_v46 = vmul.f32 %v7090_v44, %v11024_v60  ;;  %4056 = vst.msk [vmem:[#allocation2 + $0xe0] sm:$0xff] %vm467_vm0, %v4015_v58  ;;  %v4120_v44 = vld [vmem:[#allocation2 + $0x61] sm:$0xff]  ;;  %v4197_v27 = vld [vmem:[#allocation2 + $0x6a] sm:$0xff] }
 0x60c   : > { %v7137_v59 = vor.u32 %v13808_v51, %v7135_v41  ;;  %v13814_v28 = vand.u32 2147483647, %v13804_v19  ;;  %v13818_v57 = vand.u32 2147483648, %v13817_v8  ;;  %v4018_v10 = vmul.f32 %v7098_v16, %v11024_v60  ;;  %4057 = vst.msk [vmem:[#allocation2 + $0xe8] sm:$0xff] %vm467_vm0, %v4016_v37  ;;  %v4124_v16 = vld [vmem:[#allocation2 + $0x81] sm:$0xff]  ;;  %v4201_v58 = vld [vmem:[#allocation2 + $0x8a] sm:$0xff] }
 0x60d   : > { %vm11852_vm12 = vcmp.lt.f32.partialorder %v13809_v12, 8388608.0  ;;  %v7145_v31 = vor.u32 %v13813_v18, %v7143_v52  ;;  %v13819_v25 = vand.u32 2147483647, %v13807_v30  ;;  %v13823_v34 = vand.u32 2147483648, %v13822_v35  ;;  %4058 = vst.msk [vmem:[#allocation2 + $0xf0] sm:$0xff] %vm467_vm0, %v4017_v46  ;;  %v4125_v51 = vld [vmem:[#allocation2 + $0x89] sm:$0xff] }
 0x60e   : > { %vm11865_vm13 = vcmp.lt.f32.partialorder %v13814_v28, 8388608.0  ;;  %v7153_v23 = vor.u32 %v13818_v57, %v7151_v45  ;;  %v7122_v42 = vsel %vm11852_vm12, %v7121_v38, %v13801_v2  ;;  %v4019_v17 = vmul.f32 %v7106_v20, %v11024_v60  ;;  %4059 = vst.msk [vmem:[#allocation2 + $0xf8] sm:$0xff] %vm467_vm0, %v4018_v10  ;;  %v4080_v45 = vld [vmem:[#allocation2 + $0x58] sm:$0xff]  ;;  %v4081_v2 = vld [vmem:[#allocation2 + $0x60] sm:$0xff]  ;;  %v4090_v10 = vld [vmem:[#allocation2 + $0xa8] sm:$0xff] }
 0x60f   : > { %vm11878_vm14 = vcmp.lt.f32.partialorder %v13819_v25, 8388608.0  ;;  %v7161_v0 = vor.u32 %v13823_v34, %v7159_v56  ;;  %v7130_v24 = vsel %vm11865_vm13, %v7129_v1, %v13804_v19  ;;  %v13824_v53 = vand.u32 2147483647, %v13812_v3  ;;  %v4119_v38 = vld [vmem:[#allocation2 + $0x59] sm:$0xff]  ;;  %v11932_v25 = vld [vmem:[#allocation2 + $0xb0] sm:$0xff]  ;;  %v4128_v32 = vld [vmem:[#allocation2 + $0xa1] sm:$0xff] }
 0x610   : > { %v13828_v36 = vand.u32 2147483648, %v13827_v54  ;;  %v7138_v9 = vsel %vm11878_vm14, %v7137_v59, %v13807_v30  ;;  %v4020_v62 = vmul.f32 %v7114_v33, %v11024_v60  ;;  %v13829_v50 = vand.u32 2147483647, %v13817_v8  ;;  %4060 = vst.msk [vmem:[#allocation2 + $0x100] sm:$0xff] %vm467_vm0, %v4019_v17  ;;  %v4198_v56 = vld [vmem:[#allocation2 + $0x72] sm:$0xff]  ;;  %v4085_v1 = vld [vmem:[#allocation2 + $0x80] sm:$0xff] }
 0x611   : > { %vm11891_vm15 = vcmp.lt.f32.partialorder %v13824_v53, 8388608.0  ;;  %v4021_v6 = vmul.f32 %v7122_v42, %v11024_v60  ;;  %v13830_v41 = vand.u32 2147483647, %v13822_v35  ;;  %v4022_v39 = vmul.f32 %v7130_v24, %v11024_v60  ;;  %v4084_v19 = vld [vmem:[#allocation2 + $0x78] sm:$0xff]  ;;  %v4086_v30 = vld [vmem:[#allocation2 + $0x88] sm:$0xff] }
 0x612   : > { %v7169_v63 = vor.u32 %v13828_v36, %v7167_v14  ;;  %vm7148_vm2 = vcmp.lt.f32.partialorder %v13829_v50, 8388608.0  ;;  %v7146_v40 = vsel %vm11891_vm15, %v7145_v31, %v13812_v3  ;;  %v13831_v26 = vand.u32 2147483647, %v13827_v54  ;;  %4061 = vst.msk [vmem:[#allocation2 + $0x108] sm:$0xff] %vm467_vm0, %v4020_v62  ;;  %v4236_v59 = vld [vmem:[#allocation2 + $0x6b] sm:$0xff]  ;;  %v4237_v20 = vld [vmem:[#allocation2 + $0x73] sm:$0xff] }
 0x613   : > { %vm7156_vm3 = vcmp.lt.f32.partialorder %v13830_v41, 8388608.0  ;;  %v7154_v7 = vsel %vm7148_vm2, %v7153_v23, %v13817_v8  ;;  %v4023_v43 = vmul.f32 %v7138_v9, %v11024_v60  ;;  %v4024_v22 = vmul.f32 %v7146_v40, %v11024_v60  ;;  %4062 = vst.msk [vmem:[#allocation2 + $0x110] sm:$0xff] %vm467_vm0, %v4021_v6  ;;  %v4238_v37 = vld [vmem:[#allocation2 + $0x7b] sm:$0xff]  ;;  %v4240_v3 = vld [vmem:[#allocation2 + $0x8b] sm:$0xff]  ;;  %v4241_v18 = vld [vmem:[#allocation2 + $0x93] sm:$0xff] }
 0x614   : > { %vm7164_vm4 = vcmp.lt.f32.partialorder %v13831_v26, 8388608.0  ;;  %v7162_v47 = vsel %vm7156_vm3, %v7161_v0, %v13822_v35  ;;  %v4025_v15 = vmul.f32 %v7154_v7, %v11024_v60  ;;  %4063 = vst.msk [vmem:[#allocation2 + $0x118] sm:$0xff] %vm467_vm0, %v4022_v39  ;;  %v4158_v14 = vmax.f32 %v4080_v45, %v4119_v38  ;;  %v4203_v28 = vld [vmem:[#allocation2 + $0x9a] sm:$0xff]  ;;  %v4129_v35 = vld [vmem:[#allocation2 + $0xa9] sm:$0xff]  ;;  %v4130_v17 = vld [vmem:[#allocation2 + $0xb1] sm:$0xff] }
 0x615   : > { %v7170_v52 = vsel %vm7164_vm4, %v7169_v63, %v13827_v54  ;;  %v4026_v4 = vmul.f32 %v7162_v47, %v11024_v60  ;;  %4064 = vst.msk [vmem:[#allocation2 + $0x120] sm:$0xff] %vm467_vm0, %v4023_v43  ;;  %v4159_v12 = vmax.f32 %v4081_v2, %v4120_v44  ;;  %v4160_v55 = vmax.f32 %v4082_v48, %v4121_v29  ;;  %v4089_v8 = vld [vmem:[#allocation2 + $0xa0] sm:$0xff]  ;;  %v4206_v53 = vld [vmem:[#allocation2 + $0xb2] sm:$0xff]  ;;  %v4094_v39 = vld [vmem:[#allocation2 + $0xc8] sm:$0xff] }
 0x616   : > { %v4027_v49 = vmul.f32 %v7170_v52, %v11024_v60  ;;  %4065 = vst.msk [vmem:[#allocation2 + $0x128] sm:$0xff] %vm467_vm0, %v4024_v22  ;;  %v4123_v60 = vld [vmem:[#allocation2 + $0x79] sm:$0xff]  ;;  %v4275_v31 = vmax.f32 %v4197_v27, %v4236_v59  ;;  %v4276_v33 = vmax.f32 %v4198_v56, %v4237_v20  ;;  %v4277_v46 = vmax.f32 %v4199_v11, %v4238_v37  ;;  %v4132_v40 = vld [vmem:[#allocation2 + $0xc1] sm:$0xff]  ;;  %v4133_v26 = vld [vmem:[#allocation2 + $0xc9] sm:$0xff] }
 0x617   : > { %4066 = vst.msk [vmem:[#allocation2 + $0x130] sm:$0xff] %vm467_vm0, %v4025_v15  ;;  %v4162_v57 = vmax.f32 %v4084_v19, %v4123_v60  ;;  %v4279_v23 = vmax.f32 %v4201_v58, %v4240_v3  ;;  %v4163_v34 = vmax.f32 %v4085_v1, %v4124_v16  ;;  %v4280_v0 = vmax.f32 %v4202_v13, %v4241_v18  ;;  %v4245_v21 = vld [vmem:[#allocation2 + $0xb3] sm:$0xff]  ;;  %v4246_v62 = vld [vmem:[#allocation2 + $0xbb] sm:$0xff]  ;;  %v4247_v41 = vld [vmem:[#allocation2 + $0xc3] sm:$0xff] }
 0x618   : > { %4067 = vst.msk [vmem:[#allocation2 + $0x138] sm:$0xff] %vm467_vm0, %v4026_v4  ;;  %v4314_v42 = vmax.f32 %v4158_v14, %v4275_v31  ;;  %v4315_v24 = vmax.f32 %v4159_v12, %v4276_v33  ;;  %v4164_v54 = vmax.f32 %v4086_v30, %v4125_v51  ;;  %v4281_v36 = vmax.f32 %v4203_v28, %v4242_v5  ;;  %v4207_v9 = vld [vmem:[#allocation2 + $0xba] sm:$0xff]  ;;  %v4208_v6 = vld [vmem:[#allocation2 + $0xc2] sm:$0xff]  ;;  %v4095_v22 = vld [vmem:[#allocation2 + $0xd0] sm:$0xff] }
 0x619   : > { %4068 = vst.msk [vmem:[#allocation2 + $0x140] sm:$0xf] %vm3872_vm1, %v4027_v49  ;;  %v4316_v63 = vmax.f32 %v4160_v55, %v4277_v46  ;;  %v4093_v50 = vld [vmem:[#allocation2 + $0xc0] sm:$0xff]  ;;  %v4318_v7 = vmax.f32 %v4162_v57, %v4279_v23  ;;  %v4167_v47 = vmax.f32 %v4089_v8, %v4128_v32  ;;  %v4284_v43 = vmax.f32 %v4206_v53, %v4245_v21  ;;  %v4134_v15 = vld [vmem:[#allocation2 + $0xd1] sm:$0xff]  ;;  %v4098_v1 = vld [vmem:[#allocation2 + $0xe8] sm:$0xff] }
 0x61a   : > { %4353 = vst.msk [vmem:[#allocation3 + $0x58] sm:$0xff] %vm467_vm0, %v4314_v42  ;;  %v4319_v52 = vmax.f32 %v4163_v34, %v4280_v0  ;;  %v4210_v4 = vld [vmem:[#allocation2 + $0xd2] sm:$0xff]  ;;  %v5003_v45 = vld [vmem:[#allocation4 + $0x15] sm:$0xff]  ;;  %v4168_v2 = vmax.f32 %v4090_v10, %v4129_v35  ;;  %v4169_v48 = vmax.f32 %v11932_v25, %v4130_v17  ;;  %v4285_v38 = vmax.f32 %v4207_v9, %v4246_v62  ;;  %v4211_v29 = vld [vmem:[#allocation2 + $0xda] sm:$0xff] }
 0x61b   : > { %4354 = vst.msk [vmem:[#allocation3 + $0x60] sm:$0xff] %vm467_vm0, %v4315_v24  ;;  %v4249_v49 = vld [vmem:[#allocation2 + $0xd3] sm:$0xff]  ;;  %v4320_v44 = vmax.f32 %v4164_v54, %v4281_v36  ;;  %v4250_v27 = vld [vmem:[#allocation2 + $0xdb] sm:$0xff]  ;;  %v5016_v56 = vpack.c.bf16 %v5003_v45, %v5003_v45  ;;  %v4286_v19 = vmax.f32 %v4208_v6, %v4247_v41  ;;  %v4251_v11 = vld [vmem:[#allocation2 + $0xe3] sm:$0xff]  ;;  %v4171_v14 = vmax.f32 %v4093_v50, %v4132_v40 }
 0x61c   : > { %4355 = vst.msk [vmem:[#allocation3 + $0x68] sm:$0xff] %vm467_vm0, %v4316_v63  ;;  %v4212_v60 = vld [vmem:[#allocation2 + $0xe2] sm:$0xff]  ;;  %v11941_v16 = vld [vmem:[#allocation2 + $0xf0] sm:$0xff]  ;;  %v4288_v30 = vmax.f32 %v4210_v4, %v4249_v49  ;;  %v4323_v51 = vmax.f32 %v4167_v47, %v4284_v43  ;;  %v4172_v59 = vmax.f32 %v4094_v39, %v4133_v26  ;;  %v4289_v20 = vmax.f32 %v4211_v29, %v4250_v27  ;;  %v4100_v55 = vld [vmem:[#allocation2 + $0xf8] sm:$0xff] }
 0x61d   : > { %4357 = vst.msk [vmem:[#allocation3 + $0x78] sm:$0xff] %vm467_vm0, %v4318_v7  ;;  %v4137_v58 = vld [vmem:[#allocation2 + $0xe9] sm:$0xff]  ;;  %v4138_v13 = vld [vmem:[#allocation2 + $0xf1] sm:$0xff]  ;;  %5042 = vrot.lane.b32.xlu1 %v5016_v56, %s7381_s27  ;;  %v4324_v37 = vmax.f32 %v4168_v2, %v4285_v38  ;;  %v4139_v3 = vld [vmem:[#allocation2 + $0xf9] sm:$0xff]  ;;  %v4173_v33 = vmax.f32 %v4095_v22, %v4134_v15  ;;  %v4290_v46 = vmax.f32 %v4212_v60, %v4251_v11  ;;  %vm4523_vm5 = vcmask 126016  }
 0x61e   : > { %4358 = vst.msk [vmem:[#allocation3 + $0x80] sm:$0xff] %vm467_vm0, %v4319_v52  ;;  %v4634_v12 = vld [vmem:[#allocation4 + $0x22] sm:$0xff]  ;;  %v4215_v18 = vld [vmem:[#allocation2 + $0xfa] sm:$0xff]  ;;  %v4325_v28 = vmax.f32 %v4169_v48, %v4286_v19  ;;  %v4216_v8 = vld [vmem:[#allocation2 + $0x102] sm:$0xff]  ;;  %v4327_v35 = vmax.f32 %v4171_v14, %v4288_v30  ;;  %v4176_v21 = vmax.f32 %v4098_v1, %v4137_v58  ;;  %v4177_v54 = vmax.f32 %v11941_v16, %v4138_v13  ;;  %v4485_v30 = vpop.permute.xlu0 %4484 }
 0x61f   : > { %4359 = vst.msk [vmem:[#allocation3 + $0x88] sm:$0xff] %vm467_vm0, %v4320_v44  ;;  %v4254_v31 = vld [vmem:[#allocation2 + $0xfb] sm:$0xff]  ;;  %v4255_v57 = vld [vmem:[#allocation2 + $0x103] sm:$0xff]  ;;  %v4256_v32 = vld [vmem:[#allocation2 + $0x10b] sm:$0xff]  ;;  %v11946_v34 = vpack.c.bf16 %v4634_v12, %v4634_v12  ;;  %v4328_v63 = vmax.f32 %v4172_v59, %v4289_v20  ;;  %v4329_v40 = vmax.f32 %v4173_v33, %v4290_v46  ;;  %v4178_v39 = vmax.f32 %v4100_v55, %v4139_v3 }
 0x620   : > { %v5096_v23 = vld [vmem:[#allocation4 + $0x16] sm:$0xff]  ;;  %4362 = vst.msk [vmem:[#allocation3 + $0xa0] sm:$0xff] %vm467_vm0, %v4323_v51  ;;  %v4103_v0 = vld [vmem:[#allocation2 + $0x110] sm:$0xff]  ;;  %v4104_v24 = vld [vmem:[#allocation2 + $0x118] sm:$0xff]  ;;  %v4293_v36 = vmax.f32 %v4215_v18, %v4254_v31  ;;  %v4294_v50 = vmax.f32 %v4216_v8, %v4255_v57  ;;  %vm4616_vm6 = vcmask 191616   ;;  %vm4709_vm7 = vcmask 257216  }
 0x621   : > { %v4102_v42 = vld [vmem:[#allocation2 + $0x108] sm:$0xff]  ;;  %v4142_v17 = vld [vmem:[#allocation2 + $0x111] sm:$0xff]  ;;  %v4143_v53 = vld [vmem:[#allocation2 + $0x119] sm:$0xff]  ;;  %4363 = vst.msk [vmem:[#allocation3 + $0xa8] sm:$0xff] %vm467_vm0, %v4324_v37  ;;  %v5109_v6 = vpack.c.bf16 %v5096_v23, %v5096_v23  ;;  %4676 = vrot.lane.b32.xlu0 %v11946_v34, %s7377_s22  ;;  %vm4802_vm8 = vcmask 322816   ;;  %vm4895_vm9 = vcmask 388416  }
 0x622   : > { %v4141_v10 = vld [vmem:[#allocation2 + $0x109] sm:$0xff]  ;;  %v4219_v9 = vld [vmem:[#allocation2 + $0x11a] sm:$0xff]  ;;  %4364 = vst.msk [vmem:[#allocation3 + $0xb0] sm:$0xff] %vm467_vm0, %v4325_v28  ;;  %v4332_v15 = vmax.f32 %v4176_v21, %v4293_v36  ;;  %v4181_v49 = vmax.f32 %v4103_v0, %v4142_v17  ;;  %v4182_v45 = vmax.f32 %v4104_v24, %v4143_v53  ;;  %v4333_v48 = vmax.f32 %v4177_v54, %v4294_v50  ;;  %v4449_v54 = vld [vmem:[#allocation4 + $0x21] sm:$0xff] }
 0x623   : > { %v4389_v5 = vld [vmem:[#allocation3 + $0x5b] ss:$2 sm:$0xff]  ;;  %v4258_v62 = vld [vmem:[#allocation2 + $0x11b] sm:$0xff]  ;;  %4366 = vst.msk [vmem:[#allocation3 + $0xc0] sm:$0xff] %vm467_vm0, %v4327_v35  ;;  %v4180_v52 = vmax.f32 %v4102_v42, %v4141_v10  ;;  %vm4988_vm10 = vcmask 454016   ;;  %vm5174_vm11 = vcmask 585216  }
 0x624   : > { %4390 = vst.msk [vmem:[#allocation4 + $0x2a] sm:$0xff] %vm467_vm0, %v4389_v5  ;;  %v4217_v25 = vld [vmem:[#allocation2 + $0x10a] sm:$0xff]  ;;  %v4220_v41 = vld [vmem:[#allocation2 + $0x122] sm:$0xff]  ;;  %v4297_v22 = vmax.f32 %v4219_v9, %v4258_v62  ;;  %v4462_v9 = vpack.c.bf16 %v4449_v54, %v4449_v54  ;;  %vm5310_vm12 = vcmask 1043456   ;;  %vm5288_vm13 = vcmask 588800  }
 0x625   : > { %v4259_v7 = vld [vmem:[#allocation2 + $0x123] sm:$0xff]  ;;  %v4295_v26 = vmax.f32 %v4217_v25, %v4256_v32  ;;  %v4260_v43 = vld [vmem:[#allocation2 + $0x12b] sm:$0xff]  ;;  %5135 = vrot.lane.b32.xlu1 %v5109_v6, %s7382_s19  ;;  %4367 = vst.msk [vmem:[#allocation3 + $0xc8] sm:$0xff] %vm467_vm0, %v4328_v63  ;;  %v13832_v63 = vmov 0.0   ;;  %vm485_vm14 = vcmask 130048   ;;  %vm4536_vm15 = vcmask 123968  }
 0x626   : > { %v4221_v47 = vld [vmem:[#allocation2 + $0x12a] sm:$0xff]  ;;  %v4298_v2 = vmax.f32 %v4220_v41, %v4259_v7  ;;  %4368 = vst.msk [vmem:[#allocation3 + $0xd0] sm:$0xff] %vm467_vm0, %v4329_v40  ;;  %v4447_v56 = vld [vmem:[#allocation4 + $0x11] sm:$0xff]  ;;  %v4336_v60 = vmax.f32 %v4180_v52, %v4297_v22  ;;  %v4578_v31 = vpop.permute.xlu0 %4577  ;;  %vm4629_vm2 = vcmask 189568   ;;  %vm4722_vm3 = vcmask 255168  }
 0x627   : > { %v4819_v4 = vld [vmem:[#allocation4 + $0x1c] sm:$0xff]  ;;  %v4299_v44 = vmax.f32 %v4221_v47, %v4260_v43  ;;  %v4334_v29 = vmax.f32 %v4178_v39, %v4295_v26  ;;  %4371 = vst.msk [vmem:[#allocation3 + $0xe8] sm:$0xff] %vm467_vm0, %v4332_v15  ;;  %v4460_v1 = vpack.c.bf16 %v4447_v56, %v4447_v56  ;;  %v4408_v28 = vld [vmem:[#allocation4 + $0x10] sm:$0xff]  ;;  %vm4815_vm4 = vcmask 320768  }
 0x628   : > { %v4832_v19 = vpack.c.bf16 %v4819_v4, %v4819_v4  ;;  %v4337_v11 = vmax.f32 %v4181_v49, %v4298_v2  ;;  %4372 = vst.msk [vmem:[#allocation3 + $0xf0] sm:$0xff] %vm467_vm0, %v4333_v48  ;;  %v4406_v14 = vld [vmem:[#allocation4] sm:$0xff]  ;;  %v4409_v12 = vld [vmem:[#allocation4 + $0x18] sm:$0xff]  ;;  %v4421_v10 = vpack.c.bf16 %v4408_v28, %v4408_v28  ;;  %v5210_v54 = vld [vmem:[%s12763_s4 + $0x20] sm:$0xf] }
 0x629   : > { %v4338_v16 = vmax.f32 %v4182_v45, %v4299_v44  ;;  %4373 = vst.msk [vmem:[#allocation3 + $0xf8] sm:$0xff] %vm467_vm0, %v4334_v29  ;;  %v4392_v59 = vld [vmem:[#allocation3 + $0x7f] ss:$2 sm:$0xff]  ;;  %v4419_v37 = vpack.c.bf16 %v4406_v14, %v4406_v14  ;;  %v4422_v3 = vpack.c.bf16 %v4409_v12, %v4409_v12 }
 0x62a   : > { %4860 = vrot.lane.b32.xlu0 %v4832_v19, %s7379_s25  ;;  %4375 = vst.msk [vmem:[#allocation3 + $0x108] sm:$0xff] %vm467_vm0, %v4336_v60  ;;  %v4395_v55 = vld [vmem:[#allocation3 + $0xa3] ss:$2 sm:$0xff] }
 0x62b   : > { %v4727_v38 = vld [vmem:[#allocation4 + $0x23] sm:$0xff]  ;;  %v4913_v13 = vld [vmem:[#allocation4 + $0x2c] sm:$0xff]  ;;  %4376 = vst.msk [vmem:[#allocation3 + $0x110] sm:$0xff] %vm467_vm0, %v4337_v11  ;;  %v4726_v5 = vld [vmem:[#allocation4 + $0x1b] sm:$0xff] }
 0x62c   : > { %v4740_v27 = vpack.c.bf16 %v4727_v38, %v4727_v38  ;;  %v4912_v58 = vld [vmem:[#allocation4 + $0x24] sm:$0xff]  ;;  %4377 = vst.msk [vmem:[#allocation3 + $0x118] sm:$0xff] %vm467_vm0, %v4338_v16  ;;  %v11966_v20 = vpack.c.bf16 %v4913_v13, %v4913_v13  ;;  %v4739_v32 = vpack.c.bf16 %v4726_v5, %v4726_v5  ;;  %v4487_v16 = vpop.permute.xlu1 %4486 }
 0x62d   : > { %4488 = vrot.lane.b32.xlu1 %v4460_v1, %s7375_s20  ;;  %v4925_v51 = vpack.c.bf16 %v4912_v58, %v4912_v58  ;;  %4393 = vst.msk [vmem:[#allocation4 + $0x34] sm:$0xff] %vm467_vm0, %v4392_v59  ;;  %v5098_v18 = vld [vmem:[#allocation4 + $0x26] sm:$0xff] }
 0x62e   : > { %4769 = vrot.lane.b32.xlu2 %v4740_v27, %s7378_s24  ;;  %4432 = vst.msk [vmem:[#allocation5] sm:$0xf] %vm3872_vm1, %v4419_v37  ;;  %v4410_v33 = vld [vmem:[#allocation4 + $0x20] sm:$0xff]  ;;  %v5111_v57 = vpack.c.bf16 %v5098_v18, %v5098_v18  ;;  %v4411_v42 = vld [vmem:[#allocation4 + $0x28] sm:$0xff]  ;;  %v4671_v53 = vpop.permute.xlu0 %4670  ;;  %v4950_v48 = vpop.permute.xlu2 %4949 }
 0x62f   : > { %4524 = vst.msk [vmem:[#allocation5] sm:$0xf] %vm4523_vm5, %v4485_v30  ;;  %v4398_v46 = vld [vmem:[#allocation3 + $0xc7] ss:$2 sm:$0xff]  ;;  %v4423_v23 = vpack.c.bf16 %v4410_v33, %v4410_v33  ;;  %v4424_v0 = vpack.c.bf16 %v4411_v42, %v4411_v42 }
 0x630   : > { %4617 = vst.msk [vmem:[#allocation5] sm:$0xf] %vm4616_vm6, %v4578_v31  ;;  %v4401_v8 = vld [vmem:[#allocation3 + $0xeb] ss:$2 sm:$0xff] }
 0x631   : > { %4396 = vst.msk [vmem:[#allocation4 + $0x3e] sm:$0xff] %vm467_vm0, %v4395_v55  ;;  %v4450_v17 = vld [vmem:[#allocation4 + $0x29] sm:$0xff] }
 0x632   : > { %4955 = vrot.lane.b32.xlu0 %v11966_v20, %s7380_s26  ;;  %4435 = vst.msk [vmem:[#allocation5 + $0xc] sm:$0xf] %vm3872_vm1, %v4422_v3  ;;  %v4463_v36 = vpack.c.bf16 %v4450_v17, %v4450_v17  ;;  %v4543_v62 = vld [vmem:[#allocation4 + $0x2a] sm:$0xff] }
 0x633   : > { %4399 = vst.msk [vmem:[#allocation4 + $0x48] sm:$0xff] %vm467_vm0, %v4398_v46  ;;  %v5005_v40 = vld [vmem:[#allocation4 + $0x25] sm:$0xff]  ;;  %v4556_v6 = vpack.c.bf16 %v4543_v62, %v4543_v62 }
 0x634   : > { %v5006_v25 = vld [vmem:[#allocation4 + $0x2d] sm:$0xff]  ;;  %4402 = vst.msk [vmem:[#allocation4 + $0x52] sm:$0xff] %vm467_vm0, %v4401_v8  ;;  %v5018_v26 = vpack.c.bf16 %v5005_v40, %v5005_v40  ;;  %v5007_v37 = vld [vmem:[#allocation4 + $0x35] sm:$0xff] }
 0x635   : > { %4583 = vrot.lane.b32.xlu1 %v11753_v61, %s7376_s21  ;;  %v4404_v61 = vld [vmem:[#allocation3 + $0x10f] ss:$2 sm:$0xff]  ;;  %v5019_v35 = vpack.c.bf16 %v5006_v25, %v5006_v25  ;;  %4436 = vst.msk [vmem:[#allocation5 + $0x10] sm:$0xf] %vm3872_vm1, %v4423_v23  ;;  %v5020_v3 = vpack.c.bf16 %v5007_v37, %v5007_v37 }
 0x636   : > { %4953 = vrot.lane.b32.xlu2 %v4925_v51, %s7380_s26  ;;  %4405 = vst.msk [vmem:[#allocation4 + $0x5c] sm:$0xff] %vm467_vm0, %v4404_v61  ;;  %v4412_v24 = vld [vmem:[#allocation4 + $0x30] sm:$0xff]  ;;  %vm483_vm0 = vcmask 58368   ;;  %v4764_v50 = vpop.permute.xlu0 %4763  ;;  %v4407_v1 = vld [vmem:[#allocation4 + $0x8] sm:$0xff] }
 0x637   : > { %4434 = vst.msk [vmem:[#allocation5 + $0x8] sm:$0xf] %vm3872_vm1, %v4421_v10  ;;  %v4425_v21 = vpack.c.bf16 %v4412_v24, %v4412_v24  ;;  %v4729_v45 = vld [vmem:[#allocation4 + $0x33] sm:$0xff]  ;;  %v4728_v27 = vld [vmem:[#allocation4 + $0x2b] sm:$0xff]  ;;  %v4491_v58 = vpop.permute.xlu2 %4490  ;;  %v4420_v13 = vpack.c.bf16 %v4407_v1, %v4407_v1 }
 0x638   : > { %4710 = vst.msk [vmem:[#allocation5] sm:$0xf] %vm4709_vm7, %v4671_v53  ;;  %v4413_v39 = vld [vmem:[#allocation4 + $0x38] sm:$0xff]  ;;  %v4414_v43 = vld [vmem:[#allocation4 + $0x40] sm:$0xff]  ;;  %v5099_v29 = vld [vmem:[#allocation4 + $0x2e] sm:$0xff]  ;;  %v4742_v56 = vpack.c.bf16 %v4729_v45, %v4729_v45  ;;  %v4741_v60 = vpack.c.bf16 %v4728_v27, %v4728_v27 }
 0x639   : > { %4437 = vst.msk [vmem:[#allocation5 + $0x14] sm:$0xf] %vm3872_vm1, %v4424_v0  ;;  %v4426_v47 = vpack.c.bf16 %v4413_v39, %v4413_v39  ;;  %v4427_v15 = vpack.c.bf16 %v4414_v43, %v4414_v43  ;;  %v5112_v19 = vpack.c.bf16 %v5099_v29, %v5099_v29  ;;  %v4822_v11 = vld [vmem:[#allocation4 + $0x34] sm:$0xff]  ;;  %v5008_v30 = vld [vmem:[#allocation4 + $0x3d] sm:$0xff] }
 0x63a   : > { %5139 = vrot.lane.b32.xlu0 %v5111_v57, %s7382_s19  ;;  %4438 = vst.msk [vmem:[#allocation5 + $0x18] sm:$0xf] %vm3872_vm1, %v4425_v21  ;;  %v4415_v4 = vld [vmem:[#allocation4 + $0x48] sm:$0xff]  ;;  %v4835_v14 = vpack.c.bf16 %v4822_v11, %v4822_v11  ;;  %v4544_v59 = vld [vmem:[#allocation4 + $0x32] sm:$0xff]  ;;  %v5021_v12 = vpack.c.bf16 %v5008_v30, %v5008_v30  ;;  %v5101_v33 = vld [vmem:[#allocation4 + $0x3e] sm:$0xff] }
 0x63b   : > { %484 = vst.msk [vmem:[#allocation4 + $0x78] sm:$0x3] %vm483_vm0, %v13832_v63  ;;  %v4416_v52 = vld [vmem:[#allocation4 + $0x50] sm:$0xff]  ;;  %v4428_v44 = vpack.c.bf16 %v4415_v4, %v4415_v4  ;;  %v4557_v55 = vpack.c.bf16 %v4544_v59, %v4544_v59  ;;  %v5114_v28 = vpack.c.bf16 %v5101_v33, %v5101_v33  ;;  %v4545_v5 = vld [vmem:[#allocation4 + $0x3a] sm:$0xff]  ;;  %v4824_v21 = vld [vmem:[#allocation4 + $0x44] sm:$0xff] }
 0x63c   : > { %4803 = vst.msk [vmem:[#allocation5] sm:$0xf] %vm4802_vm8, %v4764_v50  ;;  %v4429_v49 = vpack.c.bf16 %v4416_v52, %v4416_v52  ;;  %v4451_v18 = vld [vmem:[#allocation4 + $0x31] sm:$0xff]  ;;  %v4823_v61 = vld [vmem:[#allocation4 + $0x3c] sm:$0xff]  ;;  %v4558_v23 = vpack.c.bf16 %v4545_v5, %v4545_v5  ;;  %v4837_v62 = vpack.c.bf16 %v4824_v21, %v4824_v21  ;;  %v5009_v39 = vld [vmem:[#allocation4 + $0x45] sm:$0xff] }
 0x63d   : > { %4767 = vrot.lane.b32.xlu1 %v4739_v32, %s7378_s24  ;;  %v4417_v41 = vld [vmem:[#allocation4 + $0x58] sm:$0xff]  ;;  %v4418_v22 = vld [vmem:[#allocation4 + $0x60] sm:$0xf]  ;;  %4439 = vst.msk [vmem:[#allocation5 + $0x1c] sm:$0xf] %vm3872_vm1, %v4426_v47  ;;  %v4464_v46 = vpack.c.bf16 %v4451_v18, %v4451_v18  ;;  %v4836_v42 = vpack.c.bf16 %v4823_v61, %v4823_v61  ;;  %v4917_v47 = vld [vmem:[#allocation4 + $0x4c] sm:$0xff]  ;;  %v5022_v43 = vpack.c.bf16 %v5009_v39, %v5009_v39 }
 0x63e   : > { %5048 = vrot.lane.b32.xlu2 %v5019_v35, %s7381_s27  ;;  %v4430_v7 = vpack.c.bf16 %v4417_v41, %v4417_v41  ;;  %v4857_v2 = vpop.permute.xlu0 %4856  ;;  %4440 = vst.msk [vmem:[#allocation5 + $0x20] sm:$0xf] %vm3872_vm1, %v4427_v15  ;;  %v4431_v38 = vpack.c.bf16 %v4418_v22, %v4418_v22  ;;  %v4730_v10 = vld [vmem:[#allocation4 + $0x3b] sm:$0xff]  ;;  %v12057_v22 = vpack.c.bf16 %v4917_v47, %v4917_v47  ;;  %v5010_v37 = vld [vmem:[#allocation4 + $0x4d] sm:$0xff]  ;;  %v4735_v5 = vld [vmem:[#allocation4 + $0x63] sm:$0xff] }
 0x63f   : > { %4896 = vst.msk [vmem:[#allocation5] sm:$0xf] %vm4895_vm9, %v4857_v2  ;;  %v4638_v32 = vld [vmem:[#allocation4 + $0x42] sm:$0xff]  ;;  %v4743_v35 = vpack.c.bf16 %v4730_v10, %v4730_v10  ;;  %v6799_v15 = vld [vmem:[%s12763_s4 + $0x8] sm:$0xff]  ;;  %v4748_v61 = vpack.c.bf16 %v4735_v5, %v4735_v5 }
 0x640   : > { %4443 = vst.msk [vmem:[#allocation5 + $0x2c] sm:$0xf] %vm3872_vm1, %v4430_v7  ;;  %v12037_v53 = vpack.c.bf16 %v4638_v32, %v4638_v32  ;;  %v6801_v7 = vld [vmem:[%s12763_s4 + $0x18] sm:$0xff]  ;;  %v4456_v1 = vld [vmem:[#allocation4 + $0x59] sm:$0xff] }
 0x641   : > { %4989 = vst.msk [vmem:[#allocation5] sm:$0xf] %vm4988_vm10, %v4950_v48  ;;  %v4731_v2 = vld [vmem:[#allocation4 + $0x43] sm:$0xff]  ;;  %v6798_v48 = vld [vmem:[%s12763_s4] sm:$0xff] }
 0x642   : > { %4494 = vrot.lane.b32.xlu0 %v4463_v36, %s7375_s20  ;;  %4442 = vst.msk [vmem:[#allocation5 + $0x28] sm:$0xf] %vm3872_vm1, %v4429_v49  ;;  %v5278_v36 = vunpack.c.l.b16 %v5210_v54  ;;  %v5103_v49 = vld [vmem:[#allocation4 + $0x4e] sm:$0xff]  ;;  %v4744_v29 = vpack.c.bf16 %v4731_v2, %v4731_v2  ;;  %v4920_v10 = vld [vmem:[#allocation4 + $0x64] sm:$0xff] }
 0x643   : > { %4444 = vst.msk [vmem:[#allocation5 + $0x30] sm:$0x3] %vm483_vm0, %v4431_v38  ;;  %v5102_v38 = vld [vmem:[#allocation4 + $0x46] sm:$0xff]  ;;  %vm5187_vm0 = vcmask 583168  }
 0x644   : > { %4441 = vst.msk [vmem:[#allocation5 + $0x24] sm:$0xf] %vm3872_vm1, %v4428_v44  ;;  %v5283_v50 = vpack.c.b16 %v5278_v36, %v5278_v36  ;;  %v5116_v44 = vpack.c.bf16 %v5103_v49, %v5103_v49  ;;  %v5115_v27 = vpack.c.bf16 %v5102_v38, %v5102_v38  ;;  %v4453_v39 = vld [vmem:[#allocation4 + $0x41] sm:$0xff]  ;;  %v4733_v38 = vld [vmem:[#allocation4 + $0x53] sm:$0xff] }
 0x645   : > { %4862 = vrot.lane.b32.xlu1 %v4925_v51, %s7379_s25  ;;  %4527 = vst.msk [vmem:[#allocation5 + $0xc] sm:$0xf] %vm4523_vm5, %v4491_v58  ;;  %v4580_v51 = vpop.permute.xlu1 %4579  ;;  %v4469_v58 = vpack.c.bf16 %v4456_v1, %v4456_v1  ;;  %v4466_v47 = vpack.c.bf16 %v4453_v39, %v4453_v39 }
 0x646   : > { %4492 = vrot.lane.b32.xlu2 %v4462_v9, %s7375_s20  ;;  %4433 = vst.msk [vmem:[#allocation5 + $0x4] sm:$0xf] %vm3872_vm1, %v4420_v13  ;;  %vm5081_vm1 = vcmask 519616   ;;  %v4452_v9 = vld [vmem:[#allocation4 + $0x39] sm:$0xff] }
 0x647   : > { %4525 = vst.msk [vmem:[#allocation5 + $0x4] sm:$0xf] %vm4523_vm5, %v4487_v16  ;;  %v4465_v40 = vpack.c.bf16 %v4452_v9, %v4452_v9  ;;  %v4734_v9 = vld [vmem:[#allocation4 + $0x5b] sm:$0xff] }
 0x648   : > { %4618 = vst.msk [vmem:[#allocation5 + $0x4] sm:$0xf] %vm4616_vm6, %v4580_v51 }
 0x649   : > { %486 = vst.msk [vmem:[#allocation8] sm:$0xff] %vm485_vm14, %v13832_v63 }
 0x64a   : > { %4678 = vrot.lane.b32.xlu0 %v4556_v6, %s7377_s22  ;;  %487 = vst.msk [vmem:[#allocation8 + $0x8] sm:$0xff] %vm485_vm14, %v13832_v63 }
 0x64b   : > { %488 = vst.msk [vmem:[#allocation8 + $0x10] sm:$0xff] %vm485_vm14, %v13832_v63 }
 0x64c   : > { %489 = vst.msk [vmem:[#allocation8 + $0x18] sm:$0xff] %vm485_vm14, %v13832_v63 }
 0x64d   : > { %5046 = vrot.lane.b32.xlu1 %v5018_v26, %s7381_s27  ;;  %v4673_v31 = vpop.permute.xlu1 %4672  ;;  %v6800_v26 = vld [vmem:[%s12763_s4 + $0x10] sm:$0xff]  ;;  %490 = vst.msk [vmem:[#allocation8 + $0x20] sm:$0xff] %vm485_vm14, %v13832_v63 }
 0x64e   : > { %4587 = vrot.lane.b32.xlu2 %v4556_v6, %s7376_s21  ;;  %4711 = vst.msk [vmem:[#allocation5 + $0x4] sm:$0xf] %vm4709_vm7, %v4673_v31  ;;  %v5312_v6 = vsel %vm5310_vm12, %v5283_v50, 0  ;;  %v4747_v50 = vpack.c.bf16 %v4734_v9, %v4734_v9 }
 0x64f   : > { %5317 = vmatpush.bf16.msra.mxu0 %v5312_v6  ;;  %6835 = vmatpush.bf16.msra.mxu1 %v5312_v6  ;;  %v4454_v6 = vld [vmem:[#allocation4 + $0x49] sm:$0xff]  ;;  %491 = vst.msk [vmem:[#allocation8 + $0x28] sm:$0xff] %vm485_vm14, %v13832_v63 }
 0x652   : > { %4773 = vrot.lane.b32.xlu0 %v4742_v56, %s7378_s24 }
 0x653   : > { %5318 = vmatpush.bf16.msra.mxu0 %v6801_v7  ;;  %6836 = vmatpush.bf16.msra.mxu1 %v6801_v7 }
 0x655   : > { %5141 = vrot.lane.b32.xlu1 %v5112_v19, %s7382_s19  ;;  %v4766_v8 = vpop.permute.xlu1 %4765  ;;  %v4548_v19 = vld [vmem:[#allocation4 + $0x52] sm:$0xff] }
 0x656   : > { %4771 = vrot.lane.b32.xlu2 %v4741_v60, %s7378_s24  ;;  %4804 = vst.msk [vmem:[#allocation5 + $0x4] sm:$0xf] %vm4802_vm8, %v4766_v8  ;;  %v12077_v16 = vpack.c.bf16 %v4548_v19, %v4548_v19  ;;  %v4732_v19 = vld [vmem:[#allocation4 + $0x4b] sm:$0xff] }
 0x657   : > { %5319 = vmatpush.bf16.msra.mxu0 %v6800_v26  ;;  %6837 = vmatpush.bf16.msra.mxu1 %v6800_v26  ;;  %v4467_v26 = vpack.c.bf16 %v4454_v6, %v4454_v6  ;;  %v4745_v1 = vpack.c.bf16 %v4732_v19, %v4732_v19  ;;  %v5105_v6 = vld [vmem:[#allocation4 + $0x5e] sm:$0xff] }
 0x659   : > { %v12033_v24 = vpop.permute.xlu2 %4674 }
 0x65a   : > { %4957 = vrot.lane.b32.xlu0 %v4835_v14, %s7380_s26 }
 0x65b   : > { %5320 = vmatpush.bf16.msra.mxu0 %v6799_v15  ;;  %6838 = vmatpush.bf16.msra.mxu1 %v6799_v15  ;;  %v5013_v15 = vld [vmem:[#allocation4 + $0x65] sm:$0xff] }
 0x65c   : > { %v5026_v2 = vpack.c.bf16 %v5013_v15, %v5013_v15 }
 0x65d   : > { %4585 = vrot.lane.b32.xlu1 %v11946_v34, %s7376_s21  ;;  %v4952_v34 = vpop.permute.xlu0 %4951  ;;  %v4859_v25 = vpop.permute.xlu1 %4858 }
 0x65e   : > { %4866 = vrot.lane.b32.xlu2 %v4835_v14, %s7379_s25  ;;  %4897 = vst.msk [vmem:[#allocation5 + $0x4] sm:$0xf] %vm4895_vm9, %v4859_v25  ;;  %v4642_v14 = vld [vmem:[#allocation4 + $0x62] sm:$0xff] }
 0x65f   : > { %4990 = vst.msk [vmem:[#allocation5 + $0x4] sm:$0xf] %vm4988_vm10, %v4952_v34  ;;  %5321 = vmatpush.bf16.msra.mxu0 %v6798_v48  ;;  %6839 = vmatpush.bf16.msra.mxu1 %v6798_v48  ;;  %v4827_v34 = vld [vmem:[#allocation4 + $0x5c] sm:$0xff] }
 0x660   : > { %v12094_v8 = vpack.c.bf16 %v4827_v34, %v4827_v34  ;;  %v5104_v34 = vld [vmem:[#allocation4 + $0x56] sm:$0xff] }
 0x661   : > { %v5117_v5 = vpack.c.bf16 %v5104_v34, %v5104_v34  ;;  %v5223_v34 = vld [vmem:[%s12765_s6 + $0x58] sm:$0xff] }
 0x662   : > { %5052 = vrot.lane.b32.xlu0 %v5021_v12, %s7381_s27  ;;  %v4641_v12 = vld [vmem:[#allocation4 + $0x5a] sm:$0xff] }
 0x663   : > { %v4654_v18 = vpack.c.bf16 %v4641_v12, %v4641_v12 }
 0x665   : > { %4680 = vrot.lane.b32.xlu1 %v4557_v55, %s7377_s22  ;;  %v5045_v57 = vpop.permute.xlu0 %5044 }
 0x666   : > { %5050 = vrot.lane.b32.xlu2 %v5020_v3, %s7381_s27  ;;  %5083 = vst.msk [vmem:[#allocation5 + $0x4] sm:$0xf] %vm5081_vm1, %v5045_v57  ;;  %v5023_v3 = vpack.c.bf16 %v5010_v37, %v5010_v37  ;;  %v5011_v37 = vld [vmem:[#allocation4 + $0x55] sm:$0xff] }
 0x66a   : > { %4496 = vrot.lane.b32.xlu0 %v4464_v46, %s7375_s20 }
 0x66d   : > { %4864 = vrot.lane.b32.xlu1 %v11966_v20, %s7379_s25  ;;  %v5100_v20 = vld [vmem:[#allocation4 + $0x36] sm:$0xff]  ;;  %v5138_v0 = vpop.permute.xlu0 %5137 }
 0x66e   : > { %5145 = vrot.lane.b32.xlu2 %v5114_v28, %s7382_s19  ;;  %5176 = vst.msk [vmem:[#allocation5 + $0x4] sm:$0xf] %vm5174_vm11, %v5138_v0  ;;  %v5113_v17 = vpack.c.bf16 %v5100_v20, %v5100_v20  ;;  %v4455_v28 = vld [vmem:[#allocation4 + $0x51] sm:$0xff]  ;;  %v5106_v0 = vld [vmem:[#allocation4 + $0x66] sm:$0xff] }
 0x66f   : > { %v4468_v57 = vpack.c.bf16 %v4455_v28, %v4455_v28  ;;  %v5119_v54 = vpack.c.bf16 %v5106_v0, %v5106_v0  ;;  %v4550_v28 = vld [vmem:[#allocation4 + $0x62] sm:$0xf] }
 0x672   : > { %4591 = vrot.lane.b32.xlu0 %v4558_v23, %s7376_s21 }
 0x675   : > { %4959 = vrot.lane.b32.xlu1 %v4836_v42, %s7380_s26  ;;  %v4582_v52 = vpop.permute.xlu0 %4581 }
 0x676   : > { %4589 = vrot.lane.b32.xlu2 %v4557_v55, %s7376_s21  ;;  %v4655_v55 = vpack.c.bf16 %v4642_v14, %v4642_v14 }
 0x67a   : > { %4775 = vrot.lane.b32.xlu0 %v4743_v35, %s7378_s24  ;;  %v4933_v35 = vpack.c.bf16 %v4920_v10, %v4920_v10 }
 0x67d   : > { %5143 = vrot.lane.b32.xlu1 %v5113_v17, %s7382_s19  ;;  %v5014_v17 = vld [vmem:[#allocation4 + $0x6d] sm:$0xff] }
 0x67e   : > { %4684 = vrot.lane.b32.xlu2 %v12037_v53, %s7377_s22 }
 0x682   : > { %4870 = vrot.lane.b32.xlu0 %v4837_v62, %s7379_s25 }
 0x685   : > { %4498 = vrot.lane.b32.xlu1 %v4465_v40, %s7375_s20 }
 0x686   : > { %4868 = vrot.lane.b32.xlu2 %v4836_v42, %s7379_s25 }
 0x688   : > { %v12046_v41 = vpop.permute.xlu2 %4769 }
 0x68a   : > { %5054 = vrot.lane.b32.xlu0 %v5022_v43, %s7381_s27 }
 0x68d   : > { %4682 = vrot.lane.b32.xlu1 %v4558_v23, %s7377_s22  ;;  %v4921_v23 = vld [vmem:[#allocation4 + $0x6c] sm:$0xff] }
 0x68e   : > { %4963 = vrot.lane.b32.xlu2 %v12057_v22, %s7380_s26  ;;  %v4934_v20 = vpack.c.bf16 %v4921_v23, %v4921_v23  ;;  %v4643_v23 = vld [vmem:[#allocation4 + $0x6a] sm:$0xf] }
 0x68f   : > { %v5043_v45 = vpop.permute.xlu1 %5042 }
 0x690   : > { %v12065_v4 = vpop.permute.xlu2 %4953  ;;  %5082 = vst.msk [vmem:[#allocation5] sm:$0xf] %vm5081_vm1, %v5043_v45 }
 0x692   : > { %5149 = vrot.lane.b32.xlu0 %v5116_v44, %s7382_s19  ;;  %v5107_v44 = vld [vmem:[#allocation4 + $0x6e] sm:$0xff] }
 0x693   : > { %v4677_v56 = vpop.permute.xlu0 %4676 }
 0x695   : > { %4777 = vrot.lane.b32.xlu1 %v4744_v29, %s7378_s24 }
 0x696   : > { %5147 = vrot.lane.b32.xlu2 %v5115_v27, %s7382_s19 }
 0x697   : > { %v5136_v60 = vpop.permute.xlu1 %5135 }
 0x698   : > { %v12074_v11 = vpop.permute.xlu2 %5048  ;;  %5175 = vst.msk [vmem:[#allocation5] sm:$0xf] %vm5174_vm11, %v5136_v60  ;;  %v4746_v60 = vpack.c.bf16 %v4733_v38, %v4733_v38  ;;  %v5219_v38 = vld [vmem:[%s12765_s6 + $0x38] sm:$0xff] }
 0x69a   : > { %4597 = vrot.lane.b32.xlu0 %v12077_v16, %s7376_s21 }
 0x69c   : > { %v4861_v13 = vpop.permute.xlu0 %4860 }
 0x69d   : > { %4961 = vrot.lane.b32.xlu1 %v4837_v62, %s7380_s26  ;;  %v5027_v62 = vpack.c.bf16 %v5014_v17, %v5014_v17 }
 0x69e   : > { %4506 = vrot.lane.b32.xlu2 %v4469_v58, %s7375_s20 }
 0x69f   : > { %v4489_v30 = vpop.permute.xlu1 %4488  ;;  %v6792_v51 = vld [vmem:[#allocation5] sm:$0xff] }
 0x6a0   : > { %v4493_v59 = vpop.permute.xlu2 %4492  ;;  %4526 = vst.msk [vmem:[#allocation5 + $0x8] sm:$0xf] %vm4523_vm5, %v4489_v30  ;;  %6645 = vmatmul.msk.bf16.vlgmr.msra.gmra.mxu0 %vm5288_vm13, %v6792_v51 }
 0x6a1   : > { %4528 = vst.msk [vmem:[#allocation5 + $0x10] sm:$0xf] %vm4523_vm5, %v4493_v59 }
 0x6a2   : > { %4619 = vst.msk [vmem:[#allocation5 + $0x8] sm:$0xf] %vm4616_vm6, %v4582_v52  ;;  %4692 = vrot.lane.b32.xlu0 %v4655_v55, %s7377_s22  ;;  %v4547_v52 = vld [vmem:[#allocation4 + $0x4a] sm:$0xff] }
 0x6a3   : > { %4712 = vst.msk [vmem:[#allocation5 + $0x8] sm:$0xf] %vm4709_vm7, %v12033_v24  ;;  %v4560_v45 = vpack.c.bf16 %v4547_v52, %v4547_v52  ;;  %v5215_v52 = vld [vmem:[%s12765_s6 + $0x18] sm:$0xff] }
 0x6a4   : > { %v4956_v31 = vpop.permute.xlu0 %4955 }
 0x6a5   : > { %5056 = vrot.lane.b32.xlu1 %v5023_v3, %s7381_s27  ;;  %v4457_v3 = vld [vmem:[#allocation4 + $0x61] sm:$0xf] }
 0x6a6   : > { %4690 = vrot.lane.b32.xlu2 %v4654_v18, %s7377_s22 }
 0x6a7   : > { %v4584_v33 = vpop.permute.xlu1 %4583 }
 0x6a8   : > { %v4588_v46 = vpop.permute.xlu2 %4587  ;;  %4620 = vst.msk [vmem:[#allocation5 + $0xc] sm:$0xf] %vm4616_vm6, %v4584_v33 }
 0x6a9   : > { %4713 = vst.msk [vmem:[#allocation5 + $0xc] sm:$0xf] %vm4709_vm7, %v4677_v56 }
 0x6aa   : > { %4806 = vst.msk [vmem:[#allocation5 + $0xc] sm:$0xf] %vm4802_vm8, %v12046_v41  ;;  %4876 = vrot.lane.b32.xlu0 %v12094_v8, %s7379_s25 }
 0x6ac   : > { %v5140_v42 = vpop.permute.xlu0 %5139 }
 0x6ad   : > { %4504 = vrot.lane.b32.xlu1 %v4468_v57, %s7375_s20  ;;  %v4563_v57 = vpack.c.bf16 %v4550_v28, %v4550_v28 }
 0x6ae   : > { %4785 = vrot.lane.b32.xlu2 %v4748_v61, %s7378_s24  ;;  %v4736_v61 = vld [vmem:[#allocation4 + $0x6b] sm:$0xf] }
 0x6af   : > { %v4768_v25 = vpop.permute.xlu1 %4767  ;;  %v4749_v10 = vpack.c.bf16 %v4736_v61, %v4736_v61 }
 0x6b0   : > { %v4772_v32 = vpop.permute.xlu2 %4771  ;;  %4805 = vst.msk [vmem:[#allocation5 + $0x8] sm:$0xf] %vm4802_vm8, %v4768_v25 }
 0x6b1   : > { %4898 = vst.msk [vmem:[#allocation5 + $0x8] sm:$0xf] %vm4895_vm9, %v4861_v13  ;;  %v4826_v13 = vld [vmem:[#allocation4 + $0x54] sm:$0xff] }
 0x6b2   : > { %4991 = vst.msk [vmem:[#allocation5 + $0x8] sm:$0xf] %vm4988_vm10, %v12065_v4  ;;  %4971 = vrot.lane.b32.xlu0 %v4934_v20, %s7380_s26  ;;  %v4839_v51 = vpack.c.bf16 %v4826_v13, %v4826_v13  ;;  %v4656_v20 = vpack.c.bf16 %v4643_v23, %v4643_v23 }
 0x6b4   : > { %v4495_v24 = vpop.permute.xlu0 %4494 }
 0x6b5   : > { %4599 = vrot.lane.b32.xlu1 %v4654_v18, %s7376_s21  ;;  %4529 = vst.msk [vmem:[#allocation5 + $0x14] sm:$0xf] %vm4523_vm5, %v4495_v24  ;;  %v5024_v18 = vpack.c.bf16 %v5011_v37, %v5011_v37 }
 0x6b6   : > { %4969 = vrot.lane.b32.xlu2 %v4933_v35, %s7380_s26  ;;  %4622 = vst.msk [vmem:[#allocation5 + $0x14] sm:$0xf] %vm4616_vm6, %v4588_v46 }
 0x6b7   : > { %v4863_v21 = vpop.permute.xlu1 %4862 }
 0x6b8   : > { %v4867_v36 = vpop.permute.xlu2 %4866  ;;  %4899 = vst.msk [vmem:[#allocation5 + $0xc] sm:$0xf] %vm4895_vm9, %v4863_v21 }
 0x6b9   : > { %4992 = vst.msk [vmem:[#allocation5 + $0xc] sm:$0xf] %vm4988_vm10, %v4956_v31 }
 0x6ba   : > { %5085 = vst.msk [vmem:[#allocation5 + $0xc] sm:$0xf] %vm5081_vm1, %v12074_v11  ;;  %5155 = vrot.lane.b32.xlu0 %v5119_v54, %s7382_s19  ;;  %v5120_v11 = vpack.c.bf16 %v5107_v44, %v5107_v44  ;;  %v5012_v54 = vld [vmem:[#allocation4 + $0x5d] sm:$0xff] }
 0x6bc   : > { %v4679_v40 = vpop.permute.xlu0 %4678 }
 0x6bd   : > { %4783 = vrot.lane.b32.xlu1 %v4747_v50, %s7378_s24 }
 0x6be   : > { %5064 = vrot.lane.b32.xlu2 %v5027_v62, %s7381_s27 }
 0x6bf   : > { %v5047_v41 = vpop.permute.xlu1 %5046 }
 0x6c0   : > { %v5051_v7 = vpop.permute.xlu2 %5050  ;;  %5084 = vst.msk [vmem:[#allocation5 + $0x8] sm:$0xf] %vm5081_vm1, %v5047_v41  ;;  %v5212_v41 = vld [vmem:[%s12765_s6] sm:$0xff] }
 0x6c1   : > { %5177 = vst.msk [vmem:[#allocation5 + $0x8] sm:$0xf] %vm5174_vm11, %v5140_v42 }
 0x6c2   : > { %4502 = vrot.lane.b32.xlu0 %v4467_v26, %s7375_s20  ;;  %v4829_v26 = vld [vmem:[#allocation4 + $0x6c] sm:$0xf] }
 0x6c3   : > { %v4842_v15 = vpack.c.bf16 %v4829_v26, %v4829_v26 }
 0x6c4   : > { %v4774_v43 = vpop.permute.xlu0 %4773 }
 0x6c5   : > { %4878 = vrot.lane.b32.xlu1 %v4933_v35, %s7379_s25 }
 0x6c6   : > { %4500 = vrot.lane.b32.xlu2 %v4466_v47, %s7375_s20 }
 0x6c7   : > { %v5142_v4 = vpop.permute.xlu1 %5141 }
 0x6c8   : > { %v5146_v49 = vpop.permute.xlu2 %5145  ;;  %5178 = vst.msk [vmem:[#allocation5 + $0xc] sm:$0xf] %vm5174_vm11, %v5142_v4  ;;  %v5214_v4 = vld [vmem:[%s12765_s6 + $0x10] sm:$0xff] }
 0x6ca   : > { %4686 = vrot.lane.b32.xlu0 %v4560_v45, %s7377_s22 }
 0x6cc   : > { %v4958_v48 = vpop.permute.xlu0 %4957 }
 0x6cd   : > { %5062 = vrot.lane.b32.xlu1 %v5026_v2, %s7381_s27 }
 0x6ce   : > { %4595 = vrot.lane.b32.xlu2 %v4560_v45, %s7376_s21  ;;  %v5108_v45 = vld [vmem:[#allocation4 + $0x76] sm:$0xf] }
 0x6cf   : > { %v4586_v29 = vpop.permute.xlu1 %4585  ;;  %v6793_v27 = vld [vmem:[#allocation5 + $0x8] sm:$0xff]  ;;  %v5121_v44 = vpack.c.bf16 %v5108_v45, %v5108_v45 }
 0x6d0   : > { %v4590_v56 = vpop.permute.xlu2 %4589  ;;  %4621 = vst.msk [vmem:[#allocation5 + $0x10] sm:$0xf] %vm4616_vm6, %v4586_v29  ;;  %6646 = vmatmul.msk.bf16.gmra.mxu0 %vm5288_vm13, %v6793_v27  ;;  %v5218_v29 = vld [vmem:[%s12765_s6 + $0x30] sm:$0xff] }
 0x6d1   : > { %4714 = vst.msk [vmem:[#allocation5 + $0x10] sm:$0xf] %vm4709_vm7, %v4679_v40  ;;  %v5216_v40 = vld [vmem:[%s12765_s6 + $0x20] sm:$0xff] }
 0x6d2   : > { %4807 = vst.msk [vmem:[#allocation5 + $0x10] sm:$0xf] %vm4802_vm8, %v4772_v32  ;;  %4781 = vrot.lane.b32.xlu0 %v4746_v60, %s7378_s24  ;;  %v5015_v32 = vld [vmem:[#allocation4 + $0x75] sm:$0xf]  ;;  %v5222_v60 = vld [vmem:[%s12765_s6 + $0x50] sm:$0xff] }
 0x6d3   : > { %v5028_v17 = vpack.c.bf16 %v5015_v32, %v5015_v32 }
 0x6d4   : > { %v5053_v58 = vpop.permute.xlu0 %5052 }
 0x6d5   : > { %5157 = vrot.lane.b32.xlu1 %v5120_v11, %s7382_s19  ;;  %v5213_v11 = vld [vmem:[%s12765_s6 + $0x8] sm:$0xff] }
 0x6d6   : > { %4779 = vrot.lane.b32.xlu2 %v4745_v1, %s7378_s24  ;;  %v5221_v1 = vld [vmem:[%s12765_s6 + $0x48] sm:$0xff] }
 0x6d7   : > { %v4681_v14 = vpop.permute.xlu1 %4680 }
 0x6d8   : > { %v4685_v30 = vpop.permute.xlu2 %4684  ;;  %4715 = vst.msk [vmem:[#allocation5 + $0x14] sm:$0xf] %vm4709_vm7, %v4681_v14 }
 0x6d9   : > { %4808 = vst.msk [vmem:[#allocation5 + $0x14] sm:$0xf] %vm4802_vm8, %v4774_v43 }
 0x6da   : > { %4901 = vst.msk [vmem:[#allocation5 + $0x14] sm:$0xf] %vm4895_vm9, %v4867_v36  ;;  %4965 = vrot.lane.b32.xlu0 %v4839_v51, %s7380_s26 }
 0x6dc   : > { %v4497_v59 = vpop.permute.xlu0 %4496 }
 0x6dd   : > { %4593 = vrot.lane.b32.xlu1 %v12037_v53, %s7376_s21  ;;  %4530 = vst.msk [vmem:[#allocation5 + $0x18] sm:$0xf] %vm4523_vm5, %v4497_v59  ;;  %v4470_v53 = vpack.c.bf16 %v4457_v3, %v4457_v3  ;;  %v5224_v59 = vld [vmem:[%s12765_s6 + $0x60] sm:$0xf] }
 0x6de   : > { %4874 = vrot.lane.b32.xlu2 %v4839_v51, %s7379_s25  ;;  %4623 = vst.msk [vmem:[#allocation5 + $0x18] sm:$0xf] %vm4616_vm6, %v4590_v56  ;;  %v5217_v51 = vld [vmem:[%s12765_s6 + $0x28] sm:$0xff]  ;;  %v5220_v3 = vld [vmem:[%s12765_s6 + $0x40] sm:$0xff] }
 0x6df   : > { %v4865_v12 = vpop.permute.xlu1 %4864 }
 0x6e0   : > { %v4869_v55 = vpop.permute.xlu2 %4868  ;;  %4900 = vst.msk [vmem:[#allocation5 + $0x10] sm:$0xf] %vm4895_vm9, %v4865_v12 }
 0x6e1   : > { %4993 = vst.msk [vmem:[#allocation5 + $0x10] sm:$0xf] %vm4988_vm10, %v4958_v48 }
 0x6e2   : > { %5086 = vst.msk [vmem:[#allocation5 + $0x10] sm:$0xf] %vm5081_vm1, %v5051_v7  ;;  %5058 = vrot.lane.b32.xlu0 %v5024_v18, %s7381_s27  ;;  %v5118_v7 = vpack.c.bf16 %v5105_v6, %v5105_v6 }
 0x6e4   : > { %v4592_v31 = vpop.permute.xlu0 %4591 }
 0x6e5   : > { %4688 = vrot.lane.b32.xlu1 %v12077_v16, %s7377_s22 }
 0x6e6   : > { %4508 = vrot.lane.b32.xlu2 %v4470_v53, %s7375_s20  ;;  %s7384_s20 = smov 80  }
 0x6e7   : > { %v4960_v33 = vpop.permute.xlu1 %4959 }
 0x6e8   : > { %v4964_v46 = vpop.permute.xlu2 %4963  ;;  %4994 = vst.msk [vmem:[#allocation5 + $0x14] sm:$0xf] %vm4988_vm10, %v4960_v33 }
 0x6e9   : > { %5087 = vst.msk [vmem:[#allocation5 + $0x14] sm:$0xf] %vm5081_vm1, %v5053_v58 }
 0x6ea   : > { %5180 = vst.msk [vmem:[#allocation5 + $0x14] sm:$0xf] %vm5174_vm11, %v5146_v49  ;;  %5151 = vrot.lane.b32.xlu0 %v5117_v5, %s7382_s19 }
 0x6ec   : > { %v4776_v16 = vpop.permute.xlu0 %4775 }
 0x6ed   : > { %4872 = vrot.lane.b32.xlu1 %v12057_v22, %s7379_s25  ;;  %v4922_v22 = vld [vmem:[#allocation4 + $0x74] sm:$0xf] }
 0x6ee   : > { %4601 = vrot.lane.b32.xlu2 %v4563_v57, %s7376_s21  ;;  %v4935_v36 = vpack.c.bf16 %v4922_v22, %v4922_v22 }
 0x6ef   : > { %v5144_v42 = vpop.permute.xlu1 %5143 }
 0x6f0   : > { %v5148_v25 = vpop.permute.xlu2 %5147  ;;  %5179 = vst.msk [vmem:[#allocation5 + $0x10] sm:$0xf] %vm5174_vm11, %v5144_v42 }
 0x6f2   : > { %4787 = vrot.lane.b32.xlu0 %v4749_v10, %s7378_s24 }
 0x6f4   : > { %v4871_v35 = vpop.permute.xlu0 %4870 }
 0x6f5   : > { %4967 = vrot.lane.b32.xlu1 %v12094_v8, %s7380_s26  ;;  %v5025_v8 = vpack.c.bf16 %v5012_v54, %v5012_v54 }
 0x6f6   : > { %4694 = vrot.lane.b32.xlu2 %v4656_v20, %s7377_s22  ;;  %s7385_s22 = smov 96  }
 0x6f7   : > { %v4499_v0 = vpop.permute.xlu1 %4498  ;;  %v6794_v24 = vld [vmem:[#allocation5 + $0x10] sm:$0xff] }
 0x6f8   : > { %v4507_v21 = vpop.permute.xlu2 %4506  ;;  %4531 = vst.msk [vmem:[#allocation5 + $0x1c] sm:$0xf] %vm4523_vm5, %v4499_v0  ;;  %6647 = vmatmul.msk.bf16.gmra.mxu0 %vm5288_vm13, %v6794_v24 }
 0x6f9   : > { %4535 = vst.msk [vmem:[#allocation5 + $0x2c] sm:$0xf] %vm4523_vm5, %v4507_v21 }
 0x6fa   : > { %4624 = vst.msk [vmem:[#allocation5 + $0x1c] sm:$0xf] %vm4616_vm6, %v4592_v31  ;;  %5066 = vrot.lane.b32.xlu0 %v5028_v17, %s7381_s27 }
 0x6fb   : > { %4717 = vst.msk [vmem:[#allocation5 + $0x1c] sm:$0xf] %vm4709_vm7, %v4685_v30 }
 0x6fc   : > { %v5055_v9 = vpop.permute.xlu0 %5054 }
 0x6fd   : > { %5060 = vrot.lane.b32.xlu1 %v5025_v8, %s7381_s27 }
 0x6fe   : > { %4973 = vrot.lane.b32.xlu2 %v4935_v36, %s7380_s26 }
 0x6ff   : > { %v4683_v62 = vpop.permute.xlu1 %4682 }
 0x700   : > { %v4691_v50 = vpop.permute.xlu2 %4690  ;;  %4716 = vst.msk [vmem:[#allocation5 + $0x18] sm:$0xf] %vm4709_vm7, %v4683_v62 }
 0x701   : > { %4809 = vst.msk [vmem:[#allocation5 + $0x18] sm:$0xf] %vm4802_vm8, %v4776_v16 }
 0x702   : > { %4902 = vst.msk [vmem:[#allocation5 + $0x18] sm:$0xf] %vm4895_vm9, %v4869_v55  ;;  %5392 = vperm.xlu0 %7340, %v5216_v40  }
 0x704   : > { %v5150_v39 = vpop.permute.xlu0 %5149 }
 0x705   : > { %5153 = vrot.lane.b32.xlu1 %v5118_v7, %s7382_s19 }
 0x706   : > { %5372 = vperm.xlu2 %7342, %v5212_v41  }
 0x707   : > { %v4778_v47 = vpop.permute.xlu1 %4777 }
 0x708   : > { %v4786_v43 = vpop.permute.xlu2 %4785  ;;  %4810 = vst.msk [vmem:[#allocation5 + $0x1c] sm:$0xf] %vm4802_vm8, %v4778_v47 }
 0x709   : > { %4903 = vst.msk [vmem:[#allocation5 + $0x1c] sm:$0xf] %vm4895_vm9, %v4871_v35 }
 0x70a   : > { %4996 = vst.msk [vmem:[#allocation5 + $0x1c] sm:$0xf] %vm4988_vm10, %v4964_v46  ;;  %5387 = vperm.xlu0 %7340, %v5215_v52  }
 0x70c   : > { %v4598_v49 = vpop.permute.xlu0 %4597 }
 0x70d   : > { %4880 = vrot.lane.b32.xlu1 %v4842_v15, %s7379_s25 }
 0x70e   : > { %5382 = vperm.xlu2 %7342, %v5214_v4  }
 0x70f   : > { %v4962_v2 = vpop.permute.xlu1 %4961 }
 0x710   : > { %v4970_v48 = vpop.permute.xlu2 %4969  ;;  %4995 = vst.msk [vmem:[#allocation5 + $0x18] sm:$0xf] %vm4988_vm10, %v4962_v2 }
 0x711   : > { %5088 = vst.msk [vmem:[#allocation5 + $0x18] sm:$0xf] %vm5081_vm1, %v5055_v9 }
 0x712   : > { %5181 = vst.msk [vmem:[#allocation5 + $0x18] sm:$0xf] %vm5174_vm11, %v5148_v25  ;;  %5407 = vperm.xlu0 %7340, %v5219_v38  }
 0x714   : > { %v4693_v27 = vpop.permute.xlu0 %4692 }
 0x715   : > { %5159 = vrot.lane.b32.xlu1 %v5121_v44, %s7382_s19 }
 0x716   : > { %5402 = vperm.xlu2 %7342, %v5218_v29  }
 0x717   : > { %v5057_v56 = vpop.permute.xlu1 %5056 }
 0x718   : > { %v5065_v19 = vpop.permute.xlu2 %5064  ;;  %5089 = vst.msk [vmem:[#allocation5 + $0x1c] sm:$0xf] %vm5081_vm1, %v5057_v56 }
 0x719   : > { %5182 = vst.msk [vmem:[#allocation5 + $0x1c] sm:$0xf] %vm5174_vm11, %v5150_v39 }
 0x71a   : > { %5422 = vperm.xlu0 %7340, %v5222_v60   ;;  %v7353_v60 = vld [vmem:[%s12764_s5] ss:$0 sm:$0xff] }
 0x71c   : > { %v4877_v58 = vpop.permute.xlu0 %4876 }
 0x71d   : > { %5377 = vperm.xlu1 %7341, %v5213_v11   ;;  %v5323_v39 = vpop.f32.mrf.mxu0 }
 0x71e   : > { %5417 = vperm.xlu2 %7342, %v5221_v1  }
 0x71f   : > { %v4505_v13 = vpop.permute.xlu1 %4504 }
 0x720   : > { %v4501_v14 = vpop.permute.xlu2 %4500  ;;  %4534 = vst.msk [vmem:[#allocation5 + $0x28] sm:$0xf] %vm4523_vm5, %v4505_v13  ;;  %v6795_v30 = vld [vmem:[#allocation5 + $0x18] sm:$0xff] }
 0x721   : > { %4532 = vst.msk [vmem:[#allocation5 + $0x20] sm:$0xf] %vm4523_vm5, %v4501_v14  ;;  %6648 = vmatmul.msk.bf16.gmra.mxu0 %vm5288_vm13, %v6795_v30 }
 0x722   : > { %4627 = vst.msk [vmem:[#allocation5 + $0x28] sm:$0xf] %vm4616_vm6, %v4598_v49 }
 0x723   : > { %4720 = vst.msk [vmem:[#allocation5 + $0x28] sm:$0xf] %vm4709_vm7, %v4691_v50 }
 0x724   : > { %v4972_v37 = vpop.permute.xlu0 %4971 }
 0x725   : > { %5397 = vperm.xlu1 %7341, %v5217_v51   ;;  %v5325_v26 = vpop.f32.mrf.mxu0 }
 0x726   : > { %5432 = vperm.xlu2 %7342, %v5224_v59  }
 0x727   : > { %v4600_v12 = vpop.permute.xlu1 %4599 }
 0x728   : > { %v4596_v55 = vpop.permute.xlu2 %4595  ;;  %4628 = vst.msk [vmem:[#allocation5 + $0x2c] sm:$0xf] %vm4616_vm6, %v4600_v12  ;;  %v5324_v12 = vadd.f32 %v7353_v60, %v5323_v39 }
 0x729   : > { %4721 = vst.msk [vmem:[#allocation5 + $0x2c] sm:$0xf] %vm4709_vm7, %v4693_v27 }
 0x72a   : > { %4814 = vst.msk [vmem:[#allocation5 + $0x2c] sm:$0xf] %vm4802_vm8, %v4786_v43 }
 0x72c   : > { %v5156_v18 = vpop.permute.xlu0 %5155 }
 0x72d   : > { %5412 = vperm.xlu1 %7341, %v5220_v3  }
 0x72f   : > { %v4784_v53 = vpop.permute.xlu1 %4783 }
 0x730   : > { %v4780_v31 = vpop.permute.xlu2 %4779  ;;  %4813 = vst.msk [vmem:[#allocation5 + $0x28] sm:$0xf] %vm4802_vm8, %v4784_v53  ;;  %v5326_v53 = vadd.f32 %v7353_v60, %v5325_v26 }
 0x731   : > { %4906 = vst.msk [vmem:[#allocation5 + $0x28] sm:$0xf] %vm4895_vm9, %v4877_v58 }
 0x732   : > { %4999 = vst.msk [vmem:[#allocation5 + $0x28] sm:$0xf] %vm4988_vm10, %v4970_v48 }
 0x734   : > { %v4503_v33 = vpop.permute.xlu0 %4502 }
 0x735   : > { %5427 = vperm.xlu1 %7341, %v5223_v34   ;;  %4533 = vst.msk [vmem:[#allocation5 + $0x24] sm:$0xf] %vm4523_vm5, %v4503_v33  ;;  %vm4908_vm5 = vcmask 386368  }
 0x736   : > { %4626 = vst.msk [vmem:[#allocation5 + $0x24] sm:$0xf] %vm4616_vm6, %v4596_v55 }
 0x737   : > { %v4879_v46 = vpop.permute.xlu1 %4878 }
 0x738   : > { %v4875_v28 = vpop.permute.xlu2 %4874  ;;  %4907 = vst.msk [vmem:[#allocation5 + $0x2c] sm:$0xf] %vm4895_vm9, %v4879_v46 }
 0x739   : > { %5000 = vst.msk [vmem:[#allocation5 + $0x2c] sm:$0xf] %vm4988_vm10, %v4972_v37 }
 0x73a   : > { %5093 = vst.msk [vmem:[#allocation5 + $0x2c] sm:$0xf] %vm5081_vm1, %v5065_v19 }
 0x73c   : > { %v4687_v5 = vpop.permute.xlu0 %4686 }
 0x73f   : > { %v5063_v57 = vpop.permute.xlu1 %5062 }
 0x740   : > { %v4509_v61 = vpop.permute.xlu2 %4508  ;;  %5092 = vst.msk [vmem:[#allocation5 + $0x28] sm:$0xf] %vm5081_vm1, %v5063_v57 }
 0x741   : > { %4537 = vst.msk [vmem:[#allocation5 + $0x30] sm:$0x3] %vm4536_vm15, %v4509_v61 }
 0x742   : > { %5185 = vst.msk [vmem:[#allocation5 + $0x28] sm:$0xf] %vm5174_vm11, %v5156_v18 }
 0x744   : > { %v4782_v16 = vpop.permute.xlu0 %4781 }
 0x747   : > { %v5158_v23 = vpop.permute.xlu1 %5157 }
 0x748   : > { %v4602_v42 = vpop.permute.xlu2 %4601  ;;  %5186 = vst.msk [vmem:[#allocation5 + $0x2c] sm:$0xf] %vm5174_vm11, %v5158_v23 }
 0x749   : > { %4630 = vst.msk [vmem:[#allocation5 + $0x30] sm:$0x3] %vm4629_vm2, %v4602_v42 }
 0x74c   : > { %v4966_v10 = vpop.permute.xlu0 %4965 }
 0x74d   : > { %v5328_v47 = vpop.f32.mrf.mxu0 }
 0x74e   : > { %v5329_v46 = vadd.f32 %v7353_v60, %v5328_v47 }
 0x74f   : > { %v4594_v25 = vpop.permute.xlu1 %4593  ;;  %v6797_v20 = vld [vmem:[#allocation5 + $0x28] sm:$0xff] }
 0x750   : > { %v4695_v32 = vpop.permute.xlu2 %4694  ;;  %4625 = vst.msk [vmem:[#allocation5 + $0x20] sm:$0xf] %vm4616_vm6, %v4594_v25  ;;  %6650 = vmatmul.msk.bf16.vlgmr.msra.gmra.mxu1 %vm5288_vm13, %v6797_v20  ;;  %vm5001_vm6 = vcmask 451968   ;;  %v5358_v25 = vmax.f32 %v5326_v53, 0.0 }
 0x751   : > { %4723 = vst.msk [vmem:[#allocation5 + $0x30] sm:$0x3] %vm4722_vm3, %v4695_v32 }
 0x752   : > { %4718 = vst.msk [vmem:[#allocation5 + $0x20] sm:$0xf] %vm4709_vm7, %v4687_v5 }
 0x753   : > { %4811 = vst.msk [vmem:[#allocation5 + $0x20] sm:$0xf] %vm4802_vm8, %v4780_v31 }
 0x754   : > { %v5059_v35 = vpop.permute.xlu0 %5058 }
 0x755   : > { %v5330_v43 = vpop.f32.mrf.mxu0 }
 0x756   : > { %v5331_v55 = vadd.f32 %v7353_v60, %v5330_v43 }
 0x757   : > { %v4689_v22 = vpop.permute.xlu1 %4688 }
 0x758   : > { %4719 = vst.msk [vmem:[#allocation5 + $0x24] sm:$0xf] %vm4709_vm7, %v4689_v22  ;;  %vm5094_vm7 = vcmask 517568   ;;  %v4974_v62 = vpop.permute.xlu2 %4973  ;;  %v5360_v23 = vmax.f32 %v5331_v55, 0.0 }
 0x759   : > { %4812 = vst.msk [vmem:[#allocation5 + $0x24] sm:$0xf] %vm4802_vm8, %v4782_v16  ;;  %v5357_v16 = vmax.f32 %v5324_v12, 0.0  ;;  %vm5468_vm8 = vcmask 125952  }
 0x75a   : > { %4905 = vst.msk [vmem:[#allocation5 + $0x24] sm:$0xf] %vm4895_vm9, %v4875_v28 }
 0x75c   : > { %v5152_v0 = vpop.permute.xlu0 %5151 }
 0x75f   : > { %v4873_v24 = vpop.permute.xlu1 %4872 }
 0x760   : > { %4904 = vst.msk [vmem:[#allocation5 + $0x20] sm:$0xf] %vm4895_vm9, %v4873_v24  ;;  %v5373_v49 = vpop.permute.xlu2 %5372 }
 0x761   : > { %4997 = vst.msk [vmem:[#allocation5 + $0x20] sm:$0xf] %vm4988_vm10, %v4966_v10  ;;  %v12277_v22 = vmul.f32 %v5373_v49, %v5357_v16 }
 0x762   : > { %5090 = vst.msk [vmem:[#allocation5 + $0x20] sm:$0xf] %vm5081_vm1, %v5059_v35 }
 0x763   : > { %5183 = vst.msk [vmem:[#allocation5 + $0x20] sm:$0xf] %vm5174_vm11, %v5152_v0  ;;  %v5359_v0 = vmax.f32 %v5329_v46, 0.0  ;;  %v5448_v47 = vsel %vm485_vm14, %v12277_v22, -inf }
 0x764   : > { %v4788_v17 = vpop.permute.xlu0 %4787 }
 0x765   : > { %4816 = vst.msk [vmem:[#allocation5 + $0x30] sm:$0x3] %vm4815_vm4, %v4788_v17 }
 0x767   : > { %v4968_v21 = vpop.permute.xlu1 %4967 }
 0x768   : > { %4998 = vst.msk [vmem:[#allocation5 + $0x24] sm:$0xf] %vm4988_vm10, %v4968_v21  ;;  %v5383_v38 = vpop.permute.xlu2 %5382 }
 0x76c   : > { %v5067_v50 = vpop.permute.xlu0 %5066 }
 0x76f   : > { %v5061_v54 = vpop.permute.xlu1 %5060 }
 0x770   : > { %5091 = vst.msk [vmem:[#allocation5 + $0x24] sm:$0xf] %vm5081_vm1, %v5061_v54  ;;  %v5403_v19 = vpop.permute.xlu2 %5402 }
 0x774   : > { %v5393_v2 = vpop.permute.xlu0 %5392 }
 0x775   : > { %v5333_v52 = vpop.f32.mrf.mxu0 }
 0x776   : > { %v5334_v11 = vadd.f32 %v7353_v60, %v5333_v52 }
 0x777   : > { %v5154_v36 = vpop.permute.xlu1 %5153 }
 0x778   : > { %5184 = vst.msk [vmem:[#allocation5 + $0x24] sm:$0xf] %vm5174_vm11, %v5154_v36  ;;  %v5361_v3 = vmax.f32 %v5334_v11, 0.0  ;;  %v5418_v28 = vpop.permute.xlu2 %5417 }
 0x77a   : > { %v12273_v42 = vmul.f32 %v5393_v2, %v5361_v3 }
 0x77c   : > { %v5388_v27 = vpop.permute.xlu0 %5387 }
 0x77d   : > { %v5335_v15 = vpop.f32.mrf.mxu0  ;;  %v12279_v24 = vmul.f32 %v5388_v27, %v5360_v23  ;;  %v5714_v23 = vld [vmem:[#allocation8 + $0x2] sm:$0xff] }
 0x77e   : > { %v5336_v18 = vadd.f32 %v7353_v60, %v5335_v15 }
 0x77f   : > { %v4881_v8 = vpop.permute.xlu1 %4880  ;;  %v6796_v9 = vld [vmem:[#allocation5 + $0x20] sm:$0xff]  ;;  %v5451_v43 = vsel %vm485_vm14, %v12279_v24, -inf }
 0x780   : > { %4909 = vst.msk [vmem:[#allocation5 + $0x30] sm:$0x3] %vm4908_vm5, %v4881_v8  ;;  %6649 = vmatmul.msk.bf16.gmra.mxu0 %vm5288_vm13, %v6796_v9  ;;  %v5362_v10 = vmax.f32 %v5336_v18, 0.0  ;;  %v12289_v9 = vmul.f32 %v5383_v38, %v5359_v0 }
 0x781   : > { %5002 = vst.msk [vmem:[#allocation5 + $0x30] sm:$0x3] %vm5001_vm6, %v4974_v62  ;;  %v5452_v62 = vsel %vm485_vm14, %v12273_v42, -inf }
 0x782   : > { %5095 = vst.msk [vmem:[#allocation5 + $0x30] sm:$0x3] %vm5094_vm7, %v5067_v50  ;;  %v5450_v2 = vsel %vm485_vm14, %v12289_v9, -inf  ;;  %v5453_v38 = vmax.f32 %v5448_v47, %v5452_v62 }
 0x784   : > { %v5408_v14 = vpop.permute.xlu0 %5407 }
 0x787   : > { %v5160_v40 = vpop.permute.xlu1 %5159 }
 0x788   : > { %5188 = vst.msk [vmem:[#allocation5 + $0x30] sm:$0x3] %vm5187_vm0, %v5160_v40 }
 0x78c   : > { %v5423_v40 = vpop.permute.xlu0 %5422 }
 0x78f   : > { %v5201_v6 = vld [vmem:[#allocation5 + $0x30] sm:$0x3]  ;;  %v5378_v45 = vpop.permute.xlu1 %5377 }
 0x790   : > { %v5253_v41 = vunpack.c.l.b16 %v5201_v6  ;;  %v12293_v50 = vmul.f32 %v5378_v45, %v5358_v25 }
 0x792   : > { %v5260_v7 = vpack.c.b16 %v5253_v41, %v5253_v41 }
 0x794   : > { %6651 = vmatmul.msk.bf16.gmra.mxu1 %vm5288_vm13, %v5260_v7 }
 0x797   : > { %v5398_v44 = vpop.permute.xlu1 %5397 }
 0x798   : > { %v12281_v17 = vmul.f32 %v5398_v44, %v5362_v10 }
 0x79a   : > { %v5454_v52 = vsel %vm485_vm14, %v12281_v17, -inf }
 0x79e   : > { %v5338_v4 = vpop.f32.mrf.mxu0 }
 0x79f   : > { %v5413_v1 = vpop.permute.xlu1 %5412  ;;  %v5339_v51 = vadd.f32 %v7353_v60, %v5338_v4 }
 0x7a1   : > { %v5363_v5 = vmax.f32 %v5339_v51, 0.0 }
 0x7a3   : > { %v12283_v54 = vmul.f32 %v5403_v19, %v5363_v5 }
 0x7a5   : > { %v5456_v15 = vsel %vm485_vm14, %v12283_v54, -inf }
 0x7a6   : > { %v5340_v48 = vpop.f32.mrf.mxu0  ;;  %v5457_v11 = vmax.f32 %v5450_v2, %v5456_v15 }
 0x7a7   : > { %v5341_v13 = vadd.f32 %v7353_v60, %v5340_v48  ;;  %v5428_v21 = vpop.permute.xlu1 %5427  ;;  %v5433_v48 = vpop.permute.xlu2 %5432 }
 0x7a9   : > { %v5364_v31 = vmax.f32 %v5341_v13, 0.0 }
 0x7ab   : > { %v12275_v20 = vmul.f32 %v5408_v14, %v5364_v31 }
 0x7ad   : > { %v5458_v41 = vsel %vm485_vm14, %v12275_v20, -inf }
 0x7ae   : > { %v5459_v44 = vmax.f32 %v5451_v43, %v5458_v41 }
 0x7cd   : > { %v5348_v29 = vpop.f32.mrf.mxu1 }
 0x7ce   : > { %v5349_v34 = vadd.f32 %v7353_v60, %v5348_v29  ;;  %v5449_v29 = vsel %vm485_vm14, %v12293_v50, -inf }
 0x7d0   : > { %v5367_v32 = vmax.f32 %v5349_v34, 0.0 }
 0x7d2   : > { %v12297_v7 = vmul.f32 %v5423_v40, %v5367_v32  ;;  %v5719_v32 = vpack.c.bf16 %v5714_v23, %v5714_v23  ;;  %v5751_v40 = vld [vmem:[#allocation8 + $0x6] sm:$0xff] }
 0x7d3   : > { %v5756_v47 = vpack.c.bf16 %v5751_v40, %v5751_v40 }
 0x7d4   : > { %v5464_v27 = vsel %vm485_vm14, %v12297_v7, -inf }
 0x7d5   : > { %v5350_v58 = vpop.f32.mrf.mxu1  ;;  %v5465_v14 = vmax.f32 %v5457_v11, %v5464_v27 }
 0x7d6   : > { %v5351_v59 = vadd.f32 %v7353_v60, %v5350_v58 }
 0x7d8   : > { %v5368_v57 = vmax.f32 %v5351_v59, 0.0 }
 0x7da   : > { %v12285_v36 = vmul.f32 %v5428_v21, %v5368_v57 }
 0x7dc   : > { %v5466_v4 = vsel %vm485_vm14, %v12285_v36, -inf }
 0x7fd   : > { %v5343_v56 = vpop.f32.mrf.mxu0 }
 0x7fe   : > { %v5344_v37 = vadd.f32 %v7353_v60, %v5343_v56 }
 0x800   : > { %v5365_v61 = vmax.f32 %v5344_v37, 0.0 }
 0x802   : > { %v12287_v8 = vmul.f32 %v5413_v1, %v5365_v61  ;;  %v5467_v1 = vmax.f32 %v5459_v44, %v5466_v4  ;;  %v5677_v61 = vld [vmem:[#allocation8 + $0x1] sm:$0xff] }
 0x803   : > { %v5682_v16 = vpack.c.bf16 %v5677_v61, %v5677_v61 }
 0x804   : > { %v5460_v49 = vsel %vm485_vm14, %v12287_v8, -inf  ;;  %v5472_v12 = vmax.f32 %v5465_v14, %v5467_v1 }
 0x805   : > { %v5345_v30 = vpop.f32.mrf.mxu0  ;;  %v5461_v58 = vmax.f32 %v5453_v38, %v5460_v49  ;;  %5692 = vrot.lane.b32.xlu1 %v5682_v16, %s7376_s21 }
 0x806   : > { %v5346_v33 = vadd.f32 %v7353_v60, %v5345_v30 }
 0x808   : > { %v5366_v35 = vmax.f32 %v5346_v33, 0.0 }
 0x80a   : > { %v12299_v39 = vmul.f32 %v5418_v28, %v5366_v35 }
 0x80c   : > { %v5462_v56 = vsel %vm485_vm14, %v12299_v39, -inf }
 0x80d   : > { %5729 = vrot.lane.b32.xlu1 %v5719_v32, %s7378_s24 }
 0x811   : > { %v5353_v6 = vpop.f32.mrf.mxu1 }
 0x812   : > { %v5354_v26 = vadd.f32 %v7353_v60, %v5353_v6  ;;  %v5455_v60 = vmax.f32 %v5449_v29, %v5454_v52 }
 0x814   : > { %v5369_v45 = vmax.f32 %v5354_v26, 0.0  ;;  %v5463_v30 = vmax.f32 %v5455_v60, %v5462_v56 }
 0x815   : > { %5766 = vrot.lane.b32.xlu1 %v5756_v47, %s7380_s26 }
 0x816   : > { %v5447_v19 = vmul.f32 %v5433_v48, %v5369_v45 }
 0x818   : > { %v5469_v13 = vsel %vm5468_vm8, %v5447_v19, -inf }
 0x819   : > { %v5470_v51 = vmax.f32 %v5461_v58, %v5469_v13  ;;  %v5355_v59 = vpop.f32.mrf.mxu1 }
 0x81b   : > { %v5471_v37 = vmax.f32 %v5470_v51, %v5463_v30 }
 0x81d   : > { %v5473_v55 = vmax.f32 %v5471_v37, %v5472_v12 }
 0x81f   : > { %5474 = vmax.xlane.f32.xlu0 %v5473_v55 }
 0x892   : > { %v5475_v3 = vpop.xlane.xlu0 %5474 }
 0x893   : > { %v5476_v18 = vrot.slane %v5475_v3, 4 }
 0x895   : > { %v5477_v53 = vmax.f32 %v5475_v3, %v5476_v18 }
 0x897   : > { %v5478_v31 = vrot.slane %v5477_v53, 2 }
 0x899   : > { %v5479_v34 = vmax.f32 %v5477_v53, %v5478_v31 }
 0x89b   : > { %v5480_v33 = vrot.slane %v5479_v34, 1 }
 0x89d   : > { %v5481_v46 = vmax.f32 %v5479_v34, %v5480_v33 }
 0x89f   : > { %7171 = vpush %v5481_v46 }
 0x8d0   : > { %s7172_s23 = spop %7171 }
 0x8d1   : > { %v5483_v28 = vstv %s7172_s23 }
 0x8d2   : > { %v5484_v5 = vmax.f32 %v5483_v28, 1e-12 }
 0x8d4   : > { %v12322_v57 = vmul.f32 0.06666667, %v5484_v5 }
 0x8d6   : > { %7357 = vrcp.f32 %v12322_v57  ;;  %v5497_v0 = vand.u32 2147483648, %v12322_v57  ;;  %v5495_v62 = vand.u32 2147483647, %v12322_v57  ;;  %vm5491_vm10 = vweird.f32 %v12322_v57 }
 0x8d8   : > { %v5498_v41 = vor.u32 1.1754944e-38, %v5497_v0  ;;  %vm5496_vm11 = vcmp.eq.f32.partialorder %v5495_v62, 8.507059e+37 }
 0x8dc   : > { %v7358_v10 = vpop.eup %7357 }
 0x8dd   : > { %v5487_v25 = vmul.f32 %v7358_v10, %v12322_v57  ;;  %vm5492_vm9 = vweird.f32 %v7358_v10 }
 0x8de   : > { %vm5493_vm1 = vmor %vm5491_vm10, %vm5492_vm9 }
 0x8df   : > { %v5488_v35 = vsub.f32 1.0, %v5487_v25 }
 0x8e1   : > { %v5489_v21 = vmul.f32 %v7358_v10, %v5488_v35 }
 0x8e3   : > { %v5490_v6 = vadd.f32 %v7358_v10, %v5489_v21 }
 0x8e5   : > { %v5494_v26 = vsel %vm5493_vm1, %v7358_v10, %v5490_v6 }
 0x8e6   : > { %v12331_v43 = vsel %vm5496_vm11, %v5498_v41, %v5494_v26  ;;  %vm492_vm11 = vcmask 123904  }
 0x8e7   : > { %v5501_v52 = vmul.f32 %v12331_v43, %v12277_v22  ;;  %v5513_v15 = vmul.f32 %v12331_v43, %v5447_v19  ;;  %v12338_v4 = vmul.f32 %v12331_v43, %v12293_v50  ;;  %v12342_v49 = vmul.f32 %v12331_v43, %v12289_v9  ;;  %493 = vst.msk [vmem:[#allocation8 + $0x30] sm:$0x3] %vm492_vm11, %v13832_v63 }
 0x8e8   : > { %v12347_v38 = vmul.f32 %v12331_v43, %v12279_v24  ;;  %v12351_v44 = vmul.f32 %v12331_v43, %v12273_v42  ;;  %v12357_v56 = vmul.f32 %v12331_v43, %v12281_v17  ;;  %v12361_v19 = vmul.f32 %v12331_v43, %v12283_v54 }
 0x8e9   : > { %v7173_v45 = vand.u32 2147483647, %v5501_v52  ;;  %v7175_v2 = vcvt.f32.s32 %v5501_v52  ;;  %v7269_v48 = vand.u32 2147483647, %v5513_v15  ;;  %v7271_v22 = vcvt.f32.s32 %v5513_v15 }
 0x8ea   : > { %v7181_v50 = vand.u32 2147483647, %v12338_v4  ;;  %v7183_v29 = vcvt.f32.s32 %v12338_v4  ;;  %v7178_v27 = vand.u32 2147483648, %v5501_v52  ;;  %v7274_v60 = vand.u32 2147483648, %v5513_v15 }
 0x8eb   : > { %v7176_v9 = vcvt.s32.f32 %v7175_v2  ;;  %vm12363_vm12 = vcmp.lt.f32.partialorder %v7173_v45, 8388608.0  ;;  %v7272_v42 = vcvt.s32.f32 %v7271_v22  ;;  %vm12367_vm13 = vcmp.lt.f32.partialorder %v7269_v48, 8388608.0 }
 0x8ec   : > { %v7184_v11 = vcvt.s32.f32 %v7183_v29  ;;  %v7186_v13 = vand.u32 2147483648, %v12338_v4  ;;  %v7191_v17 = vcvt.f32.s32 %v12342_v49  ;;  %vm12373_vm15 = vcmp.lt.f32.partialorder %v7181_v50, 8388608.0 }
 0x8ed   : > { %v7177_v1 = vand.u32 2147483647, %v7176_v9  ;;  %v7273_v14 = vand.u32 2147483647, %v7272_v42  ;;  %v7199_v51 = vcvt.f32.s32 %v12347_v38  ;;  %v7189_v37 = vand.u32 2147483647, %v12342_v49 }
 0x8ee   : > { %v7185_v30 = vand.u32 2147483647, %v7184_v11  ;;  %v7192_v12 = vcvt.s32.f32 %v7191_v17  ;;  %v7194_v55 = vand.u32 2147483648, %v12342_v49  ;;  %v7197_v53 = vand.u32 2147483647, %v12347_v38 }
 0x8ef   : > { %v7179_v59 = vor.u32 %v7178_v27, %v7177_v1  ;;  %v7275_v3 = vor.u32 %v7274_v60, %v7273_v14  ;;  %v7200_v31 = vcvt.s32.f32 %v7199_v51  ;;  %v7202_v46 = vand.u32 2147483648, %v12347_v38  ;;  %v6814_v14 = vld [vmem:[%s12766_s7 + $0x40] sm:$0xff] }
 0x8f0   : > { %v7187_v18 = vor.u32 %v7186_v13, %v7185_v30  ;;  %v7193_v33 = vand.u32 2147483647, %v7192_v12  ;;  %v7207_v28 = vcvt.f32.s32 %v12351_v44  ;;  %v7205_v23 = vand.u32 2147483647, %v12351_v44  ;;  %6100 = vmatpush.bf16.msra.mxu2 %v6814_v14 }
 0x8f1   : > { %v7180_v34 = vsel %vm12363_vm12, %v7179_v59, %v5501_v52  ;;  %v7276_v5 = vsel %vm12367_vm13, %v7275_v3, %v5513_v15  ;;  %v7201_v16 = vand.u32 2147483647, %v7200_v31  ;;  %vm12390_vm2 = vcmp.lt.f32.partialorder %v7189_v37, 8388608.0 }
 0x8f2   : > { %v5527_v61 = vmul.f32 %v7180_v34, %v12322_v57  ;;  %v5539_v10 = vmul.f32 %v7276_v5, %v12322_v57  ;;  %v7195_v32 = vor.u32 %v7194_v55, %v7193_v33  ;;  %v7208_v35 = vcvt.s32.f32 %v7207_v28 }
 0x8f3   : > { %v7188_v0 = vsel %vm12373_vm15, %v7187_v18, %v12338_v4  ;;  %vm12398_vm3 = vcmp.lt.f32.partialorder %v7197_v53, 8388608.0  ;;  %v7203_v62 = vor.u32 %v7202_v46, %v7201_v16  ;;  %v7215_v40 = vcvt.f32.s32 %v12357_v56 }
 0x8f4   : > { %5540 = vst.msk [vmem:[#allocation6] sm:$0xff] %vm485_vm14, %v5527_v61  ;;  %v7196_v6 = vsel %vm12390_vm2, %v7195_v32, %v12342_v49  ;;  %v7209_v41 = vand.u32 2147483647, %v7208_v35  ;;  %v7210_v26 = vand.u32 2147483648, %v12351_v44  ;;  %v7223_v47 = vcvt.f32.s32 %v12361_v19 }
 0x8f5   : > { %5552 = vst.msk [vmem:[#allocation6 + $0x60] sm:$0xf] %vm5468_vm8, %v5539_v10  ;;  %v7204_v52 = vsel %vm12398_vm3, %v7203_v62, %v12347_v38  ;;  %vm12412_vm4 = vcmp.lt.f32.partialorder %v7205_v23, 8388608.0  ;;  %v7213_v4 = vand.u32 2147483647, %v12357_v56  ;;  %v7216_v45 = vcvt.s32.f32 %v7215_v40 }
 0x8f6   : > { %v7211_v2 = vor.u32 %v7210_v26, %v7209_v41  ;;  %v7218_v48 = vand.u32 2147483648, %v12357_v56  ;;  %v7224_v49 = vcvt.s32.f32 %v7223_v47  ;;  %v5528_v22 = vmul.f32 %v7188_v0, %v12322_v57 }
 0x8f7   : > { %v7217_v50 = vand.u32 2147483647, %v7216_v45  ;;  %v7221_v29 = vand.u32 2147483647, %v12361_v19  ;;  %v5529_v9 = vmul.f32 %v7196_v6, %v12322_v57  ;;  %v5530_v38 = vmul.f32 %v7204_v52, %v12322_v57 }
 0x8f8   : > { %v7212_v27 = vsel %vm12412_vm4, %v7211_v2, %v12351_v44  ;;  %v7225_v24 = vand.u32 2147483647, %v7224_v49  ;;  %v7226_v42 = vand.u32 2147483648, %v12361_v19  ;;  %5541 = vst.msk [vmem:[#allocation6 + $0x8] sm:$0xff] %vm485_vm14, %v5528_v22  ;;  %vm7214_vm5 = vcmp.lt.f32.partialorder %v7213_v4, 8388608.0 }
 0x8f9   : > { %v7219_v60 = vor.u32 %v7218_v48, %v7217_v50  ;;  %v5531_v11 = vmul.f32 %v7212_v27, %v12322_v57  ;;  %5542 = vst.msk [vmem:[#allocation6 + $0x10] sm:$0xff] %vm485_vm14, %v5529_v9  ;;  %vm7222_vm6 = vcmp.lt.f32.partialorder %v7221_v29, 8388608.0  ;;  %v12441_v54 = vmul.f32 %v12331_v43, %v12275_v20 }
 0x8fa   : > { %v7227_v1 = vor.u32 %v7226_v42, %v7225_v24  ;;  %5543 = vst.msk [vmem:[#allocation6 + $0x18] sm:$0xff] %vm485_vm14, %v5530_v38  ;;  %v12450_v30 = vmul.f32 %v12331_v43, %v12299_v39  ;;  %v12454_v37 = vmul.f32 %v12331_v43, %v12297_v7  ;;  %v12460_v18 = vmul.f32 %v12331_v43, %v12285_v36 }
 0x8fb   : > { %v7220_v58 = vsel %vm7214_vm5, %v7219_v60, %v12357_v56  ;;  %5544 = vst.msk [vmem:[#allocation6 + $0x20] sm:$0xff] %vm485_vm14, %v5531_v11  ;;  %v12445_v56 = vmul.f32 %v12331_v43, %v12287_v8  ;;  %v7229_v20 = vand.u32 2147483647, %v12441_v54  ;;  %v7231_v12 = vcvt.f32.s32 %v12441_v54 }
 0x8fc   : > { %v7228_v44 = vsel %vm7222_vm6, %v7227_v1, %v12361_v19  ;;  %v5532_v13 = vmul.f32 %v7220_v58, %v12322_v57  ;;  %v7234_v39 = vand.u32 2147483648, %v12441_v54  ;;  %v7247_v10 = vcvt.f32.s32 %v12450_v30 }
 0x8fd   : > { %v5533_v17 = vmul.f32 %v7228_v44, %v12322_v57  ;;  %v7239_v53 = vcvt.f32.s32 %v12445_v56  ;;  %v7232_v28 = vcvt.s32.f32 %v7231_v12  ;;  %v7237_v5 = vand.u32 2147483647, %v12445_v56 }
 0x8fe   : > { %5545 = vst.msk [vmem:[#allocation6 + $0x28] sm:$0xff] %vm485_vm14, %v5532_v13  ;;  %vm12465_vm7 = vcmp.lt.f32.partialorder %v7229_v20, 8388608.0  ;;  %v7242_v43 = vand.u32 2147483648, %v12445_v56  ;;  %v7248_v6 = vcvt.s32.f32 %v7247_v10  ;;  %v7255_v41 = vcvt.f32.s32 %v12454_v37 }
 0x8ff   : > { %5546 = vst.msk [vmem:[#allocation6 + $0x30] sm:$0xff] %vm485_vm14, %v5533_v17  ;;  %v5554_v19 = vld [vmem:[#allocation6 + $0x8] sm:$0xff]  ;;  %v7240_v36 = vcvt.s32.f32 %v7239_v53  ;;  %v7233_v35 = vand.u32 2147483647, %v7232_v28  ;;  %v7245_v22 = vand.u32 2147483647, %v12450_v30  ;;  %v7263_v17 = vcvt.f32.s32 %v12460_v18 }
 0x900   : > { %v5555_v51 = vld [vmem:[#allocation6 + $0x10] sm:$0xff]  ;;  %vm12474_vm0 = vcmp.lt.f32.partialorder %v7237_v5, 8388608.0  ;;  %v7249_v9 = vand.u32 2147483647, %v7248_v6  ;;  %v7250_v38 = vand.u32 2147483648, %v12450_v30  ;;  %v7256_v60 = vcvt.s32.f32 %v7255_v41 }
 0x901   : > { %v5566_v59 = vld [vmem:[#allocation6 + $0x9] sm:$0xff]  ;;  %v5556_v8 = vld [vmem:[#allocation6 + $0x18] sm:$0xff]  ;;  %v7241_v40 = vand.u32 2147483647, %v7240_v36  ;;  %v7235_v48 = vor.u32 %v7234_v39, %v7233_v35  ;;  %v7253_v58 = vand.u32 2147483647, %v12454_v37 }
 0x902   : > { %v5567_v55 = vld [vmem:[#allocation6 + $0x11] sm:$0xff]  ;;  %v5557_v31 = vld [vmem:[#allocation6 + $0x20] sm:$0xff]  ;;  %v5578_v33 = vmax.f32 %v5554_v19, %v5566_v59  ;;  %v7251_v1 = vor.u32 %v7250_v38, %v7249_v9  ;;  %vm7246_vm9 = vcmp.lt.f32.partialorder %v7245_v22, 8388608.0  ;;  %v7257_v44 = vand.u32 2147483647, %v7256_v60 }
 0x903   : > { %v5590_v3 = vld [vmem:[#allocation6 + $0x12] sm:$0xff]  ;;  %v5579_v7 = vmax.f32 %v5555_v51, %v5567_v55  ;;  %v5591_v46 = vld [vmem:[#allocation6 + $0x1a] sm:$0xff]  ;;  %v7243_v49 = vor.u32 %v7242_v43, %v7241_v40  ;;  %v7236_v24 = vsel %vm12465_vm7, %v7235_v48, %v12441_v54  ;;  %v7258_v13 = vand.u32 2147483648, %v12454_v37 }
 0x904   : > { %v5568_v34 = vld [vmem:[#allocation6 + $0x19] sm:$0xff]  ;;  %v7252_v14 = vsel %vm7246_vm9, %v7251_v1, %v12450_v30  ;;  %v5534_v54 = vmul.f32 %v7236_v24, %v12322_v57  ;;  %v7264_v51 = vcvt.s32.f32 %v7263_v17  ;;  %vm7254_vm10 = vcmp.lt.f32.partialorder %v7253_v58, 8388608.0 }
 0x905   : > { %v5602_v61 = vld [vmem:[#allocation6 + $0x13] sm:$0xff]  ;;  %v5603_v16 = vld [vmem:[#allocation6 + $0x1b] sm:$0xff]  ;;  %v5580_v21 = vmax.f32 %v5556_v8, %v5568_v34  ;;  %v5604_v52 = vld [vmem:[#allocation6 + $0x23] sm:$0xff]  ;;  %v7244_v42 = vsel %vm12474_vm0, %v7243_v49, %v12445_v56  ;;  %v7259_v19 = vor.u32 %v7258_v13, %v7257_v44  ;;  %v5536_v59 = vmul.f32 %v7252_v14, %v12322_v57 }
 0x906   : > { %v5614_v25 = vmax.f32 %v5590_v3, %v5602_v61  ;;  %v5615_v32 = vmax.f32 %v5591_v46, %v5603_v16  ;;  %v5569_v0 = vld [vmem:[#allocation6 + $0x21] sm:$0xff]  ;;  %v5593_v47 = vld [vmem:[#allocation6 + $0x2a] sm:$0xff]  ;;  %v5535_v56 = vmul.f32 %v7244_v42, %v12322_v57  ;;  %v7261_v20 = vand.u32 2147483647, %v12460_v18  ;;  %5547 = vst.msk [vmem:[#allocation6 + $0x38] sm:$0xff] %vm485_vm14, %v5534_v54  ;;  %v5939_v60 = vld [vmem:[#allocation8 + $0x26] sm:$0xff] }
 0x907   : > { %v5592_v62 = vld [vmem:[#allocation6 + $0x22] sm:$0xff]  ;;  %v5581_v26 = vmax.f32 %v5557_v31, %v5569_v0  ;;  %v5605_v45 = vld [vmem:[#allocation6 + $0x2b] sm:$0xff]  ;;  %v7260_v12 = vsel %vm7254_vm10, %v7259_v19, %v12454_v37  ;;  %v7265_v8 = vand.u32 2147483647, %v7264_v51  ;;  %v7266_v55 = vand.u32 2147483648, %v12460_v18  ;;  %5549 = vst.msk [vmem:[#allocation6 + $0x48] sm:$0xff] %vm485_vm14, %v5536_v59 }
 0x908   : > { %v5626_v15 = vmax.f32 %v5578_v33, %v5614_v25  ;;  %v5627_v4 = vmax.f32 %v5579_v7, %v5615_v32  ;;  %v5616_v2 = vmax.f32 %v5592_v62, %v5604_v52  ;;  %v5617_v50 = vmax.f32 %v5593_v47, %v5605_v45  ;;  %5548 = vst.msk [vmem:[#allocation6 + $0x40] sm:$0xff] %vm485_vm14, %v5535_v56  ;;  %v5559_v34 = vld [vmem:[#allocation6 + $0x30] sm:$0xff] }
 0x909   : > { %v5537_v3 = vmul.f32 %v7260_v12, %v12322_v57  ;;  %v7267_v39 = vor.u32 %v7266_v55, %v7265_v8  ;;  %vm7262_vm1 = vcmp.lt.f32.partialorder %v7261_v20, 8388608.0  ;;  %v5944_v1 = vpack.c.bf16 %v5939_v60, %v5939_v60  ;;  %v5977_v60 = vld [vmem:[%s12768_s9 + $0x10] sm:$0xff] }
 0x90a   : > { %5638 = vst.msk [vmem:[#allocation7 + $0x8] sm:$0xff] %vm485_vm14, %v5626_v15  ;;  %v5628_v27 = vmax.f32 %v5580_v21, %v5616_v2  ;;  %v5629_v11 = vmax.f32 %v5581_v26, %v5617_v50  ;;  %vm5707_vm12 = vcmask 257152   ;;  %vm5744_vm13 = vcmask 388352  }
 0x90b   : > { %5639 = vst.msk [vmem:[#allocation7 + $0x10] sm:$0xff] %vm485_vm14, %v5627_v4  ;;  %v7268_v31 = vsel %vm7262_vm1, %v7267_v39, %v12460_v18  ;;  %vm5818_vm15 = vcmask 650752   ;;  %vm5855_vm2 = vcmask 781952   ;;  %vm5892_vm3 = vcmask 913152  }
 0x90c   : > { %5640 = vst.msk [vmem:[#allocation7 + $0x18] sm:$0xff] %vm485_vm14, %v5628_v27  ;;  %v5538_v37 = vmul.f32 %v7268_v31, %v12322_v57  ;;  %vm5929_vm4 = vcmask 1044352   ;;  %vm5712_vm5 = vcmask 255104   ;;  %vm5749_vm6 = vcmask 386304  }
 0x90d   : > { %5641 = vst.msk [vmem:[#allocation7 + $0x20] sm:$0xff] %vm485_vm14, %v5629_v11  ;;  %v5560_v33 = vld [vmem:[#allocation6 + $0x38] sm:$0xff]  ;;  %vm5786_vm7 = vcmask 517504   ;;  %vm5823_vm0 = vcmask 648704   ;;  %vm5860_vm9 = vcmask 779904   ;;  %vm5897_vm10 = vcmask 911104  }
 0x90e   : > { %5550 = vst.msk [vmem:[#allocation6 + $0x50] sm:$0xff] %vm485_vm14, %v5537_v3  ;;  %v5571_v7 = vld [vmem:[#allocation6 + $0x31] sm:$0xff]  ;;  %v5562_v32 = vld [vmem:[#allocation6 + $0x48] sm:$0xff]  ;;  %vm5934_vm1 = vcmask 1042304  }
 0x90f   : > { %5551 = vst.msk [vmem:[#allocation6 + $0x58] sm:$0xff] %vm485_vm14, %v5538_v37  ;;  %v5561_v46 = vld [vmem:[#allocation6 + $0x40] sm:$0xff]  ;;  %v5583_v43 = vmax.f32 %v5559_v34, %v5571_v7 }
 0x910   : > { %v5572_v28 = vld [vmem:[#allocation6 + $0x39] sm:$0xff]  ;;  %v5573_v5 = vld [vmem:[#allocation6 + $0x41] sm:$0xff]  ;;  %5949 = vst.msk [vmem:[#allocation9 + $0x1c] sm:$0xf] %vm5468_vm8, %v5944_v1 }
 0x911   : > { %v5595_v61 = vld [vmem:[#allocation6 + $0x3a] sm:$0xff]  ;;  %v5596_v16 = vld [vmem:[#allocation6 + $0x42] sm:$0xff]  ;;  %v5584_v10 = vmax.f32 %v5560_v33, %v5572_v28  ;;  %v5585_v0 = vmax.f32 %v5561_v46, %v5573_v5 }
 0x912   : > { %v5651_v30 = vld [vmem:[#allocation7 + $0xb] ss:$2 sm:$0xf]  ;;  %v5607_v21 = vld [vmem:[#allocation6 + $0x3b] sm:$0xff]  ;;  %v5608_v62 = vld [vmem:[#allocation6 + $0x43] sm:$0xff] }
 0x913   : > { %5652 = vst.msk [vmem:[#allocation8 + $0xe] sm:$0xf] %vm5468_vm8, %v5651_v30  ;;  %v5619_v41 = vmax.f32 %v5595_v61, %v5607_v21  ;;  %v5620_v26 = vmax.f32 %v5596_v16, %v5608_v62  ;;  %v5979_v1 = vld [vmem:[%s12768_s9 + $0x20] sm:$0xf] }
 0x914   : > { %v5654_v53 = vld [vmem:[#allocation7 + $0x1f] ss:$2 sm:$0xf] }
 0x915   : > { %5655 = vst.msk [vmem:[#allocation8 + $0x14] sm:$0xf] %vm5468_vm8, %v5654_v53  ;;  %v5574_v35 = vld [vmem:[#allocation6 + $0x49] sm:$0xff]  ;;  %v5631_v48 = vmax.f32 %v5583_v43, %v5619_v41  ;;  %v5632_v49 = vmax.f32 %v5584_v10, %v5620_v26 }
 0x916   : > { %v5597_v57 = vld [vmem:[#allocation6 + $0x4a] sm:$0xff]  ;;  %v5586_v2 = vmax.f32 %v5562_v32, %v5574_v35  ;;  %v5598_v50 = vld [vmem:[#allocation6 + $0x52] sm:$0xff] }
 0x917   : > { %v5609_v40 = vld [vmem:[#allocation6 + $0x4b] sm:$0xff]  ;;  %v5610_v29 = vld [vmem:[#allocation6 + $0x53] sm:$0xff]  ;;  %5643 = vst.msk [vmem:[#allocation7 + $0x30] sm:$0xff] %vm485_vm14, %v5631_v48 }
 0x918   : > { %v5621_v47 = vmax.f32 %v5597_v57, %v5609_v40  ;;  %v5622_v9 = vmax.f32 %v5598_v50, %v5610_v29  ;;  %5644 = vst.msk [vmem:[#allocation7 + $0x38] sm:$0xff] %vm485_vm14, %v5632_v49  ;;  %v5975_v29 = vld [vmem:[%s12768_s9] sm:$0xff] }
 0x91a   : > { %v5788_v23 = vld [vmem:[#allocation8 + $0x7] sm:$0xff]  ;;  %v5633_v22 = vmax.f32 %v5585_v0, %v5621_v47  ;;  %v5634_v38 = vmax.f32 %v5586_v2, %v5622_v9 }
 0x91b   : > { %v5678_v36 = vld [vmem:[#allocation8 + $0x9] sm:$0xff]  ;;  %v5793_v25 = vpack.c.bf16 %v5788_v23, %v5788_v23  ;;  %v5662_v47 = vld [vmem:[#allocation8] sm:$0xff] }
 0x91c   : > { %v5683_v18 = vpack.c.bf16 %v5678_v36, %v5678_v36  ;;  %v5899_v6 = vld [vmem:[#allocation8 + $0xd] sm:$0xff]  ;;  %5645 = vst.msk [vmem:[#allocation7 + $0x40] sm:$0xff] %vm485_vm14, %v5633_v22  ;;  %v5755_v22 = vld [vmem:[#allocation8 + $0x26] sm:$0xf] }
 0x91d   : > { %5803 = vrot.lane.b32.xlu1 %v5793_v25, %s7382_s19  ;;  %v5904_v52 = vpack.c.bf16 %v5899_v6, %v5899_v6  ;;  %v5825_v15 = vld [vmem:[#allocation8 + $0x8] sm:$0xff]  ;;  %5646 = vst.msk [vmem:[#allocation7 + $0x48] sm:$0xff] %vm485_vm14, %v5634_v38  ;;  %v5826_v17 = vld [vmem:[#allocation8 + $0x10] sm:$0xff]  ;;  %v5760_v50 = vpack.c.bf16 %v5755_v22, %v5755_v22 }
 0x91e   : > { %5694 = vrot.lane.b32.xlu2 %v5683_v18, %s7376_s21  ;;  %v5715_v4 = vld [vmem:[#allocation8 + $0xa] sm:$0xff]  ;;  %v5830_v27 = vpack.c.bf16 %v5825_v15, %v5825_v15  ;;  %v5831_v54 = vpack.c.bf16 %v5826_v17, %v5826_v17  ;;  %v6664_v18 = vld [vmem:[#allocation9 + $0x18] sm:$0xf0] }
 0x91f   : > { %v5936_v45 = vld [vmem:[#allocation8 + $0xe] sm:$0xff]  ;;  %5914 = vrot.lane.b32.xlu0 %v5904_v52, %s7383_s30  ;;  %v5720_v24 = vpack.c.bf16 %v5715_v4, %v5715_v4  ;;  %v5693_v52 = vpop.permute.xlu1 %5692  ;;  %v5902_v15 = vld [vmem:[#allocation8 + $0x25] sm:$0xff]  ;;  %v5667_v4 = vpack.c.bf16 %v5662_v47, %v5662_v47 }
 0x920   : > { %v5941_v42 = vpack.c.bf16 %v5936_v45, %v5936_v45  ;;  %v5862_v11 = vld [vmem:[#allocation8 + $0xc] sm:$0xff]  ;;  %5673 = vst.msk [vmem:[#allocation9 + $0x8] sm:$0xf] %vm5468_vm8, %v5830_v27  ;;  %v5829_v45 = vld [vmem:[#allocation8 + $0x28] sm:$0xf]  ;;  %v5907_v2 = vpack.c.bf16 %v5902_v15, %v5902_v15 }
 0x921   : > { %v5657_v58 = vld [vmem:[#allocation7 + $0x33] ss:$2 sm:$0xf]  ;;  %v5867_v44 = vpack.c.bf16 %v5862_v11, %v5862_v11  ;;  %5674 = vst.msk [vmem:[#allocation9 + $0x10] sm:$0xf] %vm5468_vm8, %v5831_v54  ;;  %v5716_v62 = vld [vmem:[#allocation8 + $0x12] sm:$0xff]  ;;  %v5834_v48 = vpack.c.bf16 %v5829_v45, %v5829_v45 }
 0x922   : > { %5946 = vst.msk [vmem:[#allocation9 + $0x4] sm:$0xf] %vm5468_vm8, %v5941_v42  ;;  %v5789_v14 = vld [vmem:[#allocation8 + $0xf] sm:$0xff]  ;;  %v5721_v41 = vpack.c.bf16 %v5716_v62, %v5716_v62  ;;  %v5792_v17 = vld [vmem:[#allocation8 + $0x27] sm:$0xf] }
 0x923   : > { %5658 = vst.msk [vmem:[#allocation8 + $0x1a] sm:$0xf] %vm5468_vm8, %v5657_v58  ;;  %v5794_v20 = vpack.c.bf16 %v5789_v14, %v5789_v14  ;;  %v5679_v10 = vld [vmem:[#allocation8 + $0x11] sm:$0xff]  ;;  %v5866_v38 = vld [vmem:[#allocation8 + $0x2c] sm:$0xf]  ;;  %v6813_v58 = vld [vmem:[%s12766_s7 + $0x38] sm:$0xff] }
 0x924   : > { %v5660_v13 = vld [vmem:[#allocation7 + $0x47] ss:$2 sm:$0xf]  ;;  %v5684_v35 = vpack.c.bf16 %v5679_v10, %v5679_v10  ;;  %5672 = vst.msk [vmem:[#allocation9] sm:$0xf] %vm5468_vm8, %v5667_v4  ;;  %6070 = vmatpush.bf16.msrb.mxu1 %v6813_v58 }
 0x925   : > { %5840 = vrot.lane.b32.xlu1 %v5830_v27, %s7384_s20  ;;  %5661 = vst.msk [vmem:[#allocation8 + $0x20] sm:$0xf] %vm5468_vm8, %v5660_v13  ;;  %v5865_v27 = vld [vmem:[#allocation8 + $0x24] sm:$0xff]  ;;  %v6812_v13 = vld [vmem:[%s12766_s7 + $0x30] sm:$0xff] }
 0x926   : > { %5731 = vrot.lane.b32.xlu2 %v5720_v24, %s7378_s24  ;;  %5708 = vst.msk [vmem:[#allocation9] sm:$0xf] %vm5707_vm12, %v5693_v52  ;;  %v5871_v24 = vpack.c.bf16 %v5866_v38, %v5866_v38 }
 0x927   : > { %v5730_v49 = vpop.permute.xlu1 %5729 }
 0x928   : > { %5745 = vst.msk [vmem:[#allocation9] sm:$0xf] %vm5744_vm13, %v5730_v49  ;;  %6071 = vmatpush.bf16.msrb.mxu1 %v6812_v13 }
 0x929   : > { %v6802_v39 = vld [vmem:[#allocation9 + $0x4] sm:$0xf] }
 0x92a   : > { %v5937_v56 = vld [vmem:[#allocation8 + $0x16] sm:$0xff] }
 0x92b   : > { %v5900_v19 = vld [vmem:[#allocation8 + $0x15] sm:$0xff]  ;;  %v5942_v51 = vpack.c.bf16 %v5937_v56, %v5937_v56  ;;  %v5978_v56 = vld [vmem:[%s12768_s9 + $0x18] sm:$0xff] }
 0x92c   : > { %v5905_v59 = vpack.c.bf16 %v5900_v19, %v5900_v19  ;;  %v5717_v12 = vld [vmem:[#allocation8 + $0x1a] sm:$0xff]  ;;  %v5718_v40 = vld [vmem:[#allocation8 + $0x22] sm:$0xf]  ;;  %v5903_v19 = vld [vmem:[#allocation8 + $0x2d] sm:$0xf] }
 0x92d   : > { %5877 = vrot.lane.b32.xlu1 %v5867_v44, %s7385_s22  ;;  %5947 = vst.msk [vmem:[#allocation9 + $0xc] sm:$0xf] %vm5468_vm8, %v5942_v51  ;;  %v5938_v8 = vld [vmem:[#allocation8 + $0x1e] sm:$0xff]  ;;  %v5722_v55 = vpack.c.bf16 %v5717_v12, %v5717_v12  ;;  %v5863_v7 = vld [vmem:[#allocation8 + $0x14] sm:$0xff]  ;;  %v5723_v26 = vpack.c.bf16 %v5718_v40, %v5718_v40 }
 0x92e   : > { %5768 = vrot.lane.b32.xlu2 %v5941_v42, %s7380_s26  ;;  %v5943_v30 = vpack.c.bf16 %v5938_v8, %v5938_v8  ;;  %v5680_v3 = vld [vmem:[#allocation8 + $0x19] sm:$0xff]  ;;  %v5868_v23 = vpack.c.bf16 %v5863_v7, %v5863_v7  ;;  %v5870_v42 = vpack.c.bf16 %v5865_v27, %v5865_v27  ;;  %v5681_v11 = vld [vmem:[#allocation8 + $0x21] sm:$0xf] }
 0x92f   : > { %5735 = vrot.lane.b32.xlu0 %v5722_v55, %s7378_s24  ;;  %v5790_v53 = vld [vmem:[#allocation8 + $0x17] sm:$0xff]  ;;  %v5685_v37 = vpack.c.bf16 %v5680_v3, %v5680_v3  ;;  %v5666_v28 = vld [vmem:[#allocation8 + $0x20] sm:$0xf]  ;;  %v5767_v9 = vpop.permute.xlu1 %5766  ;;  %v5686_v44 = vpack.c.bf16 %v5681_v11, %v5681_v11  ;;  %v6810_v55 = vld [vmem:[%s12766_s7 + $0x20] sm:$0xff] }
 0x930   : > { %5948 = vst.msk [vmem:[#allocation9 + $0x14] sm:$0xf] %vm5468_vm8, %v5943_v30  ;;  %v5795_v33 = vpack.c.bf16 %v5790_v53, %v5790_v53  ;;  %v5827_v46 = vld [vmem:[#allocation8 + $0x18] sm:$0xff]  ;;  %v5671_v61 = vpack.c.bf16 %v5666_v28, %v5666_v28  ;;  %v5828_v16 = vld [vmem:[#allocation8 + $0x20] sm:$0xff]  ;;  %v6806_v28 = vld [vmem:[%s12766_s7] sm:$0xff] }
 0x931   : > { %v5832_v5 = vpack.c.bf16 %v5827_v46, %v5827_v46  ;;  %v5833_v36 = vpack.c.bf16 %v5828_v16, %v5828_v16  ;;  %v5791_v43 = vld [vmem:[#allocation8 + $0x1f] sm:$0xff]  ;;  %v6811_v12 = vld [vmem:[%s12766_s7 + $0x28] sm:$0xff] }
 0x932   : > { %5676 = vst.msk [vmem:[#allocation9 + $0x20] sm:$0x3] %vm492_vm11, %v5671_v61  ;;  %v5901_v32 = vld [vmem:[#allocation8 + $0x1d] sm:$0xff]  ;;  %v5796_v63 = vpack.c.bf16 %v5791_v43, %v5791_v43  ;;  %v5976_v8 = vld [vmem:[%s12768_s9 + $0x8] sm:$0xff]  ;;  %6072 = vmatpush.bf16.msrb.mxu1 %v6811_v12 }
 0x933   : > { %5675 = vst.msk [vmem:[#allocation9 + $0x18] sm:$0xf] %vm5468_vm8, %v5832_v5  ;;  %v5906_v57 = vpack.c.bf16 %v5901_v32, %v5901_v32  ;;  %v5864_v21 = vld [vmem:[#allocation8 + $0x1c] sm:$0xff]  ;;  %vm5781_vm8 = vcmask 519552   ;;  %v6807_v46 = vld [vmem:[%s12766_s7 + $0x8] sm:$0xff] }
 0x934   : > { %v6656_v31 = vld [vmem:[#allocation9 + $0x8] sm:$0xf0]  ;;  %v5869_v6 = vpack.c.bf16 %v5864_v21, %v5864_v21  ;;  %5782 = vst.msk [vmem:[#allocation9] sm:$0xf] %vm5781_vm8, %v5767_v9  ;;  %v6808_v53 = vld [vmem:[%s12766_s7 + $0x10] sm:$0xff] }
 0x935   : > { %5916 = vrot.lane.b32.xlu1 %v5905_v59, %s7383_s30  ;;  %v6659_v34 = vor.u32 %v6802_v39, %v6656_v31  ;;  %v5908_v59 = vpack.c.bf16 %v5903_v19, %v5903_v19  ;;  %v6809_v39 = vld [vmem:[%s12766_s7 + $0x18] sm:$0xff] }
 0x936   : > { %5805 = vrot.lane.b32.xlu2 %v5794_v20, %s7382_s19  ;;  %6073 = vmatpush.bf16.msrb.mxu1 %v6810_v55 }
 0x937   : > { %6704 = vmatmul.msk.bf16.vlgmr.msra.gmra.mxu2 %vm485_vm14, %v6659_v34  ;;  %5807 = vrot.lane.b32.xlu0 %v5795_v33, %s7382_s19  ;;  %v6804_v25 = vld [vmem:[#allocation9 + $0x14] sm:$0xf] }
 0x938   : > { %v6667_v0 = vor.u32 %v6804_v25, %v6664_v18 }
 0x93a   : > { %6074 = vmatpush.bf16.msrb.mxu1 %v6809_v39 }
 0x93d   : > { %5698 = vrot.lane.b32.xlu1 %v5685_v37, %s7376_s21 }
 0x93e   : > { %5842 = vrot.lane.b32.xlu2 %v5831_v54, %s7384_s20  ;;  %v5797_v54 = vpack.c.bf16 %v5792_v17, %v5792_v17  ;;  %6075 = vmatpush.bf16.msrb.mxu1 %v6808_v53  ;;  %v7354_v17 = vld [vmem:[%s12767_s8] ss:$0 sm:$0xff] }
 0x93f   : > { %5846 = vrot.lane.b32.xlu0 %v5833_v36, %s7384_s20 }
 0x942   : > { %6076 = vmatpush.bf16.msrb.mxu1 %v6807_v46 }
 0x945   : > { %5770 = vrot.lane.b32.xlu1 %v5942_v51, %s7380_s26 }
 0x946   : > { %5879 = vrot.lane.b32.xlu2 %v5868_v23, %s7385_s22  ;;  %6077 = vmatpush.bf16.msrb.mxu1 %v6806_v28 }
 0x947   : > { %6705 = vmatmul.msk.bf16.gmra.mxu2 %vm485_vm14, %v6667_v0  ;;  %5918 = vrot.lane.b32.xlu0 %v5906_v57, %s7383_s30 }
 0x94d   : > { %5809 = vrot.lane.b32.xlu1 %v5796_v63, %s7382_s19 }
 0x94e   : > { %5696 = vrot.lane.b32.xlu2 %v5684_v35, %s7376_s21 }
 0x94f   : > { %5737 = vrot.lane.b32.xlu0 %v5723_v26, %s7378_s24 }
 0x955   : > { %5881 = vrot.lane.b32.xlu1 %v5869_v6, %s7385_s22  ;;  %v5940_v6 = vld [vmem:[#allocation8 + $0x2e] sm:$0xf] }
 0x956   : > { %5733 = vrot.lane.b32.xlu2 %v5721_v41, %s7378_s24  ;;  %v5945_v41 = vpack.c.bf16 %v5940_v6, %v5940_v6 }
 0x957   : > { %5848 = vrot.lane.b32.xlu0 %v5834_v48, %s7384_s20 }
 0x958   : > { %5950 = vst.msk [vmem:[#allocation9 + $0x24] sm:$0x3] %vm492_vm11, %v5945_v41  ;;  %vm6156_vm11 = vcmask 257024  }
 0x95d   : > { %5920 = vrot.lane.b32.xlu1 %v5907_v2, %s7383_s30 }
 0x95e   : > { %5772 = vrot.lane.b32.xlu2 %v5943_v30, %s7380_s26 }
 0x95f   : > { %6123 = vperm.xlu0 %7340, %v5975_v29  }
 0x965   : > { %5774 = vrot.lane.b32.xlu1 %v5760_v50, %s7380_s26 }
 0x966   : > { %5844 = vrot.lane.b32.xlu2 %v5832_v5, %s7384_s20 }
 0x967   : > { %6133 = vperm.xlu0 %7340, %v5977_v60  }
 0x96d   : > { %5885 = vrot.lane.b32.xlu1 %v5871_v24, %s7385_s22 }
 0x96e   : > { %5883 = vrot.lane.b32.xlu2 %v5870_v42, %s7385_s22 }
 0x975   : > { %6143 = vperm.xlu1 %7341, %v5979_v1  }
 0x976   : > { %5700 = vrot.lane.b32.xlu2 %v5686_v44, %s7376_s21 }
 0x978   : > { %v5695_v14 = vpop.permute.xlu2 %5694 }
 0x979   : > { %5709 = vst.msk [vmem:[#allocation9 + $0x8] sm:$0xf] %vm5707_vm12, %v5695_v14 }
 0x97d   : > { %6138 = vperm.xlu1 %7341, %v5978_v56  }
 0x97e   : > { %5811 = vrot.lane.b32.xlu2 %v5797_v54, %s7382_s19 }
 0x980   : > { %v5732_v51 = vpop.permute.xlu2 %5731 }
 0x981   : > { %5746 = vst.msk [vmem:[#allocation9 + $0x8] sm:$0xf] %vm5744_vm13, %v5732_v51 }
 0x986   : > { %5922 = vrot.lane.b32.xlu2 %v5908_v59, %s7383_s30 }
 0x988   : > { %v5769_v20 = vpop.permute.xlu2 %5768 }
 0x989   : > { %5783 = vst.msk [vmem:[#allocation9 + $0x8] sm:$0xf] %vm5781_vm8, %v5769_v20 }
 0x98e   : > { %6128 = vperm.xlu2 %7342, %v5976_v8  }
 0x98f   : > { %v5804_v30 = vpop.permute.xlu1 %5803 }
 0x990   : > { %v5806_v3 = vpop.permute.xlu2 %5805  ;;  %5819 = vst.msk [vmem:[#allocation9] sm:$0xf] %vm5818_vm15, %v5804_v30 }
 0x991   : > { %5820 = vst.msk [vmem:[#allocation9 + $0x8] sm:$0xf] %vm5818_vm15, %v5806_v3  ;;  %v5915_v34 = vpop.permute.xlu0 %5914 }
 0x997   : > { %v5841_v31 = vpop.permute.xlu1 %5840 }
 0x998   : > { %v5843_v37 = vpop.permute.xlu2 %5842  ;;  %5856 = vst.msk [vmem:[#allocation9] sm:$0xf] %vm5855_vm2, %v5841_v31 }
 0x999   : > { %5857 = vst.msk [vmem:[#allocation9 + $0x8] sm:$0xf] %vm5855_vm2, %v5843_v37 }
 0x99f   : > { %v5878_v33 = vpop.permute.xlu1 %5877 }
 0x9a0   : > { %v5880_v7 = vpop.permute.xlu2 %5879  ;;  %5893 = vst.msk [vmem:[#allocation9] sm:$0xf] %vm5892_vm3, %v5878_v33 }
 0x9a1   : > { %5930 = vst.msk [vmem:[#allocation9] sm:$0xf] %vm5929_vm4, %v5915_v34  ;;  %v5736_v16 = vpop.permute.xlu0 %5735 }
 0x9a2   : > { %5894 = vst.msk [vmem:[#allocation9 + $0x8] sm:$0xf] %vm5892_vm3, %v5880_v7 }
 0x9a7   : > { %v5917_v5 = vpop.permute.xlu1 %5916 }
 0x9a8   : > { %v5697_v61 = vpop.permute.xlu2 %5696  ;;  %5931 = vst.msk [vmem:[#allocation9 + $0x8] sm:$0xf] %vm5929_vm4, %v5917_v5  ;;  %v6654_v43 = vld [vmem:[#allocation9] sm:$0xf] }
 0x9a9   : > { %5710 = vst.msk [vmem:[#allocation9 + $0x10] sm:$0xf] %vm5707_vm12, %v5697_v61  ;;  %v5808_v18 = vpop.permute.xlu0 %5807 }
 0x9af   : > { %v5699_v23 = vpop.permute.xlu1 %5698  ;;  %v6803_v10 = vld [vmem:[#allocation9 + $0x4] sm:$0xf0] }
 0x9b0   : > { %v5734_v36 = vpop.permute.xlu2 %5733  ;;  %5711 = vst.msk [vmem:[#allocation9 + $0x18] sm:$0xf] %vm5707_vm12, %v5699_v23  ;;  %v6655_v25 = vor.u32 %v6803_v10, %v6654_v43 }
 0x9b1   : > { %5748 = vst.msk [vmem:[#allocation9 + $0x18] sm:$0xf] %vm5744_vm13, %v5736_v16  ;;  %v5847_v35 = vpop.permute.xlu0 %5846 }
 0x9b2   : > { %5747 = vst.msk [vmem:[#allocation9 + $0x10] sm:$0xf] %vm5744_vm13, %v5734_v36  ;;  %6078 = vmatmul.bf16.vlgmr.msrb.gmra.mxu1 %v6655_v25 }
 0x9b7   : > { %v5771_v32 = vpop.permute.xlu1 %5770 }
 0x9b8   : > { %v5773_v63 = vpop.permute.xlu2 %5772  ;;  %5784 = vst.msk [vmem:[#allocation9 + $0x10] sm:$0xf] %vm5781_vm8, %v5771_v32 }
 0x9b9   : > { %5821 = vst.msk [vmem:[#allocation9 + $0x10] sm:$0xf] %vm5818_vm15, %v5808_v18  ;;  %v5919_v21 = vpop.permute.xlu0 %5918 }
 0x9ba   : > { %5785 = vst.msk [vmem:[#allocation9 + $0x18] sm:$0xf] %vm5781_vm8, %v5773_v63  ;;  %v6102_v60 = vpop.f32.mrf.mxu2 }
 0x9bf   : > { %v5810_v0 = vpop.permute.xlu1 %5809 }
 0x9c0   : > { %v5845_v57 = vpop.permute.xlu2 %5844  ;;  %5822 = vst.msk [vmem:[#allocation9 + $0x18] sm:$0xf] %vm5818_vm15, %v5810_v0 }
 0x9c1   : > { %5859 = vst.msk [vmem:[#allocation9 + $0x18] sm:$0xf] %vm5855_vm2, %v5847_v35  ;;  %v5738_v26 = vpop.permute.xlu0 %5737 }
 0x9c2   : > { %5858 = vst.msk [vmem:[#allocation9 + $0x10] sm:$0xf] %vm5855_vm2, %v5845_v57  ;;  %v6104_v1 = vpop.f32.mrf.mxu2 }
 0x9c7   : > { %v5882_v62 = vpop.permute.xlu1 %5881 }
 0x9c8   : > { %v5884_v40 = vpop.permute.xlu2 %5883  ;;  %5895 = vst.msk [vmem:[#allocation9 + $0x10] sm:$0xf] %vm5892_vm3, %v5882_v62 }
 0x9c9   : > { %5932 = vst.msk [vmem:[#allocation9 + $0x10] sm:$0xf] %vm5929_vm4, %v5919_v21  ;;  %v5849_v49 = vpop.permute.xlu0 %5848 }
 0x9ca   : > { %5896 = vst.msk [vmem:[#allocation9 + $0x18] sm:$0xf] %vm5892_vm3, %v5884_v40  ;;  %v6107_v44 = vpop.f32.mrf.mxu2 }
 0x9cf   : > { %v5921_v47 = vpop.permute.xlu1 %5920 }
 0x9d0   : > { %v5701_v52 = vpop.permute.xlu2 %5700  ;;  %5933 = vst.msk [vmem:[#allocation9 + $0x18] sm:$0xf] %vm5929_vm4, %v5921_v47  ;;  %v6662_v45 = vld [vmem:[#allocation9 + $0x10] sm:$0xf] }
 0x9d1   : > { %5713 = vst.msk [vmem:[#allocation9 + $0x20] sm:$0x3] %vm5712_vm5, %v5701_v52  ;;  %v6124_v20 = vpop.permute.xlu0 %6123 }
 0x9d2   : > { %5750 = vst.msk [vmem:[#allocation9 + $0x20] sm:$0x3] %vm5749_vm6, %v5738_v26  ;;  %v6109_v56 = vpop.f32.mrf.mxu2 }
 0x9d7   : > { %v5775_v15 = vpop.permute.xlu1 %5774  ;;  %v6805_v2 = vld [vmem:[#allocation9 + $0x14] sm:$0xf0] }
 0x9d8   : > { %v5812_v4 = vpop.permute.xlu2 %5811  ;;  %5787 = vst.msk [vmem:[#allocation9 + $0x20] sm:$0x3] %vm5786_vm7, %v5775_v15  ;;  %v6663_v48 = vor.u32 %v6805_v2, %v6662_v45  ;;  %vm6240_vm7 = vcmask 258048  }
 0x9d9   : > { %5824 = vst.msk [vmem:[#allocation9 + $0x20] sm:$0x3] %vm5823_vm0, %v5812_v4  ;;  %v6134_v23 = vpop.permute.xlu0 %6133 }
 0x9da   : > { %6083 = vmatmul.bf16.gmra.mxu1 %v6663_v48  ;;  %5861 = vst.msk [vmem:[#allocation9 + $0x20] sm:$0x3] %vm5860_vm9, %v5849_v49 }
 0x9df   : > { %v5886_v22 = vpop.permute.xlu1 %5885 }
 0x9e0   : > { %v5923_v50 = vpop.permute.xlu2 %5922  ;;  %5898 = vst.msk [vmem:[#allocation9 + $0x20] sm:$0x3] %vm5897_vm10, %v5886_v22 }
 0x9e1   : > { %5935 = vst.msk [vmem:[#allocation9 + $0x20] sm:$0x3] %vm5934_vm1, %v5923_v50 }
 0x9e7   : > { %v6144_v19 = vpop.permute.xlu1 %6143 }
 0x9e8   : > { %v5955_v29 = vld [vmem:[#allocation9 + $0x20] sm:$0x33]  ;;  %v6129_v36 = vpop.permute.xlu2 %6128 }
 0x9e9   : > { %v5996_v9 = vunpack.c.l.b16 %v5955_v29  ;;  %v5997_v38 = vunpack.c.h.b16 %v5955_v29 }
 0x9eb   : > { %v6002_v27 = vpack.c.b16 %v5996_v9, %v5996_v9  ;;  %v6003_v24 = vpack.c.b16 %v5997_v38, %v5997_v38 }
 0x9ed   : > { %6088 = vmatmul.bf16.gmra.mxu1 %v6002_v27  ;;  %6706 = vmatmul.msk.bf16.gmra.mxu2 %vm485_vm14, %v6003_v24  ;;  %vm6151_vm14 = vcmask 261120  }
 0x9ef   : > { %v6139_v46 = vpop.permute.xlu1 %6138 }
 0xa2f   : > { %v6079_v42 = vpop.f32.mrf.mxu1 }
 0xa30   : > { %v6080_v14 = vadd.f32 %v7354_v17, %v6079_v42 }
 0xa32   : > { %v6103_v8 = vadd.f32 %v6102_v60, %v6080_v14 }
 0xa34   : > { %v6116_v39 = vmax.f32 %v6103_v8, 0.0 }
 0xa36   : > { %v6146_v5 = vmul.f32 %v6124_v20, %v6116_v39 }
 0xa37   : > { %v6081_v11 = vpop.f32.mrf.mxu1 }
 0xa38   : > { %v6082_v51 = vadd.f32 %v7354_v17, %v6081_v11  ;;  %v6152_v18 = vsel %vm6151_vm14, %v6146_v5, -inf }
 0xa3a   : > { %v6105_v30 = vadd.f32 %v6104_v1, %v6082_v51 }
 0xa3c   : > { %v6117_v34 = vmax.f32 %v6105_v30, 0.0 }
 0xa3e   : > { %v6147_v43 = vmul.f32 %v6129_v36, %v6117_v34 }
 0xa40   : > { %v6153_v57 = vsel %vm6151_vm14, %v6147_v43, -inf }
 0xa57   : > { %v6084_v58 = vpop.f32.mrf.mxu1 }
 0xa58   : > { %v6085_v59 = vadd.f32 %v7354_v17, %v6084_v58 }
 0xa5a   : > { %v6108_v3 = vadd.f32 %v6107_v44, %v6085_v59 }
 0xa5c   : > { %v6118_v33 = vmax.f32 %v6108_v3, 0.0 }
 0xa5e   : > { %v6148_v10 = vmul.f32 %v6134_v23, %v6118_v33 }
 0xa5f   : > { %v6086_v13 = vpop.f32.mrf.mxu1 }
 0xa60   : > { %v6087_v54 = vadd.f32 %v7354_v17, %v6086_v13  ;;  %v6154_v21 = vsel %vm6151_vm14, %v6148_v10, -inf }
 0xa62   : > { %v6110_v55 = vadd.f32 %v6109_v56, %v6087_v54 }
 0xa64   : > { %v6119_v53 = vmax.f32 %v6110_v55, 0.0 }
 0xa66   : > { %v6149_v61 = vmul.f32 %v6139_v46, %v6119_v53 }
 0xa68   : > { %v6155_v63 = vsel %vm6151_vm14, %v6149_v61, -inf }
 0xa69   : > { %v6160_v40 = vmax.f32 %v6154_v21, %v6155_v63 }
 0xa6a   : > { %v6089_v12 = vpop.f32.mrf.mxu1 }
 0xa6b   : > { %v6090_v31 = vadd.f32 %v7354_v17, %v6089_v12 }
 0xa70   : > { %v6112_v37 = vpop.f32.mrf.mxu2 }
 0xa71   : > { %v6113_v7 = vadd.f32 %v6112_v37, %v6090_v31 }
 0xa72   : > { %v6091_v28 = vpop.f32.mrf.mxu1 }
 0xa73   : > { %v6120_v16 = vmax.f32 %v6113_v7, 0.0  ;;  %v6821_v28 = vld [vmem:[%s12769_s10 + $0x30] sm:$0xff] }
 0xa75   : > { %v6150_v25 = vmul.f32 %v6144_v19, %v6120_v16 }
 0xa77   : > { %v6157_v32 = vsel %vm6156_vm11, %v6150_v25, -inf }
 0xa78   : > { %v6158_v35 = vmax.f32 %v6152_v18, %v6157_v32  ;;  %v6114_v0 = vpop.f32.mrf.mxu2 }
 0xa7a   : > { %v6159_v62 = vmax.f32 %v6158_v35, %v6153_v57 }
 0xa7c   : > { %v6161_v6 = vmax.f32 %v6159_v62, %v6160_v40 }
 0xa7e   : > { %6162 = vmax.xlane.f32.xlu2 %v6161_v6 }
 0xaf1   : > { %v6163_v41 = vpop.xlane.xlu2 %6162 }
 0xaf2   : > { %v6164_v26 = vrot.slane %v6163_v41, 4 }
 0xaf4   : > { %v6165_v47 = vmax.f32 %v6163_v41, %v6164_v26 }
 0xaf6   : > { %v6166_v52 = vrot.slane %v6165_v47, 2 }
 0xaf8   : > { %v6167_v15 = vmax.f32 %v6165_v47, %v6166_v52 }
 0xafa   : > { %v6168_v4 = vrot.slane %v6167_v15, 1 }
 0xafc   : > { %v6169_v45 = vmax.f32 %v6167_v15, %v6168_v4 }
 0xafe   : > { %7277 = vpush %v6169_v45 }
 0xb2f   : > { %s7278_s18 = spop %7277 }
 0xb30   : > { %v6171_v2 = vstv %s7278_s18  ;;  %s465_s18 = scalar_lea.vmem %s12773_s14, %s13856_s16 }
 0xb31   : > { %v6172_v48 = vmax.f32 %v6171_v2, 1e-12 }
 0xb33   : > { %v12636_v49 = vmul.f32 0.003921569, %v6172_v48 }
 0xb35   : > { %7359 = vrcp.f32 %v12636_v49  ;;  %v6185_v9 = vand.u32 2147483648, %v12636_v49  ;;  %v6183_v27 = vand.u32 2147483647, %v12636_v49  ;;  %vm6179_vm13 = vweird.f32 %v12636_v49 }
 0xb37   : > { %v6186_v42 = vor.u32 1.1754944e-38, %v6185_v9  ;;  %vm6184_vm15 = vcmp.eq.f32.partialorder %v6183_v27, 8.507059e+37 }
 0xb3b   : > { %v7360_v22 = vpop.eup %7359 }
 0xb3c   : > { %v6175_v50 = vmul.f32 %v7360_v22, %v12636_v49  ;;  %vm6180_vm12 = vweird.f32 %v7360_v22 }
 0xb3d   : > { %vm6181_vm8 = vmor %vm6179_vm13, %vm6180_vm12 }
 0xb3e   : > { %v6176_v29 = vsub.f32 1.0, %v6175_v50 }
 0xb40   : > { %v6177_v38 = vmul.f32 %v7360_v22, %v6176_v29 }
 0xb42   : > { %v6178_v24 = vadd.f32 %v7360_v22, %v6177_v38 }
 0xb44   : > { %v6182_v60 = vsel %vm6181_vm8, %v7360_v22, %v6178_v24 }
 0xb45   : > { %v6187_v11 = vsel %vm6184_vm15, %v6186_v42, %v6182_v60 }
 0xb46   : > { %v6189_v1 = vmul.f32 %v6187_v11, %v6146_v5  ;;  %v6190_v58 = vmul.f32 %v6187_v11, %v6147_v43  ;;  %v6191_v44 = vmul.f32 %v6187_v11, %v6148_v10  ;;  %v6192_v13 = vmul.f32 %v6187_v11, %v6149_v61 }
 0xb47   : > { %v6193_v56 = vmul.f32 %v6187_v11, %v6150_v25 }
 0xb48   : > { %v7279_v17 = vand.u32 2147483647, %v6189_v1  ;;  %v7281_v14 = vcvt.f32.s32 %v6189_v1  ;;  %v7287_v54 = vand.u32 2147483647, %v6190_v58  ;;  %v7289_v19 = vcvt.f32.s32 %v6190_v58 }
 0xb49   : > { %v7297_v51 = vcvt.f32.s32 %v6191_v44  ;;  %v7295_v20 = vand.u32 2147483647, %v6191_v44  ;;  %v7284_v12 = vand.u32 2147483648, %v6189_v1  ;;  %v7292_v55 = vand.u32 2147483648, %v6190_v58 }
 0xb4a   : > { %v7282_v59 = vcvt.s32.f32 %v7281_v14  ;;  %v7290_v8 = vcvt.s32.f32 %v7289_v19  ;;  %vm12643_vm2 = vcmp.lt.f32.partialorder %v7279_v17, 8388608.0  ;;  %vm12647_vm3 = vcmp.lt.f32.partialorder %v7287_v54, 8388608.0 }
 0xb4b   : > { %v7298_v30 = vcvt.s32.f32 %v7297_v51  ;;  %v7305_v31 = vcvt.f32.s32 %v6192_v13  ;;  %v7300_v33 = vand.u32 2147483648, %v6191_v44  ;;  %v7313_v7 = vcvt.f32.s32 %v6193_v56 }
 0xb4c   : > { %v7283_v39 = vand.u32 2147483647, %v7282_v59  ;;  %v7291_v37 = vand.u32 2147483647, %v7290_v8  ;;  %vm12651_vm4 = vcmp.lt.f32.partialorder %v7295_v20, 8388608.0  ;;  %v7308_v36 = vand.u32 2147483648, %v6192_v13 }
 0xb4d   : > { %v7299_v34 = vand.u32 2147483647, %v7298_v30  ;;  %v7303_v5 = vand.u32 2147483647, %v6192_v13  ;;  %v7306_v61 = vcvt.s32.f32 %v7305_v31  ;;  %v7314_v43 = vcvt.s32.f32 %v7313_v7  ;;  %v6822_v59 = vld [vmem:[%s12769_s10 + $0x38] sm:$0xff] }
 0xb4e   : > { %v7285_v46 = vor.u32 %v7284_v12, %v7283_v39  ;;  %v7293_v16 = vor.u32 %v7292_v55, %v7291_v37  ;;  %v7311_v18 = vand.u32 2147483647, %v6193_v56  ;;  %v7316_v32 = vand.u32 2147483648, %v6193_v56  ;;  %6456 = vmatpush.bf16.msra.mxu3 %v6822_v59 }
 0xb4f   : > { %v7301_v23 = vor.u32 %v7300_v33, %v7299_v34  ;;  %v7307_v25 = vand.u32 2147483647, %v7306_v61  ;;  %v7315_v0 = vand.u32 2147483647, %v7314_v43  ;;  %vm7304_vm5 = vcmp.lt.f32.partialorder %v7303_v5, 8388608.0  ;;  %v6820_v5 = vld [vmem:[%s12769_s10 + $0x28] sm:$0xff] }
 0xb50   : > { %v7286_v10 = vsel %vm12643_vm2, %v7285_v46, %v6189_v1  ;;  %v7294_v63 = vsel %vm12647_vm3, %v7293_v16, %v6190_v58  ;;  %vm7312_vm6 = vcmp.lt.f32.partialorder %v7311_v18, 8388608.0  ;;  %v6243_v55 = vlaneseq  ;;  %v6829_v46 = vld [vmem:[%s12769_s10 + $0x70] sm:$0xff]  ;;  %v6828_v61 = vld [vmem:[%s12769_s10 + $0x68] sm:$0xff]  ;;  %v6819_v16 = vld [vmem:[%s12769_s10 + $0x20] sm:$0xff] }
 0xb51   : > { %v7302_v35 = vsel %vm12651_vm4, %v7301_v23, %v6191_v44  ;;  %v6199_v57 = vmul.f32 %v7286_v10, %v12636_v49  ;;  %v7309_v21 = vor.u32 %v7308_v36, %v7307_v25  ;;  %v6200_v62 = vmul.f32 %v7294_v63, %v12636_v49  ;;  %v6827_v23 = vld [vmem:[%s12769_s10 + $0x60] sm:$0xff]  ;;  %v6818_v36 = vld [vmem:[%s12769_s10 + $0x18] sm:$0xff]  ;;  %v6817_v10 = vld [vmem:[%s12769_s10 + $0x10] sm:$0xff] }
 0xb52   : > { %v6201_v40 = vmul.f32 %v7302_v35, %v12636_v49  ;;  %v7317_v6 = vor.u32 %v7316_v32, %v7315_v0  ;;  %vm6245_vm0 = vcmp.lt.s32.totalorder %v6243_v55, 32  ;;  %6457 = vmatpush.bf16.msra.mxu3 %v6821_v28  ;;  %v6826_v43 = vld [vmem:[%s12769_s10 + $0x58] sm:$0xff]  ;;  %v6825_v25 = vld [vmem:[%s12769_s10 + $0x50] sm:$0xff]  ;;  %v6816_v18 = vld [vmem:[%s12769_s10 + $0x8] sm:$0xff]  ;;  %vm6253_vm9 = vcmp.ge.s32.totalorder %v6243_v55, 32 }
 0xb53   : > { %6204 = vst.msk [vmem:[#allocation10] sm:$0xff] %vm6151_vm14, %v6199_v57  ;;  %v7310_v41 = vsel %vm7304_vm5, %v7309_v21, %v6192_v13  ;;  %v6824_v32 = vld [vmem:[%s12769_s10 + $0x48] sm:$0xff]  ;;  %v6815_v63 = vld [vmem:[%s12769_s10] sm:$0xff]  ;;  %vm6254_vm10 = vcmp.lt.s32.totalorder %v6243_v55, 64  ;;  %vm6263_vm12 = vcmp.lt.s32.totalorder %v6243_v55, 96  ;;  %vm6271_vm8 = vcmp.ge.s32.totalorder %v6243_v55, 96 }
 0xb54   : > { %6205 = vst.msk [vmem:[#allocation10 + $0x8] sm:$0xff] %vm6151_vm14, %v6200_v62  ;;  %v7318_v26 = vsel %vm7312_vm6, %v7317_v6, %v6193_v56  ;;  %v6202_v47 = vmul.f32 %v7310_v41, %v12636_v49  ;;  %v6823_v35 = vld [vmem:[%s12769_s10 + $0x40] sm:$0xff]  ;;  %vm6255_vm1 = vmand %vm6253_vm9, %vm6254_vm10  ;;  %v6832_v57 = vld [vmem:[%s12769_s10 + $0x88] sm:$0xff]  ;;  %vm6272_vm15 = vcmp.lt.s32.totalorder %v6243_v55, 128  ;;  %vm6550_vm6 = vcmask 0  }
 0xb55   : > { %6206 = vst.msk [vmem:[#allocation10 + $0x10] sm:$0xff] %vm6151_vm14, %v6201_v40  ;;  %v6203_v52 = vmul.f32 %v7318_v26, %v12636_v49  ;;  %v6830_v49 = vld [vmem:[%s12769_s10 + $0x78] sm:$0xff]  ;;  %v6831_v21 = vld [vmem:[%s12769_s10 + $0x80] sm:$0xff]  ;;  %vm6273_vm2 = vmand %vm6271_vm8, %vm6272_vm15 }
 0xb56   : > { %6207 = vst.msk [vmem:[#allocation10 + $0x18] sm:$0xff] %vm6151_vm14, %v6202_v47  ;;  %6469 = vmatpush.bf16.msrb.mxu2 %v6830_v49  ;;  %6458 = vmatpush.bf16.msra.mxu3 %v6820_v5 }
 0xb57   : > { %6208 = vst.msk [vmem:[#allocation10 + $0x20] sm:$0xf] %vm6156_vm11, %v6203_v52  ;;  %vm6262_vm11 = vcmp.ge.s32.totalorder %v6243_v55, 64 }
 0xb58   : > { %vm6264_vm13 = vmand %vm6262_vm11, %vm6263_vm12 }
 0xb5a   : > { %v6209_v15 = vld [vmem:[#allocation10] sm:$0xff]  ;;  %6470 = vmatpush.bf16.msrb.mxu2 %v6829_v46  ;;  %6459 = vmatpush.bf16.msra.mxu3 %v6819_v16 }
 0xb5b   : > { %v6213_v4 = vld [vmem:[#allocation10 + $0x1] sm:$0xff] }
 0xb5c   : > { %v6221_v45 = vld [vmem:[#allocation10 + $0x6] sm:$0xff]  ;;  %v6211_v48 = vld [vmem:[#allocation10 + $0x10] sm:$0xff]  ;;  %v6217_v22 = vmax.f32 %v6209_v15, %v6213_v4 }
 0xb5d   : > { %v6225_v2 = vld [vmem:[#allocation10 + $0x7] sm:$0xff]  ;;  %v6226_v24 = vld [vmem:[#allocation10 + $0xf] sm:$0xff]  ;;  %v6227_v11 = vld [vmem:[#allocation10 + $0x17] sm:$0xff] }
 0xb5e   : > { %v6229_v50 = vmax.f32 %v6221_v45, %v6225_v2  ;;  %v6210_v29 = vld [vmem:[#allocation10 + $0x8] sm:$0xff]  ;;  %v6215_v42 = vld [vmem:[#allocation10 + $0x11] sm:$0xff]  ;;  %v6216_v14 = vld [vmem:[#allocation10 + $0x19] sm:$0x1f]  ;;  %6471 = vmatpush.bf16.msrb.mxu2 %v6828_v61  ;;  %6460 = vmatpush.bf16.msra.mxu3 %v6818_v36 }
 0xb5f   : > { %v6214_v9 = vld [vmem:[#allocation10 + $0x9] sm:$0xff]  ;;  %v6223_v60 = vld [vmem:[#allocation10 + $0x16] sm:$0xff]  ;;  %v6219_v44 = vmax.f32 %v6211_v48, %v6215_v42  ;;  %v6224_v54 = vld [vmem:[#allocation10 + $0x1e] sm:$0x1f] }
 0xb60   : > { %v6218_v38 = vmax.f32 %v6210_v29, %v6214_v9  ;;  %v6222_v27 = vld [vmem:[#allocation10 + $0xe] sm:$0xff]  ;;  %v6233_v1 = vmax.f32 %v6217_v22, %v6229_v50  ;;  %v6231_v13 = vmax.f32 %v6223_v60, %v6227_v11  ;;  %v6212_v17 = vld [vmem:[#allocation10 + $0x18] sm:$0x1f]  ;;  %v6228_v19 = vld [vmem:[#allocation10 + $0x1f] sm:$0x1f] }
 0xb61   : > { %v6230_v58 = vmax.f32 %v6222_v27, %v6226_v24  ;;  %v6220_v56 = vmax.f32 %v6212_v17, %v6216_v14  ;;  %v6232_v12 = vmax.f32 %v6224_v54, %v6228_v19  ;;  %v6834_v22 = vld [vmem:[%s12771_s12 + $0x8] sm:$0xff]  ;;  %v6833_v50 = vld [vmem:[%s12771_s12] sm:$0xff] }
 0xb62   : > { %6237 = vst.msk [vmem:[#allocation11] sm:$0xff] %vm6151_vm14, %v6233_v1  ;;  %v6235_v20 = vmax.f32 %v6219_v44, %v6231_v13  ;;  %6472 = vmatpush.bf16.msrb.mxu2 %v6827_v23  ;;  %6461 = vmatpush.bf16.msra.mxu3 %v6817_v10  ;;  %v6500_v44 = vld [vmem:[#allocation13] sm:$0x1] }
 0xb63   : > { %v6234_v51 = vmax.f32 %v6218_v38, %v6230_v58  ;;  %v6236_v8 = vmax.f32 %v6220_v56, %v6232_v12  ;;  %v6344_v38 = vld [vmem:[%s12770_s11] sm:$0x1] }
 0xb64   : > { %6239 = vst.msk [vmem:[#allocation11 + $0x10] sm:$0xff] %vm6151_vm14, %v6235_v20 }
 0xb65   : > { %6238 = vst.msk [vmem:[#allocation11 + $0x8] sm:$0xff] %vm6151_vm14, %v6234_v51 }
 0xb66   : > { %6241 = vst.msk [vmem:[#allocation11 + $0x18] sm:$0x1f] %vm6240_vm7, %v6236_v8  ;;  %6473 = vmatpush.bf16.msrb.mxu2 %v6826_v43  ;;  %6462 = vmatpush.bf16.msra.mxu3 %v6816_v18 }
 0xb69   : > { %v6248_v30 = vld [vmem:[#allocation11 + $0x2] sm:$0x1]  ;;  %v6257_v53 = vld [vmem:[#allocation11 + $0x4] sm:$0x1]  ;;  %v6242_v7 = vld [vmem:[#allocation11] sm:$0x1] }
 0xb6a   : > { %6250 = vrot.lane.b32.xlu0 %v6248_v30, %s7378_s24  ;;  %6247 = vst.msk [vmem:[#allocation12] sm:$0x1] %vm6245_vm0, %v6242_v7  ;;  %6474 = vmatpush.bf16.msrb.mxu2 %v6825_v25 }
 0xb6b   : > { %v6277_v3 = vld [vmem:[#allocation11 + $0x10] sm:$0x1]  ;;  %6463 = vmatpush.bf16.msra.mxu3 %v6815_v63 }
 0xb6c   : > { %6279 = vrot.lane.b32.xlu1 %v6277_v3, %s7378_s24  ;;  %v6266_v37 = vld [vmem:[#allocation11 + $0xc] sm:$0x1]  ;;  %v6275_v33 = vld [vmem:[#allocation11 + $0xe] sm:$0x1] }
 0xb6d   : > { %v6295_v39 = vld [vmem:[#allocation11 + $0x1c] sm:$0x1]  ;;  %v6283_v31 = vld [vmem:[#allocation11 + $0x18] sm:$0x1]  ;;  %v6289_v34 = vld [vmem:[#allocation11 + $0x1a] sm:$0x1] }
 0xb6e   : > { %6296 = vst.msk [vmem:[#allocation12 + $0x2] sm:$0x1] %vm6245_vm0, %v6295_v39  ;;  %6475 = vmatpush.bf16.msrb.mxu2 %v6824_v32 }
 0xb6f   : > { %6276 = vst.msk [vmem:[#allocation12 + $0x1] sm:$0x1] %vm6245_vm0, %v6275_v33  ;;  %6488 = vmatpush.bf16.msrb.mxu3 %v6832_v57 }
 0xb72   : > { %6259 = vrot.lane.b32.xlu0 %v6257_v53, %s7382_s19  ;;  %6476 = vmatpush.bf16.msrb.mxu2 %v6823_v35 }
 0xb73   : > { %6489 = vmatpush.bf16.msrb.mxu3 %v6831_v21 }
 0xb74   : > { %6285 = vrot.lane.b32.xlu1 %v6283_v31, %s7382_s19 }
 0xb7a   : > { %6268 = vrot.lane.b32.xlu0 %v6266_v37, %s7385_s22 }
 0xb7c   : > { %6291 = vrot.lane.b32.xlu1 %v6289_v34, %s7385_s22 }
 0xbdc   : > { %v6251_v0 = vpop.permute.xlu0 %6250 }
 0xbdd   : > { %6256 = vst.msk [vmem:[#allocation12] sm:$0x1] %vm6255_vm1, %v6251_v0 }
 0xbde   : > { %v6280_v62 = vpop.permute.xlu1 %6279 }
 0xbdf   : > { %6282 = vst.msk [vmem:[#allocation12 + $0x1] sm:$0x1] %vm6255_vm1, %v6280_v62 }
 0xbe4   : > { %v6260_v40 = vpop.permute.xlu0 %6259 }
 0xbe5   : > { %6265 = vst.msk [vmem:[#allocation12] sm:$0x1] %vm6264_vm13, %v6260_v40 }
 0xbe6   : > { %v6286_v6 = vpop.permute.xlu1 %6285 }
 0xbe7   : > { %6288 = vst.msk [vmem:[#allocation12 + $0x1] sm:$0x1] %vm6264_vm13, %v6286_v6 }
 0xbec   : > { %v6269_v41 = vpop.permute.xlu0 %6268 }
 0xbed   : > { %6274 = vst.msk [vmem:[#allocation12] sm:$0x1] %vm6273_vm2, %v6269_v41 }
 0xbee   : > { %v6292_v26 = vpop.permute.xlu1 %6291 }
 0xbef   : > { %6294 = vst.msk [vmem:[#allocation12 + $0x1] sm:$0x1] %vm6273_vm2, %v6292_v26 }
 0xbf6   : > { %v6297_v47 = vld [vmem:[#allocation12] sm:$0x7] }
 0xbf7   : > { %v6299_v52 = vperm.slane %v6297_v47, 0  ;;  %v6300_v15 = vperm.slane %v6297_v47, 1  ;;  %v6301_v2 = vperm.slane %v6297_v47, 2 }
 0xbf9   : > { %v6305_v4 = vpack.c.bf16 %v6299_v52, %v6299_v52  ;;  %v6306_v45 = vpack.c.bf16 %v6300_v15, %v6300_v15  ;;  %v6307_v48 = vpack.c.bf16 %v6301_v2, %v6301_v2 }
 0xbfb   : > { %6464 = vmatmul.bf16.vlgmr.msra.gmra.mxu3 %v6305_v4  ;;  %6477 = vmatmul.bf16.vlgmr.msrb.gmra.mxu2 %v6306_v45 }
 0xbfc   : > { %6522 = vmatpush.bf16.msra.mxu3 %v6834_v22 }
 0xc00   : > { %6523 = vmatpush.bf16.msra.mxu3 %v6833_v50 }
 0xc0b   : > { %6779 = vmatmul.msk.bf16.vlgmr.msrb.gmra.mxu3 %vm6151_vm14, %v6307_v48 }
 0xc7e   : > { %v6465_v29 = vpop.f32.mrf.mxu3  ;;  %v6478_v9 = vpop.f32.mrf.mxu2 }
 0xc7f   : > { %v6466_v49 = vadd.f32 %v6465_v29, %v6344_v38 }
 0xc81   : > { %v6479_v42 = vadd.f32 %v6478_v9, %v6466_v49 }
 0xc86   : > { %v6467_v27 = vpop.f32.mrf.mxu3  ;;  %v6480_v24 = vpop.f32.mrf.mxu2 }
 0xc8e   : > { %v6491_v60 = vpop.f32.mrf.mxu3 }
 0xc8f   : > { %v6492_v11 = vadd.f32 %v6491_v60, %v6479_v42 }
 0xc91   : > { %v6495_v1 = vpack.c.bf16 %v6492_v11, %v6492_v11 }
 0xc93   : > { %6788 = vmatmul.msk.bf16.vlgmr.msra.gmra.mxu3 %vm6151_vm14, %v6495_v1 }
 0xc96   : > { %v6493_v58 = vpop.f32.mrf.mxu3 }
 0xd16   : > { %v6525_v13 = vpop.f32.mrf.mxu3 }
 0xd17   : > { %v6526_v17 = vadd.f32 %v6525_v13, %v6500_v44 }
 0xd19   : > { %v6789_v14 = vmul.f32 -1.442695, %v6526_v17 }
 0xd1b   : > { %7361 = vpow2.f32 %v6789_v14 }
 0xd1e   : > { %v6527_v54 = vpop.f32.mrf.mxu3 }
 0xd21   : > { %v7362_v56 = vpop.eup %7361 }
 0xd22   : > { %v6532_v19 = vadd.f32 1.0, %v7362_v56 }
 0xd24   : > { %7363 = vrcp.f32 %v6532_v19  ;;  %v6544_v12 = vand.u32 2147483648, %v6532_v19  ;;  %v6542_v55 = vand.u32 2147483647, %v6532_v19  ;;  %vm6538_vm14 = vweird.f32 %v6532_v19 }
 0xd26   : > { %v6545_v3 = vor.u32 1.1754944e-38, %v6544_v12  ;;  %vm6543_vm5 = vcmp.eq.f32.partialorder %v6542_v55, 8.507059e+37 }
 0xd2a   : > { %v7364_v51 = vpop.eup %7363 }
 0xd2b   : > { %v6534_v59 = vmul.f32 %v7364_v51, %v6532_v19  ;;  %vm6539_vm3 = vweird.f32 %v7364_v51 }
 0xd2c   : > { %vm6540_vm4 = vmor %vm6538_vm14, %vm6539_vm3 }
 0xd2d   : > { %v6535_v20 = vsub.f32 1.0, %v6534_v59 }
 0xd2f   : > { %v6536_v8 = vmul.f32 %v7364_v51, %v6535_v20 }
 0xd31   : > { %v6537_v30 = vadd.f32 %v7364_v51, %v6536_v8 }
 0xd33   : > { %v6541_v39 = vsel %vm6540_vm4, %v7364_v51, %v6537_v30 }
 0xd34   : > { %v6546_v53 = vsel %vm6543_vm5, %v6545_v3, %v6541_v39 }
 0xd35   : > { %v6548_v31 = vmul.f32 0.8, %v6546_v53 }
 0xd37   : > { %v6549_v37 = vadd.f32 0.1, %v6548_v31 }
 0xd39   : > { %6551 = vst.msk [vmem:[%s465_s18] sm:$0x1] %vm6550_vm6, %v6549_v37 }
 0xd3a PF: > { %s26_s15 = sadd.s32 1, %s7371_s15  }
 0xd3b   : > { %p23_p4 = scmp.ge.s32.totalorder %s26_s15, 4  }
 0xd3d   :  { %25 = sbr.rel (!%p23_p4) target bundleno = 3 (0x3), region = 118 }

</bundles_post_ra>
